<compile_context>
chip_gen: v6e
topology: v6e:2x2x1
jax: 0.10.0
libtpu: 0.0.40
codegen_flags: <defaults>
</compile_context>

<pallas_src>
import functools

import jax
import jax.numpy as jnp
from jax.experimental import pallas as pl
from jax.experimental.pallas import tpu as pltpu


@functools.lru_cache(maxsize=None)
def _vmem_limit_bytes():
    """Half of physical VMEM, clamped to [32, 96] MiB (v7x: 32 MiB, v5e/v6e: 64 MiB)."""
    try:
        cap = int(pltpu.get_tpu_info().vmem_capacity_bytes)
    except Exception:  # non-TPU / API unavailable -> conservative default
        return 32 << 20
    return int(max(32 << 20, min(96 << 20, cap // 2)))


# ----------------------------------------------------------------------------
# Pallas kernels
# ----------------------------------------------------------------------------
def _conv_mm_kernel(w_ref, b_ref, p_ref, o_ref):
    """o = relu(W @ patches + b): lane-dense (Cout, M-tile) output.
    bf16 MXU operands, f32 accumulate, bf16 store."""
    acc = jnp.dot(w_ref[...], p_ref[...], preferred_element_type=jnp.float32)
    o_ref[...] = jnp.maximum(acc + b_ref[...], 0.0).astype(o_ref.dtype)


def _fc1_partial_kernel(x_ref, w_ref, o_ref):
    """fc1 partial sums: K-tiled accumulation into a per-parallel-index (i.e.
    per-TensorCore on v7x) resident f32 output block."""
    @pl.when(pl.program_id(1) == 0)
    def _():
        o_ref[...] = jnp.zeros_like(o_ref)

    o_ref[...] += jnp.dot(x_ref[...], w_ref[...],
                          preferred_element_type=jnp.float32)


def _fc_tail_kernel(part_ref, b1_ref, w2_ref, b2_ref, w3_ref, b3_ref, o_ref):
    """Sum the two fc1 partials, then fused bias+relu -> fc2+relu -> fc3."""
    h1 = part_ref[0] + part_ref[1] + b1_ref[...]
    h1 = jnp.maximum(h1, 0.0).astype(jnp.bfloat16)
    h2 = jnp.dot(h1, w2_ref[...], preferred_element_type=jnp.float32) + b2_ref[...]
    h2 = jnp.maximum(h2, 0.0).astype(jnp.bfloat16)
    o_ref[...] = (jnp.dot(h2, w3_ref[...], preferred_element_type=jnp.float32)
                  + b3_ref[...])


# ----------------------------------------------------------------------------
# Wrappers
# ----------------------------------------------------------------------------
def _im2col_kmajor(xt, k):
    """xt: (Cin, N, H, W) -> K-major patches (k*k*Cin, N*Ho*Wo).
    K ordered (ki, kj, c), M ordered (n, ho, wo).  The huge flattened spatial
    axis is minor, so the patch array is lane-dense in HBM."""
    c, n, h, w = xt.shape
    ho, wo = h - k + 1, w - k + 1
    taps = [xt[:, :, i:i + ho, j:j + wo].reshape(c, n * ho * wo)
            for i in range(k) for j in range(k)]
    return jnp.concatenate(taps, axis=0), (n, ho, wo)


def conv2d_bias_relu(xt, w2d, b, k, *, tile_m):
    """Valid stride-1 conv: K-major im2col + Pallas MXU matmul with fused
    bias+ReLU.  Grid tiles (and megacore-parallelises) the flattened spatial
    axis; the last (partial) block's OOB columns are computed on unspecified
    data and dropped on store."""
    patches, (n, ho, wo) = _im2col_kmajor(xt, k)
    kk, m = patches.shape
    cout = w2d.shape[0]
    out = pl.pallas_call(
        _conv_mm_kernel,
        out_shape=jax.ShapeDtypeStruct((cout, m), jnp.bfloat16),
        grid=(pl.cdiv(m, tile_m),),
        in_specs=[
            pl.BlockSpec((cout, kk), lambda i: (0, 0)),
            pl.BlockSpec((cout, 1), lambda i: (0, 0)),
            pl.BlockSpec((kk, tile_m), lambda i: (0, i)),
        ],
        out_specs=pl.BlockSpec((cout, tile_m), lambda i: (0, i)),
        compiler_params=pltpu.CompilerParams(
            dimension_semantics=("parallel",),
            vmem_limit_bytes=_vmem_limit_bytes(),
        ),
    )(w2d, b, patches)
    return out.reshape(cout, n, ho, wo)


def maxpool2x2(x):
    """2x2 / stride-2 max pool on (C, N, H, W): fused XLA elementwise max of
    four strided views (ReLU is already fused into the conv epilogue)."""
    a = jnp.maximum(x[:, :, 0::2, 0::2], x[:, :, 0::2, 1::2])
    b = jnp.maximum(x[:, :, 1::2, 0::2], x[:, :, 1::2, 1::2])
    return jnp.maximum(a, b)


def fc_head(flat, p):
    """fc1: the 11 MB bf16 (K,120) weight streams over a (2-way 'parallel') x
    (4 K-step 'arbitrary') grid producing per-core f32 partials; then a tiny
    kernel fuses partial-sum + bias/relu -> fc2 -> relu -> fc3."""
    bsz, kin = flat.shape
    kp, h1 = p["fc1_w"].shape                 # K padded to a multiple of 1024
    h2 = p["fc2_w"].shape[1]
    nout = p["fc3_w"].shape[1]

    n_par, n_k = 2, 4                         # 2 cores x 4 K-steps = 8 K tiles
    tk = kp // (n_par * n_k)                  # 5632, multiple of 128
    x_pad = jnp.pad(flat, ((0, 0), (0, kp - kin)))   # ~180 KB, zero pad rows

    partials = pl.pallas_call(
        _fc1_partial_kernel,
        out_shape=jax.ShapeDtypeStruct((n_par, bsz, h1), jnp.float32),
        grid=(n_par, n_k),
        in_specs=[
            pl.BlockSpec((bsz, tk), lambda pi, k: (0, pi * n_k + k)),
            pl.BlockSpec((tk, h1), lambda pi, k: (pi * n_k + k, 0)),
        ],
        out_specs=pl.BlockSpec((None, bsz, h1), lambda pi, k: (pi, 0, 0)),
        compiler_params=pltpu.CompilerParams(
            dimension_semantics=("parallel", "arbitrary"),
            vmem_limit_bytes=_vmem_limit_bytes(),
        ),
    )(x_pad, p["fc1_w"])

    return pl.pallas_call(
        _fc_tail_kernel,
        out_shape=jax.ShapeDtypeStruct((bsz, nout), jnp.float32),
        grid=(1,),
        in_specs=[
            pl.BlockSpec((n_par, bsz, h1), lambda i: (0, 0, 0)),
            pl.BlockSpec((1, h1), lambda i: (0, 0)),
            pl.BlockSpec((h1, h2), lambda i: (0, 0)),
            pl.BlockSpec((1, h2), lambda i: (0, 0)),
            pl.BlockSpec((h2, nout), lambda i: (0, 0)),
            pl.BlockSpec((1, nout), lambda i: (0, 0)),
        ],
        out_specs=pl.BlockSpec((bsz, nout), lambda i: (0, 0)),
        compiler_params=pltpu.CompilerParams(
            dimension_semantics=("arbitrary",),
            vmem_limit_bytes=_vmem_limit_bytes(),
        ),
    )(partials, p["fc1_b"], p["fc2_w"], p["fc2_b"], p["fc3_w"], p["fc3_b"])


# ----------------------------------------------------------------------------
# Parameters (deterministic synthetic init; same logical shapes as the module)
# ----------------------------------------------------------------------------
def _prep_conv_w(w):
    """PyTorch (Cout,Cin,kh,kw) -> (Cout, kh*kw*Cin) bf16, matching the K-major
    im2col row order (ki, kj, c)."""
    cout, cin, kh, kw = w.shape
    return (jnp.transpose(w, (0, 2, 3, 1))
            .reshape(cout, kh * kw * cin).astype(jnp.bfloat16))


def init_params(key):
    ks = jax.random.split(key, 10)

    def dense(k, fan_in, shape):
        return jax.random.normal(k, shape, jnp.float32) / jnp.sqrt(jnp.float32(fan_in))

    # PyTorch-layout weights, converted to kernel layouts below.
    w_c1 = dense(ks[0], 3 * 5 * 5, (6, 3, 5, 5))
    w_c2 = dense(ks[1], 6 * 5 * 5, (16, 6, 5, 5))
    k_fc1 = 16 * 53 * 53                                # 44944 (nn.Linear(44944, 120))
    w_fc1 = dense(ks[2], k_fc1, (120, k_fc1))           # torch (out, in)
    w_fc2 = dense(ks[3], 120, (84, 120))
    w_fc3 = dense(ks[4], 84, (10, 84))

    k_pad = ((k_fc1 + 1023) // 1024) * 1024             # 45056: eight (8,128)-aligned K tiles
    # torch.flatten on NCHW orders features (c, h, w); our flatten does too, so
    # fc1 rows need no permutation -- transpose to (K, N) and zero-pad K once.
    fc1_w = jnp.transpose(w_fc1).astype(jnp.bfloat16)
    fc1_w = jnp.pad(fc1_w, ((0, k_pad - k_fc1), (0, 0)))

    return {
        "c1_w": _prep_conv_w(w_c1),                                   # (6, 75)   bf16
        "c1_b": 0.01 * jax.random.normal(ks[5], (6, 1), jnp.float32),
        "c2_w": _prep_conv_w(w_c2),                                   # (16, 150) bf16
        "c2_b": 0.01 * jax.random.normal(ks[6], (16, 1), jnp.float32),
        "fc1_w": fc1_w,                                               # (45056, 120) bf16
        "fc1_b": 0.01 * jax.random.normal(ks[7], (1, 120), jnp.float32),
        "fc2_w": jnp.transpose(w_fc2).astype(jnp.bfloat16),           # (120, 84) bf16
        "fc2_b": 0.01 * jax.random.normal(ks[8], (1, 84), jnp.float32),
        "fc3_w": jnp.transpose(w_fc3).astype(jnp.bfloat16),           # (84, 10)  bf16
        "fc3_b": 0.01 * jax.random.normal(ks[9], (1, 10), jnp.float32),
    }


# ----------------------------------------------------------------------------
# Forward pass (mirrors Net.forward)
# ----------------------------------------------------------------------------
def net_forward(params, x_nchw):
    # NCHW f32 -> channel-major (C, N, H, W) bf16: a ~0.7 MB copy that keeps
    # every intermediate lane-dense (no 3->128 / 6->128 / 16->128 lane padding).
    x = jnp.transpose(x_nchw, (1, 0, 2, 3)).astype(jnp.bfloat16)
    x = conv2d_bias_relu(x, params["c1_w"], params["c1_b"], 5, tile_m=12288)  # (6,N,220,220)
    x = maxpool2x2(x)                                                         # (6,N,110,110)
    x = conv2d_bias_relu(x, params["c2_w"], params["c2_b"], 5, tile_m=2816)   # (16,N,106,106)
    x = maxpool2x2(x)                                                         # (16,N,53,53)
    n = x.shape[1]
    # (C,N,H,W) -> (N, C*H*W): same (c,h,w) feature order as torch.flatten.
    flat = jnp.transpose(x, (1, 0, 2, 3)).reshape(n, -1)
    return fc_head(flat, params)                                              # (N, 10) f32


# ----------------------------------------------------------------------------
if __name__ == "__main__":
    key = jax.random.PRNGKey(0)
    pkey, xkey = jax.random.split(key)

    # nn.Linear(44944=16*53*53, 120) forces a 3x224x224 input; batch is free.
    batch, in_ch, spatial = 2, 3, 224
    params = init_params(pkey)
    x = jax.random.normal(xkey, (batch, in_ch, spatial, spatial), jnp.float32)

    logits = jax.jit(net_forward)(params, x)
    logits = jax.block_until_ready(logits)

    assert logits.shape == (batch, 10), logits.shape
    assert bool(jnp.all(jnp.isfinite(logits)))
    print("KERNEL_OK")
</pallas_src>

<mosaic_0001>
module attributes {stable_mosaic.version = 11 : i64} {
  func.func @_conv_mm_kernel(%arg0: i32, %arg1: memref<6x75xbf16, #tpu.memory_space<vmem>>, %arg2: memref<6x1xf32, #tpu.memory_space<vmem>>, %arg3: memref<75x12288xbf16, #tpu.memory_space<vmem>>, %arg4: memref<6x12288xbf16, #tpu.memory_space<vmem>>) attributes {dimension_semantics = [#tpu.dimension_semantics<parallel>], iteration_bounds = array<i64: 8>, scalar_prefetch = 0 : i64, scratch_operands = 0 : i64, tpu.core_type = #tpu.core_type<tc>, window_params = [{pipeline_mode = #tpu.pipeline_mode<synchronous>, transform_indices = @transform_0, window_bounds = array<i64: 6, 75>}, {pipeline_mode = #tpu.pipeline_mode<synchronous>, transform_indices = @transform_1, window_bounds = array<i64: 6, 1>}, {transform_indices = @transform_2, window_bounds = array<i64: 75, 12288>}, {transform_indices = @transform_3, window_bounds = array<i64: 6, 12288>}]} {
    %c0 = arith.constant 0 : index
    %c0_0 = arith.constant 0 : index
    %0 = vector.load %arg1[%c0, %c0_0] : memref<6x75xbf16, #tpu.memory_space<vmem>>, vector<6x75xbf16>
    %c0_1 = arith.constant 0 : index
    %c0_2 = arith.constant 0 : index
    %1 = vector.load %arg3[%c0_1, %c0_2] : memref<75x12288xbf16, #tpu.memory_space<vmem>>, vector<75x12288xbf16>
    %cst = arith.constant dense<0.000000e+00> : vector<6x12288xf32>
    %2 = tpu.matmul %0, %1, %cst {dimension_numbers = #tpu.dot_dimension_numbers<[1], [0], [0], [1], [0, 0, 1, 1], [], []>} : vector<6x75xbf16>, vector<75x12288xbf16>, vector<6x12288xf32> -> vector<6x12288xf32>
    %c0_3 = arith.constant 0 : index
    %c0_4 = arith.constant 0 : index
    %3 = vector.load %arg2[%c0_3, %c0_4] : memref<6x1xf32, #tpu.memory_space<vmem>>, vector<6x1xf32>
    %4 = vector.broadcast %3 : vector<6x1xf32> to vector<6x12288xf32>
    %5 = arith.addf %2, %4 : vector<6x12288xf32>
    %cst_5 = arith.constant 0.000000e+00 : f32
    %6 = vector.broadcast %cst_5 : f32 to vector<6x12288xf32>
    %7 = arith.maximumf %5, %6 : vector<6x12288xf32>
    %8 = arith.truncf %7 : vector<6x12288xf32> to vector<6x12288xbf16>
    %c0_6 = arith.constant 0 : index
    %c0_7 = arith.constant 0 : index
    %9 = vector.load %arg4[%c0_6, %c0_7] : memref<6x12288xbf16, #tpu.memory_space<vmem>>, vector<6x12288xbf16>
    tpu.vector_store %arg4[%c0_6, %c0_7], %8 {strides = array<i32>} : memref<6x12288xbf16, #tpu.memory_space<vmem>>, vector<6x12288xbf16>,
    return
  }
  func.func @transform_0(%arg0: i32) -> (i32, i32) {
    %c0_i32 = arith.constant 0 : i32
    %c0_i32_0 = arith.constant 0 : i32
    %c0_i32_1 = arith.constant 0 : i32
    return %c0_i32, %c0_i32_0 : i32, i32
  }
  func.func @transform_1(%arg0: i32) -> (i32, i32) {
    %c0_i32 = arith.constant 0 : i32
    %c0_i32_0 = arith.constant 0 : i32
    %c0_i32_1 = arith.constant 0 : i32
    return %c0_i32, %c0_i32_0 : i32, i32
  }
  func.func @transform_2(%arg0: i32) -> (i32, i32) {
    %c0_i32 = arith.constant 0 : i32
    %c0_i32_0 = arith.constant 0 : i32
    return %c0_i32, %arg0 : i32, i32
  }
  func.func @transform_3(%arg0: i32) -> (i32, i32) {
    %c0_i32 = arith.constant 0 : i32
    %c0_i32_0 = arith.constant 0 : i32
    return %c0_i32, %arg0 : i32, i32
  }
}

module attributes {stable_mosaic.version = 11 : i64} {
  func.func @_conv_mm_kernel(%arg0: i32, %arg1: memref<16x150xbf16, #tpu.memory_space<vmem>>, %arg2: memref<16x1xf32, #tpu.memory_space<vmem>>, %arg3: memref<150x2816xbf16, #tpu.memory_space<vmem>>, %arg4: memref<16x2816xbf16, #tpu.memory_space<vmem>>) attributes {dimension_semantics = [#tpu.dimension_semantics<parallel>], iteration_bounds = array<i64: 8>, scalar_prefetch = 0 : i64, scratch_operands = 0 : i64, tpu.core_type = #tpu.core_type<tc>, window_params = [{pipeline_mode = #tpu.pipeline_mode<synchronous>, transform_indices = @transform_0, window_bounds = array<i64: 16, 150>}, {pipeline_mode = #tpu.pipeline_mode<synchronous>, transform_indices = @transform_1, window_bounds = array<i64: 16, 1>}, {transform_indices = @transform_2, window_bounds = array<i64: 150, 2816>}, {transform_indices = @transform_3, window_bounds = array<i64: 16, 2816>}]} {
    %c0 = arith.constant 0 : index
    %c0_0 = arith.constant 0 : index
    %0 = vector.load %arg1[%c0, %c0_0] : memref<16x150xbf16, #tpu.memory_space<vmem>>, vector<16x150xbf16>
    %c0_1 = arith.constant 0 : index
    %c0_2 = arith.constant 0 : index
    %1 = vector.load %arg3[%c0_1, %c0_2] : memref<150x2816xbf16, #tpu.memory_space<vmem>>, vector<150x2816xbf16>
    %cst = arith.constant dense<0.000000e+00> : vector<16x2816xf32>
    %2 = tpu.matmul %0, %1, %cst {dimension_numbers = #tpu.dot_dimension_numbers<[1], [0], [0], [1], [0, 0, 1, 1], [], []>} : vector<16x150xbf16>, vector<150x2816xbf16>, vector<16x2816xf32> -> vector<16x2816xf32>
    %c0_3 = arith.constant 0 : index
    %c0_4 = arith.constant 0 : index
    %3 = vector.load %arg2[%c0_3, %c0_4] : memref<16x1xf32, #tpu.memory_space<vmem>>, vector<16x1xf32>
    %4 = vector.broadcast %3 : vector<16x1xf32> to vector<16x2816xf32>
    %5 = arith.addf %2, %4 : vector<16x2816xf32>
    %cst_5 = arith.constant 0.000000e+00 : f32
    %6 = vector.broadcast %cst_5 : f32 to vector<16x2816xf32>
    %7 = arith.maximumf %5, %6 : vector<16x2816xf32>
    %8 = arith.truncf %7 : vector<16x2816xf32> to vector<16x2816xbf16>
    %c0_6 = arith.constant 0 : index
    %c0_7 = arith.constant 0 : index
    %9 = vector.load %arg4[%c0_6, %c0_7] : memref<16x2816xbf16, #tpu.memory_space<vmem>>, vector<16x2816xbf16>
    tpu.vector_store %arg4[%c0_6, %c0_7], %8 {strides = array<i32>} : memref<16x2816xbf16, #tpu.memory_space<vmem>>, vector<16x2816xbf16>,
    return
  }
  func.func @transform_0(%arg0: i32) -> (i32, i32) {
    %c0_i32 = arith.constant 0 : i32
    %c0_i32_0 = arith.constant 0 : i32
    %c0_i32_1 = arith.constant 0 : i32
    return %c0_i32, %c0_i32_0 : i32, i32
  }
  func.func @transform_1(%arg0: i32) -> (i32, i32) {
    %c0_i32 = arith.constant 0 : i32
    %c0_i32_0 = arith.constant 0 : i32
    %c0_i32_1 = arith.constant 0 : i32
    return %c0_i32, %c0_i32_0 : i32, i32
  }
  func.func @transform_2(%arg0: i32) -> (i32, i32) {
    %c0_i32 = arith.constant 0 : i32
    %c0_i32_0 = arith.constant 0 : i32
    return %c0_i32, %arg0 : i32, i32
  }
  func.func @transform_3(%arg0: i32) -> (i32, i32) {
    %c0_i32 = arith.constant 0 : i32
    %c0_i32_0 = arith.constant 0 : i32
    return %c0_i32, %arg0 : i32, i32
  }
}

module attributes {stable_mosaic.version = 11 : i64} {
  func.func @_fc1_partial_kernel(%arg0: i32, %arg1: i32, %arg2: memref<2x5632xbf16, #tpu.memory_space<vmem>>, %arg3: memref<5632x120xbf16, #tpu.memory_space<vmem>>, %arg4: memref<1x2x120xf32, #tpu.memory_space<vmem>>) attributes {dimension_semantics = [#tpu.dimension_semantics<parallel>, #tpu.dimension_semantics<arbitrary>], iteration_bounds = array<i64: 2, 4>, scalar_prefetch = 0 : i64, scratch_operands = 0 : i64, tpu.core_type = #tpu.core_type<tc>, window_params = [{transform_indices = @transform_0, window_bounds = array<i64: 2, 5632>}, {transform_indices = @transform_1, window_bounds = array<i64: 5632, 120>}, {transform_indices = @transform_2, window_bounds = array<i64: 1, 2, 120>}]} {
    %c0_i32 = arith.constant 0 : i32
    %0 = arith.cmpi eq, %arg1, %c0_i32 : i32
    %1 = arith.extui %0 : i1 to i32
    %c0_i32_0 = arith.constant 0 : i32
    %2 = arith.cmpi ne, %1, %c0_i32_0 : i32
    scf.if %2 {
      %cst_10 = arith.constant 0.000000e+00 : f32
      %12 = vector.broadcast %cst_10 : f32 to vector<2x120xf32>
      %c0_11 = arith.constant 0 : index
      %c0_12 = arith.constant 0 : index
      %c0_13 = arith.constant 0 : index
      %13 = vector.load %arg4[%c0_11, %c0_12, %c0_13] : memref<1x2x120xf32, #tpu.memory_space<vmem>>, vector<1x2x120xf32>
      %14 = vector.shape_cast %13 : vector<1x2x120xf32> to vector<2x120xf32>
      %15 = vector.shape_cast %12 : vector<2x120xf32> to vector<1x2x120xf32>
      tpu.vector_store %arg4[%c0_11, %c0_12, %c0_13], %15 {strides = array<i32>} : memref<1x2x120xf32, #tpu.memory_space<vmem>>, vector<1x2x120xf32>,
    } else {
    }
    %c0 = arith.constant 0 : index
    %c0_1 = arith.constant 0 : index
    %c0_2 = arith.constant 0 : index
    %3 = vector.load %arg4[%c0, %c0_1, %c0_2] : memref<1x2x120xf32, #tpu.memory_space<vmem>>, vector<1x2x120xf32>
    %4 = vector.shape_cast %3 : vector<1x2x120xf32> to vector<2x120xf32>
    %c0_3 = arith.constant 0 : index
    %c0_4 = arith.constant 0 : index
    %5 = vector.load %arg2[%c0_3, %c0_4] : memref<2x5632xbf16, #tpu.memory_space<vmem>>, vector<2x5632xbf16>
    %c0_5 = arith.constant 0 : index
    %c0_6 = arith.constant 0 : index
    %6 = vector.load %arg3[%c0_5, %c0_6] : memref<5632x120xbf16, #tpu.memory_space<vmem>>, vector<5632x120xbf16>
    %cst = arith.constant dense<0.000000e+00> : vector<2x120xf32>
    %7 = tpu.matmul %5, %6, %cst {dimension_numbers = #tpu.dot_dimension_numbers<[1], [0], [0], [1], [0, 0, 1, 1], [], []>} : vector<2x5632xbf16>, vector<5632x120xbf16>, vector<2x120xf32> -> vector<2x120xf32>
    %8 = arith.addf %4, %7 : vector<2x120xf32>
    %c0_7 = arith.constant 0 : index
    %c0_8 = arith.constant 0 : index
    %c0_9 = arith.constant 0 : index
    %9 = vector.load %arg4[%c0_7, %c0_8, %c0_9] : memref<1x2x120xf32, #tpu.memory_space<vmem>>, vector<1x2x120xf32>
    %10 = vector.shape_cast %9 : vector<1x2x120xf32> to vector<2x120xf32>
    %11 = vector.shape_cast %8 : vector<2x120xf32> to vector<1x2x120xf32>
    tpu.vector_store %arg4[%c0_7, %c0_8, %c0_9], %11 {strides = array<i32>} : memref<1x2x120xf32, #tpu.memory_space<vmem>>, vector<1x2x120xf32>,
    return
  }
  func.func @transform_0(%arg0: i32, %arg1: i32) -> (i32, i32) {
    %c4_i32 = arith.constant 4 : i32
    %0 = arith.muli %arg0, %c4_i32 : i32
    %1 = arith.addi %0, %arg1 : i32
    %c0_i32 = arith.constant 0 : i32
    %c0_i32_0 = arith.constant 0 : i32
    return %c0_i32, %1 : i32, i32
  }
  func.func @transform_1(%arg0: i32, %arg1: i32) -> (i32, i32) {
    %c4_i32 = arith.constant 4 : i32
    %0 = arith.muli %arg0, %c4_i32 : i32
    %1 = arith.addi %0, %arg1 : i32
    %c0_i32 = arith.constant 0 : i32
    %c0_i32_0 = arith.constant 0 : i32
    return %1, %c0_i32 : i32, i32
  }
  func.func @transform_2(%arg0: i32, %arg1: i32) -> (i32, i32, i32) {
    %c0_i32 = arith.constant 0 : i32
    %c0_i32_0 = arith.constant 0 : i32
    %c0_i32_1 = arith.constant 0 : i32
    return %arg0, %c0_i32, %c0_i32_0 : i32, i32, i32
  }
}

module attributes {stable_mosaic.version = 11 : i64} {
  func.func @_fc_tail_kernel(%arg0: i32, %arg1: memref<2x2x120xf32, #tpu.memory_space<vmem>>, %arg2: memref<1x120xf32, #tpu.memory_space<vmem>>, %arg3: memref<120x84xbf16, #tpu.memory_space<vmem>>, %arg4: memref<1x84xf32, #tpu.memory_space<vmem>>, %arg5: memref<84x10xbf16, #tpu.memory_space<vmem>>, %arg6: memref<1x10xf32, #tpu.memory_space<vmem>>, %arg7: memref<2x10xf32, #tpu.memory_space<vmem>>) attributes {dimension_semantics = [#tpu.dimension_semantics<arbitrary>], iteration_bounds = array<i64: 1>, scalar_prefetch = 0 : i64, scratch_operands = 0 : i64, tpu.core_type = #tpu.core_type<tc>, window_params = [{pipeline_mode = #tpu.pipeline_mode<synchronous>, transform_indices = @transform_0, window_bounds = array<i64: 2, 2, 120>}, {pipeline_mode = #tpu.pipeline_mode<synchronous>, transform_indices = @transform_1, window_bounds = array<i64: 1, 120>}, {pipeline_mode = #tpu.pipeline_mode<synchronous>, transform_indices = @transform_2, window_bounds = array<i64: 120, 84>}, {pipeline_mode = #tpu.pipeline_mode<synchronous>, transform_indices = @transform_3, window_bounds = array<i64: 1, 84>}, {pipeline_mode = #tpu.pipeline_mode<synchronous>, transform_indices = @transform_4, window_bounds = array<i64: 84, 10>}, {pipeline_mode = #tpu.pipeline_mode<synchronous>, transform_indices = @transform_5, window_bounds = array<i64: 1, 10>}, {pipeline_mode = #tpu.pipeline_mode<synchronous>, transform_indices = @transform_6, window_bounds = array<i64: 2, 10>}]} {
    %c0 = arith.constant 0 : index
    %c0_0 = arith.constant 0 : index
    %c0_1 = arith.constant 0 : index
    %0 = vector.load %arg1[%c0, %c0_0, %c0_1] : memref<2x2x120xf32, #tpu.memory_space<vmem>>, vector<1x2x120xf32>
    %1 = vector.shape_cast %0 : vector<1x2x120xf32> to vector<2x120xf32>
    %c1 = arith.constant 1 : index
    %c0_2 = arith.constant 0 : index
    %c0_3 = arith.constant 0 : index
    %2 = vector.load %arg1[%c1, %c0_2, %c0_3] : memref<2x2x120xf32, #tpu.memory_space<vmem>>, vector<1x2x120xf32>
    %3 = vector.shape_cast %2 : vector<1x2x120xf32> to vector<2x120xf32>
    %4 = arith.addf %1, %3 : vector<2x120xf32>
    %c0_4 = arith.constant 0 : index
    %c0_5 = arith.constant 0 : index
    %5 = vector.load %arg2[%c0_4, %c0_5] : memref<1x120xf32, #tpu.memory_space<vmem>>, vector<1x120xf32>
    %6 = vector.broadcast %5 : vector<1x120xf32> to vector<2x120xf32>
    %7 = arith.addf %4, %6 : vector<2x120xf32>
    %cst = arith.constant 0.000000e+00 : f32
    %8 = vector.broadcast %cst : f32 to vector<2x120xf32>
    %9 = arith.maximumf %7, %8 : vector<2x120xf32>
    %10 = arith.truncf %9 : vector<2x120xf32> to vector<2x120xbf16>
    %c0_6 = arith.constant 0 : index
    %c0_7 = arith.constant 0 : index
    %11 = vector.load %arg3[%c0_6, %c0_7] : memref<120x84xbf16, #tpu.memory_space<vmem>>, vector<120x84xbf16>
    %cst_8 = arith.constant dense<0.000000e+00> : vector<2x84xf32>
    %12 = tpu.matmul %10, %11, %cst_8 {dimension_numbers = #tpu.dot_dimension_numbers<[1], [0], [0], [1], [0, 0, 1, 1], [], []>} : vector<2x120xbf16>, vector<120x84xbf16>, vector<2x84xf32> -> vector<2x84xf32>
    %c0_9 = arith.constant 0 : index
    %c0_10 = arith.constant 0 : index
    %13 = vector.load %arg4[%c0_9, %c0_10] : memref<1x84xf32, #tpu.memory_space<vmem>>, vector<1x84xf32>
    %14 = vector.broadcast %13 : vector<1x84xf32> to vector<2x84xf32>
    %15 = arith.addf %12, %14 : vector<2x84xf32>
    %cst_11 = arith.constant 0.000000e+00 : f32
    %16 = vector.broadcast %cst_11 : f32 to vector<2x84xf32>
    %17 = arith.maximumf %15, %16 : vector<2x84xf32>
    %18 = arith.truncf %17 : vector<2x84xf32> to vector<2x84xbf16>
    %c0_12 = arith.constant 0 : index
    %c0_13 = arith.constant 0 : index
    %19 = vector.load %arg5[%c0_12, %c0_13] : memref<84x10xbf16, #tpu.memory_space<vmem>>, vector<84x10xbf16>
    %cst_14 = arith.constant dense<0.000000e+00> : vector<2x10xf32>
    %20 = tpu.matmul %18, %19, %cst_14 {dimension_numbers = #tpu.dot_dimension_numbers<[1], [0], [0], [1], [0, 0, 1, 1], [], []>} : vector<2x84xbf16>, vector<84x10xbf16>, vector<2x10xf32> -> vector<2x10xf32>
    %c0_15 = arith.constant 0 : index
    %c0_16 = arith.constant 0 : index
    %21 = vector.load %arg6[%c0_15, %c0_16] : memref<1x10xf32, #tpu.memory_space<vmem>>, vector<1x10xf32>
    %22 = vector.broadcast %21 : vector<1x10xf32> to vector<2x10xf32>
    %23 = arith.addf %20, %22 : vector<2x10xf32>
    %c0_17 = arith.constant 0 : index
    %c0_18 = arith.constant 0 : index
    %24 = vector.load %arg7[%c0_17, %c0_18] : memref<2x10xf32, #tpu.memory_space<vmem>>, vector<2x10xf32>
    tpu.vector_store %arg7[%c0_17, %c0_18], %23 {strides = array<i32>} : memref<2x10xf32, #tpu.memory_space<vmem>>, vector<2x10xf32>,
    return
  }
  func.func @transform_0(%arg0: i32) -> (i32, i32, i32) {
    %c0_i32 = arith.constant 0 : i32
    %c0_i32_0 = arith.constant 0 : i32
    %c0_i32_1 = arith.constant 0 : i32
    %c0_i32_2 = arith.constant 0 : i32
    return %c0_i32, %c0_i32_0, %c0_i32_1 : i32, i32, i32
  }
  func.func @transform_1(%arg0: i32) -> (i32, i32) {
    %c0_i32 = arith.constant 0 : i32
    %c0_i32_0 = arith.constant 0 : i32
    %c0_i32_1 = arith.constant 0 : i32
    return %c0_i32, %c0_i32_0 : i32, i32
  }
  func.func @transform_2(%arg0: i32) -> (i32, i32) {
    %c0_i32 = arith.constant 0 : i32
    %c0_i32_0 = arith.constant 0 : i32
    %c0_i32_1 = arith.constant 0 : i32
    return %c0_i32, %c0_i32_0 : i32, i32
  }
  func.func @transform_3(%arg0: i32) -> (i32, i32) {
    %c0_i32 = arith.constant 0 : i32
    %c0_i32_0 = arith.constant 0 : i32
    %c0_i32_1 = arith.constant 0 : i32
    return %c0_i32, %c0_i32_0 : i32, i32
  }
  func.func @transform_4(%arg0: i32) -> (i32, i32) {
    %c0_i32 = arith.constant 0 : i32
    %c0_i32_0 = arith.constant 0 : i32
    %c0_i32_1 = arith.constant 0 : i32
    return %c0_i32, %c0_i32_0 : i32, i32
  }
  func.func @transform_5(%arg0: i32) -> (i32, i32) {
    %c0_i32 = arith.constant 0 : i32
    %c0_i32_0 = arith.constant 0 : i32
    %c0_i32_1 = arith.constant 0 : i32
    return %c0_i32, %c0_i32_0 : i32, i32
  }
  func.func @transform_6(%arg0: i32) -> (i32, i32) {
    %c0_i32 = arith.constant 0 : i32
    %c0_i32_0 = arith.constant 0 : i32
    %c0_i32_1 = arith.constant 0 : i32
    return %c0_i32, %c0_i32_0 : i32, i32
  }
}

</mosaic_0001>

<bundles_post_ra>
// kernel: net_forward.4
= control target key start
LH: loop header
LB: loop body
LE: loop exit
PB: predicated region body
PF: predicated region fallthrough
CT: control target
= control target key end

     0   :  { %s8237_s12 = smov 0   ;;  %s8239_s13 = smov 0   ;;  %s10172_s0 = inlined_call_operand.vmem [shape: bf16[6,75], index: 0, kind: input, shape index: {}]   ;;  %s10173_s1 = inlined_call_operand.vmem [shape: f32[6,1], index: 1, kind: input, shape index: {}]   ;;  %s10174_s2 = inlined_call_operand.vmem [shape: bf16[75,96800], index: 2, kind: input, shape index: {}]   ;;  %s10175_s3 = inlined_call_operand.vmem [shape: bf16[6,96800], index: 3, kind: output, shape index: {}]  }
   0x1   :  { %s8241_s14 = smov 0  }
   0x2 LB: > { %s8253_s15 = sadd.s32 4294967295, %s8081_s14   ;;  %s8256_s16 = sadd.s32 1, %s8081_s14   ;;  %s8081_s14 = sphi %s8241_s14, %s10205_s14   ;;  %s8077_s13 = sphi %s8239_s13, %s10204_s13   ;;  %s8073_s12 = sphi %s8237_s12, %s10203_s12  }
   0x3   : > { %s59_s17 = ssub.s32 %s8081_s14, %s8256_s16  ;;  %s62_s18 = sadd.s32 1, %s8077_s13 }
   0x4   : > { %p60_p0 = scmp.eq.s32.totalorder %s59_s17, 0  ;;  %p69_p1 = scmp.ne.s32.totalorder %s8077_s13, %s8073_s12 }
   0x5   : > { %p70_p2 = scmp.eq.s32.totalorder %s8081_s14, 0  ;;  %p99_p3 = scmp.eq.s32.totalorder %s8253_s15, 7 }
   0x6   : > { %s8266_s19 = scalar_select %p60_p0, %s8077_s13, %s62_s18  }
   0x7   : > { %p71_p4 = por %p70_p2, %p69_p1  ;;  %p8268_p5 = por %p99_p3, %p69_p1 }
   0x8   : > { %p6947_p6 = scmp.ge.s32.totalorder %s8081_s14, 8 }
   0xa   : > { %127 = sbr.rel (%p6947_p6) target bundleno = 200 (0xc8), region = 24 }
   0xf   : > { %130 = sbr.rel (!%p71_p4) target bundleno = 200 (0xc8), region = 28  ;;  %s132_s21 = sand.u32 (%p71_p4), 1, %s8077_s13  }
  0x10   : > { %s135_s22 = smul.u32 (%p71_p4), 96, %s8081_s14 }
  0x11   : > { %s7638_s23 = smul.u32 (%p71_p4), 3840, %s132_s21 }
  0x12   : > { %s136_s24 = ssub.s32 (%p71_p4), 757, %s135_s22  ;;  %s7580_s25 = smul.u32 (%p71_p4), 384, %s8081_s14 }
  0x13   : > { %p137_p7 = scmp.lt.s32.totalorder (%p71_p4), %s136_s24, 96  ;;  %s8283_s4 = scalar_lea.vmem (%p71_p4), [#allocation2], %s7638_s23  }
  0x14   : > { %s8279_s28 = scalar_lea.vmem %s10174_s2, %s7580_s25  }
  0x15   : > { %s10207_s24 = smov (!%p137_p7, %s136_s24), 96 }
  0x16   : > { %s139_s29 = smul.u32 640, %s10207_s24  ;;  %s8281_s30 = sshll.u32 %s10207_s24, 2 }
  0x18   : > { %p6951_p8 = scmp.eq.s32.totalorder %s139_s29, 0 }
  0x19   : > { %p147_p9 = scmp.lt.u32.totalorder (!%p6951_p8), %s8281_s30, 8 }
  0x1a   : > { %146 = sbr.rel (%p6951_p8) target bundleno = 200 (0xc8), region = 32 }
  0x1f   : > { %150 = sbr.rel (%p147_p9) target bundleno = 183 (0xb7), region = 36  ;;  %s8287_s5 = sand.u32 (!%p147_p9), 7, %s8281_s30  }
  0x20   : > { %p185_p10 = scmp.eq.s32.totalorder (!%p147_p9), %s8287_s5, 0  ;;  %p6952_p11 = scmp.ne.s32.totalorder (!%p147_p9), %s8287_s5, 0 }
  0x24   : > { %188 = sbr.rel (%p6952_p11) target bundleno = 103 (0x67), region = 51  ;;  %s189_s6 = sshrl.u32 (!%p6952_p11), %s8281_s30, 3 }
  0x25   : > { %s8294_s7 = sshrl.u32 (!%p6952_p11), %s189_s6, 3 }
  0x26   : > { %p6953_p12 = scmp.le.s32.totalorder (!%p6952_p11), %s8294_s7, 0 }
  0x29   : > { %6817 = sbr.rel (%p6953_p12) target bundleno = 87 (0x57), region = 229  ;;  %s10177_s8 = smov (!%p6953_p12), %s8283_s4 }
  0x2a   : > { %s10178_s9 = smov (!%p6953_p12), %s8279_s28  ;;  %s8303_s10 = smov (!%p6953_p12), 0  }
  0x2b   : > { %s8305_s11 = smov (!%p6953_p12), 0  }
  0x2e LB: >> { %v202_v0 = vld [vmem:[%s8089_s9] sm:$0xff]  ;;  %v204_v1 = vld [vmem:[%s8089_s9 + $0x8] sm:$0xff]  ;;  %v206_v2 = vld [vmem:[%s8089_s9 + $0x10] sm:$0xff]  ;;  %s362_s17 = sadd.s32 1, %s8093_s10  ;;  %s196_s11 = sadd.s32 1, %s8097_s11   ;;  %s8097_s11 = sphi %s8305_s11, %s196_s11   ;;  %s8093_s10 = sphi %s8303_s10, %s10181_s10   ;;  %s8089_s9 = sphi %s10178_s9, %s10180_s9   ;;  %s8085_s8 = sphi %s10177_s8, %s10179_s8  }
  0x2f   : >> { %203 = vst [vmem:[%s8085_s8] sm:$0xff] %v202_v0  ;;  %205 = vst [vmem:[%s8085_s8 + $0x8] sm:$0xff] %v204_v1  ;;  %v208_v3 = vld [vmem:[%s8089_s9 + $0x18] sm:$0xff]  ;;  %v210_v4 = vld [vmem:[%s8089_s9 + $0x20] sm:$0xff]  ;;  %p363_p13 = scmp.ge.s32.totalorder %s362_s17, %s8294_s7  ;;  %p195_p0 = scmp.ge.s32.totalorder %s196_s11, %s8294_s7 }
  0x30   : >> { %207 = vst [vmem:[%s8085_s8 + $0x10] sm:$0xff] %v206_v2  ;;  %v212_v5 = vld [vmem:[%s8089_s9 + $0x28] sm:$0xff]  ;;  %209 = vst [vmem:[%s8085_s8 + $0x18] sm:$0xff] %v208_v3  ;;  %v214_v6 = vld [vmem:[%s8089_s9 + $0x30] sm:$0xff] }
  0x31   : >> { %211 = vst [vmem:[%s8085_s8 + $0x20] sm:$0xff] %v210_v4  ;;  %213 = vst [vmem:[%s8085_s8 + $0x28] sm:$0xff] %v212_v5  ;;  %v216_v7 = vld [vmem:[%s8089_s9 + $0x38] sm:$0xff]  ;;  %v222_v10 = vld [vmem:[%s8089_s9 + $0xbe4] sm:$0xff]  ;;  %s10209_s17 = smov (%p363_p13, %s362_s17), 0 }
  0x32   : >> { %v218_v8 = vld [vmem:[%s8089_s9 + $0xbd4] sm:$0xff]  ;;  %215 = vst [vmem:[%s8085_s8 + $0x30] sm:$0xff] %v214_v6  ;;  %217 = vst [vmem:[%s8085_s8 + $0x38] sm:$0xff] %v216_v7  ;;  %v220_v9 = vld [vmem:[%s8089_s9 + $0xbdc] sm:$0xff]  ;;  %s6954_s18 = sshll.u32 %s10209_s17, 6  ;;  %s10181_s10 = smov %s10209_s17 }
  0x33   : >> { %219 = vst [vmem:[%s8085_s8 + $0x180] sm:$0xff] %v218_v8  ;;  %v224_v11 = vld [vmem:[%s8089_s9 + $0xbec] sm:$0xff]  ;;  %221 = vst [vmem:[%s8085_s8 + $0x188] sm:$0xff] %v220_v9  ;;  %v226_v12 = vld [vmem:[%s8089_s9 + $0xbf4] sm:$0xff]  ;;  %s8361_s21 = scalar_lea.vmem %s8279_s28, %s6954_s18   ;;  %s8364_s22 = scalar_lea.vmem %s8283_s4, %s6954_s18 [#allocation2]  }
  0x34   : >> { %223 = vst [vmem:[%s8085_s8 + $0x190] sm:$0xff] %v222_v10  ;;  %225 = vst [vmem:[%s8085_s8 + $0x198] sm:$0xff] %v224_v11  ;;  %v228_v13 = vld [vmem:[%s8089_s9 + $0xbfc] sm:$0xff]  ;;  %v230_v14 = vld [vmem:[%s8089_s9 + $0xc04] sm:$0xff] }
  0x35   : >> { %227 = vst [vmem:[%s8085_s8 + $0x1a0] sm:$0xff] %v226_v12  ;;  %229 = vst [vmem:[%s8085_s8 + $0x1a8] sm:$0xff] %v228_v13  ;;  %v232_v15 = vld [vmem:[%s8089_s9 + $0xc0c] sm:$0xff]  ;;  %v238_v18 = vld [vmem:[%s8089_s9 + $0x17b8] sm:$0xff] }
  0x36   : >> { %231 = vst [vmem:[%s8085_s8 + $0x1b0] sm:$0xff] %v230_v14  ;;  %v234_v16 = vld [vmem:[%s8089_s9 + $0x17a8] sm:$0xff]  ;;  %v236_v17 = vld [vmem:[%s8089_s9 + $0x17b0] sm:$0xff]  ;;  %233 = vst [vmem:[%s8085_s8 + $0x1b8] sm:$0xff] %v232_v15 }
  0x37   : >> { %235 = vst [vmem:[%s8085_s8 + $0x300] sm:$0xff] %v234_v16  ;;  %237 = vst [vmem:[%s8085_s8 + $0x308] sm:$0xff] %v236_v17  ;;  %v240_v19 = vld [vmem:[%s8089_s9 + $0x17c0] sm:$0xff]  ;;  %v242_v20 = vld [vmem:[%s8089_s9 + $0x17c8] sm:$0xff] }
  0x38   : >> { %239 = vst [vmem:[%s8085_s8 + $0x310] sm:$0xff] %v238_v18  ;;  %241 = vst [vmem:[%s8085_s8 + $0x318] sm:$0xff] %v240_v19  ;;  %v244_v21 = vld [vmem:[%s8089_s9 + $0x17d0] sm:$0xff]  ;;  %v246_v22 = vld [vmem:[%s8089_s9 + $0x17d8] sm:$0xff] }
  0x39   : >> { %243 = vst [vmem:[%s8085_s8 + $0x320] sm:$0xff] %v242_v20  ;;  %v248_v23 = vld [vmem:[%s8089_s9 + $0x17e0] sm:$0xff]  ;;  %245 = vst [vmem:[%s8085_s8 + $0x328] sm:$0xff] %v244_v21  ;;  %v254_v26 = vld [vmem:[%s8089_s9 + $0x238c] sm:$0xff] }
  0x3a   : >> { %247 = vst [vmem:[%s8085_s8 + $0x330] sm:$0xff] %v246_v22  ;;  %249 = vst [vmem:[%s8085_s8 + $0x338] sm:$0xff] %v248_v23  ;;  %v250_v24 = vld [vmem:[%s8089_s9 + $0x237c] sm:$0xff]  ;;  %v252_v25 = vld [vmem:[%s8089_s9 + $0x2384] sm:$0xff] }
  0x3b   : >> { %251 = vst [vmem:[%s8085_s8 + $0x480] sm:$0xff] %v250_v24  ;;  %253 = vst [vmem:[%s8085_s8 + $0x488] sm:$0xff] %v252_v25  ;;  %v256_v27 = vld [vmem:[%s8089_s9 + $0x2394] sm:$0xff]  ;;  %v258_v28 = vld [vmem:[%s8089_s9 + $0x239c] sm:$0xff] }
  0x3c   : >> { %255 = vst [vmem:[%s8085_s8 + $0x490] sm:$0xff] %v254_v26  ;;  %v260_v29 = vld [vmem:[%s8089_s9 + $0x23a4] sm:$0xff]  ;;  %257 = vst [vmem:[%s8085_s8 + $0x498] sm:$0xff] %v256_v27  ;;  %v262_v30 = vld [vmem:[%s8089_s9 + $0x23ac] sm:$0xff] }
  0x3d   : >> { %259 = vst [vmem:[%s8085_s8 + $0x4a0] sm:$0xff] %v258_v28  ;;  %261 = vst [vmem:[%s8085_s8 + $0x4a8] sm:$0xff] %v260_v29  ;;  %v264_v31 = vld [vmem:[%s8089_s9 + $0x23b4] sm:$0xff]  ;;  %v270_v34 = vld [vmem:[%s8089_s9 + $0x2f60] sm:$0xff] }
  0x3e   : >> { %v266_v32 = vld [vmem:[%s8089_s9 + $0x2f50] sm:$0xff]  ;;  %263 = vst [vmem:[%s8085_s8 + $0x4b0] sm:$0xff] %v262_v30  ;;  %265 = vst [vmem:[%s8085_s8 + $0x4b8] sm:$0xff] %v264_v31  ;;  %v268_v33 = vld [vmem:[%s8089_s9 + $0x2f58] sm:$0xff] }
  0x3f   : >> { %267 = vst [vmem:[%s8085_s8 + $0x600] sm:$0xff] %v266_v32  ;;  %v272_v35 = vld [vmem:[%s8089_s9 + $0x2f68] sm:$0xff]  ;;  %269 = vst [vmem:[%s8085_s8 + $0x608] sm:$0xff] %v268_v33  ;;  %v274_v36 = vld [vmem:[%s8089_s9 + $0x2f70] sm:$0xff] }
  0x40   : >> { %271 = vst [vmem:[%s8085_s8 + $0x610] sm:$0xff] %v270_v34  ;;  %273 = vst [vmem:[%s8085_s8 + $0x618] sm:$0xff] %v272_v35  ;;  %v276_v37 = vld [vmem:[%s8089_s9 + $0x2f78] sm:$0xff]  ;;  %v278_v38 = vld [vmem:[%s8089_s9 + $0x2f80] sm:$0xff] }
  0x41   : >> { %275 = vst [vmem:[%s8085_s8 + $0x620] sm:$0xff] %v274_v36  ;;  %277 = vst [vmem:[%s8085_s8 + $0x628] sm:$0xff] %v276_v37  ;;  %v280_v39 = vld [vmem:[%s8089_s9 + $0x2f88] sm:$0xff]  ;;  %v286_v42 = vld [vmem:[%s8089_s9 + $0x3b34] sm:$0xff] }
  0x42   : >> { %279 = vst [vmem:[%s8085_s8 + $0x630] sm:$0xff] %v278_v38  ;;  %v282_v40 = vld [vmem:[%s8089_s9 + $0x3b24] sm:$0xff]  ;;  %v284_v41 = vld [vmem:[%s8089_s9 + $0x3b2c] sm:$0xff]  ;;  %281 = vst [vmem:[%s8085_s8 + $0x638] sm:$0xff] %v280_v39 }
  0x43   : >> { %283 = vst [vmem:[%s8085_s8 + $0x780] sm:$0xff] %v282_v40  ;;  %285 = vst [vmem:[%s8085_s8 + $0x788] sm:$0xff] %v284_v41  ;;  %v288_v43 = vld [vmem:[%s8089_s9 + $0x3b3c] sm:$0xff]  ;;  %v290_v44 = vld [vmem:[%s8089_s9 + $0x3b44] sm:$0xff] }
  0x44   : >> { %287 = vst [vmem:[%s8085_s8 + $0x790] sm:$0xff] %v286_v42  ;;  %289 = vst [vmem:[%s8085_s8 + $0x798] sm:$0xff] %v288_v43  ;;  %v292_v45 = vld [vmem:[%s8089_s9 + $0x3b4c] sm:$0xff]  ;;  %v294_v46 = vld [vmem:[%s8089_s9 + $0x3b54] sm:$0xff] }
  0x45   : >> { %291 = vst [vmem:[%s8085_s8 + $0x7a0] sm:$0xff] %v290_v44  ;;  %v296_v47 = vld [vmem:[%s8089_s9 + $0x3b5c] sm:$0xff]  ;;  %293 = vst [vmem:[%s8085_s8 + $0x7a8] sm:$0xff] %v292_v45  ;;  %v302_v50 = vld [vmem:[%s8089_s9 + $0x4708] sm:$0xff] }
  0x46   : >> { %295 = vst [vmem:[%s8085_s8 + $0x7b0] sm:$0xff] %v294_v46  ;;  %297 = vst [vmem:[%s8085_s8 + $0x7b8] sm:$0xff] %v296_v47  ;;  %v298_v48 = vld [vmem:[%s8089_s9 + $0x46f8] sm:$0xff]  ;;  %v300_v49 = vld [vmem:[%s8089_s9 + $0x4700] sm:$0xff] }
  0x47   : >> { %299 = vst [vmem:[%s8085_s8 + $0x900] sm:$0xff] %v298_v48  ;;  %301 = vst [vmem:[%s8085_s8 + $0x908] sm:$0xff] %v300_v49  ;;  %v304_v51 = vld [vmem:[%s8089_s9 + $0x4710] sm:$0xff]  ;;  %v306_v52 = vld [vmem:[%s8089_s9 + $0x4718] sm:$0xff] }
  0x48   : >> { %303 = vst [vmem:[%s8085_s8 + $0x910] sm:$0xff] %v302_v50  ;;  %v308_v53 = vld [vmem:[%s8089_s9 + $0x4720] sm:$0xff]  ;;  %305 = vst [vmem:[%s8085_s8 + $0x918] sm:$0xff] %v304_v51  ;;  %v310_v54 = vld [vmem:[%s8089_s9 + $0x4728] sm:$0xff] }
  0x49   : >> { %307 = vst [vmem:[%s8085_s8 + $0x920] sm:$0xff] %v306_v52  ;;  %309 = vst [vmem:[%s8085_s8 + $0x928] sm:$0xff] %v308_v53  ;;  %v312_v55 = vld [vmem:[%s8089_s9 + $0x4730] sm:$0xff]  ;;  %v318_v58 = vld [vmem:[%s8089_s9 + $0x52dc] sm:$0xff] }
  0x4a   : >> { %v314_v56 = vld [vmem:[%s8089_s9 + $0x52cc] sm:$0xff]  ;;  %311 = vst [vmem:[%s8085_s8 + $0x930] sm:$0xff] %v310_v54  ;;  %313 = vst [vmem:[%s8085_s8 + $0x938] sm:$0xff] %v312_v55  ;;  %v316_v57 = vld [vmem:[%s8089_s9 + $0x52d4] sm:$0xff] }
  0x4b   : >> { %315 = vst [vmem:[%s8085_s8 + $0xa80] sm:$0xff] %v314_v56  ;;  %v320_v59 = vld [vmem:[%s8089_s9 + $0x52e4] sm:$0xff]  ;;  %317 = vst [vmem:[%s8085_s8 + $0xa88] sm:$0xff] %v316_v57  ;;  %v322_v60 = vld [vmem:[%s8089_s9 + $0x52ec] sm:$0xff] }
  0x4c   : >> { %319 = vst [vmem:[%s8085_s8 + $0xa90] sm:$0xff] %v318_v58  ;;  %321 = vst [vmem:[%s8085_s8 + $0xa98] sm:$0xff] %v320_v59  ;;  %v324_v61 = vld [vmem:[%s8089_s9 + $0x52f4] sm:$0xff]  ;;  %v326_v62 = vld [vmem:[%s8089_s9 + $0x52fc] sm:$0xff] }
  0x4d   : >> { %323 = vst [vmem:[%s8085_s8 + $0xaa0] sm:$0xff] %v322_v60  ;;  %325 = vst [vmem:[%s8085_s8 + $0xaa8] sm:$0xff] %v324_v61  ;;  %v328_v63 = vld [vmem:[%s8089_s9 + $0x5304] sm:$0xff]  ;;  %v334_v2 = vld [vmem:[%s8089_s9 + $0x5eb0] sm:$0xff] }
  0x4e   : >> { %327 = vst [vmem:[%s8085_s8 + $0xab0] sm:$0xff] %v326_v62  ;;  %v330_v0 = vld [vmem:[%s8089_s9 + $0x5ea0] sm:$0xff]  ;;  %v332_v1 = vld [vmem:[%s8089_s9 + $0x5ea8] sm:$0xff]  ;;  %329 = vst [vmem:[%s8085_s8 + $0xab8] sm:$0xff] %v328_v63 }
  0x4f   : >> { %331 = vst [vmem:[%s8085_s8 + $0xc00] sm:$0xff] %v330_v0  ;;  %333 = vst [vmem:[%s8085_s8 + $0xc08] sm:$0xff] %v332_v1  ;;  %v336_v3 = vld [vmem:[%s8089_s9 + $0x5eb8] sm:$0xff]  ;;  %v338_v4 = vld [vmem:[%s8089_s9 + $0x5ec0] sm:$0xff] }
  0x50   : >> { %335 = vst [vmem:[%s8085_s8 + $0xc10] sm:$0xff] %v334_v2  ;;  %337 = vst [vmem:[%s8085_s8 + $0xc18] sm:$0xff] %v336_v3  ;;  %v340_v5 = vld [vmem:[%s8089_s9 + $0x5ec8] sm:$0xff]  ;;  %v342_v6 = vld [vmem:[%s8089_s9 + $0x5ed0] sm:$0xff] }
  0x51   : >> { %339 = vst [vmem:[%s8085_s8 + $0xc20] sm:$0xff] %v338_v4  ;;  %v344_v7 = vld [vmem:[%s8089_s9 + $0x5ed8] sm:$0xff]  ;;  %341 = vst [vmem:[%s8085_s8 + $0xc28] sm:$0xff] %v340_v5  ;;  %v350_v10 = vld [vmem:[%s8089_s9 + $0x6a84] sm:$0xff] }
  0x52   : >> { %343 = vst [vmem:[%s8085_s8 + $0xc30] sm:$0xff] %v342_v6  ;;  %345 = vst [vmem:[%s8085_s8 + $0xc38] sm:$0xff] %v344_v7  ;;  %v346_v8 = vld [vmem:[%s8089_s9 + $0x6a74] sm:$0xff]  ;;  %v348_v9 = vld [vmem:[%s8089_s9 + $0x6a7c] sm:$0xff]  ;;  %198 = sbr.rel (!%p195_p0) target bundleno = 46 (0x2e), region = 235 }
  0x53   : >> { %347 = vst [vmem:[%s8085_s8 + $0xd80] sm:$0xff] %v346_v8  ;;  %349 = vst [vmem:[%s8085_s8 + $0xd88] sm:$0xff] %v348_v9  ;;  %v352_v11 = vld [vmem:[%s8089_s9 + $0x6a8c] sm:$0xff]  ;;  %v354_v12 = vld [vmem:[%s8089_s9 + $0x6a94] sm:$0xff] }
  0x54   : >> { %351 = vst [vmem:[%s8085_s8 + $0xd90] sm:$0xff] %v350_v10  ;;  %v356_v13 = vld [vmem:[%s8089_s9 + $0x6a9c] sm:$0xff]  ;;  %353 = vst [vmem:[%s8085_s8 + $0xd98] sm:$0xff] %v352_v11  ;;  %v358_v14 = vld [vmem:[%s8089_s9 + $0x6aa4] sm:$0xff] }
  0x55   : >> { %355 = vst [vmem:[%s8085_s8 + $0xda0] sm:$0xff] %v354_v12  ;;  %357 = vst [vmem:[%s8085_s8 + $0xda8] sm:$0xff] %v356_v13  ;;  %v360_v15 = vld [vmem:[%s8089_s9 + $0x6aac] sm:$0xff]  ;;  %s10180_s9 = smov %s8361_s21 }
  0x56   : >> { %359 = vst [vmem:[%s8085_s8 + $0xdb0] sm:$0xff] %v358_v14  ;;  %361 = vst [vmem:[%s8085_s8 + $0xdb8] sm:$0xff] %v360_v15  ;;  %s10179_s8 = smov %s8364_s22 }
  0x57 PF: > { %s8502_s23 = sand.u32 7, %s189_s6   ;;  %s7581_s24 = sshll.u32 %s8294_s7, 10 }
  0x58   : > { %s373_s25 = sshra.s32 %s7581_s24, 4  ;;  %p6959_p1 = scmp.le.s32.totalorder %s8502_s23, 0 }
  0x59   : > { %s8506_s26 = scalar_lea.vmem %s8279_s28, %s373_s25   ;;  %s8509_s27 = scalar_lea.vmem %s8283_s4, %s373_s25 [#allocation2]  }
  0x5a   : > { %6831 = sbr.rel (%p6959_p1) target bundleno = 103 (0x67), region = 240  ;;  %s10182_s29 = smov (!%p6959_p1), %s8509_s27 }
  0x5b   : > { %s10183_s8 = smov (!%p6959_p1), %s8506_s26  ;;  %s8518_s9 = smov (!%p6959_p1), 0  }
  0x5c   : > { %s8520_s10 = smov (!%p6959_p1), 0  }
  0x5f LB: >> { %v389_v16 = vld [vmem:[%s8105_s8] sm:$0xff]  ;;  %v391_v17 = vld [vmem:[%s8105_s8 + $0xbd4] sm:$0xff]  ;;  %v393_v18 = vld [vmem:[%s8105_s8 + $0x17a8] sm:$0xff]  ;;  %s409_s6 = sadd.s32 1, %s8109_s9  ;;  %s383_s10 = sadd.s32 1, %s8113_s10   ;;  %s8113_s10 = sphi %s8520_s10, %s383_s10   ;;  %s8109_s9 = sphi %s8518_s9, %s10184_s9   ;;  %s8105_s8 = sphi %s10183_s8, %s414_s8   ;;  %s8101_s29 = sphi %s10182_s29, %s415_s29  }
  0x60   : >> { %390 = vst [vmem:[%s8101_s29] sm:$0xff] %v389_v16  ;;  %392 = vst [vmem:[%s8101_s29 + $0x180] sm:$0xff] %v391_v17  ;;  %v395_v19 = vld [vmem:[%s8105_s8 + $0x237c] sm:$0xff]  ;;  %v397_v20 = vld [vmem:[%s8105_s8 + $0x2f50] sm:$0xff]  ;;  %p410_p2 = scmp.ge.s32.totalorder %s409_s6, %s8502_s23  ;;  %p382_p3 = scmp.ge.s32.totalorder %s383_s10, %s8502_s23 }
  0x61   : >> { %394 = vst [vmem:[%s8101_s29 + $0x300] sm:$0xff] %v393_v18  ;;  %v399_v21 = vld [vmem:[%s8105_s8 + $0x3b24] sm:$0xff]  ;;  %396 = vst [vmem:[%s8101_s29 + $0x480] sm:$0xff] %v395_v19  ;;  %v401_v22 = vld [vmem:[%s8105_s8 + $0x46f8] sm:$0xff] }
  0x62   : >> { %398 = vst [vmem:[%s8101_s29 + $0x600] sm:$0xff] %v397_v20  ;;  %400 = vst [vmem:[%s8101_s29 + $0x780] sm:$0xff] %v399_v21  ;;  %v403_v23 = vld [vmem:[%s8105_s8 + $0x52cc] sm:$0xff]  ;;  %v405_v24 = vld [vmem:[%s8105_s8 + $0x5ea0] sm:$0xff]  ;;  %s10211_s6 = smov (%p410_p2, %s409_s6), 0  ;;  %385 = sbr.rel (!%p382_p3) target bundleno = 95 (0x5f), region = 246 }
  0x63   : >> { %402 = vst [vmem:[%s8101_s29 + $0x900] sm:$0xff] %v401_v22  ;;  %404 = vst [vmem:[%s8101_s29 + $0xa80] sm:$0xff] %v403_v23  ;;  %v407_v25 = vld [vmem:[%s8105_s8 + $0x6a74] sm:$0xff]  ;;  %s6960_s7 = sshll.u32 %s10211_s6, 3  ;;  %s10184_s9 = smov %s10211_s6 }
  0x64   : >> { %406 = vst [vmem:[%s8101_s29 + $0xc00] sm:$0xff] %v405_v24  ;;  %408 = vst [vmem:[%s8101_s29 + $0xd80] sm:$0xff] %v407_v25  ;;  %s414_s8 = scalar_lea.vmem %s8506_s26, %s6960_s7   ;;  %s415_s29 = scalar_lea.vmem %s8509_s27, %s6960_s7 [#allocation2]  }
  0x67 PF: > { %418 = sbr.rel (%p185_p10) target bundleno = 183 (0xb7), region = 69  ;;  %s420_s11 = ssub.s32 (!%p185_p10), %s8281_s30, %s8287_s5 }
  0x68   : > { %s424_s17 = sshrl.u32 (!%p185_p10), %s8281_s30, 3  ;;  %s8547_s18 = scalar_lea.vmem (!%p185_p10), %s8279_s28, %s420_s11 }
  0x69   : > { %s8550_s21 = scalar_lea.vmem (!%p185_p10), %s8283_s4, %s420_s11 [#allocation2]  ;;  %s8554_s22 = sshrl.u32 (!%p185_p10), %s424_s17, 3 }
  0x6a   : > { %p6962_p4 = scmp.le.s32.totalorder (!%p185_p10), %s8554_s22, 0 }
  0x6c   : > { %6845 = sbr.rel (%p6962_p4) target bundleno = 154 (0x9a), region = 251  ;;  %s10185_s23 = smov (!%p6962_p4), %s8283_s4 }
  0x6d   : > { %s10186_s24 = smov (!%p6962_p4), %s8279_s28  ;;  %s8563_s25 = smov (!%p6962_p4), 0  }
  0x6e   : > { %s8565_s26 = smov (!%p6962_p4), 0  }
  0x71 LB: >> { %v437_v26 = vld [vmem:[%s8121_s24] sm:$0xff]  ;;  %v439_v27 = vld [vmem:[%s8121_s24 + $0x8] sm:$0xff]  ;;  %v441_v28 = vld [vmem:[%s8121_s24 + $0x10] sm:$0xff]  ;;  %s597_s27 = sadd.s32 1, %s8125_s25  ;;  %s431_s26 = sadd.s32 1, %s8129_s26   ;;  %s8129_s26 = sphi %s8565_s26, %s431_s26   ;;  %s8125_s25 = sphi %s8563_s25, %s10189_s25   ;;  %s8121_s24 = sphi %s10186_s24, %s10188_s24   ;;  %s8117_s23 = sphi %s10185_s23, %s10187_s23  }
  0x72   : >> { %438 = vst [vmem:[%s8117_s23] sm:$0xff] %v437_v26  ;;  %440 = vst [vmem:[%s8117_s23 + $0x8] sm:$0xff] %v439_v27  ;;  %v443_v29 = vld [vmem:[%s8121_s24 + $0x18] sm:$0xff]  ;;  %v445_v30 = vld [vmem:[%s8121_s24 + $0x20] sm:$0xff]  ;;  %p598_p6 = scmp.ge.s32.totalorder %s597_s27, %s8554_s22  ;;  %p430_p7 = scmp.ge.s32.totalorder %s431_s26, %s8554_s22 }
  0x73   : >> { %442 = vst [vmem:[%s8117_s23 + $0x10] sm:$0xff] %v441_v28  ;;  %v447_v31 = vld [vmem:[%s8121_s24 + $0x28] sm:$0xff]  ;;  %444 = vst [vmem:[%s8117_s23 + $0x18] sm:$0xff] %v443_v29  ;;  %v449_v32 = vld [vmem:[%s8121_s24 + $0x30] sm:$0xff] }
  0x74   : >> { %446 = vst [vmem:[%s8117_s23 + $0x20] sm:$0xff] %v445_v30  ;;  %448 = vst [vmem:[%s8117_s23 + $0x28] sm:$0xff] %v447_v31  ;;  %v451_v33 = vld [vmem:[%s8121_s24 + $0x38] sm:$0xff]  ;;  %v457_v36 = vld [vmem:[%s8121_s24 + $0xbe4] sm:$0xff]  ;;  %s10213_s27 = smov (%p598_p6, %s597_s27), 0 }
  0x75   : >> { %v453_v34 = vld [vmem:[%s8121_s24 + $0xbd4] sm:$0xff]  ;;  %450 = vst [vmem:[%s8117_s23 + $0x30] sm:$0xff] %v449_v32  ;;  %452 = vst [vmem:[%s8117_s23 + $0x38] sm:$0xff] %v451_v33  ;;  %v455_v35 = vld [vmem:[%s8121_s24 + $0xbdc] sm:$0xff]  ;;  %s6963_s29 = sshll.u32 %s10213_s27, 6  ;;  %s10189_s25 = smov %s10213_s27 }
  0x76   : >> { %454 = vst [vmem:[%s8117_s23 + $0x180] sm:$0xff] %v453_v34  ;;  %v459_v37 = vld [vmem:[%s8121_s24 + $0xbec] sm:$0xff]  ;;  %456 = vst [vmem:[%s8117_s23 + $0x188] sm:$0xff] %v455_v35  ;;  %v461_v38 = vld [vmem:[%s8121_s24 + $0xbf4] sm:$0xff]  ;;  %s8621_s8 = scalar_lea.vmem %s8279_s28, %s6963_s29   ;;  %s8624_s9 = scalar_lea.vmem %s8283_s4, %s6963_s29 [#allocation2]  }
  0x77   : >> { %458 = vst [vmem:[%s8117_s23 + $0x190] sm:$0xff] %v457_v36  ;;  %460 = vst [vmem:[%s8117_s23 + $0x198] sm:$0xff] %v459_v37  ;;  %v463_v39 = vld [vmem:[%s8121_s24 + $0xbfc] sm:$0xff]  ;;  %v465_v40 = vld [vmem:[%s8121_s24 + $0xc04] sm:$0xff] }
  0x78   : >> { %462 = vst [vmem:[%s8117_s23 + $0x1a0] sm:$0xff] %v461_v38  ;;  %464 = vst [vmem:[%s8117_s23 + $0x1a8] sm:$0xff] %v463_v39  ;;  %v467_v41 = vld [vmem:[%s8121_s24 + $0xc0c] sm:$0xff]  ;;  %v473_v44 = vld [vmem:[%s8121_s24 + $0x17b8] sm:$0xff] }
  0x79   : >> { %466 = vst [vmem:[%s8117_s23 + $0x1b0] sm:$0xff] %v465_v40  ;;  %v469_v42 = vld [vmem:[%s8121_s24 + $0x17a8] sm:$0xff]  ;;  %v471_v43 = vld [vmem:[%s8121_s24 + $0x17b0] sm:$0xff]  ;;  %468 = vst [vmem:[%s8117_s23 + $0x1b8] sm:$0xff] %v467_v41 }
  0x7a   : >> { %470 = vst [vmem:[%s8117_s23 + $0x300] sm:$0xff] %v469_v42  ;;  %472 = vst [vmem:[%s8117_s23 + $0x308] sm:$0xff] %v471_v43  ;;  %v475_v45 = vld [vmem:[%s8121_s24 + $0x17c0] sm:$0xff]  ;;  %v477_v46 = vld [vmem:[%s8121_s24 + $0x17c8] sm:$0xff] }
  0x7b   : >> { %474 = vst [vmem:[%s8117_s23 + $0x310] sm:$0xff] %v473_v44  ;;  %476 = vst [vmem:[%s8117_s23 + $0x318] sm:$0xff] %v475_v45  ;;  %v479_v47 = vld [vmem:[%s8121_s24 + $0x17d0] sm:$0xff]  ;;  %v481_v48 = vld [vmem:[%s8121_s24 + $0x17d8] sm:$0xff] }
  0x7c   : >> { %478 = vst [vmem:[%s8117_s23 + $0x320] sm:$0xff] %v477_v46  ;;  %v483_v49 = vld [vmem:[%s8121_s24 + $0x17e0] sm:$0xff]  ;;  %480 = vst [vmem:[%s8117_s23 + $0x328] sm:$0xff] %v479_v47  ;;  %v489_v52 = vld [vmem:[%s8121_s24 + $0x238c] sm:$0xff] }
  0x7d   : >> { %482 = vst [vmem:[%s8117_s23 + $0x330] sm:$0xff] %v481_v48  ;;  %484 = vst [vmem:[%s8117_s23 + $0x338] sm:$0xff] %v483_v49  ;;  %v485_v50 = vld [vmem:[%s8121_s24 + $0x237c] sm:$0xff]  ;;  %v487_v51 = vld [vmem:[%s8121_s24 + $0x2384] sm:$0xff] }
  0x7e   : >> { %486 = vst [vmem:[%s8117_s23 + $0x480] sm:$0xff] %v485_v50  ;;  %488 = vst [vmem:[%s8117_s23 + $0x488] sm:$0xff] %v487_v51  ;;  %v491_v53 = vld [vmem:[%s8121_s24 + $0x2394] sm:$0xff]  ;;  %v493_v54 = vld [vmem:[%s8121_s24 + $0x239c] sm:$0xff] }
  0x7f   : >> { %490 = vst [vmem:[%s8117_s23 + $0x490] sm:$0xff] %v489_v52  ;;  %v495_v55 = vld [vmem:[%s8121_s24 + $0x23a4] sm:$0xff]  ;;  %492 = vst [vmem:[%s8117_s23 + $0x498] sm:$0xff] %v491_v53  ;;  %v497_v56 = vld [vmem:[%s8121_s24 + $0x23ac] sm:$0xff] }
  0x80   : >> { %494 = vst [vmem:[%s8117_s23 + $0x4a0] sm:$0xff] %v493_v54  ;;  %496 = vst [vmem:[%s8117_s23 + $0x4a8] sm:$0xff] %v495_v55  ;;  %v499_v57 = vld [vmem:[%s8121_s24 + $0x23b4] sm:$0xff]  ;;  %v505_v60 = vld [vmem:[%s8121_s24 + $0x2f60] sm:$0xff] }
  0x81   : >> { %v501_v58 = vld [vmem:[%s8121_s24 + $0x2f50] sm:$0xff]  ;;  %498 = vst [vmem:[%s8117_s23 + $0x4b0] sm:$0xff] %v497_v56  ;;  %500 = vst [vmem:[%s8117_s23 + $0x4b8] sm:$0xff] %v499_v57  ;;  %v503_v59 = vld [vmem:[%s8121_s24 + $0x2f58] sm:$0xff] }
  0x82   : >> { %502 = vst [vmem:[%s8117_s23 + $0x600] sm:$0xff] %v501_v58  ;;  %v507_v61 = vld [vmem:[%s8121_s24 + $0x2f68] sm:$0xff]  ;;  %504 = vst [vmem:[%s8117_s23 + $0x608] sm:$0xff] %v503_v59  ;;  %v509_v62 = vld [vmem:[%s8121_s24 + $0x2f70] sm:$0xff] }
  0x83   : >> { %506 = vst [vmem:[%s8117_s23 + $0x610] sm:$0xff] %v505_v60  ;;  %508 = vst [vmem:[%s8117_s23 + $0x618] sm:$0xff] %v507_v61  ;;  %v511_v63 = vld [vmem:[%s8121_s24 + $0x2f78] sm:$0xff]  ;;  %v513_v0 = vld [vmem:[%s8121_s24 + $0x2f80] sm:$0xff] }
  0x84   : >> { %510 = vst [vmem:[%s8117_s23 + $0x620] sm:$0xff] %v509_v62  ;;  %512 = vst [vmem:[%s8117_s23 + $0x628] sm:$0xff] %v511_v63  ;;  %v515_v1 = vld [vmem:[%s8121_s24 + $0x2f88] sm:$0xff]  ;;  %v521_v4 = vld [vmem:[%s8121_s24 + $0x3b34] sm:$0xff] }
  0x85   : >> { %514 = vst [vmem:[%s8117_s23 + $0x630] sm:$0xff] %v513_v0  ;;  %v517_v2 = vld [vmem:[%s8121_s24 + $0x3b24] sm:$0xff]  ;;  %v519_v3 = vld [vmem:[%s8121_s24 + $0x3b2c] sm:$0xff]  ;;  %516 = vst [vmem:[%s8117_s23 + $0x638] sm:$0xff] %v515_v1 }
  0x86   : >> { %518 = vst [vmem:[%s8117_s23 + $0x780] sm:$0xff] %v517_v2  ;;  %520 = vst [vmem:[%s8117_s23 + $0x788] sm:$0xff] %v519_v3  ;;  %v523_v5 = vld [vmem:[%s8121_s24 + $0x3b3c] sm:$0xff]  ;;  %v525_v6 = vld [vmem:[%s8121_s24 + $0x3b44] sm:$0xff] }
  0x87   : >> { %522 = vst [vmem:[%s8117_s23 + $0x790] sm:$0xff] %v521_v4  ;;  %524 = vst [vmem:[%s8117_s23 + $0x798] sm:$0xff] %v523_v5  ;;  %v527_v7 = vld [vmem:[%s8121_s24 + $0x3b4c] sm:$0xff]  ;;  %v529_v8 = vld [vmem:[%s8121_s24 + $0x3b54] sm:$0xff] }
  0x88   : >> { %526 = vst [vmem:[%s8117_s23 + $0x7a0] sm:$0xff] %v525_v6  ;;  %v531_v9 = vld [vmem:[%s8121_s24 + $0x3b5c] sm:$0xff]  ;;  %528 = vst [vmem:[%s8117_s23 + $0x7a8] sm:$0xff] %v527_v7  ;;  %v537_v12 = vld [vmem:[%s8121_s24 + $0x4708] sm:$0xff] }
  0x89   : >> { %530 = vst [vmem:[%s8117_s23 + $0x7b0] sm:$0xff] %v529_v8  ;;  %532 = vst [vmem:[%s8117_s23 + $0x7b8] sm:$0xff] %v531_v9  ;;  %v533_v10 = vld [vmem:[%s8121_s24 + $0x46f8] sm:$0xff]  ;;  %v535_v11 = vld [vmem:[%s8121_s24 + $0x4700] sm:$0xff] }
  0x8a   : >> { %534 = vst [vmem:[%s8117_s23 + $0x900] sm:$0xff] %v533_v10  ;;  %536 = vst [vmem:[%s8117_s23 + $0x908] sm:$0xff] %v535_v11  ;;  %v539_v13 = vld [vmem:[%s8121_s24 + $0x4710] sm:$0xff]  ;;  %v541_v14 = vld [vmem:[%s8121_s24 + $0x4718] sm:$0xff] }
  0x8b   : >> { %538 = vst [vmem:[%s8117_s23 + $0x910] sm:$0xff] %v537_v12  ;;  %v543_v15 = vld [vmem:[%s8121_s24 + $0x4720] sm:$0xff]  ;;  %540 = vst [vmem:[%s8117_s23 + $0x918] sm:$0xff] %v539_v13  ;;  %v545_v16 = vld [vmem:[%s8121_s24 + $0x4728] sm:$0xff] }
  0x8c   : >> { %542 = vst [vmem:[%s8117_s23 + $0x920] sm:$0xff] %v541_v14  ;;  %544 = vst [vmem:[%s8117_s23 + $0x928] sm:$0xff] %v543_v15  ;;  %v547_v17 = vld [vmem:[%s8121_s24 + $0x4730] sm:$0xff]  ;;  %v553_v20 = vld [vmem:[%s8121_s24 + $0x52dc] sm:$0xff] }
  0x8d   : >> { %v549_v18 = vld [vmem:[%s8121_s24 + $0x52cc] sm:$0xff]  ;;  %546 = vst [vmem:[%s8117_s23 + $0x930] sm:$0xff] %v545_v16  ;;  %548 = vst [vmem:[%s8117_s23 + $0x938] sm:$0xff] %v547_v17  ;;  %v551_v19 = vld [vmem:[%s8121_s24 + $0x52d4] sm:$0xff] }
  0x8e   : >> { %550 = vst [vmem:[%s8117_s23 + $0xa80] sm:$0xff] %v549_v18  ;;  %v555_v21 = vld [vmem:[%s8121_s24 + $0x52e4] sm:$0xff]  ;;  %552 = vst [vmem:[%s8117_s23 + $0xa88] sm:$0xff] %v551_v19  ;;  %v557_v22 = vld [vmem:[%s8121_s24 + $0x52ec] sm:$0xff] }
  0x8f   : >> { %554 = vst [vmem:[%s8117_s23 + $0xa90] sm:$0xff] %v553_v20  ;;  %556 = vst [vmem:[%s8117_s23 + $0xa98] sm:$0xff] %v555_v21  ;;  %v559_v23 = vld [vmem:[%s8121_s24 + $0x52f4] sm:$0xff]  ;;  %v561_v24 = vld [vmem:[%s8121_s24 + $0x52fc] sm:$0xff] }
  0x90   : >> { %558 = vst [vmem:[%s8117_s23 + $0xaa0] sm:$0xff] %v557_v22  ;;  %560 = vst [vmem:[%s8117_s23 + $0xaa8] sm:$0xff] %v559_v23  ;;  %v563_v25 = vld [vmem:[%s8121_s24 + $0x5304] sm:$0xff]  ;;  %v569_v28 = vld [vmem:[%s8121_s24 + $0x5eb0] sm:$0xff] }
  0x91   : >> { %562 = vst [vmem:[%s8117_s23 + $0xab0] sm:$0xff] %v561_v24  ;;  %v565_v26 = vld [vmem:[%s8121_s24 + $0x5ea0] sm:$0xff]  ;;  %v567_v27 = vld [vmem:[%s8121_s24 + $0x5ea8] sm:$0xff]  ;;  %564 = vst [vmem:[%s8117_s23 + $0xab8] sm:$0xff] %v563_v25 }
  0x92   : >> { %566 = vst [vmem:[%s8117_s23 + $0xc00] sm:$0xff] %v565_v26  ;;  %568 = vst [vmem:[%s8117_s23 + $0xc08] sm:$0xff] %v567_v27  ;;  %v571_v29 = vld [vmem:[%s8121_s24 + $0x5eb8] sm:$0xff]  ;;  %v573_v30 = vld [vmem:[%s8121_s24 + $0x5ec0] sm:$0xff] }
  0x93   : >> { %570 = vst [vmem:[%s8117_s23 + $0xc10] sm:$0xff] %v569_v28  ;;  %572 = vst [vmem:[%s8117_s23 + $0xc18] sm:$0xff] %v571_v29  ;;  %v575_v31 = vld [vmem:[%s8121_s24 + $0x5ec8] sm:$0xff]  ;;  %v577_v32 = vld [vmem:[%s8121_s24 + $0x5ed0] sm:$0xff] }
  0x94   : >> { %574 = vst [vmem:[%s8117_s23 + $0xc20] sm:$0xff] %v573_v30  ;;  %v579_v33 = vld [vmem:[%s8121_s24 + $0x5ed8] sm:$0xff]  ;;  %576 = vst [vmem:[%s8117_s23 + $0xc28] sm:$0xff] %v575_v31  ;;  %v585_v36 = vld [vmem:[%s8121_s24 + $0x6a84] sm:$0xff] }
  0x95   : >> { %578 = vst [vmem:[%s8117_s23 + $0xc30] sm:$0xff] %v577_v32  ;;  %580 = vst [vmem:[%s8117_s23 + $0xc38] sm:$0xff] %v579_v33  ;;  %v581_v34 = vld [vmem:[%s8121_s24 + $0x6a74] sm:$0xff]  ;;  %v583_v35 = vld [vmem:[%s8121_s24 + $0x6a7c] sm:$0xff]  ;;  %433 = sbr.rel (!%p430_p7) target bundleno = 113 (0x71), region = 257 }
  0x96   : >> { %582 = vst [vmem:[%s8117_s23 + $0xd80] sm:$0xff] %v581_v34  ;;  %584 = vst [vmem:[%s8117_s23 + $0xd88] sm:$0xff] %v583_v35  ;;  %v587_v37 = vld [vmem:[%s8121_s24 + $0x6a8c] sm:$0xff]  ;;  %v589_v38 = vld [vmem:[%s8121_s24 + $0x6a94] sm:$0xff] }
  0x97   : >> { %586 = vst [vmem:[%s8117_s23 + $0xd90] sm:$0xff] %v585_v36  ;;  %v591_v39 = vld [vmem:[%s8121_s24 + $0x6a9c] sm:$0xff]  ;;  %588 = vst [vmem:[%s8117_s23 + $0xd98] sm:$0xff] %v587_v37  ;;  %v593_v40 = vld [vmem:[%s8121_s24 + $0x6aa4] sm:$0xff] }
  0x98   : >> { %590 = vst [vmem:[%s8117_s23 + $0xda0] sm:$0xff] %v589_v38  ;;  %592 = vst [vmem:[%s8117_s23 + $0xda8] sm:$0xff] %v591_v39  ;;  %v595_v41 = vld [vmem:[%s8121_s24 + $0x6aac] sm:$0xff]  ;;  %s10188_s24 = smov %s8621_s8 }
  0x99   : >> { %594 = vst [vmem:[%s8117_s23 + $0xdb0] sm:$0xff] %v593_v40  ;;  %596 = vst [vmem:[%s8117_s23 + $0xdb8] sm:$0xff] %v595_v41  ;;  %s10187_s23 = smov %s8624_s9 }
  0x9a PF: > { %s8762_s10 = sand.u32 7, %s424_s17   ;;  %s7583_s6 = sshll.u32 %s8554_s22, 10 }
  0x9b   : > { %s608_s7 = sshra.s32 %s7583_s6, 4  ;;  %p6968_p8 = scmp.le.s32.totalorder %s8762_s10, 0 }
  0x9c   : > { %s8766_s11 = scalar_lea.vmem %s8279_s28, %s608_s7   ;;  %s8769_s29 = scalar_lea.vmem %s8283_s4, %s608_s7 [#allocation2]  }
  0x9d   : > { %6859 = sbr.rel (%p6968_p8) target bundleno = 170 (0xaa), region = 262  ;;  %s10190_s23 = smov (!%p6968_p8), %s8769_s29 }
  0x9e   : > { %s10191_s24 = smov (!%p6968_p8), %s8766_s11  ;;  %s8778_s25 = smov (!%p6968_p8), 0  }
  0x9f   : > { %s8780_s26 = smov (!%p6968_p8), 0  }
  0xa2 LB: >> { %v624_v42 = vld [vmem:[%s8137_s24] sm:$0xff]  ;;  %v626_v43 = vld [vmem:[%s8137_s24 + $0xbd4] sm:$0xff]  ;;  %v628_v44 = vld [vmem:[%s8137_s24 + $0x17a8] sm:$0xff]  ;;  %s644_s17 = sadd.s32 1, %s8141_s25  ;;  %s618_s26 = sadd.s32 1, %s8145_s26   ;;  %s8145_s26 = sphi %s8780_s26, %s618_s26   ;;  %s8141_s25 = sphi %s8778_s25, %s10192_s25   ;;  %s8137_s24 = sphi %s10191_s24, %s649_s24   ;;  %s8133_s23 = sphi %s10190_s23, %s650_s23  }
  0xa3   : >> { %625 = vst [vmem:[%s8133_s23] sm:$0xff] %v624_v42  ;;  %627 = vst [vmem:[%s8133_s23 + $0x180] sm:$0xff] %v626_v43  ;;  %v630_v45 = vld [vmem:[%s8137_s24 + $0x237c] sm:$0xff]  ;;  %v632_v46 = vld [vmem:[%s8137_s24 + $0x2f50] sm:$0xff]  ;;  %p645_p9 = scmp.ge.s32.totalorder %s644_s17, %s8762_s10  ;;  %p617_p10 = scmp.ge.s32.totalorder %s618_s26, %s8762_s10 }
  0xa4   : >> { %629 = vst [vmem:[%s8133_s23 + $0x300] sm:$0xff] %v628_v44  ;;  %v634_v47 = vld [vmem:[%s8137_s24 + $0x3b24] sm:$0xff]  ;;  %631 = vst [vmem:[%s8133_s23 + $0x480] sm:$0xff] %v630_v45  ;;  %v636_v48 = vld [vmem:[%s8137_s24 + $0x46f8] sm:$0xff] }
  0xa5   : >> { %633 = vst [vmem:[%s8133_s23 + $0x600] sm:$0xff] %v632_v46  ;;  %635 = vst [vmem:[%s8133_s23 + $0x780] sm:$0xff] %v634_v47  ;;  %v638_v49 = vld [vmem:[%s8137_s24 + $0x52cc] sm:$0xff]  ;;  %v640_v50 = vld [vmem:[%s8137_s24 + $0x5ea0] sm:$0xff]  ;;  %s10215_s17 = smov (%p645_p9, %s644_s17), 0  ;;  %620 = sbr.rel (!%p617_p10) target bundleno = 162 (0xa2), region = 268 }
  0xa6   : >> { %637 = vst [vmem:[%s8133_s23 + $0x900] sm:$0xff] %v636_v48  ;;  %639 = vst [vmem:[%s8133_s23 + $0xa80] sm:$0xff] %v638_v49  ;;  %v642_v51 = vld [vmem:[%s8137_s24 + $0x6a74] sm:$0xff]  ;;  %s6969_s22 = sshll.u32 %s10215_s17, 3  ;;  %s10192_s25 = smov %s10215_s17 }
  0xa7   : >> { %641 = vst [vmem:[%s8133_s23 + $0xc00] sm:$0xff] %v640_v50  ;;  %643 = vst [vmem:[%s8133_s23 + $0xd80] sm:$0xff] %v642_v51  ;;  %s649_s24 = scalar_lea.vmem %s8766_s11, %s6969_s22   ;;  %s650_s23 = scalar_lea.vmem %s8769_s29, %s6969_s22 [#allocation2]  }
  0xaa PF: > { %s8211_s27 = smov 1  }
  0xab   : > { %s651_s8 = sshll.u32 %s8211_s27, %s8287_s5 }
  0xac   : > { %s6971_s9 = sadd.s32 4294967295, %s651_s8 }
  0xad   : > { %v661_v52 = vld [vmem:[%s8547_s18] sm:%s6971_s9]  ;;  %v663_v53 = vld [vmem:[%s8547_s18 + $0xbd4] sm:%s6971_s9] }
  0xae   : > { %662 = vst [vmem:[%s8550_s21] sm:%s6971_s9] %v661_v52  ;;  %664 = vst [vmem:[%s8550_s21 + $0x180] sm:%s6971_s9] %v663_v53 }
  0xaf   : > { %v665_v54 = vld [vmem:[%s8547_s18 + $0x17a8] sm:%s6971_s9]  ;;  %v667_v55 = vld [vmem:[%s8547_s18 + $0x237c] sm:%s6971_s9] }
  0xb0   : > { %666 = vst [vmem:[%s8550_s21 + $0x300] sm:%s6971_s9] %v665_v54  ;;  %668 = vst [vmem:[%s8550_s21 + $0x480] sm:%s6971_s9] %v667_v55 }
  0xb1   : > { %v669_v56 = vld [vmem:[%s8547_s18 + $0x2f50] sm:%s6971_s9]  ;;  %v671_v57 = vld [vmem:[%s8547_s18 + $0x3b24] sm:%s6971_s9] }
  0xb2   : > { %670 = vst [vmem:[%s8550_s21 + $0x600] sm:%s6971_s9] %v669_v56  ;;  %672 = vst [vmem:[%s8550_s21 + $0x780] sm:%s6971_s9] %v671_v57 }
  0xb3   : > { %v673_v58 = vld [vmem:[%s8547_s18 + $0x46f8] sm:%s6971_s9]  ;;  %v675_v59 = vld [vmem:[%s8547_s18 + $0x52cc] sm:%s6971_s9] }
  0xb4   : > { %674 = vst [vmem:[%s8550_s21 + $0x900] sm:%s6971_s9] %v673_v58  ;;  %676 = vst [vmem:[%s8550_s21 + $0xa80] sm:%s6971_s9] %v675_v59 }
  0xb5   : > { %v677_v60 = vld [vmem:[%s8547_s18 + $0x5ea0] sm:%s6971_s9]  ;;  %v679_v61 = vld [vmem:[%s8547_s18 + $0x6a74] sm:%s6971_s9] }
  0xb6   : > { %678 = vst [vmem:[%s8550_s21 + $0xc00] sm:%s6971_s9] %v677_v60  ;;  %680 = vst [vmem:[%s8550_s21 + $0xd80] sm:%s6971_s9] %v679_v61 }
  0xb7 PF: > { %p6972_p11 = scmp.ge.u32.totalorder %s8281_s30, 8 }
  0xb8   : > { %s8212_s5 = smov (!%p6972_p11), 1  }
  0xb9   : > { %153 = sbr.rel (%p6972_p11) target bundleno = 200 (0xc8), region = 40  ;;  %s154_s18 = sshll.u32 (!%p6972_p11), %s8212_s5, %s8281_s30 }
  0xba   : > { %s6973_s21 = sadd.s32 (!%p6972_p11), 4294967295, %s154_s18 }
  0xbe   : > { %v164_v62 = vld [vmem:[%s8279_s28] sm:%s6973_s21]  ;;  %v166_v63 = vld [vmem:[%s8279_s28 + $0xbd4] sm:%s6973_s21] }
  0xbf   : > { %165 = vst [vmem:[%s8283_s4] sm:%s6973_s21] %v164_v62  ;;  %167 = vst [vmem:[%s8283_s4 + $0x180] sm:%s6973_s21] %v166_v63 }
  0xc0   : > { %v168_v0 = vld [vmem:[%s8279_s28 + $0x17a8] sm:%s6973_s21]  ;;  %v170_v1 = vld [vmem:[%s8279_s28 + $0x237c] sm:%s6973_s21] }
  0xc1   : > { %169 = vst [vmem:[%s8283_s4 + $0x300] sm:%s6973_s21] %v168_v0  ;;  %171 = vst [vmem:[%s8283_s4 + $0x480] sm:%s6973_s21] %v170_v1 }
  0xc2   : > { %v172_v2 = vld [vmem:[%s8279_s28 + $0x2f50] sm:%s6973_s21]  ;;  %v174_v3 = vld [vmem:[%s8279_s28 + $0x3b24] sm:%s6973_s21] }
  0xc3   : > { %173 = vst [vmem:[%s8283_s4 + $0x600] sm:%s6973_s21] %v172_v2  ;;  %175 = vst [vmem:[%s8283_s4 + $0x780] sm:%s6973_s21] %v174_v3 }
  0xc4   : > { %v176_v4 = vld [vmem:[%s8279_s28 + $0x46f8] sm:%s6973_s21]  ;;  %v178_v5 = vld [vmem:[%s8279_s28 + $0x52cc] sm:%s6973_s21] }
  0xc5   : > { %177 = vst [vmem:[%s8283_s4 + $0x900] sm:%s6973_s21] %v176_v4  ;;  %179 = vst [vmem:[%s8283_s4 + $0xa80] sm:%s6973_s21] %v178_v5 }
  0xc6   : > { %v180_v6 = vld [vmem:[%s8279_s28 + $0x5ea0] sm:%s6973_s21]  ;;  %v182_v7 = vld [vmem:[%s8279_s28 + $0x6a74] sm:%s6973_s21] }
  0xc7   : > { %181 = vst [vmem:[%s8283_s4 + $0xc00] sm:%s6973_s21] %v180_v6  ;;  %183 = vst [vmem:[%s8283_s4 + $0xd80] sm:%s6973_s21] %v182_v7 }
  0xc8 PF: > { %p6974_p12 = scmp.ge.s32.totalorder %s8081_s14, 1  ;;  %p683_p13 = scmp.lt.s32.totalorder %s8081_s14, 9 }
  0xca   : > { %p684_p0 = pnand %p6974_p12, %p683_p13 }
  0xcb   : > { %s690_s30 = sand.u32 (!%p684_p0), 1, %s8073_s12  }
  0xcc   : > { %687 = sbr.rel (%p684_p0) target bundleno = 1044 (0x414), region = 94 }
  0xcd   : > { %s7639_s10 = smul.u32 (!%p684_p0), 3840, %s690_s30 }
  0xce   : > { %s9202_s23 = smul.u32 (!%p684_p0), 384, %s690_s30 }
  0xcf   : > { %s8855_s4 = scalar_lea.vmem (!%p684_p0), [#allocation2], %s7639_s10 }
  0xd0   : > { %s9222_s12 = scalar_lea.vmem (!%p684_p0), [#allocation3], %s9202_s23  }
  0xd1   : > { %vm3518_vm0 = vcmask 1044480   ;;  %vm3519_vm1 = vcmask 1045504   ;;  %v8213_v8 = vmov 65535   ;;  %v8214_v10 = vmov 0   ;;  %v1204_v11 = vld [vmem:[%s10173_s1] sm:$0x3f] }
  0xd2   : > { %v3520_v9 = vsel %vm3518_vm0, 4294967295, %v8213_v8  ;;  %3842 = vmatprep.mubr.bf16.mxu0 %v8214_v10  ;;  %3883 = vmatprep.mubr.bf16.mxu1 %v8214_v10  ;;  %v1108_v12 = vld [vmem:[%s8855_s4 + $0xc00] sm:$0xff]  ;;  %v1109_v15 = vld [vmem:[%s8855_s4 + $0xc08] sm:$0xff]  ;;  %v1110_v50 = vld [vmem:[%s8855_s4 + $0xc10] sm:$0xff]  ;;  %vm3514_vm2 = vcmask 613376   ;;  %s6313_s22 = smul.u32 (%p8268_p5), 96, %s8253_s15 }
  0xd3   : > { %7927 = vset.pattern.permute.xlu0 %v8214_v10  ;;  %v1156_v13 = vld [vmem:[%s8855_s4 + $0xd80] sm:$0x33]  ;;  %v8859_v14 = vsel %vm3519_vm1, %v3520_v9, 0  ;;  %v1157_v17 = vld [vmem:[%s8855_s4 + $0xd88] sm:$0x33]  ;;  %v1111_v53 = vld [vmem:[%s8855_s4 + $0xc18] sm:$0xff] }
  0xd4   : > { %1207 = vperm.xlu0 %7927, %v1204_v11   ;;  %v7360_v16 = vcombine.high %v1108_v12, %v1156_v13  ;;  %v7359_v18 = vcombine.low %v1108_v12, %v1156_v13  ;;  %v1012_v19 = vld [vmem:[%s8855_s4 + $0x900] sm:$0xff]  ;;  %v7362_v21 = vcombine.high %v1109_v15, %v1157_v17  ;;  %v7361_v22 = vcombine.low %v1109_v15, %v1157_v17  ;;  %v1013_v23 = vld [vmem:[%s8855_s4 + $0x908] sm:$0xff]  ;;  %v1158_v51 = vld [vmem:[%s8855_s4 + $0xd90] sm:$0x33]  ;;  %s7633_s27 = smul.u32 (%p8268_p5), 384, %s8253_s15  ;;  %s6314_s8 = ssub.s32 (%p8268_p5), 757, %s6313_s22 }
  0xd5   : > { %v1060_v20 = vld [vmem:[%s8855_s4 + $0xa80] sm:$0xff]  ;;  %v1061_v24 = vld [vmem:[%s8855_s4 + $0xa88] sm:$0xff]  ;;  %v1159_v54 = vld [vmem:[%s8855_s4 + $0xd98] sm:$0x33]  ;;  %v7364_v58 = vcombine.high %v1110_v50, %v1158_v51  ;;  %v7363_v62 = vcombine.low %v1110_v50, %v1158_v51  ;;  %p6315_p1 = scmp.lt.s32.totalorder (%p8268_p5), %s6314_s8, 96 }
  0xd6   : > { %v3526_v25 = vand.u32 %v7360_v16, %v8859_v14  ;;  %v3523_v26 = vand.u32 %v7359_v18, %v8859_v14  ;;  %v7264_v27 = vcombine.high %v1012_v19, %v1060_v20  ;;  %v3532_v28 = vand.u32 %v7362_v21, %v8859_v14  ;;  %v916_v31 = vld [vmem:[%s8855_s4 + $0x600] sm:$0xff]  ;;  %v917_v33 = vld [vmem:[%s8855_s4 + $0x608] sm:$0xff]  ;;  %v1014_v3 = vld [vmem:[%s8855_s4 + $0x910] sm:$0xff]  ;;  %s9757_s18 = scalar_lea.vmem (%p8268_p5), %s10175_s3, %s7633_s27  }
  0xd7   : > { %v3529_v29 = vand.u32 %v7361_v22, %v8859_v14  ;;  %v7266_v30 = vcombine.high %v1013_v23, %v1061_v24  ;;  %v964_v32 = vld [vmem:[%s8855_s4 + $0x780] sm:$0xff]  ;;  %v965_v34 = vld [vmem:[%s8855_s4 + $0x788] sm:$0xff]  ;;  %v7263_v35 = vcombine.low %v1012_v19, %v1060_v20  ;;  %v7265_v36 = vcombine.low %v1013_v23, %v1061_v24  ;;  %v1062_v4 = vld [vmem:[%s8855_s4 + $0xa90] sm:$0xff] }
  0xd8   : > { %3816 = vmatprep.subr.bf16.mxu0 %v3526_v25  ;;  %3857 = vmatprep.subr.bf16.mxu1 %v3532_v28  ;;  %v7168_v37 = vcombine.high %v916_v31, %v964_v32  ;;  %v7170_v38 = vcombine.high %v917_v33, %v965_v34  ;;  %v820_v39 = vld [vmem:[%s8855_s4 + $0x300] sm:$0xff]  ;;  %v821_v41 = vld [vmem:[%s8855_s4 + $0x308] sm:$0xff]  ;;  %v7167_v43 = vcombine.low %v916_v31, %v964_v32  ;;  %v1015_v5 = vld [vmem:[%s8855_s4 + $0x918] sm:$0xff] }
  0xd9   : > { %3817 = vmatpush1.bf16.msra.mxu0 %v3523_v26  ;;  %3858 = vmatpush1.bf16.msra.mxu1 %v3529_v29  ;;  %v868_v40 = vld [vmem:[%s8855_s4 + $0x480] sm:$0xff]  ;;  %v869_v42 = vld [vmem:[%s8855_s4 + $0x488] sm:$0xff]  ;;  %v7169_v44 = vcombine.low %v917_v33, %v965_v34  ;;  %v7366_v60 = vcombine.high %v1111_v53, %v1159_v54  ;;  %v3538_v0 = vand.u32 %v7364_v58, %v8859_v14  ;;  %v1063_v6 = vld [vmem:[%s8855_s4 + $0xa98] sm:$0xff] }
  0xda   : > { %3818 = vmatprep.subr.bf16.mxu0 %v7264_v27  ;;  %3859 = vmatprep.subr.bf16.mxu1 %v7266_v30  ;;  %v7072_v45 = vcombine.high %v820_v39, %v868_v40  ;;  %v724_v46 = vld [vmem:[%s8855_s4] sm:$0xff]  ;;  %v7074_v48 = vcombine.high %v821_v41, %v869_v42  ;;  %v725_v49 = vld [vmem:[%s8855_s4 + $0x8] sm:$0xff]  ;;  %v7071_v55 = vcombine.low %v820_v39, %v868_v40  ;;  %v918_v13 = vld [vmem:[%s8855_s4 + $0x610] sm:$0xff] }
  0xdb   : > { %v772_v47 = vld [vmem:[%s8855_s4 + $0x180] sm:$0xff]  ;;  %v773_v52 = vld [vmem:[%s8855_s4 + $0x188] sm:$0xff]  ;;  %v7073_v56 = vcombine.low %v821_v41, %v869_v42  ;;  %v7365_v1 = vcombine.low %v1111_v53, %v1159_v54  ;;  %v3544_v2 = vand.u32 %v7366_v60, %v8859_v14  ;;  %v3535_v8 = vand.u32 %v7363_v62, %v8859_v14  ;;  %v966_v15 = vld [vmem:[%s8855_s4 + $0x790] sm:$0xff] }
  0xdc   : > { %v6976_v57 = vcombine.high %v724_v46, %v772_v47  ;;  %v6978_v59 = vcombine.high %v725_v49, %v773_v52  ;;  %v6975_v61 = vcombine.low %v724_v46, %v772_v47  ;;  %v6977_v63 = vcombine.low %v725_v49, %v773_v52  ;;  %v8896_v7 = vld [vmem:[%s10172_s0] sm:$0x7]  ;;  %v919_v16 = vld [vmem:[%s8855_s4 + $0x618] sm:$0xff]  ;;  %v822_v22 = vld [vmem:[%s8855_s4 + $0x310] sm:$0xff] }
  0xdd   : > { %3819 = vmatpush1.bf16.msra.mxu0 %v7263_v35  ;;  %3860 = vmatpush1.bf16.msra.mxu1 %v7265_v36  ;;  %v3541_v9 = vand.u32 %v7365_v1, %v8859_v14  ;;  %v7268_v11 = vcombine.high %v1014_v3, %v1062_v4  ;;  %v7270_v12 = vcombine.high %v1015_v5, %v1063_v6  ;;  %v967_v17 = vld [vmem:[%s8855_s4 + $0x798] sm:$0xff]  ;;  %v870_v23 = vld [vmem:[%s8855_s4 + $0x490] sm:$0xff]  ;;  %v1112_v33 = vld [vmem:[%s8855_s4 + $0xc20] sm:$0xff] }
  0xde   : > { %3820 = vmatprep.subr.bf16.mxu0 %v7168_v37  ;;  %3861 = vmatprep.subr.bf16.mxu1 %v7170_v38  ;;  %v7267_v18 = vcombine.low %v1014_v3, %v1062_v4  ;;  %v7269_v19 = vcombine.low %v1015_v5, %v1063_v6  ;;  %v7172_v20 = vcombine.high %v918_v13, %v966_v15  ;;  %v823_v24 = vld [vmem:[%s8855_s4 + $0x318] sm:$0xff]  ;;  %v726_v29 = vld [vmem:[%s8855_s4 + $0x10] sm:$0xff]  ;;  %v1160_v34 = vld [vmem:[%s8855_s4 + $0xda0] sm:$0x33] }
  0xdf   : > { %v7174_v21 = vcombine.high %v919_v16, %v967_v17  ;;  %v871_v25 = vld [vmem:[%s8855_s4 + $0x498] sm:$0xff]  ;;  %v7171_v26 = vcombine.low %v918_v13, %v966_v15  ;;  %v7173_v27 = vcombine.low %v919_v16, %v967_v17  ;;  %v7076_v28 = vcombine.high %v822_v22, %v870_v23  ;;  %v774_v30 = vld [vmem:[%s8855_s4 + $0x190] sm:$0xff]  ;;  %v1113_v36 = vld [vmem:[%s8855_s4 + $0xc28] sm:$0xff] }
  0xe0   : > { %v7078_v31 = vcombine.high %v823_v24, %v871_v25  ;;  %v727_v32 = vld [vmem:[%s8855_s4 + $0x18] sm:$0xff]  ;;  %v1161_v37 = vld [vmem:[%s8855_s4 + $0xda8] sm:$0x33]  ;;  %v7075_v38 = vcombine.low %v822_v22, %v870_v23  ;;  %v7077_v39 = vcombine.low %v823_v24, %v871_v25  ;;  %v6980_v40 = vcombine.high %v726_v29, %v774_v30  ;;  %v1016_v50 = vld [vmem:[%s8855_s4 + $0x920] sm:$0xff] }
  0xe1   : > { %3821 = vmatpush1.bf16.msra.mxu0 %v7167_v43  ;;  %3862 = vmatpush1.bf16.msra.mxu1 %v7169_v44  ;;  %v775_v35 = vld [vmem:[%s8855_s4 + $0x198] sm:$0xff]  ;;  %v7368_v41 = vcombine.high %v1112_v33, %v1160_v34  ;;  %v7370_v43 = vcombine.high %v1113_v36, %v1161_v37  ;;  %v6979_v44 = vcombine.low %v726_v29, %v774_v30  ;;  %v1064_v51 = vld [vmem:[%s8855_s4 + $0xaa0] sm:$0xff]  ;;  %v1017_v52 = vld [vmem:[%s8855_s4 + $0x928] sm:$0xff] }
  0xe2   : > { %3822 = vmatprep.subr.bf16.mxu0 %v7072_v45  ;;  %3863 = vmatprep.subr.bf16.mxu1 %v7074_v48  ;;  %v6982_v42 = vcombine.high %v727_v32, %v775_v35  ;;  %v7367_v45 = vcombine.low %v1112_v33, %v1160_v34  ;;  %v6981_v46 = vcombine.low %v727_v32, %v775_v35  ;;  %v1065_v53 = vld [vmem:[%s8855_s4 + $0xaa8] sm:$0xff]  ;;  %v920_v58 = vld [vmem:[%s8855_s4 + $0x620] sm:$0xff]  ;;  %v1114_v16 = vld [vmem:[%s8855_s4 + $0xc30] sm:$0xff] }
  0xe3   : > { %v3550_v47 = vand.u32 %v7368_v41, %v8859_v14  ;;  %v7369_v48 = vcombine.low %v1113_v36, %v1161_v37  ;;  %v3556_v49 = vand.u32 %v7370_v43, %v8859_v14  ;;  %v921_v60 = vld [vmem:[%s8855_s4 + $0x628] sm:$0xff]  ;;  %v7271_v62 = vcombine.low %v1016_v50, %v1064_v51  ;;  %v872_v3 = vld [vmem:[%s8855_s4 + $0x4a0] sm:$0xff]  ;;  %v1162_v17 = vld [vmem:[%s8855_s4 + $0xdb0] sm:$0x33] }
  0xe4   : > { %v3547_v54 = vand.u32 %v7367_v45, %v8859_v14  ;;  %v825_v4 = vld [vmem:[%s8855_s4 + $0x328] sm:$0xff]  ;;  %v7372_v24 = vcombine.high %v1114_v16, %v1162_v17  ;;  %v1018_v33 = vld [vmem:[%s8855_s4 + $0x930] sm:$0xff]  ;;  %v1019_v35 = vld [vmem:[%s8855_s4 + $0x938] sm:$0xff] }
  0xe5   : > { %3823 = vmatpush1.bf16.msra.mxu0 %v7071_v55  ;;  %3864 = vmatpush1.bf16.msra.mxu1 %v7073_v56  ;;  %v3553_v55 = vand.u32 %v7369_v48, %v8859_v14  ;;  %v7272_v56 = vcombine.high %v1016_v50, %v1064_v51  ;;  %v873_v5 = vld [vmem:[%s8855_s4 + $0x4a8] sm:$0xff]  ;;  %v1066_v34 = vld [vmem:[%s8855_s4 + $0xab0] sm:$0xff]  ;;  %v1067_v36 = vld [vmem:[%s8855_s4 + $0xab8] sm:$0xff] }
  0xe6   : > { %3824 = vmatprep.subr.bf16.mxu0 %v6976_v57  ;;  %3865 = vmatprep.subr.bf16.mxu1 %v6978_v59  ;;  %v7274_v57 = vcombine.high %v1017_v52, %v1065_v53  ;;  %v968_v59 = vld [vmem:[%s8855_s4 + $0x7a0] sm:$0xff]  ;;  %v7082_v13 = vcombine.high %v825_v4, %v873_v5  ;;  %v729_v15 = vld [vmem:[%s8855_s4 + $0x28] sm:$0xff]  ;;  %v7081_v22 = vcombine.low %v825_v4, %v873_v5  ;;  %v922_v41 = vld [vmem:[%s8855_s4 + $0x630] sm:$0xff] }
  0xe7   : > { %v7175_v6 = vcombine.low %v920_v58, %v968_v59  ;;  %v3562_v30 = vand.u32 %v7372_v24, %v8859_v14  ;;  %v923_v43 = vld [vmem:[%s8855_s4 + $0x638] sm:$0xff]  ;;  %v7275_v45 = vcombine.low %v1018_v33, %v1066_v34  ;;  %v874_v50 = vld [vmem:[%s8855_s4 + $0x4b0] sm:$0xff]  ;;  %v924_v24 = vld [vmem:[%s8855_s4 + $0x640] sm:$0xff] }
  0xe8   : > { %v827_v51 = vld [vmem:[%s8855_s4 + $0x338] sm:$0xff] }
  0xe9   : > { %3825 = vmatpush1.bf16.msra.mxu0 %v6975_v61  ;;  %3866 = vmatpush1.bf16.msra.mxu1 %v6977_v63  ;;  %v969_v61 = vld [vmem:[%s8855_s4 + $0x7a8] sm:$0xff]  ;;  %v7273_v63 = vcombine.low %v1017_v52, %v1065_v53  ;;  %v875_v52 = vld [vmem:[%s8855_s4 + $0x4b8] sm:$0xff] }
  0xea   : > { %3898 = vmatprep.subr.bf16.mxu0 %v3538_v0  ;;  %3939 = vmatprep.subr.bf16.mxu1 %v3544_v2  ;;  %v7176_v0 = vcombine.high %v920_v58, %v968_v59  ;;  %v7178_v1 = vcombine.high %v921_v60, %v969_v61  ;;  %v824_v2 = vld [vmem:[%s8855_s4 + $0x320] sm:$0xff]  ;;  %v7086_v58 = vcombine.high %v827_v51, %v875_v52  ;;  %v731_v59 = vld [vmem:[%s8855_s4 + $0x38] sm:$0xff] }
  0xec   : > { %7455 = vmatmul.mubr.msk.bf16.vlgmr.msra.gmra.mxu0 %vm3514_vm2, %v8896_v7  ;;  %7456 = vmatmul.mubr.msk.bf16.vlgmr.msra.gmra.mxu1 %vm3514_vm2, %v8896_v7 }
  0xed   : > { %3899 = vmatpush1.bf16.msra.mxu0 %v3535_v8  ;;  %3940 = vmatpush1.bf16.msra.mxu1 %v3541_v9  ;;  %v7177_v8 = vcombine.low %v921_v60, %v969_v61  ;;  %v7080_v9 = vcombine.high %v824_v2, %v872_v3  ;;  %v1116_v60 = vld [vmem:[%s8855_s4 + $0xc40] sm:$0xff] }
  0xee   : > { %3900 = vmatprep.subr.bf16.mxu0 %v7268_v11  ;;  %3941 = vmatprep.subr.bf16.mxu1 %v7270_v12  ;;  %v728_v11 = vld [vmem:[%s8855_s4 + $0x20] sm:$0xff] }
  0xef   : > { %3924 = vmatprep.mubr.bf16.mxu0 %v8214_v10  ;;  %3965 = vmatprep.mubr.bf16.mxu1 %v8214_v10  ;;  %v776_v12 = vld [vmem:[%s8855_s4 + $0x1a0] sm:$0xff] }
  0xf0   : > { %v6984_v23 = vcombine.high %v728_v11, %v776_v12  ;;  %v1164_v61 = vld [vmem:[%s8855_s4 + $0xdc0] sm:$0x33] }
  0xf1   : > { %3901 = vmatpush1.bf16.msra.mxu0 %v7267_v18  ;;  %3942 = vmatpush1.bf16.msra.mxu1 %v7269_v19  ;;  %v777_v18 = vld [vmem:[%s8855_s4 + $0x1a8] sm:$0xff]  ;;  %v1115_v19 = vld [vmem:[%s8855_s4 + $0xc38] sm:$0xff]  ;;  %v7376_v4 = vcombine.high %v1116_v60, %v1164_v61 }
  0xf2   : > { %3902 = vmatprep.subr.bf16.mxu0 %v7172_v20  ;;  %3943 = vmatprep.subr.bf16.mxu1 %v7174_v21  ;;  %v1163_v20 = vld [vmem:[%s8855_s4 + $0xdb8] sm:$0x33]  ;;  %v7079_v21 = vcombine.low %v824_v2, %v872_v3  ;;  %v6986_v25 = vcombine.high %v729_v15, %v777_v18  ;;  %v6985_v29 = vcombine.low %v729_v15, %v777_v18  ;;  %v1021_v18 = vld [vmem:[%s8855_s4 + $0x948] sm:$0xff] }
  0xf3   : > { %v7085_v2 = vcombine.low %v827_v51, %v875_v52 }
  0xf5   : > { %3903 = vmatpush1.bf16.msra.mxu0 %v7171_v26  ;;  %3944 = vmatpush1.bf16.msra.mxu1 %v7173_v27  ;;  %v7374_v26 = vcombine.high %v1115_v19, %v1163_v20  ;;  %v6983_v27 = vcombine.low %v728_v11, %v776_v12  ;;  %v3574_v12 = vand.u32 %v7376_v4, %v8859_v14  ;;  %v926_v4 = vld [vmem:[%s8855_s4 + $0x650] sm:$0xff] }
  0xf6   : > { %3904 = vmatprep.subr.bf16.mxu0 %v7076_v28  ;;  %3945 = vmatprep.subr.bf16.mxu1 %v7078_v31  ;;  %v7371_v28 = vcombine.low %v1114_v16, %v1162_v17  ;;  %v7373_v31 = vcombine.low %v1115_v19, %v1163_v20  ;;  %v1020_v16 = vld [vmem:[%s8855_s4 + $0x940] sm:$0xff]  ;;  %v1069_v19 = vld [vmem:[%s8855_s4 + $0xac8] sm:$0xff] }
  0xf7   : > { %v3568_v32 = vand.u32 %v7374_v26, %v8859_v14  ;;  %v1068_v17 = vld [vmem:[%s8855_s4 + $0xac0] sm:$0xff]  ;;  %v925_v26 = vld [vmem:[%s8855_s4 + $0x648] sm:$0xff] }
  0xf8   : > { %v3559_v37 = vand.u32 %v7371_v28, %v8859_v14  ;;  %v7279_v28 = vcombine.low %v1020_v16, %v1068_v17 }
  0xf9   : > { %3905 = vmatpush1.bf16.msra.mxu0 %v7075_v38  ;;  %3946 = vmatpush1.bf16.msra.mxu1 %v7077_v39  ;;  %v3565_v38 = vand.u32 %v7373_v31, %v8859_v14  ;;  %v7276_v39 = vcombine.high %v1018_v33, %v1066_v34  ;;  %v876_v33 = vld [vmem:[%s8855_s4 + $0x4c0] sm:$0xff]  ;;  %v829_v34 = vld [vmem:[%s8855_s4 + $0x348] sm:$0xff] }
  0xfa   : > { %3906 = vmatprep.subr.bf16.mxu0 %v6980_v40  ;;  %3947 = vmatprep.subr.bf16.mxu1 %v6982_v42  ;;  %v7278_v40 = vcombine.high %v1019_v35, %v1067_v36  ;;  %v970_v42 = vld [vmem:[%s8855_s4 + $0x7b0] sm:$0xff] }
  0xfb   : > { %v7179_v53 = vcombine.low %v922_v41, %v970_v42 }
  0xfd   : > { %3907 = vmatpush1.bf16.msra.mxu0 %v6979_v44  ;;  %3948 = vmatpush1.bf16.msra.mxu1 %v6981_v46  ;;  %v971_v44 = vld [vmem:[%s8855_s4 + $0x7b8] sm:$0xff]  ;;  %v7277_v46 = vcombine.low %v1019_v35, %v1067_v36  ;;  %v877_v35 = vld [vmem:[%s8855_s4 + $0x4c8] sm:$0xff] }
  0xfe   : > { %3980 = vmatprep.subr.bf16.mxu0 %v3550_v47  ;;  %4021 = vmatprep.subr.bf16.mxu1 %v3556_v49  ;;  %v7180_v47 = vcombine.high %v922_v41, %v970_v42  ;;  %v7182_v48 = vcombine.high %v923_v43, %v971_v44  ;;  %v826_v49 = vld [vmem:[%s8855_s4 + $0x330] sm:$0xff]  ;;  %v7090_v41 = vcombine.high %v829_v34, %v877_v35  ;;  %v733_v42 = vld [vmem:[%s8855_s4 + $0x48] sm:$0xff] }
 0x100   : > { %7457 = vmatmul.mubr.msk.bf16.vlgmr.msra.gmra.mxu0 %vm3514_vm2, %v8896_v7  ;;  %7458 = vmatmul.mubr.msk.bf16.vlgmr.msra.gmra.mxu1 %vm3514_vm2, %v8896_v7 }
 0x101   : > { %3981 = vmatpush1.bf16.msra.mxu0 %v3547_v54  ;;  %4022 = vmatpush1.bf16.msra.mxu1 %v3553_v55  ;;  %v7181_v54 = vcombine.low %v923_v43, %v971_v44  ;;  %v7084_v55 = vcombine.high %v826_v49, %v874_v50  ;;  %v1118_v43 = vld [vmem:[%s8855_s4 + $0xc50] sm:$0xff] }
 0x102   : > { %3982 = vmatprep.subr.bf16.mxu0 %v7272_v56  ;;  %4023 = vmatprep.subr.bf16.mxu1 %v7274_v57  ;;  %v730_v56 = vld [vmem:[%s8855_s4 + $0x30] sm:$0xff] }
 0x103   : > { %4006 = vmatprep.mubr.bf16.mxu0 %v8214_v10  ;;  %4047 = vmatprep.mubr.bf16.mxu1 %v8214_v10  ;;  %v778_v57 = vld [vmem:[%s8855_s4 + $0x1b0] sm:$0xff] }
 0x104   : > { %v6988_v3 = vcombine.high %v730_v56, %v778_v57  ;;  %v1166_v44 = vld [vmem:[%s8855_s4 + $0xdd0] sm:$0x33] }
 0x105   : > { %3983 = vmatpush1.bf16.msra.mxu0 %v7271_v62  ;;  %4024 = vmatpush1.bf16.msra.mxu1 %v7273_v63  ;;  %v779_v62 = vld [vmem:[%s8855_s4 + $0x1b8] sm:$0xff]  ;;  %v1117_v63 = vld [vmem:[%s8855_s4 + $0xc48] sm:$0xff]  ;;  %v7380_v51 = vcombine.high %v1118_v43, %v1166_v44 }
 0x106   : > { %3984 = vmatprep.subr.bf16.mxu0 %v7176_v0  ;;  %4025 = vmatprep.subr.bf16.mxu1 %v7178_v1  ;;  %v1165_v0 = vld [vmem:[%s8855_s4 + $0xdc8] sm:$0x33]  ;;  %v7083_v1 = vcombine.low %v826_v49, %v874_v50  ;;  %v6990_v5 = vcombine.high %v731_v59, %v779_v62  ;;  %v6989_v11 = vcombine.low %v731_v59, %v779_v62  ;;  %v1023_v62 = vld [vmem:[%s8855_s4 + $0x958] sm:$0xff] }
 0x107   : > { %v7089_v49 = vcombine.low %v829_v34, %v877_v35 }
 0x109   : > { %3985 = vmatpush1.bf16.msra.mxu0 %v7175_v6  ;;  %4026 = vmatpush1.bf16.msra.mxu1 %v7177_v8  ;;  %v7378_v6 = vcombine.high %v1117_v63, %v1165_v0  ;;  %v6987_v8 = vcombine.low %v730_v56, %v778_v57  ;;  %v3586_v57 = vand.u32 %v7380_v51, %v8859_v14  ;;  %v928_v51 = vld [vmem:[%s8855_s4 + $0x660] sm:$0xff] }
 0x10a   : > { %3986 = vmatprep.subr.bf16.mxu0 %v7080_v9  ;;  %4027 = vmatprep.subr.bf16.mxu1 %v7082_v13  ;;  %v7375_v9 = vcombine.low %v1116_v60, %v1164_v61  ;;  %v7377_v13 = vcombine.low %v1117_v63, %v1165_v0  ;;  %v1022_v60 = vld [vmem:[%s8855_s4 + $0x950] sm:$0xff]  ;;  %v1071_v63 = vld [vmem:[%s8855_s4 + $0xad8] sm:$0xff] }
 0x10b   : > { %v3580_v15 = vand.u32 %v7378_v6, %v8859_v14  ;;  %v1070_v61 = vld [vmem:[%s8855_s4 + $0xad0] sm:$0xff]  ;;  %v927_v6 = vld [vmem:[%s8855_s4 + $0x658] sm:$0xff] }
 0x10c   : > { %v3571_v20 = vand.u32 %v7375_v9, %v8859_v14  ;;  %v7283_v9 = vcombine.low %v1022_v60, %v1070_v61 }
 0x10d   : > { %3987 = vmatpush1.bf16.msra.mxu0 %v7079_v21  ;;  %4028 = vmatpush1.bf16.msra.mxu1 %v7081_v22  ;;  %v3577_v21 = vand.u32 %v7377_v13, %v8859_v14  ;;  %v7280_v22 = vcombine.high %v1020_v16, %v1068_v17  ;;  %v878_v16 = vld [vmem:[%s8855_s4 + $0x4d0] sm:$0xff]  ;;  %v831_v17 = vld [vmem:[%s8855_s4 + $0x358] sm:$0xff] }
 0x10e   : > { %3988 = vmatprep.subr.bf16.mxu0 %v6984_v23  ;;  %4029 = vmatprep.subr.bf16.mxu1 %v6986_v25  ;;  %v7282_v23 = vcombine.high %v1021_v18, %v1069_v19  ;;  %v972_v25 = vld [vmem:[%s8855_s4 + $0x7c0] sm:$0xff] }
 0x10f   : > { %v7183_v36 = vcombine.low %v924_v24, %v972_v25 }
 0x111   : > { %3989 = vmatpush1.bf16.msra.mxu0 %v6983_v27  ;;  %4030 = vmatpush1.bf16.msra.mxu1 %v6985_v29  ;;  %v973_v27 = vld [vmem:[%s8855_s4 + $0x7c8] sm:$0xff]  ;;  %v7281_v29 = vcombine.low %v1021_v18, %v1069_v19  ;;  %v879_v18 = vld [vmem:[%s8855_s4 + $0x4d8] sm:$0xff] }
 0x112   : > { %4062 = vmatprep.subr.bf16.mxu0 %v3562_v30  ;;  %4103 = vmatprep.subr.bf16.mxu1 %v3568_v32  ;;  %v7184_v30 = vcombine.high %v924_v24, %v972_v25  ;;  %v7186_v31 = vcombine.high %v925_v26, %v973_v27  ;;  %v828_v32 = vld [vmem:[%s8855_s4 + $0x340] sm:$0xff]  ;;  %v7094_v24 = vcombine.high %v831_v17, %v879_v18  ;;  %v735_v25 = vld [vmem:[%s8855_s4 + $0x58] sm:$0xff] }
 0x114   : > { %7459 = vmatmul.mubr.msk.bf16.vlgmr.msra.gmra.mxu0 %vm3514_vm2, %v8896_v7  ;;  %7460 = vmatmul.mubr.msk.bf16.vlgmr.msra.gmra.mxu1 %vm3514_vm2, %v8896_v7 }
 0x115   : > { %4063 = vmatpush1.bf16.msra.mxu0 %v3559_v37  ;;  %4104 = vmatpush1.bf16.msra.mxu1 %v3565_v38  ;;  %v7185_v37 = vcombine.low %v925_v26, %v973_v27  ;;  %v7088_v38 = vcombine.high %v828_v32, %v876_v33  ;;  %v1120_v26 = vld [vmem:[%s8855_s4 + $0xc60] sm:$0xff] }
 0x116   : > { %4064 = vmatprep.subr.bf16.mxu0 %v7276_v39  ;;  %4105 = vmatprep.subr.bf16.mxu1 %v7278_v40  ;;  %v732_v39 = vld [vmem:[%s8855_s4 + $0x40] sm:$0xff] }
 0x117   : > { %4088 = vmatprep.mubr.bf16.mxu0 %v8214_v10  ;;  %4129 = vmatprep.mubr.bf16.mxu1 %v8214_v10  ;;  %v780_v40 = vld [vmem:[%s8855_s4 + $0x1c0] sm:$0xff] }
 0x118   : > { %v6992_v50 = vcombine.high %v732_v39, %v780_v40  ;;  %v1168_v27 = vld [vmem:[%s8855_s4 + $0xde0] sm:$0x33] }
 0x119   : > { %4065 = vmatpush1.bf16.msra.mxu0 %v7275_v45  ;;  %4106 = vmatpush1.bf16.msra.mxu1 %v7277_v46  ;;  %v781_v45 = vld [vmem:[%s8855_s4 + $0x1c8] sm:$0xff]  ;;  %v1119_v46 = vld [vmem:[%s8855_s4 + $0xc58] sm:$0xff]  ;;  %v7384_v34 = vcombine.high %v1120_v26, %v1168_v27 }
 0x11a   : > { %4066 = vmatprep.subr.bf16.mxu0 %v7180_v47  ;;  %4107 = vmatprep.subr.bf16.mxu1 %v7182_v48  ;;  %v1167_v47 = vld [vmem:[%s8855_s4 + $0xdd8] sm:$0x33]  ;;  %v7087_v48 = vcombine.low %v828_v32, %v876_v33  ;;  %v6994_v52 = vcombine.high %v733_v42, %v781_v45  ;;  %v6993_v56 = vcombine.low %v733_v42, %v781_v45  ;;  %v1025_v45 = vld [vmem:[%s8855_s4 + $0x968] sm:$0xff] }
 0x11b   : > { %v7093_v32 = vcombine.low %v831_v17, %v879_v18 }
 0x11d   : > { %4067 = vmatpush1.bf16.msra.mxu0 %v7179_v53  ;;  %4108 = vmatpush1.bf16.msra.mxu1 %v7181_v54  ;;  %v7382_v53 = vcombine.high %v1119_v46, %v1167_v47  ;;  %v6991_v54 = vcombine.low %v732_v39, %v780_v40  ;;  %v3598_v40 = vand.u32 %v7384_v34, %v8859_v14  ;;  %v930_v34 = vld [vmem:[%s8855_s4 + $0x670] sm:$0xff] }
 0x11e   : > { %4068 = vmatprep.subr.bf16.mxu0 %v7084_v55  ;;  %4109 = vmatprep.subr.bf16.mxu1 %v7086_v58  ;;  %v7379_v55 = vcombine.low %v1118_v43, %v1166_v44  ;;  %v7381_v58 = vcombine.low %v1119_v46, %v1167_v47  ;;  %v1024_v43 = vld [vmem:[%s8855_s4 + $0x960] sm:$0xff]  ;;  %v1073_v46 = vld [vmem:[%s8855_s4 + $0xae8] sm:$0xff] }
 0x11f   : > { %v3592_v59 = vand.u32 %v7382_v53, %v8859_v14  ;;  %v1072_v44 = vld [vmem:[%s8855_s4 + $0xae0] sm:$0xff]  ;;  %v929_v53 = vld [vmem:[%s8855_s4 + $0x668] sm:$0xff] }
 0x120   : > { %v3583_v0 = vand.u32 %v7379_v55, %v8859_v14  ;;  %v7287_v55 = vcombine.low %v1024_v43, %v1072_v44 }
 0x121   : > { %4069 = vmatpush1.bf16.msra.mxu0 %v7083_v1  ;;  %4110 = vmatpush1.bf16.msra.mxu1 %v7085_v2  ;;  %v3589_v1 = vand.u32 %v7381_v58, %v8859_v14  ;;  %v7284_v2 = vcombine.high %v1022_v60, %v1070_v61  ;;  %v880_v60 = vld [vmem:[%s8855_s4 + $0x4e0] sm:$0xff]  ;;  %v833_v61 = vld [vmem:[%s8855_s4 + $0x368] sm:$0xff] }
 0x122   : > { %4070 = vmatprep.subr.bf16.mxu0 %v6988_v3  ;;  %4111 = vmatprep.subr.bf16.mxu1 %v6990_v5  ;;  %v7286_v3 = vcombine.high %v1023_v62, %v1071_v63  ;;  %v974_v5 = vld [vmem:[%s8855_s4 + $0x7d0] sm:$0xff] }
 0x123   : > { %v7187_v19 = vcombine.low %v926_v4, %v974_v5 }
 0x125   : > { %4071 = vmatpush1.bf16.msra.mxu0 %v6987_v8  ;;  %4112 = vmatpush1.bf16.msra.mxu1 %v6989_v11  ;;  %v975_v8 = vld [vmem:[%s8855_s4 + $0x7d8] sm:$0xff]  ;;  %v7285_v11 = vcombine.low %v1023_v62, %v1071_v63  ;;  %v881_v62 = vld [vmem:[%s8855_s4 + $0x4e8] sm:$0xff] }
 0x126   : > { %4144 = vmatprep.subr.bf16.mxu0 %v3574_v12  ;;  %4185 = vmatprep.subr.bf16.mxu1 %v3580_v15  ;;  %v7188_v12 = vcombine.high %v926_v4, %v974_v5  ;;  %v7190_v13 = vcombine.high %v927_v6, %v975_v8  ;;  %v830_v15 = vld [vmem:[%s8855_s4 + $0x350] sm:$0xff]  ;;  %v7098_v4 = vcombine.high %v833_v61, %v881_v62  ;;  %v737_v5 = vld [vmem:[%s8855_s4 + $0x68] sm:$0xff] }
 0x128   : > { %7461 = vmatmul.mubr.msk.bf16.vlgmr.msra.gmra.mxu0 %vm3514_vm2, %v8896_v7  ;;  %7462 = vmatmul.mubr.msk.bf16.vlgmr.msra.gmra.mxu1 %vm3514_vm2, %v8896_v7 }
 0x129   : > { %4145 = vmatpush1.bf16.msra.mxu0 %v3571_v20  ;;  %4186 = vmatpush1.bf16.msra.mxu1 %v3577_v21  ;;  %v7189_v20 = vcombine.low %v927_v6, %v975_v8  ;;  %v7092_v21 = vcombine.high %v830_v15, %v878_v16  ;;  %v1122_v6 = vld [vmem:[%s8855_s4 + $0xc70] sm:$0xff] }
 0x12a   : > { %4146 = vmatprep.subr.bf16.mxu0 %v7280_v22  ;;  %4187 = vmatprep.subr.bf16.mxu1 %v7282_v23  ;;  %v734_v22 = vld [vmem:[%s8855_s4 + $0x50] sm:$0xff] }
 0x12b   : > { %4170 = vmatprep.mubr.bf16.mxu0 %v8214_v10  ;;  %4211 = vmatprep.mubr.bf16.mxu1 %v8214_v10  ;;  %v782_v23 = vld [vmem:[%s8855_s4 + $0x1d0] sm:$0xff] }
 0x12c   : > { %v6996_v33 = vcombine.high %v734_v22, %v782_v23  ;;  %v1170_v8 = vld [vmem:[%s8855_s4 + $0xdf0] sm:$0x33] }
 0x12d   : > { %4147 = vmatpush1.bf16.msra.mxu0 %v7279_v28  ;;  %4188 = vmatpush1.bf16.msra.mxu1 %v7281_v29  ;;  %v783_v28 = vld [vmem:[%s8855_s4 + $0x1d8] sm:$0xff]  ;;  %v1121_v29 = vld [vmem:[%s8855_s4 + $0xc68] sm:$0xff]  ;;  %v7388_v17 = vcombine.high %v1122_v6, %v1170_v8 }
 0x12e   : > { %4148 = vmatprep.subr.bf16.mxu0 %v7184_v30  ;;  %4189 = vmatprep.subr.bf16.mxu1 %v7186_v31  ;;  %v1169_v30 = vld [vmem:[%s8855_s4 + $0xde8] sm:$0x33]  ;;  %v7091_v31 = vcombine.low %v830_v15, %v878_v16  ;;  %v6998_v35 = vcombine.high %v735_v25, %v783_v28  ;;  %v6997_v39 = vcombine.low %v735_v25, %v783_v28  ;;  %v1027_v28 = vld [vmem:[%s8855_s4 + $0x978] sm:$0xff] }
 0x12f   : > { %v7097_v15 = vcombine.low %v833_v61, %v881_v62 }
 0x131   : > { %4149 = vmatpush1.bf16.msra.mxu0 %v7183_v36  ;;  %4190 = vmatpush1.bf16.msra.mxu1 %v7185_v37  ;;  %v7386_v36 = vcombine.high %v1121_v29, %v1169_v30  ;;  %v6995_v37 = vcombine.low %v734_v22, %v782_v23  ;;  %v3610_v23 = vand.u32 %v7388_v17, %v8859_v14  ;;  %v932_v17 = vld [vmem:[%s8855_s4 + $0x680] sm:$0xff] }
 0x132   : > { %4150 = vmatprep.subr.bf16.mxu0 %v7088_v38  ;;  %4191 = vmatprep.subr.bf16.mxu1 %v7090_v41  ;;  %v7383_v38 = vcombine.low %v1120_v26, %v1168_v27  ;;  %v7385_v41 = vcombine.low %v1121_v29, %v1169_v30  ;;  %v1026_v26 = vld [vmem:[%s8855_s4 + $0x970] sm:$0xff]  ;;  %v1075_v29 = vld [vmem:[%s8855_s4 + $0xaf8] sm:$0xff] }
 0x133   : > { %v3604_v42 = vand.u32 %v7386_v36, %v8859_v14  ;;  %v1074_v27 = vld [vmem:[%s8855_s4 + $0xaf0] sm:$0xff]  ;;  %v931_v36 = vld [vmem:[%s8855_s4 + $0x678] sm:$0xff] }
 0x134   : > { %v3595_v47 = vand.u32 %v7383_v38, %v8859_v14  ;;  %v7291_v38 = vcombine.low %v1026_v26, %v1074_v27 }
 0x135   : > { %4151 = vmatpush1.bf16.msra.mxu0 %v7087_v48  ;;  %4192 = vmatpush1.bf16.msra.mxu1 %v7089_v49  ;;  %v3601_v48 = vand.u32 %v7385_v41, %v8859_v14  ;;  %v7288_v49 = vcombine.high %v1024_v43, %v1072_v44  ;;  %v882_v43 = vld [vmem:[%s8855_s4 + $0x4f0] sm:$0xff]  ;;  %v835_v44 = vld [vmem:[%s8855_s4 + $0x378] sm:$0xff] }
 0x136   : > { %4152 = vmatprep.subr.bf16.mxu0 %v6992_v50  ;;  %4193 = vmatprep.subr.bf16.mxu1 %v6994_v52  ;;  %v7290_v50 = vcombine.high %v1025_v45, %v1073_v46  ;;  %v976_v52 = vld [vmem:[%s8855_s4 + $0x7e0] sm:$0xff] }
 0x137   : > { %v7191_v63 = vcombine.low %v928_v51, %v976_v52 }
 0x139   : > { %4153 = vmatpush1.bf16.msra.mxu0 %v6991_v54  ;;  %4194 = vmatpush1.bf16.msra.mxu1 %v6993_v56  ;;  %v977_v54 = vld [vmem:[%s8855_s4 + $0x7e8] sm:$0xff]  ;;  %v7289_v56 = vcombine.low %v1025_v45, %v1073_v46  ;;  %v883_v45 = vld [vmem:[%s8855_s4 + $0x4f8] sm:$0xff] }
 0x13a   : > { %4226 = vmatprep.subr.bf16.mxu0 %v3586_v57  ;;  %4267 = vmatprep.subr.bf16.mxu1 %v3592_v59  ;;  %v7192_v57 = vcombine.high %v928_v51, %v976_v52  ;;  %v7194_v58 = vcombine.high %v929_v53, %v977_v54  ;;  %v832_v59 = vld [vmem:[%s8855_s4 + $0x360] sm:$0xff]  ;;  %v7102_v51 = vcombine.high %v835_v44, %v883_v45  ;;  %v739_v52 = vld [vmem:[%s8855_s4 + $0x78] sm:$0xff] }
 0x13c   : > { %7463 = vmatmul.mubr.msk.bf16.vlgmr.msra.gmra.mxu0 %vm3514_vm2, %v8896_v7  ;;  %7464 = vmatmul.mubr.msk.bf16.vlgmr.msra.gmra.mxu1 %vm3514_vm2, %v8896_v7 }
 0x13d   : > { %4227 = vmatpush1.bf16.msra.mxu0 %v3583_v0  ;;  %4268 = vmatpush1.bf16.msra.mxu1 %v3589_v1  ;;  %v7193_v0 = vcombine.low %v929_v53, %v977_v54  ;;  %v7096_v1 = vcombine.high %v832_v59, %v880_v60  ;;  %v1124_v53 = vld [vmem:[%s8855_s4 + $0xc80] sm:$0xff] }
 0x13e   : > { %4228 = vmatprep.subr.bf16.mxu0 %v7284_v2  ;;  %4269 = vmatprep.subr.bf16.mxu1 %v7286_v3  ;;  %v736_v2 = vld [vmem:[%s8855_s4 + $0x60] sm:$0xff] }
 0x13f   : > { %4252 = vmatprep.mubr.bf16.mxu0 %v8214_v10  ;;  %4293 = vmatprep.mubr.bf16.mxu1 %v8214_v10  ;;  %v784_v3 = vld [vmem:[%s8855_s4 + $0x1e0] sm:$0xff] }
 0x140   : > { %v7000_v16 = vcombine.high %v736_v2, %v784_v3  ;;  %v1172_v54 = vld [vmem:[%s8855_s4 + $0xe00] sm:$0x33] }
 0x141   : > { %4229 = vmatpush1.bf16.msra.mxu0 %v7283_v9  ;;  %4270 = vmatpush1.bf16.msra.mxu1 %v7285_v11  ;;  %v785_v9 = vld [vmem:[%s8855_s4 + $0x1e8] sm:$0xff]  ;;  %v1123_v11 = vld [vmem:[%s8855_s4 + $0xc78] sm:$0xff]  ;;  %v7392_v61 = vcombine.high %v1124_v53, %v1172_v54 }
 0x142   : > { %4230 = vmatprep.subr.bf16.mxu0 %v7188_v12  ;;  %4271 = vmatprep.subr.bf16.mxu1 %v7190_v13  ;;  %v1171_v12 = vld [vmem:[%s8855_s4 + $0xdf8] sm:$0x33]  ;;  %v7095_v13 = vcombine.low %v832_v59, %v880_v60  ;;  %v7002_v18 = vcombine.high %v737_v5, %v785_v9  ;;  %v7001_v22 = vcombine.low %v737_v5, %v785_v9  ;;  %v1029_v9 = vld [vmem:[%s8855_s4 + $0x988] sm:$0xff] }
 0x143   : > { %v7101_v59 = vcombine.low %v835_v44, %v883_v45 }
 0x145   : > { %4231 = vmatpush1.bf16.msra.mxu0 %v7187_v19  ;;  %4272 = vmatpush1.bf16.msra.mxu1 %v7189_v20  ;;  %v7390_v19 = vcombine.high %v1123_v11, %v1171_v12  ;;  %v6999_v20 = vcombine.low %v736_v2, %v784_v3  ;;  %v3622_v3 = vand.u32 %v7392_v61, %v8859_v14  ;;  %v982_v61 = vld [vmem:[%s8855_s4 + $0x810] sm:$0xff] }
 0x146   : > { %4232 = vmatprep.subr.bf16.mxu0 %v7092_v21  ;;  %4273 = vmatprep.subr.bf16.mxu1 %v7094_v24  ;;  %v7387_v21 = vcombine.low %v1122_v6, %v1170_v8  ;;  %v7389_v24 = vcombine.low %v1123_v11, %v1171_v12  ;;  %v1028_v6 = vld [vmem:[%s8855_s4 + $0x980] sm:$0xff]  ;;  %v1077_v11 = vld [vmem:[%s8855_s4 + $0xb08] sm:$0xff] }
 0x147   : > { %v3616_v25 = vand.u32 %v7390_v19, %v8859_v14  ;;  %v1076_v8 = vld [vmem:[%s8855_s4 + $0xb00] sm:$0xff]  ;;  %v933_v19 = vld [vmem:[%s8855_s4 + $0x688] sm:$0xff] }
 0x148   : > { %v3607_v30 = vand.u32 %v7387_v21, %v8859_v14  ;;  %v7295_v21 = vcombine.low %v1028_v6, %v1076_v8 }
 0x149   : > { %4233 = vmatpush1.bf16.msra.mxu0 %v7091_v31  ;;  %4274 = vmatpush1.bf16.msra.mxu1 %v7093_v32  ;;  %v3613_v31 = vand.u32 %v7389_v24, %v8859_v14  ;;  %v7292_v32 = vcombine.high %v1026_v26, %v1074_v27  ;;  %v884_v26 = vld [vmem:[%s8855_s4 + $0x500] sm:$0xff]  ;;  %v837_v27 = vld [vmem:[%s8855_s4 + $0x388] sm:$0xff] }
 0x14a   : > { %4234 = vmatprep.subr.bf16.mxu0 %v6996_v33  ;;  %4275 = vmatprep.subr.bf16.mxu1 %v6998_v35  ;;  %v7294_v33 = vcombine.high %v1027_v28, %v1075_v29  ;;  %v978_v35 = vld [vmem:[%s8855_s4 + $0x7f0] sm:$0xff] }
 0x14b   : > { %v7195_v46 = vcombine.low %v930_v34, %v978_v35 }
 0x14d   : > { %4235 = vmatpush1.bf16.msra.mxu0 %v6995_v37  ;;  %4276 = vmatpush1.bf16.msra.mxu1 %v6997_v39  ;;  %v979_v37 = vld [vmem:[%s8855_s4 + $0x7f8] sm:$0xff]  ;;  %v7293_v39 = vcombine.low %v1027_v28, %v1075_v29 }
 0x14e   : > { %4308 = vmatprep.subr.bf16.mxu0 %v3598_v40  ;;  %4349 = vmatprep.subr.bf16.mxu1 %v3604_v42  ;;  %v7196_v40 = vcombine.high %v930_v34, %v978_v35  ;;  %v7198_v41 = vcombine.high %v931_v36, %v979_v37  ;;  %v834_v42 = vld [vmem:[%s8855_s4 + $0x370] sm:$0xff]  ;;  %v741_v34 = vld [vmem:[%s8855_s4 + $0x88] sm:$0xff] }
 0x14f   : > { %v1126_v35 = vld [vmem:[%s8855_s4 + $0xc90] sm:$0xff] }
 0x150   : > { %7465 = vmatmul.mubr.msk.bf16.vlgmr.msra.gmra.mxu0 %vm3514_vm2, %v8896_v7  ;;  %7466 = vmatmul.mubr.msk.bf16.vlgmr.msra.gmra.mxu1 %vm3514_vm2, %v8896_v7 }
 0x151   : > { %4309 = vmatpush1.bf16.msra.mxu0 %v3595_v47  ;;  %4350 = vmatpush1.bf16.msra.mxu1 %v3601_v48  ;;  %v7197_v47 = vcombine.low %v931_v36, %v979_v37  ;;  %v7100_v48 = vcombine.high %v834_v42, %v882_v43  ;;  %v1174_v36 = vld [vmem:[%s8855_s4 + $0xe10] sm:$0x33]  ;;  %v789_v37 = vld [vmem:[%s8855_s4 + $0x208] sm:$0xff] }
 0x152   : > { %4310 = vmatprep.subr.bf16.mxu0 %v7288_v49  ;;  %4351 = vmatprep.subr.bf16.mxu1 %v7290_v50  ;;  %v738_v49 = vld [vmem:[%s8855_s4 + $0x70] sm:$0xff]  ;;  %v7010_v44 = vcombine.high %v741_v34, %v789_v37 }
 0x153   : > { %4334 = vmatprep.mubr.bf16.mxu0 %v8214_v10  ;;  %4375 = vmatprep.mubr.bf16.mxu1 %v8214_v10  ;;  %v786_v50 = vld [vmem:[%s8855_s4 + $0x1f0] sm:$0xff] }
 0x154   : > { %v7004_v60 = vcombine.high %v738_v49, %v786_v50 }
 0x155   : > { %4311 = vmatpush1.bf16.msra.mxu0 %v7287_v55  ;;  %4352 = vmatpush1.bf16.msra.mxu1 %v7289_v56  ;;  %v787_v55 = vld [vmem:[%s8855_s4 + $0x1f8] sm:$0xff]  ;;  %v1125_v56 = vld [vmem:[%s8855_s4 + $0xc88] sm:$0xff] }
 0x156   : > { %4312 = vmatprep.subr.bf16.mxu0 %v7192_v57  ;;  %4353 = vmatprep.subr.bf16.mxu1 %v7194_v58  ;;  %v1173_v57 = vld [vmem:[%s8855_s4 + $0xe08] sm:$0x33]  ;;  %v7099_v58 = vcombine.low %v834_v42, %v882_v43  ;;  %v7006_v62 = vcombine.high %v739_v52, %v787_v55  ;;  %v7005_v2 = vcombine.low %v739_v52, %v787_v55  ;;  %v1030_v52 = vld [vmem:[%s8855_s4 + $0x990] sm:$0xff]  ;;  %v1079_v55 = vld [vmem:[%s8855_s4 + $0xb18] sm:$0xff] }
 0x157   : > { %v7396_v43 = vcombine.high %v1126_v35, %v1174_v36 }
 0x159   : > { %4313 = vmatpush1.bf16.msra.mxu0 %v7191_v63  ;;  %4354 = vmatpush1.bf16.msra.mxu1 %v7193_v0  ;;  %v7394_v63 = vcombine.high %v1125_v56, %v1173_v57  ;;  %v7003_v0 = vcombine.low %v738_v49, %v786_v50  ;;  %v3634_v49 = vand.u32 %v7396_v43, %v8859_v14  ;;  %v936_v43 = vld [vmem:[%s8855_s4 + $0x6a0] sm:$0xff] }
 0x15a   : > { %4314 = vmatprep.subr.bf16.mxu0 %v7096_v1  ;;  %4355 = vmatprep.subr.bf16.mxu1 %v7098_v4  ;;  %v7391_v1 = vcombine.low %v1124_v53, %v1172_v54  ;;  %v7393_v4 = vcombine.low %v1125_v56, %v1173_v57  ;;  %v1078_v53 = vld [vmem:[%s8855_s4 + $0xb10] sm:$0xff]  ;;  %v1031_v54 = vld [vmem:[%s8855_s4 + $0x998] sm:$0xff] }
 0x15b   : > { %v3628_v5 = vand.u32 %v7394_v63, %v8859_v14  ;;  %v935_v63 = vld [vmem:[%s8855_s4 + $0x698] sm:$0xff] }
 0x15c   : > { %v3619_v12 = vand.u32 %v7391_v1, %v8859_v14  ;;  %v7299_v1 = vcombine.low %v1030_v52, %v1078_v53 }
 0x15d   : > { %4315 = vmatpush1.bf16.msra.mxu0 %v7095_v13  ;;  %4356 = vmatpush1.bf16.msra.mxu1 %v7097_v15  ;;  %v3625_v13 = vand.u32 %v7393_v4, %v8859_v14  ;;  %v7296_v15 = vcombine.high %v1028_v6, %v1076_v8  ;;  %v886_v6 = vld [vmem:[%s8855_s4 + $0x510] sm:$0xff]  ;;  %v839_v8 = vld [vmem:[%s8855_s4 + $0x398] sm:$0xff] }
 0x15e   : > { %4316 = vmatprep.subr.bf16.mxu0 %v7000_v16  ;;  %4357 = vmatprep.subr.bf16.mxu1 %v7002_v18  ;;  %v7298_v16 = vcombine.high %v1029_v9, %v1077_v11  ;;  %v980_v18 = vld [vmem:[%s8855_s4 + $0x800] sm:$0xff] }
 0x15f   : > { %v7199_v28 = vcombine.low %v932_v17, %v980_v18 }
 0x161   : > { %4317 = vmatpush1.bf16.msra.mxu0 %v6999_v20  ;;  %4358 = vmatpush1.bf16.msra.mxu1 %v7001_v22  ;;  %v981_v20 = vld [vmem:[%s8855_s4 + $0x808] sm:$0xff]  ;;  %v7297_v22 = vcombine.low %v1029_v9, %v1077_v11  ;;  %v887_v9 = vld [vmem:[%s8855_s4 + $0x518] sm:$0xff] }
 0x162   : > { %4390 = vmatprep.subr.bf16.mxu0 %v3610_v23  ;;  %4431 = vmatprep.subr.bf16.mxu1 %v3616_v25  ;;  %v7200_v23 = vcombine.high %v932_v17, %v980_v18  ;;  %v7202_v24 = vcombine.high %v933_v19, %v981_v20  ;;  %v836_v25 = vld [vmem:[%s8855_s4 + $0x380] sm:$0xff]  ;;  %v7201_v29 = vcombine.low %v933_v19, %v981_v20  ;;  %v743_v18 = vld [vmem:[%s8855_s4 + $0x98] sm:$0xff] }
 0x163   : > { %v7110_v17 = vcombine.high %v839_v8, %v887_v9  ;;  %v1128_v19 = vld [vmem:[%s8855_s4 + $0xca0] sm:$0xff] }
 0x164   : > { %7467 = vmatmul.mubr.msk.bf16.vlgmr.msra.gmra.mxu0 %vm3514_vm2, %v8896_v7  ;;  %7468 = vmatmul.mubr.msk.bf16.vlgmr.msra.gmra.mxu1 %vm3514_vm2, %v8896_v7  ;;  %v1176_v20 = vld [vmem:[%s8855_s4 + $0xe20] sm:$0x33] }
 0x165   : > { %4391 = vmatpush1.bf16.msra.mxu0 %v3607_v30  ;;  %4432 = vmatpush1.bf16.msra.mxu1 %v3613_v31  ;;  %v7104_v30 = vcombine.high %v836_v25, %v884_v26  ;;  %v740_v31 = vld [vmem:[%s8855_s4 + $0x80] sm:$0xff] }
 0x166   : > { %4392 = vmatprep.subr.bf16.mxu0 %v7292_v32  ;;  %4433 = vmatprep.subr.bf16.mxu1 %v7294_v33  ;;  %v788_v32 = vld [vmem:[%s8855_s4 + $0x200] sm:$0xff] }
 0x167   : > { %4416 = vmatprep.mubr.bf16.mxu0 %v8214_v10  ;;  %4457 = vmatprep.mubr.bf16.mxu1 %v8214_v10  ;;  %v7008_v42 = vcombine.high %v740_v31, %v788_v32 }
 0x169   : > { %4393 = vmatpush1.bf16.msra.mxu0 %v7291_v38  ;;  %4434 = vmatpush1.bf16.msra.mxu1 %v7293_v39  ;;  %v1127_v38 = vld [vmem:[%s8855_s4 + $0xc98] sm:$0xff] }
 0x16a   : > { %4394 = vmatprep.subr.bf16.mxu0 %v7196_v40  ;;  %4435 = vmatprep.subr.bf16.mxu1 %v7198_v41  ;;  %v1175_v39 = vld [vmem:[%s8855_s4 + $0xe18] sm:$0x33]  ;;  %v7103_v40 = vcombine.low %v836_v25, %v884_v26  ;;  %v7109_v25 = vcombine.low %v839_v8, %v887_v9 }
 0x16b   : > { %v7398_v45 = vcombine.high %v1127_v38, %v1175_v39  ;;  %v7397_v50 = vcombine.low %v1127_v38, %v1175_v39  ;;  %v1081_v38 = vld [vmem:[%s8855_s4 + $0xb28] sm:$0xff] }
 0x16d   : > { %4395 = vmatpush1.bf16.msra.mxu0 %v7195_v46  ;;  %4436 = vmatpush1.bf16.msra.mxu1 %v7197_v47  ;;  %v7007_v46 = vcombine.low %v740_v31, %v788_v32  ;;  %v7395_v47 = vcombine.low %v1126_v35, %v1174_v36  ;;  %v3637_v57 = vand.u32 %v7397_v50, %v8859_v14  ;;  %v1032_v35 = vld [vmem:[%s8855_s4 + $0x9a0] sm:$0xff] }
 0x16e   : > { %4396 = vmatprep.subr.bf16.mxu0 %v7100_v48  ;;  %4437 = vmatprep.subr.bf16.mxu1 %v7102_v51  ;;  %v7009_v48 = vcombine.low %v741_v34, %v789_v37  ;;  %v3640_v51 = vand.u32 %v7398_v45, %v8859_v14  ;;  %v1080_v36 = vld [vmem:[%s8855_s4 + $0xb20] sm:$0xff]  ;;  %v1033_v37 = vld [vmem:[%s8855_s4 + $0x9a8] sm:$0xff] }
 0x16f   : > { %v3631_v56 = vand.u32 %v7395_v47, %v8859_v14  ;;  %v937_v45 = vld [vmem:[%s8855_s4 + $0x6a8] sm:$0xff]  ;;  %v7303_v47 = vcombine.low %v1032_v35, %v1080_v36 }
 0x171   : > { %4397 = vmatpush1.bf16.msra.mxu0 %v7099_v58  ;;  %4438 = vmatpush1.bf16.msra.mxu1 %v7101_v59  ;;  %v7300_v58 = vcombine.high %v1030_v52, %v1078_v53  ;;  %v7302_v59 = vcombine.high %v1031_v54, %v1079_v55  ;;  %v888_v52 = vld [vmem:[%s8855_s4 + $0x520] sm:$0xff]  ;;  %v841_v53 = vld [vmem:[%s8855_s4 + $0x3a8] sm:$0xff] }
 0x172   : > { %4398 = vmatprep.subr.bf16.mxu0 %v7004_v60  ;;  %4439 = vmatprep.subr.bf16.mxu1 %v7006_v62  ;;  %v934_v60 = vld [vmem:[%s8855_s4 + $0x690] sm:$0xff]  ;;  %v9145_v62 = vld [vmem:[%s10172_s0] sm:$0x7] }
 0x173   : > { %v7203_v11 = vcombine.low %v934_v60, %v982_v61 }
 0x175   : > { %4399 = vmatpush1.bf16.msra.mxu0 %v7003_v0  ;;  %4440 = vmatpush1.bf16.msra.mxu1 %v7005_v2  ;;  %v983_v0 = vld [vmem:[%s8855_s4 + $0x818] sm:$0xff]  ;;  %v7301_v2 = vcombine.low %v1031_v54, %v1079_v55  ;;  %v889_v54 = vld [vmem:[%s8855_s4 + $0x528] sm:$0xff] }
 0x176   : > { %4472 = vmatprep.subr.bf16.mxu0 %v3622_v3  ;;  %4513 = vmatprep.subr.bf16.mxu1 %v3628_v5  ;;  %v7204_v3 = vcombine.high %v934_v60, %v982_v61  ;;  %v7206_v4 = vcombine.high %v935_v63, %v983_v0  ;;  %v838_v5 = vld [vmem:[%s8855_s4 + $0x390] sm:$0xff]  ;;  %v7114_v60 = vcombine.high %v841_v53, %v889_v54  ;;  %v745_v61 = vld [vmem:[%s8855_s4 + $0xa8] sm:$0xff] }
 0x178   : > { %7469 = vmatmul.mubr.msk.bf16.vlgmr.msra.gmra.mxu0 %vm3514_vm2, %v8896_v7  ;;  %7470 = vmatmul.mubr.msk.bf16.vlgmr.msra.gmra.mxu1 %vm3514_vm2, %v8896_v7  ;;  %v885_v7 = vld [vmem:[%s8855_s4 + $0x508] sm:$0xff] }
 0x179   : > { %4473 = vmatpush1.bf16.msra.mxu0 %v3619_v12  ;;  %4514 = vmatpush1.bf16.msra.mxu1 %v3625_v13  ;;  %v7106_v33 = vcombine.high %v837_v27, %v885_v7  ;;  %v7105_v41 = vcombine.low %v837_v27, %v885_v7  ;;  %v7205_v12 = vcombine.low %v935_v63, %v983_v0  ;;  %v1130_v63 = vld [vmem:[%s8855_s4 + $0xcb0] sm:$0xff] }
 0x17a   : > { %4474 = vmatprep.subr.bf16.mxu0 %v7296_v15  ;;  %4515 = vmatprep.subr.bf16.mxu1 %v7298_v16  ;;  %v7108_v13 = vcombine.high %v838_v5, %v886_v6  ;;  %v742_v15 = vld [vmem:[%s8855_s4 + $0x90] sm:$0xff]  ;;  %v7400_v27 = vcombine.high %v1128_v19, %v1176_v20 }
 0x17b   : > { %4498 = vmatprep.mubr.bf16.mxu0 %v8214_v10  ;;  %4539 = vmatprep.mubr.bf16.mxu1 %v8214_v10  ;;  %v790_v16 = vld [vmem:[%s8855_s4 + $0x210] sm:$0xff] }
 0x17c   : > { %v7012_v26 = vcombine.high %v742_v15, %v790_v16  ;;  %v3646_v32 = vand.u32 %v7400_v27, %v8859_v14  ;;  %v1178_v0 = vld [vmem:[%s8855_s4 + $0xe30] sm:$0x33] }
 0x17d   : > { %4475 = vmatpush1.bf16.msra.mxu0 %v7295_v21  ;;  %4516 = vmatpush1.bf16.msra.mxu1 %v7297_v22  ;;  %v791_v21 = vld [vmem:[%s8855_s4 + $0x218] sm:$0xff]  ;;  %v1129_v22 = vld [vmem:[%s8855_s4 + $0xca8] sm:$0xff]  ;;  %v7404_v9 = vcombine.high %v1130_v63, %v1178_v0 }
 0x17e   : > { %4476 = vmatprep.subr.bf16.mxu0 %v7200_v23  ;;  %4517 = vmatprep.subr.bf16.mxu1 %v7202_v24  ;;  %v1177_v23 = vld [vmem:[%s8855_s4 + $0xe28] sm:$0x33]  ;;  %v7107_v24 = vcombine.low %v838_v5, %v886_v6  ;;  %v7014_v7 = vcombine.high %v743_v18, %v791_v21  ;;  %v7013_v31 = vcombine.low %v743_v18, %v791_v21  ;;  %v9197_v6 = vpop.permute.xlu0 %1207 }
 0x17f   : > { %v7113_v5 = vcombine.low %v841_v53, %v889_v54  ;;  %v842_v53 = vld [vmem:[%s8855_s4 + $0x3b0] sm:$0xff] }
 0x180   : > { %v890_v54 = vld [vmem:[%s8855_s4 + $0x530] sm:$0xff] }
 0x181   : > { %4477 = vmatpush1.bf16.msra.mxu0 %v7199_v28  ;;  %4518 = vmatpush1.bf16.msra.mxu1 %v7201_v29  ;;  %v7402_v28 = vcombine.high %v1129_v22, %v1177_v23  ;;  %v7011_v29 = vcombine.low %v742_v15, %v790_v16 }
 0x182   : > { %4478 = vmatprep.subr.bf16.mxu0 %v7104_v30  ;;  %4519 = vmatprep.subr.bf16.mxu1 %v7106_v33  ;;  %v7399_v30 = vcombine.low %v1128_v19, %v1176_v20  ;;  %v7401_v33 = vcombine.low %v1129_v22, %v1177_v23  ;;  %v7403_v19 = vcombine.low %v1130_v63, %v1178_v0  ;;  %v747_v0 = vld [vmem:[%s8855_s4 + $0xb8] sm:$0xff] }
 0x183   : > { %v3652_v34 = vand.u32 %v7402_v28, %v8859_v14  ;;  %v3658_v22 = vand.u32 %v7404_v9, %v8859_v14  ;;  %v1082_v28 = vld [vmem:[%s8855_s4 + $0xb30] sm:$0xff] }
 0x184   : > { %v3643_v39 = vand.u32 %v7399_v30, %v8859_v14 }
 0x185   : > { %4479 = vmatpush1.bf16.msra.mxu0 %v7103_v40  ;;  %4520 = vmatpush1.bf16.msra.mxu1 %v7105_v41  ;;  %v3649_v40 = vand.u32 %v7401_v33, %v8859_v14  ;;  %v7304_v41 = vcombine.high %v1032_v35, %v1080_v36  ;;  %v1083_v33 = vld [vmem:[%s8855_s4 + $0xb38] sm:$0xff]  ;;  %v3655_v36 = vand.u32 %v7403_v19, %v8859_v14 }
 0x186   : > { %4480 = vmatprep.subr.bf16.mxu0 %v7008_v42  ;;  %4521 = vmatprep.subr.bf16.mxu1 %v7010_v44  ;;  %v7306_v42 = vcombine.high %v1033_v37, %v1081_v38  ;;  %v984_v44 = vld [vmem:[%s8855_s4 + $0x820] sm:$0xff] }
 0x187   : > { %v7207_v55 = vcombine.low %v936_v43, %v984_v44 }
 0x189   : > { %4481 = vmatpush1.bf16.msra.mxu0 %v7007_v46  ;;  %4522 = vmatpush1.bf16.msra.mxu1 %v7009_v48  ;;  %v985_v46 = vld [vmem:[%s8855_s4 + $0x828] sm:$0xff]  ;;  %v7305_v48 = vcombine.low %v1033_v37, %v1081_v38 }
 0x18a   : > { %4554 = vmatprep.subr.bf16.mxu0 %v3634_v49  ;;  %4595 = vmatprep.subr.bf16.mxu1 %v3640_v51  ;;  %v7208_v49 = vcombine.high %v936_v43, %v984_v44  ;;  %v7210_v50 = vcombine.high %v937_v45, %v985_v46  ;;  %v840_v51 = vld [vmem:[%s8855_s4 + $0x3a0] sm:$0xff]  ;;  %v938_v44 = vld [vmem:[%s8855_s4 + $0x6b0] sm:$0xff] }
 0x18c   : > { %7471 = vmatmul.mubr.msk.bf16.vlgmr.msra.gmra.mxu0 %vm3514_vm2, %v9145_v62  ;;  %7472 = vmatmul.mubr.msk.bf16.vlgmr.msra.gmra.mxu1 %vm3514_vm2, %v9145_v62 }
 0x18d   : > { %4555 = vmatpush1.bf16.msra.mxu0 %v3631_v56  ;;  %4596 = vmatpush1.bf16.msra.mxu1 %v3637_v57  ;;  %v7209_v56 = vcombine.low %v937_v45, %v985_v46  ;;  %v7112_v57 = vcombine.high %v840_v51, %v888_v52  ;;  %v986_v45 = vld [vmem:[%s8855_s4 + $0x830] sm:$0xff] }
 0x18e   : > { %4556 = vmatprep.subr.bf16.mxu0 %v7300_v58  ;;  %4597 = vmatprep.subr.bf16.mxu1 %v7302_v59  ;;  %v744_v58 = vld [vmem:[%s8855_s4 + $0xa0] sm:$0xff] }
 0x18f   : > { %4580 = vmatprep.mubr.bf16.mxu0 %v8214_v10  ;;  %4621 = vmatprep.mubr.bf16.mxu1 %v8214_v10  ;;  %v792_v59 = vld [vmem:[%s8855_s4 + $0x220] sm:$0xff] }
 0x190   : > { %v7016_v8 = vcombine.high %v744_v58, %v792_v59 }
 0x191   : > { %4557 = vmatpush1.bf16.msra.mxu0 %v7299_v1  ;;  %4598 = vmatpush1.bf16.msra.mxu1 %v7301_v2  ;;  %v793_v1 = vld [vmem:[%s8855_s4 + $0x228] sm:$0xff]  ;;  %v1131_v2 = vld [vmem:[%s8855_s4 + $0xcb8] sm:$0xff] }
 0x192   : > { %4558 = vmatprep.subr.bf16.mxu0 %v7204_v3  ;;  %4599 = vmatprep.subr.bf16.mxu1 %v7206_v4  ;;  %v1179_v3 = vld [vmem:[%s8855_s4 + $0xe38] sm:$0x33]  ;;  %v7111_v4 = vcombine.low %v840_v51, %v888_v52  ;;  %v7017_v18 = vcombine.low %v745_v61, %v793_v1  ;;  %v7212_v51 = vcombine.high %v938_v44, %v986_v45 }
 0x193   : > { %v7405_v23 = vcombine.low %v1131_v2, %v1179_v3 }
 0x195   : > { %4559 = vmatpush1.bf16.msra.mxu0 %v7203_v11  ;;  %4600 = vmatpush1.bf16.msra.mxu1 %v7205_v12  ;;  %v7018_v11 = vcombine.high %v745_v61, %v793_v1  ;;  %v7406_v12 = vcombine.high %v1131_v2, %v1179_v3  ;;  %v794_v61 = vld [vmem:[%s8855_s4 + $0x230] sm:$0xff]  ;;  %v1132_v1 = vld [vmem:[%s8855_s4 + $0xcc0] sm:$0xff]  ;;  %v795_v3 = vld [vmem:[%s8855_s4 + $0x238] sm:$0xff] }
 0x196   : > { %4560 = vmatprep.subr.bf16.mxu0 %v7108_v13  ;;  %4601 = vmatprep.subr.bf16.mxu1 %v7110_v17  ;;  %v7015_v17 = vcombine.low %v744_v58, %v792_v59  ;;  %v7116_v59 = vcombine.high %v842_v53, %v890_v54  ;;  %v1180_v2 = vld [vmem:[%s8855_s4 + $0xe40] sm:$0x33] }
 0x197   : > { %v3664_v27 = vand.u32 %v7406_v12, %v8859_v14  ;;  %v7408_v12 = vcombine.high %v1132_v1, %v1180_v2 }
 0x199   : > { %4561 = vmatpush1.bf16.msra.mxu0 %v7107_v24  ;;  %4602 = vmatpush1.bf16.msra.mxu1 %v7109_v25 }
 0x19a   : > { %4562 = vmatprep.subr.bf16.mxu0 %v7012_v26  ;;  %4603 = vmatprep.subr.bf16.mxu1 %v7014_v7  ;;  %v1034_v7 = vld [vmem:[%s8855_s4 + $0x9b0] sm:$0xff] }
 0x19d   : > { %4563 = vmatpush1.bf16.msra.mxu0 %v7011_v29  ;;  %4604 = vmatpush1.bf16.msra.mxu1 %v7013_v31 }
 0x19e   : > { %4636 = vmatprep.subr.bf16.mxu0 %v3646_v32  ;;  %4677 = vmatprep.subr.bf16.mxu1 %v3652_v34  ;;  %v1035_v32 = vld [vmem:[%s8855_s4 + $0x9b8] sm:$0xff] }
 0x19f   : > { %v7310_v43 = vcombine.high %v1035_v32, %v1083_v33 }
 0x1a0   : > { %7473 = vmatmul.mubr.msk.bf16.vlgmr.msra.gmra.mxu0 %vm3514_vm2, %v9145_v62  ;;  %7474 = vmatmul.mubr.msk.bf16.vlgmr.msra.gmra.mxu1 %vm3514_vm2, %v9145_v62 }
 0x1a1   : > { %4637 = vmatpush1.bf16.msra.mxu0 %v3643_v39  ;;  %4678 = vmatpush1.bf16.msra.mxu1 %v3649_v40  ;;  %v3661_v39 = vand.u32 %v7405_v23, %v8859_v14  ;;  %v7308_v40 = vcombine.high %v1034_v7, %v1082_v28 }
 0x1a2   : > { %4638 = vmatprep.subr.bf16.mxu0 %v7304_v41  ;;  %4679 = vmatprep.subr.bf16.mxu1 %v7306_v42 }
 0x1a3   : > { %4662 = vmatprep.mubr.bf16.mxu0 %v8214_v10  ;;  %4703 = vmatprep.mubr.bf16.mxu1 %v8214_v10 }
 0x1a5   : > { %4639 = vmatpush1.bf16.msra.mxu0 %v7303_v47  ;;  %4680 = vmatpush1.bf16.msra.mxu1 %v7305_v48  ;;  %v939_v47 = vld [vmem:[%s8855_s4 + $0x6b8] sm:$0xff] }
 0x1a6   : > { %4640 = vmatprep.subr.bf16.mxu0 %v7208_v49  ;;  %4681 = vmatprep.subr.bf16.mxu1 %v7210_v50  ;;  %v987_v48 = vld [vmem:[%s8855_s4 + $0x838] sm:$0xff]  ;;  %v7307_v49 = vcombine.low %v1034_v7, %v1082_v28  ;;  %v7309_v50 = vcombine.low %v1035_v32, %v1083_v33 }
 0x1a7   : > { %v7214_v52 = vcombine.high %v939_v47, %v987_v48  ;;  %v7213_v58 = vcombine.low %v939_v47, %v987_v48  ;;  %v988_v47 = vld [vmem:[%s8855_s4 + $0x840] sm:$0xff] }
 0x1a9   : > { %4641 = vmatpush1.bf16.msra.mxu0 %v7207_v55  ;;  %4682 = vmatpush1.bf16.msra.mxu1 %v7209_v56  ;;  %v843_v55 = vld [vmem:[%s8855_s4 + $0x3b8] sm:$0xff] }
 0x1aa   : > { %4642 = vmatprep.subr.bf16.mxu0 %v7112_v57  ;;  %4683 = vmatprep.subr.bf16.mxu1 %v7114_v60  ;;  %v891_v56 = vld [vmem:[%s8855_s4 + $0x538] sm:$0xff]  ;;  %v7211_v57 = vcombine.low %v938_v44, %v986_v45  ;;  %v746_v60 = vld [vmem:[%s8855_s4 + $0xb0] sm:$0xff] }
 0x1ab   : > { %v7118_v63 = vcombine.high %v843_v55, %v891_v56  ;;  %v7117_v9 = vcombine.low %v843_v55, %v891_v56  ;;  %v7019_v19 = vcombine.low %v746_v60, %v794_v61  ;;  %v844_v55 = vld [vmem:[%s8855_s4 + $0x3c0] sm:$0xff] }
 0x1ac   : > { %v3844_v13 = vpop.f32.mrf.mxu0  ;;  %v3885_v15 = vpop.f32.mrf.mxu1  ;;  %v892_v56 = vld [vmem:[%s8855_s4 + $0x540] sm:$0xff] }
 0x1ad   : > { %4643 = vmatpush1.bf16.msra.mxu0 %v7111_v4  ;;  %v3845_v16 = vadd.f32 %v3844_v13, %v9197_v6  ;;  %4684 = vmatpush1.bf16.msra.mxu1 %v7113_v5  ;;  %v3886_v21 = vadd.f32 %v3885_v15, %v9197_v6  ;;  %v1133_v4 = vld [vmem:[%s8855_s4 + $0xcc8] sm:$0xff]  ;;  %v7022_v13 = vcombine.high %v747_v0, %v795_v3 }
 0x1ae   : > { %v3846_v20 = vpop.f32.mrf.mxu0  ;;  %4644 = vmatprep.subr.bf16.mxu0 %v7016_v8  ;;  %v3887_v26 = vpop.f32.mrf.mxu1  ;;  %4685 = vmatprep.subr.bf16.mxu1 %v7018_v11  ;;  %v1181_v5 = vld [vmem:[%s8855_s4 + $0xe48] sm:$0x33]  ;;  %v7115_v8 = vcombine.low %v842_v53, %v890_v54  ;;  %v7020_v11 = vcombine.high %v746_v60, %v794_v61  ;;  %v7120_v61 = vcombine.high %v844_v55, %v892_v56 }
 0x1af   : > { %v3847_v24 = vadd.f32 %v3846_v20, %v9197_v6  ;;  %v5778_v25 = vmax.f32 %v3845_v16, 0.0  ;;  %v3888_v29 = vadd.f32 %v3887_v26, %v9197_v6  ;;  %v5780_v30 = vmax.f32 %v3886_v21, 0.0 }
 0x1b0   : > { %v3848_v31 = vpop.f32.mrf.mxu0  ;;  %v3889_v35 = vpop.f32.mrf.mxu1  ;;  %v7410_v15 = vcombine.high %v1133_v4, %v1181_v5  ;;  %v7021_v20 = vcombine.low %v747_v0, %v795_v3  ;;  %v7407_v21 = vcombine.low %v1132_v1, %v1180_v2  ;;  %v796_v0 = vld [vmem:[%s8855_s4 + $0x240] sm:$0xff]  ;;  %v749_v2 = vld [vmem:[%s8855_s4 + $0xc8] sm:$0xff]  ;;  %v1134_v3 = vld [vmem:[%s8855_s4 + $0xcd0] sm:$0xff] }
 0x1b1   : > { %v5779_v34 = vmax.f32 %v3847_v24, 0.0  ;;  %4645 = vmatpush1.bf16.msra.mxu0 %v7015_v17  ;;  %v5781_v37 = vmax.f32 %v3888_v29, 0.0  ;;  %4686 = vmatpush1.bf16.msra.mxu1 %v7017_v18  ;;  %v3670_v24 = vand.u32 %v7408_v12, %v8859_v14  ;;  %v1036_v29 = vld [vmem:[%s8855_s4 + $0x9c0] sm:$0xff]  ;;  %v1085_v35 = vld [vmem:[%s8855_s4 + $0xb48] sm:$0xff] }
 0x1b2   : > { %v3849_v38 = vpop.f32.mrf.mxu0  ;;  %4718 = vmatprep.subr.bf16.mxu0 %v3658_v22  ;;  %v3890_v42 = vpop.f32.mrf.mxu1  ;;  %4759 = vmatprep.subr.bf16.mxu1 %v3664_v27  ;;  %v3676_v28 = vand.u32 %v7410_v15, %v8859_v14 }
 0x1b3   : > { %v7585_v41 = vpack.c.bf16 %v5779_v34, %v5778_v25  ;;  %v7586_v46 = vpack.c.bf16 %v5781_v37, %v5780_v30  ;;  %v7409_v25 = vcombine.low %v1133_v4, %v1181_v5  ;;  %v1084_v30 = vld [vmem:[%s8855_s4 + $0xb40] sm:$0xff]  ;;  %v1037_v34 = vld [vmem:[%s8855_s4 + $0x9c8] sm:$0xff]  ;;  %v3667_v38 = vand.u32 %v7407_v21, %v8859_v14  ;;  %v1182_v4 = vld [vmem:[%s8855_s4 + $0xe50] sm:$0x33] }
 0x1b4   : > { %7475 = vmatmul.mubr.msk.bf16.vlgmr.msra.gmra.mxu0 %vm3514_vm2, %v9145_v62  ;;  %7476 = vmatmul.mubr.msk.bf16.vlgmr.msra.gmra.mxu1 %vm3514_vm2, %v9145_v62  ;;  %v7312_v42 = vcombine.high %v1036_v29, %v1084_v30  ;;  %v7314_v45 = vcombine.high %v1037_v34, %v1085_v35  ;;  %v797_v5 = vld [vmem:[%s8855_s4 + $0x248] sm:$0xff]  ;;  %v7412_v15 = vcombine.high %v1134_v3, %v1182_v4 }
 0x1b5   : > { %6258 = vst [vmem:[%s9222_s12] sm:$0x77] %v7585_v41  ;;  %4719 = vmatpush1.bf16.msra.mxu0 %v3655_v36  ;;  %6259 = vst [vmem:[%s9222_s12 + $0x8] sm:$0x77] %v7586_v46  ;;  %4760 = vmatpush1.bf16.msra.mxu1 %v3661_v39  ;;  %v3673_v41 = vand.u32 %v7409_v25, %v8859_v14  ;;  %v940_v46 = vld [vmem:[%s8855_s4 + $0x6c0] sm:$0xff] }
 0x1b6   : > { %4720 = vmatprep.subr.bf16.mxu0 %v7308_v40  ;;  %4761 = vmatprep.subr.bf16.mxu1 %v7310_v43  ;;  %v7216_v53 = vcombine.high %v940_v46, %v988_v47 }
 0x1b7   : > { %4744 = vmatprep.mubr.bf16.mxu0 %v8214_v10  ;;  %4785 = vmatprep.mubr.bf16.mxu1 %v8214_v10 }
 0x1b9   : > { %4721 = vmatpush1.bf16.msra.mxu0 %v7307_v49  ;;  %4762 = vmatpush1.bf16.msra.mxu1 %v7309_v50  ;;  %v941_v49 = vld [vmem:[%s8855_s4 + $0x6c8] sm:$0xff] }
 0x1ba   : > { %4722 = vmatprep.subr.bf16.mxu0 %v7212_v51  ;;  %4763 = vmatprep.subr.bf16.mxu1 %v7214_v52  ;;  %v989_v50 = vld [vmem:[%s8855_s4 + $0x848] sm:$0xff]  ;;  %v7311_v51 = vcombine.low %v1036_v29, %v1084_v30  ;;  %v7313_v52 = vcombine.low %v1037_v34, %v1085_v35 }
 0x1bb   : > { %v7218_v54 = vcombine.high %v941_v49, %v989_v50  ;;  %v7217_v60 = vcombine.low %v941_v49, %v989_v50  ;;  %v990_v49 = vld [vmem:[%s8855_s4 + $0x850] sm:$0xff] }
 0x1bd   : > { %4723 = vmatpush1.bf16.msra.mxu0 %v7211_v57  ;;  %4764 = vmatpush1.bf16.msra.mxu1 %v7213_v58  ;;  %v845_v57 = vld [vmem:[%s8855_s4 + $0x3c8] sm:$0xff] }
 0x1be   : > { %4724 = vmatprep.subr.bf16.mxu0 %v7116_v59  ;;  %4765 = vmatprep.subr.bf16.mxu1 %v7118_v63  ;;  %v893_v58 = vld [vmem:[%s8855_s4 + $0x548] sm:$0xff]  ;;  %v7215_v59 = vcombine.low %v940_v46, %v988_v47  ;;  %v748_v63 = vld [vmem:[%s8855_s4 + $0xc0] sm:$0xff] }
 0x1bf   : > { %v7122_v1 = vcombine.high %v845_v57, %v893_v58  ;;  %v7121_v12 = vcombine.low %v845_v57, %v893_v58  ;;  %v7023_v21 = vcombine.low %v748_v63, %v796_v0  ;;  %v846_v57 = vld [vmem:[%s8855_s4 + $0x3d0] sm:$0xff] }
 0x1c0   : > { %v3926_v16 = vpop.f32.mrf.mxu0  ;;  %v3967_v18 = vpop.f32.mrf.mxu1  ;;  %v894_v58 = vld [vmem:[%s8855_s4 + $0x550] sm:$0xff] }
 0x1c1   : > { %v3927_v17 = vadd.f32 %v3926_v16, %v9197_v6  ;;  %4725 = vmatpush1.bf16.msra.mxu0 %v7115_v8  ;;  %v3968_v22 = vadd.f32 %v3967_v18, %v9197_v6  ;;  %4766 = vmatpush1.bf16.msra.mxu1 %v7117_v9  ;;  %v1135_v8 = vld [vmem:[%s8855_s4 + $0xcd8] sm:$0xff]  ;;  %v7026_v16 = vcombine.high %v749_v2, %v797_v5 }
 0x1c2   : > { %v3928_v23 = vpop.f32.mrf.mxu0  ;;  %4726 = vmatprep.subr.bf16.mxu0 %v7020_v11  ;;  %v3969_v7 = vpop.f32.mrf.mxu1  ;;  %4767 = vmatprep.subr.bf16.mxu1 %v7022_v13  ;;  %v1183_v9 = vld [vmem:[%s8855_s4 + $0xe58] sm:$0x33]  ;;  %v7119_v11 = vcombine.low %v844_v55, %v892_v56  ;;  %v7024_v13 = vcombine.high %v748_v63, %v796_v0  ;;  %v7124_v0 = vcombine.high %v846_v57, %v894_v58 }
 0x1c3   : > { %v5782_v26 = vmax.f32 %v3927_v17, 0.0  ;;  %v3929_v27 = vadd.f32 %v3928_v23, %v9197_v6  ;;  %v5784_v31 = vmax.f32 %v3968_v22, 0.0  ;;  %v3970_v32 = vadd.f32 %v3969_v7, %v9197_v6 }
 0x1c4   : > { %v3930_v33 = vpop.f32.mrf.mxu0  ;;  %v3971_v37 = vpop.f32.mrf.mxu1  ;;  %v7414_v17 = vcombine.high %v1135_v8, %v1183_v9  ;;  %v7025_v22 = vcombine.low %v749_v2, %v797_v5  ;;  %v7411_v23 = vcombine.low %v1134_v3, %v1182_v4  ;;  %v798_v2 = vld [vmem:[%s8855_s4 + $0x250] sm:$0xff]  ;;  %v751_v4 = vld [vmem:[%s8855_s4 + $0xd8] sm:$0xff]  ;;  %v1136_v5 = vld [vmem:[%s8855_s4 + $0xce0] sm:$0xff] }
 0x1c5   : > { %v5783_v36 = vmax.f32 %v3929_v27, 0.0  ;;  %4727 = vmatpush1.bf16.msra.mxu0 %v7019_v19  ;;  %v5785_v39 = vmax.f32 %v3970_v32, 0.0  ;;  %4768 = vmatpush1.bf16.msra.mxu1 %v7021_v20  ;;  %v7413_v27 = vcombine.low %v1135_v8, %v1183_v9  ;;  %v1086_v32 = vld [vmem:[%s8855_s4 + $0xb50] sm:$0xff]  ;;  %v1087_v37 = vld [vmem:[%s8855_s4 + $0xb58] sm:$0xff]  ;;  %v1184_v8 = vld [vmem:[%s8855_s4 + $0xe60] sm:$0x33] }
 0x1c6   : > { %v3931_v40 = vpop.f32.mrf.mxu0  ;;  %4800 = vmatprep.subr.bf16.mxu0 %v3670_v24  ;;  %v3972_v44 = vpop.f32.mrf.mxu1  ;;  %4841 = vmatprep.subr.bf16.mxu1 %v3676_v28  ;;  %v3688_v30 = vand.u32 %v7414_v17, %v8859_v14  ;;  %v799_v9 = vld [vmem:[%s8855_s4 + $0x258] sm:$0xff]  ;;  %v7416_v17 = vcombine.high %v1136_v5, %v1184_v8 }
 0x1c7   : > { %v7587_v43 = vpack.c.bf16 %v5783_v36, %v5782_v26  ;;  %v7588_v48 = vpack.c.bf16 %v5785_v39, %v5784_v31  ;;  %v3682_v26 = vand.u32 %v7412_v15, %v8859_v14  ;;  %v1038_v31 = vld [vmem:[%s8855_s4 + $0x9d0] sm:$0xff]  ;;  %v1039_v36 = vld [vmem:[%s8855_s4 + $0x9d8] sm:$0xff]  ;;  %v3679_v40 = vand.u32 %v7411_v23, %v8859_v14 }
 0x1c8   : > { %7477 = vmatmul.mubr.msk.bf16.vlgmr.msra.gmra.mxu0 %vm3514_vm2, %v9145_v62  ;;  %7478 = vmatmul.mubr.msk.bf16.vlgmr.msra.gmra.mxu1 %vm3514_vm2, %v9145_v62  ;;  %v7316_v44 = vcombine.high %v1038_v31, %v1086_v32  ;;  %v7318_v47 = vcombine.high %v1039_v36, %v1087_v37 }
 0x1c9   : > { %6260 = vst [vmem:[%s9222_s12 + $0x10] sm:$0x77] %v7587_v43  ;;  %4801 = vmatpush1.bf16.msra.mxu0 %v3667_v38  ;;  %6261 = vst [vmem:[%s9222_s12 + $0x18] sm:$0x77] %v7588_v48  ;;  %4842 = vmatpush1.bf16.msra.mxu1 %v3673_v41  ;;  %v3685_v43 = vand.u32 %v7413_v27, %v8859_v14  ;;  %v942_v48 = vld [vmem:[%s8855_s4 + $0x6d0] sm:$0xff] }
 0x1ca   : > { %4802 = vmatprep.subr.bf16.mxu0 %v7312_v42  ;;  %4843 = vmatprep.subr.bf16.mxu1 %v7314_v45  ;;  %v7220_v55 = vcombine.high %v942_v48, %v990_v49 }
 0x1cb   : > { %4826 = vmatprep.mubr.bf16.mxu0 %v8214_v10  ;;  %4867 = vmatprep.mubr.bf16.mxu1 %v8214_v10 }
 0x1cd   : > { %4803 = vmatpush1.bf16.msra.mxu0 %v7311_v51  ;;  %4844 = vmatpush1.bf16.msra.mxu1 %v7313_v52  ;;  %v943_v51 = vld [vmem:[%s8855_s4 + $0x6d8] sm:$0xff] }
 0x1ce   : > { %4804 = vmatprep.subr.bf16.mxu0 %v7216_v53  ;;  %4845 = vmatprep.subr.bf16.mxu1 %v7218_v54  ;;  %v991_v52 = vld [vmem:[%s8855_s4 + $0x858] sm:$0xff]  ;;  %v7315_v53 = vcombine.low %v1038_v31, %v1086_v32  ;;  %v7317_v54 = vcombine.low %v1039_v36, %v1087_v37 }
 0x1cf   : > { %v7222_v56 = vcombine.high %v943_v51, %v991_v52  ;;  %v7221_v63 = vcombine.low %v943_v51, %v991_v52  ;;  %v992_v51 = vld [vmem:[%s8855_s4 + $0x860] sm:$0xff] }
 0x1d1   : > { %4805 = vmatpush1.bf16.msra.mxu0 %v7215_v59  ;;  %4846 = vmatpush1.bf16.msra.mxu1 %v7217_v60  ;;  %v847_v59 = vld [vmem:[%s8855_s4 + $0x3d8] sm:$0xff] }
 0x1d2   : > { %4806 = vmatprep.subr.bf16.mxu0 %v7120_v61  ;;  %4847 = vmatprep.subr.bf16.mxu1 %v7122_v1  ;;  %v895_v60 = vld [vmem:[%s8855_s4 + $0x558] sm:$0xff]  ;;  %v7219_v61 = vcombine.low %v942_v48, %v990_v49  ;;  %v750_v1 = vld [vmem:[%s8855_s4 + $0xd0] sm:$0xff] }
 0x1d3   : > { %v7126_v3 = vcombine.high %v847_v59, %v895_v60  ;;  %v7125_v15 = vcombine.low %v847_v59, %v895_v60  ;;  %v7027_v23 = vcombine.low %v750_v1, %v798_v2  ;;  %v848_v59 = vld [vmem:[%s8855_s4 + $0x3e0] sm:$0xff] }
 0x1d4   : > { %v4008_v18 = vpop.f32.mrf.mxu0  ;;  %v4049_v20 = vpop.f32.mrf.mxu1  ;;  %v896_v60 = vld [vmem:[%s8855_s4 + $0x560] sm:$0xff] }
 0x1d5   : > { %v4009_v19 = vadd.f32 %v4008_v18, %v9197_v6  ;;  %4807 = vmatpush1.bf16.msra.mxu0 %v7119_v11  ;;  %v4050_v24 = vadd.f32 %v4049_v20, %v9197_v6  ;;  %4848 = vmatpush1.bf16.msra.mxu1 %v7121_v12  ;;  %v1137_v11 = vld [vmem:[%s8855_s4 + $0xce8] sm:$0xff]  ;;  %v7030_v18 = vcombine.high %v751_v4, %v799_v9 }
 0x1d6   : > { %v4010_v25 = vpop.f32.mrf.mxu0  ;;  %4808 = vmatprep.subr.bf16.mxu0 %v7024_v13  ;;  %v4051_v29 = vpop.f32.mrf.mxu1  ;;  %4849 = vmatprep.subr.bf16.mxu1 %v7026_v16  ;;  %v1185_v12 = vld [vmem:[%s8855_s4 + $0xe68] sm:$0x33]  ;;  %v7123_v13 = vcombine.low %v846_v57, %v894_v58  ;;  %v7028_v16 = vcombine.high %v750_v1, %v798_v2  ;;  %v7128_v2 = vcombine.high %v848_v59, %v896_v60 }
 0x1d7   : > { %v5786_v7 = vmax.f32 %v4009_v19, 0.0  ;;  %v4011_v28 = vadd.f32 %v4010_v25, %v9197_v6  ;;  %v5788_v33 = vmax.f32 %v4050_v24, 0.0  ;;  %v4052_v34 = vadd.f32 %v4051_v29, %v9197_v6 }
 0x1d8   : > { %v4012_v35 = vpop.f32.mrf.mxu0  ;;  %v4053_v39 = vpop.f32.mrf.mxu1  ;;  %v7418_v19 = vcombine.high %v1137_v11, %v1185_v12  ;;  %v7029_v24 = vcombine.low %v751_v4, %v799_v9  ;;  %v7415_v25 = vcombine.low %v1136_v5, %v1184_v8  ;;  %v800_v4 = vld [vmem:[%s8855_s4 + $0x260] sm:$0xff]  ;;  %v753_v8 = vld [vmem:[%s8855_s4 + $0xe8] sm:$0xff]  ;;  %v1138_v9 = vld [vmem:[%s8855_s4 + $0xcf0] sm:$0xff] }
 0x1d9   : > { %v5787_v38 = vmax.f32 %v4011_v28, 0.0  ;;  %4809 = vmatpush1.bf16.msra.mxu0 %v7023_v21  ;;  %v5789_v41 = vmax.f32 %v4052_v34, 0.0  ;;  %4850 = vmatpush1.bf16.msra.mxu1 %v7025_v22  ;;  %v7417_v28 = vcombine.low %v1137_v11, %v1185_v12  ;;  %v1088_v34 = vld [vmem:[%s8855_s4 + $0xb60] sm:$0xff]  ;;  %v1089_v39 = vld [vmem:[%s8855_s4 + $0xb68] sm:$0xff]  ;;  %v1186_v11 = vld [vmem:[%s8855_s4 + $0xe70] sm:$0x33] }
 0x1da   : > { %v4013_v42 = vpop.f32.mrf.mxu0  ;;  %4882 = vmatprep.subr.bf16.mxu0 %v3682_v26  ;;  %v4054_v46 = vpop.f32.mrf.mxu1  ;;  %4923 = vmatprep.subr.bf16.mxu1 %v3688_v30  ;;  %v3700_v32 = vand.u32 %v7418_v19, %v8859_v14  ;;  %v801_v12 = vld [vmem:[%s8855_s4 + $0x268] sm:$0xff]  ;;  %v7420_v19 = vcombine.high %v1138_v9, %v1186_v11 }
 0x1db   : > { %v7589_v45 = vpack.c.bf16 %v5787_v38, %v5786_v7  ;;  %v7590_v50 = vpack.c.bf16 %v5789_v41, %v5788_v33  ;;  %v3694_v7 = vand.u32 %v7416_v17, %v8859_v14  ;;  %v1040_v33 = vld [vmem:[%s8855_s4 + $0x9e0] sm:$0xff]  ;;  %v1041_v38 = vld [vmem:[%s8855_s4 + $0x9e8] sm:$0xff]  ;;  %v3691_v42 = vand.u32 %v7415_v25, %v8859_v14 }
 0x1dc   : > { %7479 = vmatmul.mubr.msk.bf16.vlgmr.msra.gmra.mxu0 %vm3514_vm2, %v9145_v62  ;;  %7480 = vmatmul.mubr.msk.bf16.vlgmr.msra.gmra.mxu1 %vm3514_vm2, %v9145_v62  ;;  %v7320_v46 = vcombine.high %v1040_v33, %v1088_v34  ;;  %v7322_v49 = vcombine.high %v1041_v38, %v1089_v39 }
 0x1dd   : > { %6262 = vst [vmem:[%s9222_s12 + $0x20] sm:$0x77] %v7589_v45  ;;  %4883 = vmatpush1.bf16.msra.mxu0 %v3679_v40  ;;  %6263 = vst [vmem:[%s9222_s12 + $0x28] sm:$0x77] %v7590_v50  ;;  %4924 = vmatpush1.bf16.msra.mxu1 %v3685_v43  ;;  %v3697_v45 = vand.u32 %v7417_v28, %v8859_v14  ;;  %v944_v50 = vld [vmem:[%s8855_s4 + $0x6e0] sm:$0xff] }
 0x1de   : > { %4884 = vmatprep.subr.bf16.mxu0 %v7316_v44  ;;  %4925 = vmatprep.subr.bf16.mxu1 %v7318_v47  ;;  %v7224_v57 = vcombine.high %v944_v50, %v992_v51 }
 0x1df   : > { %4908 = vmatprep.mubr.bf16.mxu0 %v8214_v10  ;;  %4949 = vmatprep.mubr.bf16.mxu1 %v8214_v10 }
 0x1e1   : > { %4885 = vmatpush1.bf16.msra.mxu0 %v7315_v53  ;;  %4926 = vmatpush1.bf16.msra.mxu1 %v7317_v54  ;;  %v945_v53 = vld [vmem:[%s8855_s4 + $0x6e8] sm:$0xff] }
 0x1e2   : > { %4886 = vmatprep.subr.bf16.mxu0 %v7220_v55  ;;  %4927 = vmatprep.subr.bf16.mxu1 %v7222_v56  ;;  %v993_v54 = vld [vmem:[%s8855_s4 + $0x868] sm:$0xff]  ;;  %v7319_v55 = vcombine.low %v1040_v33, %v1088_v34  ;;  %v7321_v56 = vcombine.low %v1041_v38, %v1089_v39 }
 0x1e3   : > { %v7226_v58 = vcombine.high %v945_v53, %v993_v54  ;;  %v7225_v1 = vcombine.low %v945_v53, %v993_v54  ;;  %v994_v53 = vld [vmem:[%s8855_s4 + $0x870] sm:$0xff] }
 0x1e5   : > { %4887 = vmatpush1.bf16.msra.mxu0 %v7219_v61  ;;  %4928 = vmatpush1.bf16.msra.mxu1 %v7221_v63  ;;  %v849_v61 = vld [vmem:[%s8855_s4 + $0x3e8] sm:$0xff] }
 0x1e6   : > { %4888 = vmatprep.subr.bf16.mxu0 %v7124_v0  ;;  %4929 = vmatprep.subr.bf16.mxu1 %v7126_v3  ;;  %v897_v63 = vld [vmem:[%s8855_s4 + $0x568] sm:$0xff]  ;;  %v7223_v0 = vcombine.low %v944_v50, %v992_v51  ;;  %v752_v3 = vld [vmem:[%s8855_s4 + $0xe0] sm:$0xff] }
 0x1e7   : > { %v7130_v5 = vcombine.high %v849_v61, %v897_v63  ;;  %v7129_v17 = vcombine.low %v849_v61, %v897_v63  ;;  %v7031_v25 = vcombine.low %v752_v3, %v800_v4  ;;  %v850_v61 = vld [vmem:[%s8855_s4 + $0x3f0] sm:$0xff] }
 0x1e8   : > { %v4090_v20 = vpop.f32.mrf.mxu0  ;;  %v4131_v22 = vpop.f32.mrf.mxu1  ;;  %v898_v63 = vld [vmem:[%s8855_s4 + $0x570] sm:$0xff] }
 0x1e9   : > { %v4091_v21 = vadd.f32 %v4090_v20, %v9197_v6  ;;  %4889 = vmatpush1.bf16.msra.mxu0 %v7123_v13  ;;  %v4132_v26 = vadd.f32 %v4131_v22, %v9197_v6  ;;  %4930 = vmatpush1.bf16.msra.mxu1 %v7125_v15  ;;  %v1139_v13 = vld [vmem:[%s8855_s4 + $0xcf8] sm:$0xff]  ;;  %v7034_v20 = vcombine.high %v753_v8, %v801_v12 }
 0x1ea   : > { %v4092_v27 = vpop.f32.mrf.mxu0  ;;  %4890 = vmatprep.subr.bf16.mxu0 %v7028_v16  ;;  %v4133_v31 = vpop.f32.mrf.mxu1  ;;  %4931 = vmatprep.subr.bf16.mxu1 %v7030_v18  ;;  %v1187_v15 = vld [vmem:[%s8855_s4 + $0xe78] sm:$0x33]  ;;  %v7127_v16 = vcombine.low %v848_v59, %v896_v60  ;;  %v7032_v18 = vcombine.high %v752_v3, %v800_v4  ;;  %v7132_v4 = vcombine.high %v850_v61, %v898_v63 }
 0x1eb   : > { %v5790_v29 = vmax.f32 %v4091_v21, 0.0  ;;  %v4093_v30 = vadd.f32 %v4092_v27, %v9197_v6  ;;  %v5792_v35 = vmax.f32 %v4132_v26, 0.0  ;;  %v4134_v36 = vadd.f32 %v4133_v31, %v9197_v6 }
 0x1ec   : > { %v4094_v37 = vpop.f32.mrf.mxu0  ;;  %v4135_v41 = vpop.f32.mrf.mxu1  ;;  %v7422_v21 = vcombine.high %v1139_v13, %v1187_v15  ;;  %v7033_v26 = vcombine.low %v753_v8, %v801_v12  ;;  %v7419_v27 = vcombine.low %v1138_v9, %v1186_v11  ;;  %v802_v8 = vld [vmem:[%s8855_s4 + $0x270] sm:$0xff]  ;;  %v755_v11 = vld [vmem:[%s8855_s4 + $0xf8] sm:$0xff]  ;;  %v1140_v12 = vld [vmem:[%s8855_s4 + $0xd00] sm:$0xff] }
 0x1ed   : > { %v5791_v40 = vmax.f32 %v4093_v30, 0.0  ;;  %4891 = vmatpush1.bf16.msra.mxu0 %v7027_v23  ;;  %v5793_v43 = vmax.f32 %v4134_v36, 0.0  ;;  %4932 = vmatpush1.bf16.msra.mxu1 %v7029_v24  ;;  %v7421_v30 = vcombine.low %v1139_v13, %v1187_v15  ;;  %v1090_v36 = vld [vmem:[%s8855_s4 + $0xb70] sm:$0xff]  ;;  %v1091_v41 = vld [vmem:[%s8855_s4 + $0xb78] sm:$0xff]  ;;  %v1188_v13 = vld [vmem:[%s8855_s4 + $0xe80] sm:$0x33] }
 0x1ee   : > { %v4095_v44 = vpop.f32.mrf.mxu0  ;;  %4964 = vmatprep.subr.bf16.mxu0 %v3694_v7  ;;  %v4136_v48 = vpop.f32.mrf.mxu1  ;;  %5005 = vmatprep.subr.bf16.mxu1 %v3700_v32  ;;  %v3712_v34 = vand.u32 %v7422_v21, %v8859_v14  ;;  %v803_v15 = vld [vmem:[%s8855_s4 + $0x278] sm:$0xff]  ;;  %v7424_v21 = vcombine.high %v1140_v12, %v1188_v13 }
 0x1ef   : > { %v7591_v47 = vpack.c.bf16 %v5791_v40, %v5790_v29  ;;  %v7592_v52 = vpack.c.bf16 %v5793_v43, %v5792_v35  ;;  %v3706_v29 = vand.u32 %v7420_v19, %v8859_v14  ;;  %v1042_v35 = vld [vmem:[%s8855_s4 + $0x9f0] sm:$0xff]  ;;  %v1043_v40 = vld [vmem:[%s8855_s4 + $0x9f8] sm:$0xff]  ;;  %v3703_v44 = vand.u32 %v7419_v27, %v8859_v14 }
 0x1f0   : > { %7481 = vmatmul.mubr.msk.bf16.vlgmr.msra.gmra.mxu0 %vm3514_vm2, %v9145_v62  ;;  %7482 = vmatmul.mubr.msk.bf16.vlgmr.msra.gmra.mxu1 %vm3514_vm2, %v9145_v62  ;;  %v7324_v48 = vcombine.high %v1042_v35, %v1090_v36  ;;  %v7326_v51 = vcombine.high %v1043_v40, %v1091_v41 }
 0x1f1   : > { %6264 = vst [vmem:[%s9222_s12 + $0x30] sm:$0x77] %v7591_v47  ;;  %4965 = vmatpush1.bf16.msra.mxu0 %v3691_v42  ;;  %6265 = vst [vmem:[%s9222_s12 + $0x38] sm:$0x77] %v7592_v52  ;;  %5006 = vmatpush1.bf16.msra.mxu1 %v3697_v45  ;;  %v3709_v47 = vand.u32 %v7421_v30, %v8859_v14  ;;  %v946_v52 = vld [vmem:[%s8855_s4 + $0x6f0] sm:$0xff] }
 0x1f2   : > { %4966 = vmatprep.subr.bf16.mxu0 %v7320_v46  ;;  %5007 = vmatprep.subr.bf16.mxu1 %v7322_v49  ;;  %v7228_v59 = vcombine.high %v946_v52, %v994_v53 }
 0x1f3   : > { %4990 = vmatprep.mubr.bf16.mxu0 %v8214_v10  ;;  %5031 = vmatprep.mubr.bf16.mxu1 %v8214_v10 }
 0x1f5   : > { %4967 = vmatpush1.bf16.msra.mxu0 %v7319_v55  ;;  %5008 = vmatpush1.bf16.msra.mxu1 %v7321_v56  ;;  %v947_v55 = vld [vmem:[%s8855_s4 + $0x6f8] sm:$0xff] }
 0x1f6   : > { %4968 = vmatprep.subr.bf16.mxu0 %v7224_v57  ;;  %5009 = vmatprep.subr.bf16.mxu1 %v7226_v58  ;;  %v995_v56 = vld [vmem:[%s8855_s4 + $0x878] sm:$0xff]  ;;  %v9372_v57 = vld [vmem:[%s10172_s0] sm:$0x7]  ;;  %v7323_v58 = vcombine.low %v1042_v35, %v1090_v36 }
 0x1f7   : > { %v7230_v60 = vcombine.high %v947_v55, %v995_v56  ;;  %v7229_v3 = vcombine.low %v947_v55, %v995_v56  ;;  %v996_v55 = vld [vmem:[%s8855_s4 + $0x880] sm:$0xff] }
 0x1f9   : > { %4969 = vmatpush1.bf16.msra.mxu0 %v7223_v0  ;;  %5010 = vmatpush1.bf16.msra.mxu1 %v7225_v1  ;;  %v851_v0 = vld [vmem:[%s8855_s4 + $0x3f8] sm:$0xff] }
 0x1fa   : > { %4970 = vmatprep.subr.bf16.mxu0 %v7128_v2  ;;  %5011 = vmatprep.subr.bf16.mxu1 %v7130_v5  ;;  %v899_v1 = vld [vmem:[%s8855_s4 + $0x578] sm:$0xff]  ;;  %v7227_v2 = vcombine.low %v946_v52, %v994_v53  ;;  %v754_v5 = vld [vmem:[%s8855_s4 + $0xf0] sm:$0xff] }
 0x1fb   : > { %v7134_v9 = vcombine.high %v851_v0, %v899_v1  ;;  %v7133_v19 = vcombine.low %v851_v0, %v899_v1  ;;  %v7035_v27 = vcombine.low %v754_v5, %v802_v8  ;;  %v852_v0 = vld [vmem:[%s8855_s4 + $0x400] sm:$0xff] }
 0x1fc   : > { %v4172_v22 = vpop.f32.mrf.mxu0  ;;  %v4213_v24 = vpop.f32.mrf.mxu1  ;;  %v900_v1 = vld [vmem:[%s8855_s4 + $0x580] sm:$0xff] }
 0x1fd   : > { %v4173_v23 = vadd.f32 %v4172_v22, %v9197_v6  ;;  %4971 = vmatpush1.bf16.msra.mxu0 %v7127_v16  ;;  %v4214_v7 = vadd.f32 %v4213_v24, %v9197_v6  ;;  %5012 = vmatpush1.bf16.msra.mxu1 %v7129_v17  ;;  %v1141_v16 = vld [vmem:[%s8855_s4 + $0xd08] sm:$0xff]  ;;  %v7038_v22 = vcombine.high %v755_v11, %v803_v15 }
 0x1fe   : > { %v4174_v28 = vpop.f32.mrf.mxu0  ;;  %4972 = vmatprep.subr.bf16.mxu0 %v7032_v18  ;;  %v4215_v33 = vpop.f32.mrf.mxu1  ;;  %5013 = vmatprep.subr.bf16.mxu1 %v7034_v20  ;;  %v1189_v17 = vld [vmem:[%s8855_s4 + $0xe88] sm:$0x33]  ;;  %v7131_v18 = vcombine.low %v850_v61, %v898_v63  ;;  %v7036_v20 = vcombine.high %v754_v5, %v802_v8  ;;  %v7136_v8 = vcombine.high %v852_v0, %v900_v1 }
 0x1ff   : > { %v5794_v31 = vmax.f32 %v4173_v23, 0.0  ;;  %v4175_v32 = vadd.f32 %v4174_v28, %v9197_v6  ;;  %v5796_v37 = vmax.f32 %v4214_v7, 0.0  ;;  %v4216_v38 = vadd.f32 %v4215_v33, %v9197_v6 }
 0x200   : > { %v4176_v39 = vpop.f32.mrf.mxu0  ;;  %v4217_v43 = vpop.f32.mrf.mxu1  ;;  %v7426_v23 = vcombine.high %v1141_v16, %v1189_v17  ;;  %v7037_v7 = vcombine.low %v755_v11, %v803_v15  ;;  %v7423_v28 = vcombine.low %v1140_v12, %v1188_v13  ;;  %v804_v11 = vld [vmem:[%s8855_s4 + $0x280] sm:$0xff]  ;;  %v757_v13 = vld [vmem:[%s8855_s4 + $0x108] sm:$0xff]  ;;  %v1142_v15 = vld [vmem:[%s8855_s4 + $0xd10] sm:$0xff] }
 0x201   : > { %v5795_v42 = vmax.f32 %v4175_v32, 0.0  ;;  %4973 = vmatpush1.bf16.msra.mxu0 %v7031_v25  ;;  %v5797_v45 = vmax.f32 %v4216_v38, 0.0  ;;  %5014 = vmatpush1.bf16.msra.mxu1 %v7033_v26  ;;  %v7425_v32 = vcombine.low %v1141_v16, %v1189_v17  ;;  %v1092_v38 = vld [vmem:[%s8855_s4 + $0xb80] sm:$0xff]  ;;  %v1093_v43 = vld [vmem:[%s8855_s4 + $0xb88] sm:$0xff]  ;;  %v1190_v16 = vld [vmem:[%s8855_s4 + $0xe90] sm:$0x33] }
 0x202   : > { %v4177_v46 = vpop.f32.mrf.mxu0  ;;  %5046 = vmatprep.subr.bf16.mxu0 %v3706_v29  ;;  %v4218_v50 = vpop.f32.mrf.mxu1  ;;  %5087 = vmatprep.subr.bf16.mxu1 %v3712_v34  ;;  %v3724_v36 = vand.u32 %v7426_v23, %v8859_v14  ;;  %v805_v17 = vld [vmem:[%s8855_s4 + $0x288] sm:$0xff]  ;;  %v7428_v23 = vcombine.high %v1142_v15, %v1190_v16 }
 0x203   : > { %v7593_v49 = vpack.c.bf16 %v5795_v42, %v5794_v31  ;;  %v7594_v54 = vpack.c.bf16 %v5797_v45, %v5796_v37  ;;  %v3718_v31 = vand.u32 %v7424_v21, %v8859_v14  ;;  %v1044_v37 = vld [vmem:[%s8855_s4 + $0xa00] sm:$0xff]  ;;  %v1045_v42 = vld [vmem:[%s8855_s4 + $0xa08] sm:$0xff]  ;;  %v3715_v46 = vand.u32 %v7423_v28, %v8859_v14 }
 0x204   : > { %7483 = vmatmul.mubr.msk.bf16.vlgmr.msra.gmra.mxu0 %vm3514_vm2, %v9145_v62  ;;  %7484 = vmatmul.mubr.msk.bf16.vlgmr.msra.gmra.mxu1 %vm3514_vm2, %v9372_v57  ;;  %v7325_v62 = vcombine.low %v1043_v40, %v1091_v41  ;;  %v7328_v50 = vcombine.high %v1044_v37, %v1092_v38  ;;  %v7330_v53 = vcombine.high %v1045_v42, %v1093_v43 }
 0x205   : > { %6266 = vst [vmem:[%s9222_s12 + $0x40] sm:$0x77] %v7593_v49  ;;  %5047 = vmatpush1.bf16.msra.mxu0 %v3703_v44  ;;  %6267 = vst [vmem:[%s9222_s12 + $0x48] sm:$0x77] %v7594_v54  ;;  %5088 = vmatpush1.bf16.msra.mxu1 %v3709_v47  ;;  %v3721_v49 = vand.u32 %v7425_v32, %v8859_v14  ;;  %v948_v54 = vld [vmem:[%s8855_s4 + $0x700] sm:$0xff] }
 0x206   : > { %5048 = vmatprep.subr.bf16.mxu0 %v7324_v48  ;;  %5089 = vmatprep.subr.bf16.mxu1 %v7326_v51  ;;  %v7232_v61 = vcombine.high %v948_v54, %v996_v55 }
 0x207   : > { %5072 = vmatprep.mubr.bf16.mxu0 %v8214_v10  ;;  %5113 = vmatprep.mubr.bf16.mxu1 %v8214_v10 }
 0x209   : > { %5049 = vmatpush1.bf16.msra.mxu0 %v7323_v58  ;;  %5090 = vmatpush1.bf16.msra.mxu1 %v7325_v62  ;;  %v949_v58 = vld [vmem:[%s8855_s4 + $0x708] sm:$0xff] }
 0x20a   : > { %5050 = vmatprep.subr.bf16.mxu0 %v7228_v59  ;;  %5091 = vmatprep.subr.bf16.mxu1 %v7230_v60  ;;  %v997_v62 = vld [vmem:[%s8855_s4 + $0x888] sm:$0xff]  ;;  %v7327_v59 = vcombine.low %v1044_v37, %v1092_v38  ;;  %v7329_v60 = vcombine.low %v1045_v42, %v1093_v43 }
 0x20b   : > { %v7234_v63 = vcombine.high %v949_v58, %v997_v62  ;;  %v7233_v5 = vcombine.low %v949_v58, %v997_v62  ;;  %v998_v58 = vld [vmem:[%s8855_s4 + $0x890] sm:$0xff] }
 0x20d   : > { %5051 = vmatpush1.bf16.msra.mxu0 %v7227_v2  ;;  %5092 = vmatpush1.bf16.msra.mxu1 %v7229_v3  ;;  %v853_v2 = vld [vmem:[%s8855_s4 + $0x408] sm:$0xff] }
 0x20e   : > { %5052 = vmatprep.subr.bf16.mxu0 %v7132_v4  ;;  %5093 = vmatprep.subr.bf16.mxu1 %v7134_v9  ;;  %v901_v3 = vld [vmem:[%s8855_s4 + $0x588] sm:$0xff]  ;;  %v7231_v4 = vcombine.low %v948_v54, %v996_v55  ;;  %v756_v9 = vld [vmem:[%s8855_s4 + $0x100] sm:$0xff] }
 0x20f   : > { %v7138_v12 = vcombine.high %v853_v2, %v901_v3  ;;  %v7137_v21 = vcombine.low %v853_v2, %v901_v3  ;;  %v7039_v28 = vcombine.low %v756_v9, %v804_v11  ;;  %v854_v2 = vld [vmem:[%s8855_s4 + $0x410] sm:$0xff] }
 0x210   : > { %v4254_v24 = vpop.f32.mrf.mxu0  ;;  %v4295_v26 = vpop.f32.mrf.mxu1  ;;  %v902_v3 = vld [vmem:[%s8855_s4 + $0x590] sm:$0xff] }
 0x211   : > { %v4255_v25 = vadd.f32 %v4254_v24, %v9197_v6  ;;  %5053 = vmatpush1.bf16.msra.mxu0 %v7131_v18  ;;  %v4296_v29 = vadd.f32 %v4295_v26, %v9197_v6  ;;  %5094 = vmatpush1.bf16.msra.mxu1 %v7133_v19  ;;  %v1143_v18 = vld [vmem:[%s8855_s4 + $0xd18] sm:$0xff]  ;;  %v7042_v24 = vcombine.high %v757_v13, %v805_v17 }
 0x212   : > { %v4256_v30 = vpop.f32.mrf.mxu0  ;;  %5054 = vmatprep.subr.bf16.mxu0 %v7036_v20  ;;  %v4297_v35 = vpop.f32.mrf.mxu1  ;;  %5095 = vmatprep.subr.bf16.mxu1 %v7038_v22  ;;  %v1191_v19 = vld [vmem:[%s8855_s4 + $0xe98] sm:$0x33]  ;;  %v7135_v20 = vcombine.low %v852_v0, %v900_v1  ;;  %v7040_v22 = vcombine.high %v756_v9, %v804_v11  ;;  %v7140_v11 = vcombine.high %v854_v2, %v902_v3 }
 0x213   : > { %v5798_v33 = vmax.f32 %v4255_v25, 0.0  ;;  %v4257_v34 = vadd.f32 %v4256_v30, %v9197_v6  ;;  %v5800_v39 = vmax.f32 %v4296_v29, 0.0  ;;  %v4298_v40 = vadd.f32 %v4297_v35, %v9197_v6 }
 0x214   : > { %v4258_v41 = vpop.f32.mrf.mxu0  ;;  %v4299_v45 = vpop.f32.mrf.mxu1  ;;  %v7430_v25 = vcombine.high %v1143_v18, %v1191_v19  ;;  %v7041_v29 = vcombine.low %v757_v13, %v805_v17  ;;  %v7427_v30 = vcombine.low %v1142_v15, %v1190_v16  ;;  %v806_v13 = vld [vmem:[%s8855_s4 + $0x290] sm:$0xff]  ;;  %v759_v16 = vld [vmem:[%s8855_s4 + $0x118] sm:$0xff]  ;;  %v1144_v17 = vld [vmem:[%s8855_s4 + $0xd20] sm:$0xff] }
 0x215   : > { %v5799_v44 = vmax.f32 %v4257_v34, 0.0  ;;  %5055 = vmatpush1.bf16.msra.mxu0 %v7035_v27  ;;  %v5801_v47 = vmax.f32 %v4298_v40, 0.0  ;;  %5096 = vmatpush1.bf16.msra.mxu1 %v7037_v7  ;;  %v7429_v34 = vcombine.low %v1143_v18, %v1191_v19  ;;  %v1094_v40 = vld [vmem:[%s8855_s4 + $0xb90] sm:$0xff]  ;;  %v1095_v45 = vld [vmem:[%s8855_s4 + $0xb98] sm:$0xff]  ;;  %v1192_v18 = vld [vmem:[%s8855_s4 + $0xea0] sm:$0x33] }
 0x216   : > { %v4259_v48 = vpop.f32.mrf.mxu0  ;;  %5128 = vmatprep.subr.bf16.mxu0 %v3718_v31  ;;  %v4300_v52 = vpop.f32.mrf.mxu1  ;;  %5169 = vmatprep.subr.bf16.mxu1 %v3724_v36  ;;  %v3736_v38 = vand.u32 %v7430_v25, %v8859_v14  ;;  %v807_v19 = vld [vmem:[%s8855_s4 + $0x298] sm:$0xff]  ;;  %v7432_v25 = vcombine.high %v1144_v17, %v1192_v18 }
 0x217   : > { %v7595_v51 = vpack.c.bf16 %v5799_v44, %v5798_v33  ;;  %v7596_v56 = vpack.c.bf16 %v5801_v47, %v5800_v39  ;;  %v3730_v33 = vand.u32 %v7428_v23, %v8859_v14  ;;  %v1046_v39 = vld [vmem:[%s8855_s4 + $0xa10] sm:$0xff]  ;;  %v1047_v44 = vld [vmem:[%s8855_s4 + $0xa18] sm:$0xff]  ;;  %v3727_v48 = vand.u32 %v7427_v30, %v8859_v14 }
 0x218   : > { %7485 = vmatmul.mubr.msk.bf16.vlgmr.msra.gmra.mxu0 %vm3514_vm2, %v9372_v57  ;;  %7486 = vmatmul.mubr.msk.bf16.vlgmr.msra.gmra.mxu1 %vm3514_vm2, %v9372_v57  ;;  %v7332_v52 = vcombine.high %v1046_v39, %v1094_v40  ;;  %v7334_v55 = vcombine.high %v1047_v44, %v1095_v45 }
 0x219   : > { %6268 = vst [vmem:[%s9222_s12 + $0x50] sm:$0x77] %v7595_v51  ;;  %5129 = vmatpush1.bf16.msra.mxu0 %v3715_v46  ;;  %6269 = vst [vmem:[%s9222_s12 + $0x58] sm:$0x77] %v7596_v56  ;;  %5170 = vmatpush1.bf16.msra.mxu1 %v3721_v49  ;;  %v3733_v51 = vand.u32 %v7429_v34, %v8859_v14  ;;  %v950_v56 = vld [vmem:[%s8855_s4 + $0x710] sm:$0xff] }
 0x21a   : > { %5130 = vmatprep.subr.bf16.mxu0 %v7328_v50  ;;  %5171 = vmatprep.subr.bf16.mxu1 %v7330_v53  ;;  %v7236_v0 = vcombine.high %v950_v56, %v998_v58 }
 0x21b   : > { %5154 = vmatprep.mubr.bf16.mxu0 %v8214_v10  ;;  %5195 = vmatprep.mubr.bf16.mxu1 %v8214_v10 }
 0x21d   : > { %5131 = vmatpush1.bf16.msra.mxu0 %v7327_v59  ;;  %5172 = vmatpush1.bf16.msra.mxu1 %v7329_v60  ;;  %v951_v59 = vld [vmem:[%s8855_s4 + $0x718] sm:$0xff] }
 0x21e   : > { %5132 = vmatprep.subr.bf16.mxu0 %v7232_v61  ;;  %5173 = vmatprep.subr.bf16.mxu1 %v7234_v63  ;;  %v999_v60 = vld [vmem:[%s8855_s4 + $0x898] sm:$0xff]  ;;  %v7331_v61 = vcombine.low %v1046_v39, %v1094_v40  ;;  %v7333_v63 = vcombine.low %v1047_v44, %v1095_v45 }
 0x21f   : > { %v7238_v1 = vcombine.high %v951_v59, %v999_v60  ;;  %v7237_v9 = vcombine.low %v951_v59, %v999_v60  ;;  %v1000_v59 = vld [vmem:[%s8855_s4 + $0x8a0] sm:$0xff] }
 0x221   : > { %5133 = vmatpush1.bf16.msra.mxu0 %v7231_v4  ;;  %5174 = vmatpush1.bf16.msra.mxu1 %v7233_v5  ;;  %v855_v4 = vld [vmem:[%s8855_s4 + $0x418] sm:$0xff] }
 0x222   : > { %5134 = vmatprep.subr.bf16.mxu0 %v7136_v8  ;;  %5175 = vmatprep.subr.bf16.mxu1 %v7138_v12  ;;  %v903_v5 = vld [vmem:[%s8855_s4 + $0x598] sm:$0xff]  ;;  %v7235_v8 = vcombine.low %v950_v56, %v998_v58  ;;  %v758_v12 = vld [vmem:[%s8855_s4 + $0x110] sm:$0xff] }
 0x223   : > { %v7142_v15 = vcombine.high %v855_v4, %v903_v5  ;;  %v7141_v23 = vcombine.low %v855_v4, %v903_v5  ;;  %v7043_v30 = vcombine.low %v758_v12, %v806_v13  ;;  %v856_v4 = vld [vmem:[%s8855_s4 + $0x420] sm:$0xff] }
 0x224   : > { %v4336_v26 = vpop.f32.mrf.mxu0  ;;  %v4377_v7 = vpop.f32.mrf.mxu1  ;;  %v904_v5 = vld [vmem:[%s8855_s4 + $0x5a0] sm:$0xff] }
 0x225   : > { %v4337_v27 = vadd.f32 %v4336_v26, %v9197_v6  ;;  %5135 = vmatpush1.bf16.msra.mxu0 %v7135_v20  ;;  %v4378_v31 = vadd.f32 %v4377_v7, %v9197_v6  ;;  %5176 = vmatpush1.bf16.msra.mxu1 %v7137_v21  ;;  %v1145_v20 = vld [vmem:[%s8855_s4 + $0xd28] sm:$0xff]  ;;  %v7046_v26 = vcombine.high %v759_v16, %v807_v19 }
 0x226   : > { %v4338_v32 = vpop.f32.mrf.mxu0  ;;  %5136 = vmatprep.subr.bf16.mxu0 %v7040_v22  ;;  %v4379_v37 = vpop.f32.mrf.mxu1  ;;  %5177 = vmatprep.subr.bf16.mxu1 %v7042_v24  ;;  %v1193_v21 = vld [vmem:[%s8855_s4 + $0xea8] sm:$0x33]  ;;  %v7139_v22 = vcombine.low %v854_v2, %v902_v3  ;;  %v7044_v24 = vcombine.high %v758_v12, %v806_v13  ;;  %v7144_v13 = vcombine.high %v856_v4, %v904_v5 }
 0x227   : > { %v5802_v35 = vmax.f32 %v4337_v27, 0.0  ;;  %v4339_v36 = vadd.f32 %v4338_v32, %v9197_v6  ;;  %v5804_v41 = vmax.f32 %v4378_v31, 0.0  ;;  %v4380_v42 = vadd.f32 %v4379_v37, %v9197_v6 }
 0x228   : > { %v4340_v43 = vpop.f32.mrf.mxu0  ;;  %v4381_v47 = vpop.f32.mrf.mxu1  ;;  %v7434_v27 = vcombine.high %v1145_v20, %v1193_v21  ;;  %v7045_v31 = vcombine.low %v759_v16, %v807_v19  ;;  %v7431_v32 = vcombine.low %v1144_v17, %v1192_v18  ;;  %v808_v16 = vld [vmem:[%s8855_s4 + $0x2a0] sm:$0xff]  ;;  %v761_v18 = vld [vmem:[%s8855_s4 + $0x128] sm:$0xff]  ;;  %v1146_v19 = vld [vmem:[%s8855_s4 + $0xd30] sm:$0xff] }
 0x229   : > { %v5803_v46 = vmax.f32 %v4339_v36, 0.0  ;;  %5137 = vmatpush1.bf16.msra.mxu0 %v7039_v28  ;;  %v5805_v49 = vmax.f32 %v4380_v42, 0.0  ;;  %5178 = vmatpush1.bf16.msra.mxu1 %v7041_v29  ;;  %v7433_v36 = vcombine.low %v1145_v20, %v1193_v21  ;;  %v1096_v42 = vld [vmem:[%s8855_s4 + $0xba0] sm:$0xff]  ;;  %v1097_v47 = vld [vmem:[%s8855_s4 + $0xba8] sm:$0xff]  ;;  %v1194_v20 = vld [vmem:[%s8855_s4 + $0xeb0] sm:$0x33] }
 0x22a   : > { %v4341_v50 = vpop.f32.mrf.mxu0  ;;  %5210 = vmatprep.subr.bf16.mxu0 %v3730_v33  ;;  %v4382_v54 = vpop.f32.mrf.mxu1  ;;  %5251 = vmatprep.subr.bf16.mxu1 %v3736_v38  ;;  %v3748_v40 = vand.u32 %v7434_v27, %v8859_v14  ;;  %v809_v21 = vld [vmem:[%s8855_s4 + $0x2a8] sm:$0xff]  ;;  %v7436_v27 = vcombine.high %v1146_v19, %v1194_v20 }
 0x22b   : > { %v7597_v53 = vpack.c.bf16 %v5803_v46, %v5802_v35  ;;  %v7598_v62 = vpack.c.bf16 %v5805_v49, %v5804_v41  ;;  %v3742_v35 = vand.u32 %v7432_v25, %v8859_v14  ;;  %v1048_v41 = vld [vmem:[%s8855_s4 + $0xa20] sm:$0xff]  ;;  %v1049_v46 = vld [vmem:[%s8855_s4 + $0xa28] sm:$0xff]  ;;  %v3739_v50 = vand.u32 %v7431_v32, %v8859_v14 }
 0x22c   : > { %7487 = vmatmul.mubr.msk.bf16.vlgmr.msra.gmra.mxu0 %vm3514_vm2, %v9372_v57  ;;  %7488 = vmatmul.mubr.msk.bf16.vlgmr.msra.gmra.mxu1 %vm3514_vm2, %v9372_v57  ;;  %v7336_v54 = vcombine.high %v1048_v41, %v1096_v42  ;;  %v7338_v58 = vcombine.high %v1049_v46, %v1097_v47 }
 0x22d   : > { %6270 = vst [vmem:[%s9222_s12 + $0x60] sm:$0x77] %v7597_v53  ;;  %5211 = vmatpush1.bf16.msra.mxu0 %v3727_v48  ;;  %6271 = vst [vmem:[%s9222_s12 + $0x68] sm:$0x77] %v7598_v62  ;;  %5252 = vmatpush1.bf16.msra.mxu1 %v3733_v51  ;;  %v3745_v53 = vand.u32 %v7433_v36, %v8859_v14  ;;  %v952_v62 = vld [vmem:[%s8855_s4 + $0x720] sm:$0xff] }
 0x22e   : > { %5212 = vmatprep.subr.bf16.mxu0 %v7332_v52  ;;  %5253 = vmatprep.subr.bf16.mxu1 %v7334_v55  ;;  %v7240_v2 = vcombine.high %v952_v62, %v1000_v59 }
 0x22f   : > { %5236 = vmatprep.mubr.bf16.mxu0 %v8214_v10  ;;  %5277 = vmatprep.mubr.bf16.mxu1 %v8214_v10 }
 0x231   : > { %5213 = vmatpush1.bf16.msra.mxu0 %v7331_v61  ;;  %5254 = vmatpush1.bf16.msra.mxu1 %v7333_v63  ;;  %v953_v61 = vld [vmem:[%s8855_s4 + $0x728] sm:$0xff] }
 0x232   : > { %5214 = vmatprep.subr.bf16.mxu0 %v7236_v0  ;;  %5255 = vmatprep.subr.bf16.mxu1 %v7238_v1  ;;  %v1001_v63 = vld [vmem:[%s8855_s4 + $0x8a8] sm:$0xff]  ;;  %v7335_v0 = vcombine.low %v1048_v41, %v1096_v42  ;;  %v7337_v1 = vcombine.low %v1049_v46, %v1097_v47 }
 0x233   : > { %v7242_v3 = vcombine.high %v953_v61, %v1001_v63  ;;  %v7241_v12 = vcombine.low %v953_v61, %v1001_v63  ;;  %v1002_v61 = vld [vmem:[%s8855_s4 + $0x8b0] sm:$0xff] }
 0x235   : > { %5215 = vmatpush1.bf16.msra.mxu0 %v7235_v8  ;;  %5256 = vmatpush1.bf16.msra.mxu1 %v7237_v9  ;;  %v857_v8 = vld [vmem:[%s8855_s4 + $0x428] sm:$0xff] }
 0x236   : > { %5216 = vmatprep.subr.bf16.mxu0 %v7140_v11  ;;  %5257 = vmatprep.subr.bf16.mxu1 %v7142_v15  ;;  %v905_v9 = vld [vmem:[%s8855_s4 + $0x5a8] sm:$0xff]  ;;  %v7239_v11 = vcombine.low %v952_v62, %v1000_v59  ;;  %v760_v15 = vld [vmem:[%s8855_s4 + $0x120] sm:$0xff] }
 0x237   : > { %v7146_v17 = vcombine.high %v857_v8, %v905_v9  ;;  %v7145_v25 = vcombine.low %v857_v8, %v905_v9  ;;  %v7047_v32 = vcombine.low %v760_v15, %v808_v16  ;;  %v858_v8 = vld [vmem:[%s8855_s4 + $0x430] sm:$0xff] }
 0x238   : > { %v4418_v7 = vpop.f32.mrf.mxu0  ;;  %v4459_v29 = vpop.f32.mrf.mxu1  ;;  %v906_v9 = vld [vmem:[%s8855_s4 + $0x5b0] sm:$0xff] }
 0x239   : > { %v4419_v28 = vadd.f32 %v4418_v7, %v9197_v6  ;;  %5217 = vmatpush1.bf16.msra.mxu0 %v7139_v22  ;;  %v4460_v33 = vadd.f32 %v4459_v29, %v9197_v6  ;;  %5258 = vmatpush1.bf16.msra.mxu1 %v7141_v23  ;;  %v1147_v22 = vld [vmem:[%s8855_s4 + $0xd38] sm:$0xff]  ;;  %v7050_v7 = vcombine.high %v761_v18, %v809_v21 }
 0x23a   : > { %v4420_v34 = vpop.f32.mrf.mxu0  ;;  %5218 = vmatprep.subr.bf16.mxu0 %v7044_v24  ;;  %v4461_v39 = vpop.f32.mrf.mxu1  ;;  %5259 = vmatprep.subr.bf16.mxu1 %v7046_v26  ;;  %v1195_v23 = vld [vmem:[%s8855_s4 + $0xeb8] sm:$0x33]  ;;  %v7143_v24 = vcombine.low %v856_v4, %v904_v5  ;;  %v7048_v26 = vcombine.high %v760_v15, %v808_v16  ;;  %v7148_v16 = vcombine.high %v858_v8, %v906_v9 }
 0x23b   : > { %v5806_v37 = vmax.f32 %v4419_v28, 0.0  ;;  %v4421_v38 = vadd.f32 %v4420_v34, %v9197_v6  ;;  %v5808_v43 = vmax.f32 %v4460_v33, 0.0  ;;  %v4462_v44 = vadd.f32 %v4461_v39, %v9197_v6 }
 0x23c   : > { %v4422_v45 = vpop.f32.mrf.mxu0  ;;  %v4463_v49 = vpop.f32.mrf.mxu1  ;;  %v7438_v28 = vcombine.high %v1147_v22, %v1195_v23  ;;  %v7049_v33 = vcombine.low %v761_v18, %v809_v21  ;;  %v7435_v34 = vcombine.low %v1146_v19, %v1194_v20  ;;  %v810_v18 = vld [vmem:[%s8855_s4 + $0x2b0] sm:$0xff]  ;;  %v763_v20 = vld [vmem:[%s8855_s4 + $0x138] sm:$0xff]  ;;  %v1148_v21 = vld [vmem:[%s8855_s4 + $0xd40] sm:$0xff] }
 0x23d   : > { %v5807_v48 = vmax.f32 %v4421_v38, 0.0  ;;  %5219 = vmatpush1.bf16.msra.mxu0 %v7043_v30  ;;  %v5809_v51 = vmax.f32 %v4462_v44, 0.0  ;;  %5260 = vmatpush1.bf16.msra.mxu1 %v7045_v31  ;;  %v7437_v38 = vcombine.low %v1147_v22, %v1195_v23  ;;  %v1098_v44 = vld [vmem:[%s8855_s4 + $0xbb0] sm:$0xff]  ;;  %v1099_v49 = vld [vmem:[%s8855_s4 + $0xbb8] sm:$0xff]  ;;  %v1196_v22 = vld [vmem:[%s8855_s4 + $0xec0] sm:$0x33] }
 0x23e   : > { %v4423_v52 = vpop.f32.mrf.mxu0  ;;  %5292 = vmatprep.subr.bf16.mxu0 %v3742_v35  ;;  %v4464_v56 = vpop.f32.mrf.mxu1  ;;  %5333 = vmatprep.subr.bf16.mxu1 %v3748_v40  ;;  %v3760_v42 = vand.u32 %v7438_v28, %v8859_v14  ;;  %v811_v23 = vld [vmem:[%s8855_s4 + $0x2b8] sm:$0xff]  ;;  %v7440_v28 = vcombine.high %v1148_v21, %v1196_v22 }
 0x23f   : > { %v7599_v55 = vpack.c.bf16 %v5807_v48, %v5806_v37  ;;  %v7600_v60 = vpack.c.bf16 %v5809_v51, %v5808_v43  ;;  %v3754_v37 = vand.u32 %v7436_v27, %v8859_v14  ;;  %v1050_v43 = vld [vmem:[%s8855_s4 + $0xa30] sm:$0xff]  ;;  %v1051_v48 = vld [vmem:[%s8855_s4 + $0xa38] sm:$0xff]  ;;  %v3751_v52 = vand.u32 %v7435_v34, %v8859_v14 }
 0x240   : > { %7489 = vmatmul.mubr.msk.bf16.vlgmr.msra.gmra.mxu0 %vm3514_vm2, %v9372_v57  ;;  %7490 = vmatmul.mubr.msk.bf16.vlgmr.msra.gmra.mxu1 %vm3514_vm2, %v9372_v57  ;;  %v7340_v56 = vcombine.high %v1050_v43, %v1098_v44  ;;  %v7342_v59 = vcombine.high %v1051_v48, %v1099_v49 }
 0x241   : > { %6272 = vst [vmem:[%s9222_s12 + $0x70] sm:$0x77] %v7599_v55  ;;  %5293 = vmatpush1.bf16.msra.mxu0 %v3739_v50  ;;  %6273 = vst [vmem:[%s9222_s12 + $0x78] sm:$0x77] %v7600_v60  ;;  %5334 = vmatpush1.bf16.msra.mxu1 %v3745_v53  ;;  %v3757_v55 = vand.u32 %v7437_v38, %v8859_v14  ;;  %v954_v60 = vld [vmem:[%s8855_s4 + $0x730] sm:$0xff] }
 0x242   : > { %5294 = vmatprep.subr.bf16.mxu0 %v7336_v54  ;;  %5335 = vmatprep.subr.bf16.mxu1 %v7338_v58  ;;  %v7244_v4 = vcombine.high %v954_v60, %v1002_v61 }
 0x243   : > { %5318 = vmatprep.mubr.bf16.mxu0 %v8214_v10  ;;  %5359 = vmatprep.mubr.bf16.mxu1 %v8214_v10 }
 0x245   : > { %5295 = vmatpush1.bf16.msra.mxu0 %v7335_v0  ;;  %5336 = vmatpush1.bf16.msra.mxu1 %v7337_v1  ;;  %v955_v0 = vld [vmem:[%s8855_s4 + $0x738] sm:$0xff] }
 0x246   : > { %5296 = vmatprep.subr.bf16.mxu0 %v7240_v2  ;;  %5337 = vmatprep.subr.bf16.mxu1 %v7242_v3  ;;  %v1003_v1 = vld [vmem:[%s8855_s4 + $0x8b8] sm:$0xff]  ;;  %v7339_v2 = vcombine.low %v1050_v43, %v1098_v44  ;;  %v7341_v3 = vcombine.low %v1051_v48, %v1099_v49 }
 0x247   : > { %v7246_v5 = vcombine.high %v955_v0, %v1003_v1  ;;  %v7245_v15 = vcombine.low %v955_v0, %v1003_v1  ;;  %v1004_v0 = vld [vmem:[%s8855_s4 + $0x8c0] sm:$0xff] }
 0x249   : > { %5297 = vmatpush1.bf16.msra.mxu0 %v7239_v11  ;;  %5338 = vmatpush1.bf16.msra.mxu1 %v7241_v12  ;;  %v859_v11 = vld [vmem:[%s8855_s4 + $0x438] sm:$0xff] }
 0x24a   : > { %5298 = vmatprep.subr.bf16.mxu0 %v7144_v13  ;;  %5339 = vmatprep.subr.bf16.mxu1 %v7146_v17  ;;  %v907_v12 = vld [vmem:[%s8855_s4 + $0x5b8] sm:$0xff]  ;;  %v7243_v13 = vcombine.low %v954_v60, %v1002_v61  ;;  %v762_v17 = vld [vmem:[%s8855_s4 + $0x130] sm:$0xff] }
 0x24b   : > { %v7150_v19 = vcombine.high %v859_v11, %v907_v12  ;;  %v7149_v27 = vcombine.low %v859_v11, %v907_v12  ;;  %v7051_v34 = vcombine.low %v762_v17, %v810_v18  ;;  %v860_v11 = vld [vmem:[%s8855_s4 + $0x440] sm:$0xff] }
 0x24c   : > { %v4500_v29 = vpop.f32.mrf.mxu0  ;;  %v4541_v31 = vpop.f32.mrf.mxu1  ;;  %v908_v12 = vld [vmem:[%s8855_s4 + $0x5c0] sm:$0xff] }
 0x24d   : > { %v4501_v30 = vadd.f32 %v4500_v29, %v9197_v6  ;;  %5299 = vmatpush1.bf16.msra.mxu0 %v7143_v24  ;;  %v4542_v35 = vadd.f32 %v4541_v31, %v9197_v6  ;;  %5340 = vmatpush1.bf16.msra.mxu1 %v7145_v25  ;;  %v1149_v24 = vld [vmem:[%s8855_s4 + $0xd48] sm:$0xff]  ;;  %v7054_v29 = vcombine.high %v763_v20, %v811_v23 }
 0x24e   : > { %v4502_v36 = vpop.f32.mrf.mxu0  ;;  %5300 = vmatprep.subr.bf16.mxu0 %v7048_v26  ;;  %v4543_v41 = vpop.f32.mrf.mxu1  ;;  %5341 = vmatprep.subr.bf16.mxu1 %v7050_v7  ;;  %v1197_v25 = vld [vmem:[%s8855_s4 + $0xec8] sm:$0x33]  ;;  %v7147_v26 = vcombine.low %v858_v8, %v906_v9  ;;  %v7052_v7 = vcombine.high %v762_v17, %v810_v18  ;;  %v7152_v17 = vcombine.high %v860_v11, %v908_v12  ;;  %v764_v18 = vld [vmem:[%s8855_s4 + $0x140] sm:$0xff] }
 0x24f   : > { %v5810_v39 = vmax.f32 %v4501_v30, 0.0  ;;  %v4503_v40 = vadd.f32 %v4502_v36, %v9197_v6  ;;  %v5812_v45 = vmax.f32 %v4542_v35, 0.0  ;;  %v4544_v46 = vadd.f32 %v4543_v41, %v9197_v6 }
 0x250   : > { %v4504_v47 = vpop.f32.mrf.mxu0  ;;  %v4545_v51 = vpop.f32.mrf.mxu1  ;;  %v7442_v30 = vcombine.high %v1149_v24, %v1197_v25  ;;  %v7053_v35 = vcombine.low %v763_v20, %v811_v23  ;;  %v7439_v36 = vcombine.low %v1148_v21, %v1196_v22  ;;  %v765_v21 = vld [vmem:[%s8855_s4 + $0x148] sm:$0xff]  ;;  %v1150_v22 = vld [vmem:[%s8855_s4 + $0xd50] sm:$0xff] }
 0x251   : > { %v5811_v50 = vmax.f32 %v4503_v40, 0.0  ;;  %5301 = vmatpush1.bf16.msra.mxu0 %v7047_v32  ;;  %v5813_v53 = vmax.f32 %v4544_v46, 0.0  ;;  %5342 = vmatpush1.bf16.msra.mxu1 %v7049_v33  ;;  %v7441_v40 = vcombine.low %v1149_v24, %v1197_v25  ;;  %v1100_v46 = vld [vmem:[%s8855_s4 + $0xbc0] sm:$0xff]  ;;  %v1101_v51 = vld [vmem:[%s8855_s4 + $0xbc8] sm:$0xff]  ;;  %v1198_v23 = vld [vmem:[%s8855_s4 + $0xed0] sm:$0x33] }
 0x252   : > { %v4505_v54 = vpop.f32.mrf.mxu0  ;;  %5374 = vmatprep.subr.bf16.mxu0 %v3754_v37  ;;  %v4546_v62 = vpop.f32.mrf.mxu1  ;;  %5415 = vmatprep.subr.bf16.mxu1 %v3760_v42  ;;  %v3772_v44 = vand.u32 %v7442_v30, %v8859_v14  ;;  %v813_v24 = vld [vmem:[%s8855_s4 + $0x2c8] sm:$0xff]  ;;  %v1151_v25 = vld [vmem:[%s8855_s4 + $0xd58] sm:$0xff] }
 0x253   : > { %v7601_v58 = vpack.c.bf16 %v5811_v50, %v5810_v39  ;;  %v7602_v63 = vpack.c.bf16 %v5813_v53, %v5812_v45  ;;  %v3766_v39 = vand.u32 %v7440_v28, %v8859_v14  ;;  %v1052_v45 = vld [vmem:[%s8855_s4 + $0xa40] sm:$0xff]  ;;  %v1053_v50 = vld [vmem:[%s8855_s4 + $0xa48] sm:$0xff]  ;;  %v3763_v54 = vand.u32 %v7439_v36, %v8859_v14 }
 0x254   : > { %7491 = vmatmul.mubr.msk.bf16.vlgmr.msra.gmra.mxu0 %vm3514_vm2, %v9372_v57  ;;  %7492 = vmatmul.mubr.msk.bf16.vlgmr.msra.gmra.mxu1 %vm3514_vm2, %v9372_v57  ;;  %v7344_v62 = vcombine.high %v1052_v45, %v1100_v46  ;;  %v7346_v61 = vcombine.high %v1053_v50, %v1101_v51  ;;  %v7058_v30 = vcombine.high %v765_v21, %v813_v24 }
 0x255   : > { %6274 = vst [vmem:[%s9222_s12 + $0x80] sm:$0x77] %v7601_v58  ;;  %5375 = vmatpush1.bf16.msra.mxu0 %v3751_v52  ;;  %6275 = vst [vmem:[%s9222_s12 + $0x88] sm:$0x77] %v7602_v63  ;;  %5416 = vmatpush1.bf16.msra.mxu1 %v3757_v55  ;;  %v3769_v58 = vand.u32 %v7441_v40, %v8859_v14  ;;  %v956_v63 = vld [vmem:[%s8855_s4 + $0x740] sm:$0xff]  ;;  %v7057_v36 = vcombine.low %v765_v21, %v813_v24  ;;  %v814_v21 = vld [vmem:[%s8855_s4 + $0x2d0] sm:$0xff] }
 0x256   : > { %5376 = vmatprep.subr.bf16.mxu0 %v7340_v56  ;;  %5417 = vmatprep.subr.bf16.mxu1 %v7342_v59  ;;  %v7248_v8 = vcombine.high %v956_v63, %v1004_v0  ;;  %v1152_v24 = vld [vmem:[%s8855_s4 + $0xd60] sm:$0xff] }
 0x257   : > { %5400 = vmatprep.mubr.bf16.mxu0 %v8214_v10  ;;  %5441 = vmatprep.mubr.bf16.mxu1 %v8214_v10 }
 0x259   : > { %5377 = vmatpush1.bf16.msra.mxu0 %v7339_v2  ;;  %5418 = vmatpush1.bf16.msra.mxu1 %v7341_v3  ;;  %v957_v2 = vld [vmem:[%s8855_s4 + $0x748] sm:$0xff] }
 0x25a   : > { %5378 = vmatprep.subr.bf16.mxu0 %v7244_v4  ;;  %5419 = vmatprep.subr.bf16.mxu1 %v7246_v5  ;;  %v1005_v3 = vld [vmem:[%s8855_s4 + $0x8c8] sm:$0xff]  ;;  %v7343_v4 = vcombine.low %v1052_v45, %v1100_v46  ;;  %v7345_v5 = vcombine.low %v1053_v50, %v1101_v51  ;;  %v1054_v46 = vld [vmem:[%s8855_s4 + $0xa50] sm:$0xff]  ;;  %v1055_v51 = vld [vmem:[%s8855_s4 + $0xa58] sm:$0xff] }
 0x25b   : > { %v7250_v9 = vcombine.high %v957_v2, %v1005_v3 }
 0x25d   : > { %5379 = vmatpush1.bf16.msra.mxu0 %v7243_v13  ;;  %5420 = vmatpush1.bf16.msra.mxu1 %v7245_v15  ;;  %v861_v13 = vld [vmem:[%s8855_s4 + $0x448] sm:$0xff]  ;;  %v7247_v15 = vcombine.low %v956_v63, %v1004_v0  ;;  %v958_v0 = vld [vmem:[%s8855_s4 + $0x750] sm:$0xff] }
 0x25e   : > { %5380 = vmatprep.subr.bf16.mxu0 %v7148_v16  ;;  %5421 = vmatprep.subr.bf16.mxu1 %v7150_v19  ;;  %v7249_v16 = vcombine.low %v957_v2, %v1005_v3  ;;  %v812_v19 = vld [vmem:[%s8855_s4 + $0x2c0] sm:$0xff] }
 0x25f   : > { %v7056_v28 = vcombine.high %v764_v18, %v812_v19  ;;  %v9588_v3 = vld [vmem:[%s10172_s0] sm:$0x7] }
 0x260   : > { %v4582_v31 = vpop.f32.mrf.mxu0  ;;  %v4623_v33 = vpop.f32.mrf.mxu1 }
 0x261   : > { %v4583_v32 = vadd.f32 %v4582_v31, %v9197_v6  ;;  %5381 = vmatpush1.bf16.msra.mxu0 %v7147_v26  ;;  %v4624_v37 = vadd.f32 %v4623_v33, %v9197_v6  ;;  %5422 = vmatpush1.bf16.msra.mxu1 %v7149_v27  ;;  %v1199_v26 = vld [vmem:[%s8855_s4 + $0xed8] sm:$0x33]  ;;  %v7151_v27 = vcombine.low %v860_v11, %v908_v12 }
 0x262   : > { %v4584_v38 = vpop.f32.mrf.mxu0  ;;  %5382 = vmatprep.subr.bf16.mxu0 %v7052_v7  ;;  %v4625_v43 = vpop.f32.mrf.mxu1  ;;  %5423 = vmatprep.subr.bf16.mxu1 %v7054_v29  ;;  %v7444_v29 = vcombine.high %v1150_v22, %v1198_v23  ;;  %v7446_v31 = vcombine.high %v1151_v25, %v1199_v26 }
 0x263   : > { %v5814_v41 = vmax.f32 %v4583_v32, 0.0  ;;  %v4585_v42 = vadd.f32 %v4584_v38, %v9197_v6  ;;  %v5816_v47 = vmax.f32 %v4624_v37, 0.0  ;;  %v4626_v48 = vadd.f32 %v4625_v43, %v9197_v6 }
 0x264   : > { %v4586_v49 = vpop.f32.mrf.mxu0  ;;  %v4627_v53 = vpop.f32.mrf.mxu1  ;;  %v7443_v37 = vcombine.low %v1150_v22, %v1198_v23  ;;  %v3778_v40 = vand.u32 %v7444_v29, %v8859_v14  ;;  %v3784_v45 = vand.u32 %v7446_v31, %v8859_v14  ;;  %v767_v23 = vld [vmem:[%s8855_s4 + $0x158] sm:$0xff] }
 0x265   : > { %v5815_v52 = vmax.f32 %v4585_v42, 0.0  ;;  %5383 = vmatpush1.bf16.msra.mxu0 %v7051_v34  ;;  %v5817_v55 = vmax.f32 %v4626_v48, 0.0  ;;  %5424 = vmatpush1.bf16.msra.mxu1 %v7053_v35  ;;  %v7055_v35 = vcombine.low %v764_v18, %v812_v19 }
 0x266   : > { %v4587_v56 = vpop.f32.mrf.mxu0  ;;  %5456 = vmatprep.subr.bf16.mxu0 %v3766_v39  ;;  %v4628_v60 = vpop.f32.mrf.mxu1  ;;  %5497 = vmatprep.subr.bf16.mxu1 %v3772_v44 }
 0x267   : > { %v7603_v59 = vpack.c.bf16 %v5815_v52, %v5814_v41  ;;  %v7604_v1 = vpack.c.bf16 %v5817_v55, %v5816_v47  ;;  %v7445_v41 = vcombine.low %v1151_v25, %v1199_v26  ;;  %v1102_v47 = vld [vmem:[%s8855_s4 + $0xbd0] sm:$0xff]  ;;  %v1103_v52 = vld [vmem:[%s8855_s4 + $0xbd8] sm:$0xff]  ;;  %v3775_v55 = vand.u32 %v7443_v37, %v8859_v14  ;;  %v1200_v25 = vld [vmem:[%s8855_s4 + $0xee0] sm:$0x33] }
 0x268   : > { %7493 = vmatmul.mubr.msk.bf16.vlgmr.msra.gmra.mxu0 %vm3514_vm2, %v9372_v57  ;;  %7494 = vmatmul.mubr.msk.bf16.vlgmr.msra.gmra.mxu1 %vm3514_vm2, %v9372_v57  ;;  %v909_v57 = vld [vmem:[%s8855_s4 + $0x5c8] sm:$0xff]  ;;  %v7350_v63 = vcombine.high %v1055_v51, %v1103_v52  ;;  %v815_v26 = vld [vmem:[%s8855_s4 + $0x2d8] sm:$0xff]  ;;  %v7448_v31 = vcombine.high %v1152_v24, %v1200_v25 }
 0x269   : > { %6276 = vst [vmem:[%s9222_s12 + $0x90] sm:$0x77] %v7603_v59  ;;  %5457 = vmatpush1.bf16.msra.mxu0 %v3763_v54  ;;  %6277 = vst [vmem:[%s9222_s12 + $0x98] sm:$0x77] %v7604_v1  ;;  %5498 = vmatpush1.bf16.msra.mxu1 %v3769_v58  ;;  %v7154_v20 = vcombine.high %v861_v13, %v909_v57  ;;  %v7153_v7 = vcombine.low %v861_v13, %v909_v57  ;;  %v1006_v1 = vld [vmem:[%s8855_s4 + $0x8d0] sm:$0xff] }
 0x26a   : > { %5458 = vmatprep.subr.bf16.mxu0 %v7344_v62  ;;  %5499 = vmatprep.subr.bf16.mxu1 %v7346_v61  ;;  %v3781_v62 = vand.u32 %v7445_v41, %v8859_v14  ;;  %v7348_v59 = vcombine.high %v1054_v46, %v1102_v47  ;;  %v7252_v11 = vcombine.high %v958_v0, %v1006_v1  ;;  %v862_v13 = vld [vmem:[%s8855_s4 + $0x450] sm:$0xff] }
 0x26b   : > { %5482 = vmatprep.mubr.bf16.mxu0 %v8214_v10  ;;  %5523 = vmatprep.mubr.bf16.mxu1 %v8214_v10  ;;  %v910_v57 = vld [vmem:[%s8855_s4 + $0x5d0] sm:$0xff] }
 0x26c   : > { %v7156_v19 = vcombine.high %v862_v13, %v910_v57 }
 0x26d   : > { %5459 = vmatpush1.bf16.msra.mxu0 %v7343_v4  ;;  %5500 = vmatpush1.bf16.msra.mxu1 %v7345_v5  ;;  %v959_v4 = vld [vmem:[%s8855_s4 + $0x758] sm:$0xff] }
 0x26e   : > { %5460 = vmatprep.subr.bf16.mxu0 %v7248_v8  ;;  %5501 = vmatprep.subr.bf16.mxu1 %v7250_v9  ;;  %v1007_v5 = vld [vmem:[%s8855_s4 + $0x8d8] sm:$0xff]  ;;  %v7347_v8 = vcombine.low %v1054_v46, %v1102_v47  ;;  %v7349_v9 = vcombine.low %v1055_v51, %v1103_v52 }
 0x26f   : > { %v7254_v12 = vcombine.high %v959_v4, %v1007_v5  ;;  %v7253_v18 = vcombine.low %v959_v4, %v1007_v5  ;;  %v1008_v4 = vld [vmem:[%s8855_s4 + $0x8e0] sm:$0xff] }
 0x271   : > { %5461 = vmatpush1.bf16.msra.mxu0 %v7247_v15  ;;  %5502 = vmatpush1.bf16.msra.mxu1 %v7249_v16  ;;  %v863_v15 = vld [vmem:[%s8855_s4 + $0x458] sm:$0xff] }
 0x272   : > { %5462 = vmatprep.subr.bf16.mxu0 %v7152_v17  ;;  %5503 = vmatprep.subr.bf16.mxu1 %v7154_v20  ;;  %v911_v16 = vld [vmem:[%s8855_s4 + $0x5d8] sm:$0xff]  ;;  %v7251_v17 = vcombine.low %v958_v0, %v1006_v1  ;;  %v766_v20 = vld [vmem:[%s8855_s4 + $0x150] sm:$0xff] }
 0x273   : > { %v7158_v22 = vcombine.high %v863_v15, %v911_v16  ;;  %v7157_v29 = vcombine.low %v863_v15, %v911_v16  ;;  %v7059_v37 = vcombine.low %v766_v20, %v814_v21  ;;  %v864_v15 = vld [vmem:[%s8855_s4 + $0x460] sm:$0xff] }
 0x274   : > { %v4664_v32 = vpop.f32.mrf.mxu0  ;;  %v4705_v34 = vpop.f32.mrf.mxu1  ;;  %v912_v16 = vld [vmem:[%s8855_s4 + $0x5e0] sm:$0xff] }
 0x275   : > { %v4665_v33 = vadd.f32 %v4664_v32, %v9197_v6  ;;  %5463 = vmatpush1.bf16.msra.mxu0 %v7151_v27  ;;  %v4706_v38 = vadd.f32 %v4705_v34, %v9197_v6  ;;  %5504 = vmatpush1.bf16.msra.mxu1 %v7153_v7  ;;  %v1153_v27 = vld [vmem:[%s8855_s4 + $0xd68] sm:$0xff]  ;;  %v7062_v32 = vcombine.high %v767_v23, %v815_v26 }
 0x276   : > { %v4666_v39 = vpop.f32.mrf.mxu0  ;;  %5464 = vmatprep.subr.bf16.mxu0 %v7056_v28  ;;  %v4707_v44 = vpop.f32.mrf.mxu1  ;;  %5505 = vmatprep.subr.bf16.mxu1 %v7058_v30  ;;  %v1201_v7 = vld [vmem:[%s8855_s4 + $0xee8] sm:$0x33]  ;;  %v7155_v28 = vcombine.low %v862_v13, %v910_v57  ;;  %v7060_v30 = vcombine.high %v766_v20, %v814_v21  ;;  %v7160_v21 = vcombine.high %v864_v15, %v912_v16 }
 0x277   : > { %v5818_v42 = vmax.f32 %v4665_v33, 0.0  ;;  %v4667_v43 = vadd.f32 %v4666_v39, %v9197_v6  ;;  %v5820_v48 = vmax.f32 %v4706_v38, 0.0  ;;  %v4708_v49 = vadd.f32 %v4707_v44, %v9197_v6 }
 0x278   : > { %v4668_v50 = vpop.f32.mrf.mxu0  ;;  %v4709_v54 = vpop.f32.mrf.mxu1  ;;  %v7450_v33 = vcombine.high %v1153_v27, %v1201_v7  ;;  %v7061_v38 = vcombine.low %v767_v23, %v815_v26  ;;  %v7447_v39 = vcombine.low %v1152_v24, %v1200_v25  ;;  %v816_v23 = vld [vmem:[%s8855_s4 + $0x2e0] sm:$0xff]  ;;  %v769_v25 = vld [vmem:[%s8855_s4 + $0x168] sm:$0xff]  ;;  %v1154_v26 = vld [vmem:[%s8855_s4 + $0xd70] sm:$0xff] }
 0x279   : > { %v5819_v53 = vmax.f32 %v4667_v43, 0.0  ;;  %5465 = vmatpush1.bf16.msra.mxu0 %v7055_v35  ;;  %v5821_v56 = vmax.f32 %v4708_v49, 0.0  ;;  %5506 = vmatpush1.bf16.msra.mxu1 %v7057_v36  ;;  %v7449_v43 = vcombine.low %v1153_v27, %v1201_v7  ;;  %v1104_v49 = vld [vmem:[%s8855_s4 + $0xbe0] sm:$0xff]  ;;  %v1105_v54 = vld [vmem:[%s8855_s4 + $0xbe8] sm:$0xff]  ;;  %v1202_v27 = vld [vmem:[%s8855_s4 + $0xef0] sm:$0x33] }
 0x27a   : > { %v4669_v58 = vpop.f32.mrf.mxu0  ;;  %5538 = vmatprep.subr.bf16.mxu0 %v3778_v40  ;;  %v4710_v61 = vpop.f32.mrf.mxu1  ;;  %5579 = vmatprep.subr.bf16.mxu1 %v3784_v45  ;;  %v3796_v47 = vand.u32 %v7450_v33, %v8859_v14  ;;  %v817_v7 = vld [vmem:[%s8855_s4 + $0x2e8] sm:$0xff]  ;;  %v7452_v33 = vcombine.high %v1154_v26, %v1202_v27 }
 0x27b   : > { %v7605_v60 = vpack.c.bf16 %v5819_v53, %v5818_v42  ;;  %v7606_v2 = vpack.c.bf16 %v5821_v56, %v5820_v48  ;;  %v3790_v42 = vand.u32 %v7448_v31, %v8859_v14  ;;  %v1056_v48 = vld [vmem:[%s8855_s4 + $0xa60] sm:$0xff]  ;;  %v1057_v53 = vld [vmem:[%s8855_s4 + $0xa68] sm:$0xff]  ;;  %v3787_v58 = vand.u32 %v7447_v39, %v8859_v14 }
 0x27c   : > { %7495 = vmatmul.mubr.msk.bf16.vlgmr.msra.gmra.mxu0 %vm3514_vm2, %v9588_v3  ;;  %7496 = vmatmul.mubr.msk.bf16.vlgmr.msra.gmra.mxu1 %vm3514_vm2, %v9588_v3  ;;  %v7352_v61 = vcombine.high %v1056_v48, %v1104_v49  ;;  %v7354_v1 = vcombine.high %v1057_v53, %v1105_v54 }
 0x27d   : > { %6278 = vst [vmem:[%s9222_s12 + $0xa0] sm:$0x77] %v7605_v60  ;;  %5539 = vmatpush1.bf16.msra.mxu0 %v3775_v55  ;;  %6279 = vst [vmem:[%s9222_s12 + $0xa8] sm:$0x77] %v7606_v2  ;;  %5580 = vmatpush1.bf16.msra.mxu1 %v3781_v62  ;;  %v3793_v60 = vand.u32 %v7449_v43, %v8859_v14  ;;  %v960_v2 = vld [vmem:[%s8855_s4 + $0x760] sm:$0xff] }
 0x27e   : > { %5540 = vmatprep.subr.bf16.mxu0 %v7348_v59  ;;  %5581 = vmatprep.subr.bf16.mxu1 %v7350_v63  ;;  %v7256_v13 = vcombine.high %v960_v2, %v1008_v4 }
 0x27f   : > { %5564 = vmatprep.mubr.bf16.mxu0 %v8214_v10  ;;  %5605 = vmatprep.mubr.bf16.mxu1 %v8214_v10 }
 0x281   : > { %5541 = vmatpush1.bf16.msra.mxu0 %v7347_v8  ;;  %5582 = vmatpush1.bf16.msra.mxu1 %v7349_v9  ;;  %v961_v8 = vld [vmem:[%s8855_s4 + $0x768] sm:$0xff] }
 0x282   : > { %5542 = vmatprep.subr.bf16.mxu0 %v7252_v11  ;;  %5583 = vmatprep.subr.bf16.mxu1 %v7254_v12  ;;  %v1009_v9 = vld [vmem:[%s8855_s4 + $0x8e8] sm:$0xff]  ;;  %v7351_v11 = vcombine.low %v1056_v48, %v1104_v49  ;;  %v7353_v12 = vcombine.low %v1057_v53, %v1105_v54 }
 0x283   : > { %v7258_v57 = vcombine.high %v961_v8, %v1009_v9  ;;  %v7257_v20 = vcombine.low %v961_v8, %v1009_v9  ;;  %v1010_v8 = vld [vmem:[%s8855_s4 + $0x8f0] sm:$0xff] }
 0x285   : > { %5543 = vmatpush1.bf16.msra.mxu0 %v7251_v17  ;;  %5584 = vmatpush1.bf16.msra.mxu1 %v7253_v18  ;;  %v865_v17 = vld [vmem:[%s8855_s4 + $0x468] sm:$0xff] }
 0x286   : > { %5544 = vmatprep.subr.bf16.mxu0 %v7156_v19  ;;  %5585 = vmatprep.subr.bf16.mxu1 %v7158_v22  ;;  %v913_v18 = vld [vmem:[%s8855_s4 + $0x5e8] sm:$0xff]  ;;  %v7255_v19 = vcombine.low %v960_v2, %v1008_v4  ;;  %v768_v22 = vld [vmem:[%s8855_s4 + $0x160] sm:$0xff] }
 0x287   : > { %v7162_v24 = vcombine.high %v865_v17, %v913_v18  ;;  %v7161_v31 = vcombine.low %v865_v17, %v913_v18  ;;  %v7063_v39 = vcombine.low %v768_v22, %v816_v23  ;;  %v914_v17 = vld [vmem:[%s8855_s4 + $0x5f0] sm:$0xff]  ;;  %v867_v18 = vld [vmem:[%s8855_s4 + $0x478] sm:$0xff] }
 0x288   : > { %v4746_v34 = vpop.f32.mrf.mxu0  ;;  %v4787_v36 = vpop.f32.mrf.mxu1 }
 0x289   : > { %v4747_v35 = vadd.f32 %v4746_v34, %v9197_v6  ;;  %5545 = vmatpush1.bf16.msra.mxu0 %v7155_v28  ;;  %v4788_v40 = vadd.f32 %v4787_v36, %v9197_v6  ;;  %5586 = vmatpush1.bf16.msra.mxu1 %v7157_v29  ;;  %v1155_v28 = vld [vmem:[%s8855_s4 + $0xd78] sm:$0xff]  ;;  %v7066_v34 = vcombine.high %v769_v25, %v817_v7 }
 0x28a   : > { %v4748_v41 = vpop.f32.mrf.mxu0  ;;  %5546 = vmatprep.subr.bf16.mxu0 %v7060_v30  ;;  %v4789_v46 = vpop.f32.mrf.mxu1  ;;  %5587 = vmatprep.subr.bf16.mxu1 %v7062_v32  ;;  %v1203_v29 = vld [vmem:[%s8855_s4 + $0xef8] sm:$0x33]  ;;  %v7159_v30 = vcombine.low %v864_v15, %v912_v16  ;;  %v7064_v32 = vcombine.high %v768_v22, %v816_v23  ;;  %v866_v16 = vld [vmem:[%s8855_s4 + $0x470] sm:$0xff] }
 0x28b   : > { %v5822_v44 = vmax.f32 %v4747_v35, 0.0  ;;  %v4749_v45 = vadd.f32 %v4748_v41, %v9197_v6  ;;  %v5824_v50 = vmax.f32 %v4788_v40, 0.0  ;;  %v4790_v51 = vadd.f32 %v4789_v46, %v9197_v6 }
 0x28c   : > { %v4750_v52 = vpop.f32.mrf.mxu0  ;;  %v4791_v56 = vpop.f32.mrf.mxu1  ;;  %v7454_v35 = vcombine.high %v1155_v28, %v1203_v29  ;;  %v7065_v40 = vcombine.low %v769_v25, %v817_v7  ;;  %v7451_v41 = vcombine.low %v1154_v26, %v1202_v27  ;;  %v7164_v22 = vcombine.high %v866_v16, %v914_v17  ;;  %v818_v25 = vld [vmem:[%s8855_s4 + $0x2f0] sm:$0xff]  ;;  %v771_v26 = vld [vmem:[%s8855_s4 + $0x178] sm:$0xff] }
 0x28d   : > { %v5823_v55 = vmax.f32 %v4749_v45, 0.0  ;;  %5547 = vmatpush1.bf16.msra.mxu0 %v7059_v37  ;;  %v5825_v62 = vmax.f32 %v4790_v51, 0.0  ;;  %5588 = vmatpush1.bf16.msra.mxu1 %v7061_v38  ;;  %v7453_v45 = vcombine.low %v1155_v28, %v1203_v29  ;;  %v1106_v51 = vld [vmem:[%s8855_s4 + $0xbf0] sm:$0xff]  ;;  %v1107_v56 = vld [vmem:[%s8855_s4 + $0xbf8] sm:$0xff]  ;;  %v7163_v7 = vcombine.low %v866_v16, %v914_v17 }
 0x28e   : > { %v4751_v59 = vpop.f32.mrf.mxu0  ;;  %5620 = vmatprep.subr.bf16.mxu0 %v3790_v42  ;;  %v4792_v0 = vpop.f32.mrf.mxu1  ;;  %5661 = vmatprep.subr.bf16.mxu1 %v3796_v47  ;;  %v3808_v49 = vand.u32 %v7454_v35, %v8859_v14  ;;  %v819_v27 = vld [vmem:[%s8855_s4 + $0x2f8] sm:$0xff] }
 0x28f   : > { %v7607_v63 = vpack.c.bf16 %v5823_v55, %v5822_v44  ;;  %v7608_v5 = vpack.c.bf16 %v5825_v62, %v5824_v50  ;;  %v3802_v44 = vand.u32 %v7452_v33, %v8859_v14  ;;  %v1058_v50 = vld [vmem:[%s8855_s4 + $0xa70] sm:$0xff]  ;;  %v1059_v55 = vld [vmem:[%s8855_s4 + $0xa78] sm:$0xff]  ;;  %v3799_v59 = vand.u32 %v7451_v41, %v8859_v14 }
 0x290   : > { %7497 = vmatmul.mubr.msk.bf16.vlgmr.msra.gmra.mxu0 %vm3514_vm2, %v9588_v3  ;;  %7498 = vmatmul.mubr.msk.bf16.vlgmr.msra.gmra.mxu1 %vm3514_vm2, %v9588_v3  ;;  %v7356_v0 = vcombine.high %v1058_v50, %v1106_v51  ;;  %v7358_v4 = vcombine.high %v1059_v55, %v1107_v56 }
 0x291   : > { %6280 = vst [vmem:[%s9222_s12 + $0xb0] sm:$0x77] %v7607_v63  ;;  %5621 = vmatpush1.bf16.msra.mxu0 %v3787_v58  ;;  %6281 = vst [vmem:[%s9222_s12 + $0xb8] sm:$0x77] %v7608_v5  ;;  %5662 = vmatpush1.bf16.msra.mxu1 %v3793_v60  ;;  %v3805_v63 = vand.u32 %v7453_v45, %v8859_v14  ;;  %v962_v5 = vld [vmem:[%s8855_s4 + $0x770] sm:$0xff]  ;;  %v7355_v14 = vcombine.low %v1058_v50, %v1106_v51 }
 0x292   : > { %5622 = vmatprep.subr.bf16.mxu0 %v7352_v61  ;;  %5663 = vmatprep.subr.bf16.mxu1 %v7354_v1 }
 0x293   : > { %5646 = vmatprep.mubr.bf16.mxu0 %v8214_v10  ;;  %5687 = vmatprep.mubr.bf16.mxu1 %v8214_v10 }
 0x295   : > { %5623 = vmatpush1.bf16.msra.mxu0 %v7351_v11  ;;  %5664 = vmatpush1.bf16.msra.mxu1 %v7353_v12  ;;  %v963_v11 = vld [vmem:[%s8855_s4 + $0x778] sm:$0xff] }
 0x296   : > { %5624 = vmatprep.subr.bf16.mxu0 %v7256_v13  ;;  %5665 = vmatprep.subr.bf16.mxu1 %v7258_v57  ;;  %v1011_v12 = vld [vmem:[%s8855_s4 + $0x8f8] sm:$0xff]  ;;  %v7357_v13 = vcombine.low %v1059_v55, %v1107_v56  ;;  %v7260_v57 = vcombine.high %v962_v5, %v1010_v8 }
 0x297   : > { %v7262_v15 = vcombine.high %v963_v11, %v1011_v12 }
 0x299   : > { %5625 = vmatpush1.bf16.msra.mxu0 %v7255_v19  ;;  %5666 = vmatpush1.bf16.msra.mxu1 %v7257_v20  ;;  %v915_v19 = vld [vmem:[%s8855_s4 + $0x5f8] sm:$0xff]  ;;  %v7259_v20 = vcombine.low %v962_v5, %v1010_v8 }
 0x29a   : > { %5626 = vmatprep.subr.bf16.mxu0 %v7160_v21  ;;  %5667 = vmatprep.subr.bf16.mxu1 %v7162_v24  ;;  %v7261_v21 = vcombine.low %v963_v11, %v1011_v12  ;;  %v7166_v23 = vcombine.high %v867_v18, %v915_v19  ;;  %v770_v24 = vld [vmem:[%s8855_s4 + $0x170] sm:$0xff]  ;;  %v7165_v28 = vcombine.low %v867_v18, %v915_v19 }
 0x29b   : > { %v7068_v29 = vcombine.high %v770_v24, %v818_v25  ;;  %v7067_v33 = vcombine.low %v770_v24, %v818_v25 }
 0x29c   : > { %v4828_v36 = vpop.f32.mrf.mxu0  ;;  %v4869_v38 = vpop.f32.mrf.mxu1 }
 0x29d   : > { %v4829_v37 = vadd.f32 %v4828_v36, %v9197_v6  ;;  %5627 = vmatpush1.bf16.msra.mxu0 %v7159_v30  ;;  %v4870_v42 = vadd.f32 %v4869_v38, %v9197_v6  ;;  %5668 = vmatpush1.bf16.msra.mxu1 %v7161_v31  ;;  %v7069_v36 = vcombine.low %v771_v26, %v819_v27 }
 0x29e   : > { %v4830_v43 = vpop.f32.mrf.mxu0  ;;  %5628 = vmatprep.subr.bf16.mxu0 %v7064_v32  ;;  %v4871_v48 = vpop.f32.mrf.mxu1  ;;  %5669 = vmatprep.subr.bf16.mxu1 %v7066_v34 }
 0x29f   : > { %v5826_v46 = vmax.f32 %v4829_v37, 0.0  ;;  %v4831_v47 = vadd.f32 %v4830_v43, %v9197_v6  ;;  %v5828_v52 = vmax.f32 %v4870_v42, 0.0  ;;  %v4872_v53 = vadd.f32 %v4871_v48, %v9197_v6 }
 0x2a0   : > { %v4832_v54 = vpop.f32.mrf.mxu0  ;;  %v4873_v62 = vpop.f32.mrf.mxu1 }
 0x2a1   : > { %v5827_v58 = vmax.f32 %v4831_v47, 0.0  ;;  %5629 = vmatpush1.bf16.msra.mxu0 %v7063_v39  ;;  %v5829_v60 = vmax.f32 %v4872_v53, 0.0  ;;  %5670 = vmatpush1.bf16.msra.mxu1 %v7065_v40 }
 0x2a2   : > { %v4833_v61 = vpop.f32.mrf.mxu0  ;;  %5702 = vmatprep.subr.bf16.mxu0 %v3802_v44  ;;  %v4874_v2 = vpop.f32.mrf.mxu1  ;;  %5743 = vmatprep.subr.bf16.mxu1 %v3808_v49 }
 0x2a3   : > { %v7609_v1 = vpack.c.bf16 %v5827_v58, %v5826_v46  ;;  %v7610_v9 = vpack.c.bf16 %v5829_v60, %v5828_v52 }
 0x2a4   : > { %7499 = vmatmul.mubr.msk.bf16.vlgmr.msra.gmra.mxu0 %vm3514_vm2, %v9588_v3  ;;  %7500 = vmatmul.mubr.msk.bf16.vlgmr.msra.gmra.mxu1 %vm3514_vm2, %v9588_v3 }
 0x2a5   : > { %6282 = vst [vmem:[%s9222_s12 + $0xc0] sm:$0x77] %v7609_v1  ;;  %5703 = vmatpush1.bf16.msra.mxu0 %v3799_v59  ;;  %6283 = vst [vmem:[%s9222_s12 + $0xc8] sm:$0x77] %v7610_v9  ;;  %5744 = vmatpush1.bf16.msra.mxu1 %v3805_v63 }
 0x2a6   : > { %5704 = vmatprep.subr.bf16.mxu0 %v7356_v0  ;;  %5745 = vmatprep.subr.bf16.mxu1 %v7358_v4 }
 0x2a7   : > { %5728 = vmatprep.mubr.bf16.mxu0 %v8214_v10  ;;  %5769 = vmatprep.mubr.bf16.mxu1 %v8214_v10  ;;  %v7070_v10 = vcombine.high %v771_v26, %v819_v27 }
 0x2a9   : > { %5705 = vmatpush1.bf16.msra.mxu0 %v7355_v14  ;;  %5746 = vmatpush1.bf16.msra.mxu1 %v7357_v13 }
 0x2aa   : > { %5706 = vmatprep.subr.bf16.mxu0 %v7260_v57  ;;  %5747 = vmatprep.subr.bf16.mxu1 %v7262_v15 }
 0x2ad   : > { %5707 = vmatpush1.bf16.msra.mxu0 %v7259_v20  ;;  %5748 = vmatpush1.bf16.msra.mxu1 %v7261_v21 }
 0x2ae   : > { %5708 = vmatprep.subr.bf16.mxu0 %v7164_v22  ;;  %5749 = vmatprep.subr.bf16.mxu1 %v7166_v23 }
 0x2b0   : > { %v4910_v30 = vpop.f32.mrf.mxu0  ;;  %v4951_v32 = vpop.f32.mrf.mxu1 }
 0x2b1   : > { %v4911_v31 = vadd.f32 %v4910_v30, %v9197_v6  ;;  %5709 = vmatpush1.bf16.msra.mxu0 %v7163_v7  ;;  %v4952_v34 = vadd.f32 %v4951_v32, %v9197_v6  ;;  %5750 = vmatpush1.bf16.msra.mxu1 %v7165_v28 }
 0x2b2   : > { %v4912_v35 = vpop.f32.mrf.mxu0  ;;  %5710 = vmatprep.subr.bf16.mxu0 %v7068_v29  ;;  %v4953_v39 = vpop.f32.mrf.mxu1  ;;  %5751 = vmatprep.subr.bf16.mxu1 %v7070_v10 }
 0x2b3   : > { %v5830_v37 = vmax.f32 %v4911_v31, 0.0  ;;  %v4913_v38 = vadd.f32 %v4912_v35, %v9197_v6  ;;  %v5832_v40 = vmax.f32 %v4952_v34, 0.0  ;;  %v4954_v41 = vadd.f32 %v4953_v39, %v9197_v6 }
 0x2b4   : > { %v4914_v42 = vpop.f32.mrf.mxu0  ;;  %v4955_v44 = vpop.f32.mrf.mxu1 }
 0x2b5   : > { %v5831_v43 = vmax.f32 %v4913_v38, 0.0  ;;  %5711 = vmatpush1.bf16.msra.mxu0 %v7067_v33  ;;  %v5833_v45 = vmax.f32 %v4954_v41, 0.0  ;;  %5752 = vmatpush1.bf16.msra.mxu1 %v7069_v36 }
 0x2b6   : > { %v4915_v46 = vpop.f32.mrf.mxu0  ;;  %v4956_v48 = vpop.f32.mrf.mxu1 }
 0x2b7   : > { %v7611_v47 = vpack.c.bf16 %v5831_v43, %v5830_v37  ;;  %v7612_v49 = vpack.c.bf16 %v5833_v45, %v5832_v40 }
 0x2b8   : > { %7501 = vmatmul.mubr.msk.bf16.vlgmr.msra.gmra.mxu0 %vm3514_vm2, %v9588_v3  ;;  %7502 = vmatmul.mubr.msk.bf16.vlgmr.msra.gmra.mxu1 %vm3514_vm2, %v9588_v3 }
 0x2b9   : > { %6284 = vst [vmem:[%s9222_s12 + $0xd0] sm:$0x77] %v7611_v47  ;;  %6285 = vst [vmem:[%s9222_s12 + $0xd8] sm:$0x77] %v7612_v49 }
 0x2c4   : > { %v4992_v50 = vpop.f32.mrf.mxu0  ;;  %v5033_v52 = vpop.f32.mrf.mxu1 }
 0x2c5   : > { %v4993_v51 = vadd.f32 %v4992_v50, %v9197_v6  ;;  %v5034_v53 = vadd.f32 %v5033_v52, %v9197_v6 }
 0x2c6   : > { %v4994_v54 = vpop.f32.mrf.mxu0  ;;  %v5035_v58 = vpop.f32.mrf.mxu1 }
 0x2c7   : > { %v5834_v55 = vmax.f32 %v4993_v51, 0.0  ;;  %v4995_v56 = vadd.f32 %v4994_v54, %v9197_v6  ;;  %v5836_v62 = vmax.f32 %v5034_v53, 0.0  ;;  %v5036_v59 = vadd.f32 %v5035_v58, %v9197_v6 }
 0x2c8   : > { %v4996_v60 = vpop.f32.mrf.mxu0  ;;  %v5037_v3 = vpop.f32.mrf.mxu1 }
 0x2c9   : > { %v5835_v61 = vmax.f32 %v4995_v56, 0.0  ;;  %v5837_v63 = vmax.f32 %v5036_v59, 0.0 }
 0x2ca   : > { %v4997_v0 = vpop.f32.mrf.mxu0  ;;  %v5038_v2 = vpop.f32.mrf.mxu1 }
 0x2cb   : > { %v7613_v1 = vpack.c.bf16 %v5835_v61, %v5834_v55  ;;  %v7614_v4 = vpack.c.bf16 %v5837_v63, %v5836_v62 }
 0x2cd   : > { %6286 = vst [vmem:[%s9222_s12 + $0xe0] sm:$0x77] %v7613_v1  ;;  %6287 = vst [vmem:[%s9222_s12 + $0xe8] sm:$0x77] %v7614_v4 }
 0x2d8   : > { %v5074_v5 = vpop.f32.mrf.mxu0  ;;  %v5115_v9 = vpop.f32.mrf.mxu1 }
 0x2d9   : > { %v5075_v8 = vadd.f32 %v5074_v5, %v9197_v6  ;;  %v5116_v11 = vadd.f32 %v5115_v9, %v9197_v6 }
 0x2da   : > { %v5076_v12 = vpop.f32.mrf.mxu0  ;;  %v5117_v57 = vpop.f32.mrf.mxu1 }
 0x2db   : > { %v5838_v14 = vmax.f32 %v5075_v8, 0.0  ;;  %v5077_v13 = vadd.f32 %v5076_v12, %v9197_v6  ;;  %v5840_v15 = vmax.f32 %v5116_v11, 0.0  ;;  %v5118_v16 = vadd.f32 %v5117_v57, %v9197_v6 }
 0x2dc   : > { %v5078_v17 = vpop.f32.mrf.mxu0  ;;  %v5119_v19 = vpop.f32.mrf.mxu1 }
 0x2dd   : > { %v5839_v18 = vmax.f32 %v5077_v13, 0.0  ;;  %v5841_v20 = vmax.f32 %v5118_v16, 0.0 }
 0x2de   : > { %v5079_v21 = vpop.f32.mrf.mxu0  ;;  %v5120_v23 = vpop.f32.mrf.mxu1 }
 0x2df   : > { %v7615_v22 = vpack.c.bf16 %v5839_v18, %v5838_v14  ;;  %v7616_v24 = vpack.c.bf16 %v5841_v20, %v5840_v15 }
 0x2e1   : > { %6288 = vst [vmem:[%s9222_s12 + $0xf0] sm:$0x77] %v7615_v22  ;;  %6289 = vst [vmem:[%s9222_s12 + $0xf8] sm:$0x77] %v7616_v24 }
 0x2ec   : > { %v5156_v25 = vpop.f32.mrf.mxu0  ;;  %v5197_v27 = vpop.f32.mrf.mxu1 }
 0x2ed   : > { %v5157_v26 = vadd.f32 %v5156_v25, %v9197_v6  ;;  %v5198_v7 = vadd.f32 %v5197_v27, %v9197_v6 }
 0x2ee   : > { %v5158_v28 = vpop.f32.mrf.mxu0  ;;  %v5199_v30 = vpop.f32.mrf.mxu1 }
 0x2ef   : > { %v5842_v29 = vmax.f32 %v5157_v26, 0.0  ;;  %v5159_v10 = vadd.f32 %v5158_v28, %v9197_v6  ;;  %v5844_v31 = vmax.f32 %v5198_v7, 0.0  ;;  %v5200_v32 = vadd.f32 %v5199_v30, %v9197_v6 }
 0x2f0   : > { %v5160_v33 = vpop.f32.mrf.mxu0  ;;  %v5201_v35 = vpop.f32.mrf.mxu1 }
 0x2f1   : > { %v5843_v34 = vmax.f32 %v5159_v10, 0.0  ;;  %v5845_v36 = vmax.f32 %v5200_v32, 0.0 }
 0x2f2   : > { %v5161_v37 = vpop.f32.mrf.mxu0  ;;  %v5202_v39 = vpop.f32.mrf.mxu1 }
 0x2f3   : > { %v7617_v38 = vpack.c.bf16 %v5843_v34, %v5842_v29  ;;  %v7618_v40 = vpack.c.bf16 %v5845_v36, %v5844_v31 }
 0x2f5   : > { %6290 = vst [vmem:[%s9222_s12 + $0x100] sm:$0x77] %v7617_v38  ;;  %6291 = vst [vmem:[%s9222_s12 + $0x108] sm:$0x77] %v7618_v40 }
 0x300   : > { %v5238_v41 = vpop.f32.mrf.mxu0  ;;  %v5279_v43 = vpop.f32.mrf.mxu1 }
 0x301   : > { %v5239_v42 = vadd.f32 %v5238_v41, %v9197_v6  ;;  %v5280_v44 = vadd.f32 %v5279_v43, %v9197_v6 }
 0x302   : > { %v5240_v45 = vpop.f32.mrf.mxu0  ;;  %v5281_v48 = vpop.f32.mrf.mxu1 }
 0x303   : > { %v5846_v46 = vmax.f32 %v5239_v42, 0.0  ;;  %v5241_v47 = vadd.f32 %v5240_v45, %v9197_v6  ;;  %v5848_v49 = vmax.f32 %v5280_v44, 0.0  ;;  %v5282_v50 = vadd.f32 %v5281_v48, %v9197_v6 }
 0x304   : > { %v5242_v51 = vpop.f32.mrf.mxu0  ;;  %v5283_v53 = vpop.f32.mrf.mxu1 }
 0x305   : > { %v5847_v52 = vmax.f32 %v5241_v47, 0.0  ;;  %v5849_v54 = vmax.f32 %v5282_v50, 0.0 }
 0x306   : > { %v5243_v55 = vpop.f32.mrf.mxu0  ;;  %v5284_v58 = vpop.f32.mrf.mxu1 }
 0x307   : > { %v7619_v56 = vpack.c.bf16 %v5847_v52, %v5846_v46  ;;  %v7620_v62 = vpack.c.bf16 %v5849_v54, %v5848_v49 }
 0x309   : > { %6292 = vst [vmem:[%s9222_s12 + $0x110] sm:$0x77] %v7619_v56  ;;  %6293 = vst [vmem:[%s9222_s12 + $0x118] sm:$0x77] %v7620_v62 }
 0x314   : > { %v5320_v59 = vpop.f32.mrf.mxu0  ;;  %v5361_v61 = vpop.f32.mrf.mxu1 }
 0x315   : > { %v5321_v60 = vadd.f32 %v5320_v59, %v9197_v6  ;;  %v5362_v3 = vadd.f32 %v5361_v61, %v9197_v6 }
 0x316   : > { %v5322_v63 = vpop.f32.mrf.mxu0  ;;  %v5363_v2 = vpop.f32.mrf.mxu1 }
 0x317   : > { %v5850_v0 = vmax.f32 %v5321_v60, 0.0  ;;  %v5323_v1 = vadd.f32 %v5322_v63, %v9197_v6  ;;  %v5852_v4 = vmax.f32 %v5362_v3, 0.0  ;;  %v5364_v5 = vadd.f32 %v5363_v2, %v9197_v6 }
 0x318   : > { %v5324_v8 = vpop.f32.mrf.mxu0  ;;  %v5365_v11 = vpop.f32.mrf.mxu1 }
 0x319   : > { %v5851_v9 = vmax.f32 %v5323_v1, 0.0  ;;  %v5853_v12 = vmax.f32 %v5364_v5, 0.0 }
 0x31a   : > { %v5325_v14 = vpop.f32.mrf.mxu0  ;;  %v5366_v57 = vpop.f32.mrf.mxu1 }
 0x31b   : > { %v7621_v13 = vpack.c.bf16 %v5851_v9, %v5850_v0  ;;  %v7622_v15 = vpack.c.bf16 %v5853_v12, %v5852_v4 }
 0x31d   : > { %6294 = vst [vmem:[%s9222_s12 + $0x120] sm:$0x77] %v7621_v13  ;;  %6295 = vst [vmem:[%s9222_s12 + $0x128] sm:$0x77] %v7622_v15 }
 0x328   : > { %v5402_v16 = vpop.f32.mrf.mxu0  ;;  %v5443_v18 = vpop.f32.mrf.mxu1 }
 0x329   : > { %v5403_v17 = vadd.f32 %v5402_v16, %v9197_v6  ;;  %v5444_v19 = vadd.f32 %v5443_v18, %v9197_v6 }
 0x32a   : > { %v5404_v20 = vpop.f32.mrf.mxu0  ;;  %v5445_v23 = vpop.f32.mrf.mxu1 }
 0x32b   : > { %v5854_v21 = vmax.f32 %v5403_v17, 0.0  ;;  %v5405_v22 = vadd.f32 %v5404_v20, %v9197_v6  ;;  %v5856_v24 = vmax.f32 %v5444_v19, 0.0  ;;  %v5446_v25 = vadd.f32 %v5445_v23, %v9197_v6 }
 0x32c   : > { %v5406_v26 = vpop.f32.mrf.mxu0  ;;  %v5447_v7 = vpop.f32.mrf.mxu1 }
 0x32d   : > { %v5855_v27 = vmax.f32 %v5405_v22, 0.0  ;;  %v5857_v28 = vmax.f32 %v5446_v25, 0.0 }
 0x32e   : > { %v5407_v29 = vpop.f32.mrf.mxu0  ;;  %v5448_v30 = vpop.f32.mrf.mxu1 }
 0x32f   : > { %v7623_v10 = vpack.c.bf16 %v5855_v27, %v5854_v21  ;;  %v7624_v31 = vpack.c.bf16 %v5857_v28, %v5856_v24 }
 0x331   : > { %6296 = vst [vmem:[%s9222_s12 + $0x130] sm:$0x77] %v7623_v10  ;;  %6297 = vst [vmem:[%s9222_s12 + $0x138] sm:$0x77] %v7624_v31 }
 0x33c   : > { %v5484_v32 = vpop.f32.mrf.mxu0  ;;  %v5525_v34 = vpop.f32.mrf.mxu1 }
 0x33d   : > { %v5485_v33 = vadd.f32 %v5484_v32, %v9197_v6  ;;  %v5526_v35 = vadd.f32 %v5525_v34, %v9197_v6 }
 0x33e   : > { %v5486_v36 = vpop.f32.mrf.mxu0  ;;  %v5527_v39 = vpop.f32.mrf.mxu1 }
 0x33f   : > { %v5858_v37 = vmax.f32 %v5485_v33, 0.0  ;;  %v5487_v38 = vadd.f32 %v5486_v36, %v9197_v6  ;;  %v5860_v40 = vmax.f32 %v5526_v35, 0.0  ;;  %v5528_v41 = vadd.f32 %v5527_v39, %v9197_v6 }
 0x340   : > { %v5488_v42 = vpop.f32.mrf.mxu0  ;;  %v5529_v44 = vpop.f32.mrf.mxu1 }
 0x341   : > { %v5859_v43 = vmax.f32 %v5487_v38, 0.0  ;;  %v5861_v45 = vmax.f32 %v5528_v41, 0.0 }
 0x342   : > { %v5489_v46 = vpop.f32.mrf.mxu0  ;;  %v5530_v48 = vpop.f32.mrf.mxu1 }
 0x343   : > { %v7625_v47 = vpack.c.bf16 %v5859_v43, %v5858_v37  ;;  %v7626_v49 = vpack.c.bf16 %v5861_v45, %v5860_v40 }
 0x345   : > { %6298 = vst [vmem:[%s9222_s12 + $0x140] sm:$0x77] %v7625_v47  ;;  %6299 = vst [vmem:[%s9222_s12 + $0x148] sm:$0x77] %v7626_v49 }
 0x350   : > { %v5566_v50 = vpop.f32.mrf.mxu0  ;;  %v5607_v52 = vpop.f32.mrf.mxu1 }
 0x351   : > { %v5567_v51 = vadd.f32 %v5566_v50, %v9197_v6  ;;  %v5608_v53 = vadd.f32 %v5607_v52, %v9197_v6 }
 0x352   : > { %v5568_v54 = vpop.f32.mrf.mxu0  ;;  %v5609_v58 = vpop.f32.mrf.mxu1 }
 0x353   : > { %v5862_v55 = vmax.f32 %v5567_v51, 0.0  ;;  %v5569_v56 = vadd.f32 %v5568_v54, %v9197_v6  ;;  %v5864_v62 = vmax.f32 %v5608_v53, 0.0  ;;  %v5610_v59 = vadd.f32 %v5609_v58, %v9197_v6 }
 0x354   : > { %v5570_v60 = vpop.f32.mrf.mxu0  ;;  %v5611_v3 = vpop.f32.mrf.mxu1 }
 0x355   : > { %v5863_v61 = vmax.f32 %v5569_v56, 0.0  ;;  %v5865_v63 = vmax.f32 %v5610_v59, 0.0 }
 0x356   : > { %v5571_v0 = vpop.f32.mrf.mxu0  ;;  %v5612_v2 = vpop.f32.mrf.mxu1 }
 0x357   : > { %v7627_v1 = vpack.c.bf16 %v5863_v61, %v5862_v55  ;;  %v7628_v4 = vpack.c.bf16 %v5865_v63, %v5864_v62 }
 0x359   : > { %6300 = vst [vmem:[%s9222_s12 + $0x150] sm:$0x77] %v7627_v1  ;;  %6301 = vst [vmem:[%s9222_s12 + $0x158] sm:$0x77] %v7628_v4 }
 0x364   : > { %v5648_v5 = vpop.f32.mrf.mxu0  ;;  %v5689_v9 = vpop.f32.mrf.mxu1 }
 0x365   : > { %v5649_v8 = vadd.f32 %v5648_v5, %v9197_v6  ;;  %v5690_v11 = vadd.f32 %v5689_v9, %v9197_v6 }
 0x366   : > { %v5650_v12 = vpop.f32.mrf.mxu0  ;;  %v5691_v57 = vpop.f32.mrf.mxu1 }
 0x367   : > { %v5866_v14 = vmax.f32 %v5649_v8, 0.0  ;;  %v5651_v13 = vadd.f32 %v5650_v12, %v9197_v6  ;;  %v5868_v15 = vmax.f32 %v5690_v11, 0.0  ;;  %v5692_v16 = vadd.f32 %v5691_v57, %v9197_v6 }
 0x368   : > { %v5652_v17 = vpop.f32.mrf.mxu0  ;;  %v5693_v19 = vpop.f32.mrf.mxu1 }
 0x369   : > { %v5867_v18 = vmax.f32 %v5651_v13, 0.0  ;;  %v5869_v20 = vmax.f32 %v5692_v16, 0.0 }
 0x36a   : > { %v5653_v21 = vpop.f32.mrf.mxu0  ;;  %v5694_v23 = vpop.f32.mrf.mxu1 }
 0x36b   : > { %v7629_v22 = vpack.c.bf16 %v5867_v18, %v5866_v14  ;;  %v7630_v24 = vpack.c.bf16 %v5869_v20, %v5868_v15 }
 0x36d   : > { %6302 = vst [vmem:[%s9222_s12 + $0x160] sm:$0x77] %v7629_v22  ;;  %6303 = vst [vmem:[%s9222_s12 + $0x168] sm:$0x77] %v7630_v24 }
 0x378   : > { %v5730_v25 = vpop.f32.mrf.mxu0  ;;  %v5771_v27 = vpop.f32.mrf.mxu1 }
 0x379   : > { %v5731_v26 = vadd.f32 %v5730_v25, %v9197_v6  ;;  %v5772_v7 = vadd.f32 %v5771_v27, %v9197_v6 }
 0x37a   : > { %v5732_v28 = vpop.f32.mrf.mxu0  ;;  %v5773_v10 = vpop.f32.mrf.mxu1 }
 0x37b   : > { %v5733_v29 = vadd.f32 %v5732_v28, %v9197_v6  ;;  %v5774_v30 = vadd.f32 %v5773_v10, %v9197_v6  ;;  %v5870_v32 = vmax.f32 %v5731_v26, 0.0  ;;  %v5872_v35 = vmax.f32 %v5772_v7, 0.0 }
 0x37c   : > { %v5734_v31 = vpop.f32.mrf.mxu0  ;;  %v5775_v34 = vpop.f32.mrf.mxu1 }
 0x37d   : > { %v5871_v33 = vmax.f32 %v5733_v29, 0.0  ;;  %v5873_v36 = vmax.f32 %v5774_v30, 0.0  ;;  %6312 = sbr.rel (!%p8268_p5) target bundleno = 1044 (0x414), region = 102 }
 0x37e   : > { %v5735_v37 = vpop.f32.mrf.mxu0  ;;  %v5776_v39 = vpop.f32.mrf.mxu1 }
 0x37f   : > { %v7631_v38 = vpack.c.bf16 %v5871_v33, %v5870_v32  ;;  %v7632_v40 = vpack.c.bf16 %v5873_v36, %v5872_v35 }
 0x381   : > { %6304 = vst [vmem:[%s9222_s12 + $0x170] sm:$0x77] %v7631_v38  ;;  %6305 = vst [vmem:[%s9222_s12 + $0x178] sm:$0x77] %v7632_v40 }
 0x382   : > { %s10217_s8 = smov (!%p6315_p1, %s6314_s8), 96 }
 0x383   : > { %s7551_s21 = sshll.u32 %s10217_s8, 6  ;;  %s9759_s30 = sshll.u32 %s10217_s8, 2 }
 0x384   : > { %p7555_p2 = scmp.eq.s32.totalorder %s7551_s21, 0 }
 0x385   : > { %p6325_p3 = scmp.lt.u32.totalorder (!%p7555_p2), %s9759_s30, 8 }
 0x386   : > { %6324 = sbr.rel (%p7555_p2) target bundleno = 1044 (0x414), region = 106 }
 0x38b   : > { %6328 = sbr.rel (%p6325_p3) target bundleno = 1035 (0x40b), region = 110  ;;  %s9763_s20 = sand.u32 (!%p6325_p3), 7, %s9759_s30  }
 0x38c   : > { %p6345_p5 = scmp.eq.s32.totalorder (!%p6325_p3), %s9763_s20, 0  ;;  %p7556_p4 = scmp.ne.s32.totalorder (!%p6325_p3), %s9763_s20, 0 }
 0x390   : > { %6348 = sbr.rel (%p7556_p4) target bundleno = 971 (0x3cb), region = 125  ;;  %s6349_s15 = sshrl.u32 (!%p7556_p4), %s9759_s30, 3 }
 0x391   : > { %s9770_s10 = sshrl.u32 (!%p7556_p4), %s6349_s15, 6 }
 0x392   : > { %p7557_p6 = scmp.le.s32.totalorder (!%p7556_p4), %s9770_s10, 0 }
 0x395   : > { %6873 = sbr.rel (%p7557_p6) target bundleno = 955 (0x3bb), region = 273  ;;  %s10193_s28 = smov (!%p7557_p6), %s9757_s18 }
 0x396   : > { %s10194_s14 = smov (!%p7557_p6), %s9222_s12  ;;  %s9779_s4 = smov (!%p7557_p6), 0  }
 0x397   : > { %s9781_s6 = smov (!%p7557_p6), 0  }
 0x39a LB: >> { %v6362_v6 = vld [vmem:[%s8153_s14] sm:$0xff]  ;;  %v6364_v41 = vld [vmem:[%s8153_s14 + $0x8] sm:$0xff]  ;;  %v6366_v42 = vld [vmem:[%s8153_s14 + $0x10] sm:$0xff]  ;;  %s6490_s7 = sadd.s32 1, %s8157_s4  ;;  %s6356_s6 = sadd.s32 1, %s8161_s6   ;;  %s8161_s6 = sphi %s9781_s6, %s6356_s6   ;;  %s8157_s4 = sphi %s9779_s4, %s10197_s4   ;;  %s8153_s14 = sphi %s10194_s14, %s10196_s14   ;;  %s8149_s28 = sphi %s10193_s28, %s10195_s28  }
 0x39b   : >> { %6363 = vst [vmem:[%s8149_s28] sm:$0xff] %v6362_v6  ;;  %6365 = vst [vmem:[%s8149_s28 + $0x8] sm:$0xff] %v6364_v41  ;;  %v6368_v43 = vld [vmem:[%s8153_s14 + $0x18] sm:$0xff]  ;;  %v6370_v44 = vld [vmem:[%s8153_s14 + $0x20] sm:$0xff]  ;;  %p6491_p7 = scmp.ge.s32.totalorder %s6490_s7, %s9770_s10  ;;  %p6355_p8 = scmp.ge.s32.totalorder %s6356_s6, %s9770_s10 }
 0x39c   : >> { %6367 = vst [vmem:[%s8149_s28 + $0x10] sm:$0xff] %v6366_v42  ;;  %v6372_v45 = vld [vmem:[%s8153_s14 + $0x28] sm:$0xff]  ;;  %6369 = vst [vmem:[%s8149_s28 + $0x18] sm:$0xff] %v6368_v43  ;;  %v6374_v46 = vld [vmem:[%s8153_s14 + $0x30] sm:$0xff] }
 0x39d   : >> { %6371 = vst [vmem:[%s8149_s28 + $0x20] sm:$0xff] %v6370_v44  ;;  %6373 = vst [vmem:[%s8149_s28 + $0x28] sm:$0xff] %v6372_v45  ;;  %v6376_v47 = vld [vmem:[%s8153_s14 + $0x38] sm:$0xff]  ;;  %v6378_v48 = vld [vmem:[%s8153_s14 + $0x40] sm:$0xff]  ;;  %s10219_s7 = smov (%p6491_p7, %s6490_s7), 0 }
 0x39e   : >> { %6375 = vst [vmem:[%s8149_s28 + $0x30] sm:$0xff] %v6374_v46  ;;  %6377 = vst [vmem:[%s8149_s28 + $0x38] sm:$0xff] %v6376_v47  ;;  %v6380_v49 = vld [vmem:[%s8153_s14 + $0x48] sm:$0xff]  ;;  %v6382_v50 = vld [vmem:[%s8153_s14 + $0x50] sm:$0xff]  ;;  %s7558_s11 = sshll.u32 %s10219_s7, 9  ;;  %s10197_s4 = smov %s10219_s7 }
 0x39f   : >> { %6379 = vst [vmem:[%s8149_s28 + $0x40] sm:$0xff] %v6378_v48  ;;  %v6384_v51 = vld [vmem:[%s8153_s14 + $0x58] sm:$0xff]  ;;  %6381 = vst [vmem:[%s8149_s28 + $0x48] sm:$0xff] %v6380_v49  ;;  %v6386_v52 = vld [vmem:[%s8153_s14 + $0x60] sm:$0xff]  ;;  %s9837_s29 = scalar_lea.vmem %s9222_s12, %s7558_s11 [#allocation3]   ;;  %s9840_s23 = scalar_lea.vmem %s9757_s18, %s7558_s11  }
 0x3a0   : >> { %6383 = vst [vmem:[%s8149_s28 + $0x50] sm:$0xff] %v6382_v50  ;;  %6385 = vst [vmem:[%s8149_s28 + $0x58] sm:$0xff] %v6384_v51  ;;  %v6388_v53 = vld [vmem:[%s8153_s14 + $0x68] sm:$0xff]  ;;  %v6390_v54 = vld [vmem:[%s8153_s14 + $0x70] sm:$0xff] }
 0x3a1   : >> { %6387 = vst [vmem:[%s8149_s28 + $0x60] sm:$0xff] %v6386_v52  ;;  %6389 = vst [vmem:[%s8149_s28 + $0x68] sm:$0xff] %v6388_v53  ;;  %v6392_v55 = vld [vmem:[%s8153_s14 + $0x78] sm:$0xff]  ;;  %v6394_v56 = vld [vmem:[%s8153_s14 + $0x80] sm:$0xff] }
 0x3a2   : >> { %6391 = vst [vmem:[%s8149_s28 + $0x70] sm:$0xff] %v6390_v54  ;;  %v6396_v58 = vld [vmem:[%s8153_s14 + $0x88] sm:$0xff]  ;;  %6393 = vst [vmem:[%s8149_s28 + $0x78] sm:$0xff] %v6392_v55  ;;  %v6398_v62 = vld [vmem:[%s8153_s14 + $0x90] sm:$0xff] }
 0x3a3   : >> { %6395 = vst [vmem:[%s8149_s28 + $0x80] sm:$0xff] %v6394_v56  ;;  %6397 = vst [vmem:[%s8149_s28 + $0x88] sm:$0xff] %v6396_v58  ;;  %v6400_v59 = vld [vmem:[%s8153_s14 + $0x98] sm:$0xff]  ;;  %v6402_v60 = vld [vmem:[%s8153_s14 + $0xa0] sm:$0xff] }
 0x3a4   : >> { %6399 = vst [vmem:[%s8149_s28 + $0x90] sm:$0xff] %v6398_v62  ;;  %6401 = vst [vmem:[%s8149_s28 + $0x98] sm:$0xff] %v6400_v59  ;;  %v6404_v61 = vld [vmem:[%s8153_s14 + $0xa8] sm:$0xff]  ;;  %v6406_v3 = vld [vmem:[%s8153_s14 + $0xb0] sm:$0xff] }
 0x3a5   : >> { %6403 = vst [vmem:[%s8149_s28 + $0xa0] sm:$0xff] %v6402_v60  ;;  %v6408_v63 = vld [vmem:[%s8153_s14 + $0xb8] sm:$0xff]  ;;  %6405 = vst [vmem:[%s8149_s28 + $0xa8] sm:$0xff] %v6404_v61  ;;  %v6410_v0 = vld [vmem:[%s8153_s14 + $0xc0] sm:$0xff] }
 0x3a6   : >> { %6407 = vst [vmem:[%s8149_s28 + $0xb0] sm:$0xff] %v6406_v3  ;;  %6409 = vst [vmem:[%s8149_s28 + $0xb8] sm:$0xff] %v6408_v63  ;;  %v6412_v1 = vld [vmem:[%s8153_s14 + $0xc8] sm:$0xff]  ;;  %v6414_v2 = vld [vmem:[%s8153_s14 + $0xd0] sm:$0xff] }
 0x3a7   : >> { %6411 = vst [vmem:[%s8149_s28 + $0xc0] sm:$0xff] %v6410_v0  ;;  %6413 = vst [vmem:[%s8149_s28 + $0xc8] sm:$0xff] %v6412_v1  ;;  %v6416_v4 = vld [vmem:[%s8153_s14 + $0xd8] sm:$0xff]  ;;  %v6418_v5 = vld [vmem:[%s8153_s14 + $0xe0] sm:$0xff] }
 0x3a8   : >> { %6415 = vst [vmem:[%s8149_s28 + $0xd0] sm:$0xff] %v6414_v2  ;;  %v6420_v8 = vld [vmem:[%s8153_s14 + $0xe8] sm:$0xff]  ;;  %6417 = vst [vmem:[%s8149_s28 + $0xd8] sm:$0xff] %v6416_v4  ;;  %v6422_v9 = vld [vmem:[%s8153_s14 + $0xf0] sm:$0xff] }
 0x3a9   : >> { %6419 = vst [vmem:[%s8149_s28 + $0xe0] sm:$0xff] %v6418_v5  ;;  %6421 = vst [vmem:[%s8149_s28 + $0xe8] sm:$0xff] %v6420_v8  ;;  %v6424_v11 = vld [vmem:[%s8153_s14 + $0xf8] sm:$0xff]  ;;  %v6426_v12 = vld [vmem:[%s8153_s14 + $0x100] sm:$0xff] }
 0x3aa   : >> { %6423 = vst [vmem:[%s8149_s28 + $0xf0] sm:$0xff] %v6422_v9  ;;  %6425 = vst [vmem:[%s8149_s28 + $0xf8] sm:$0xff] %v6424_v11  ;;  %v6428_v14 = vld [vmem:[%s8153_s14 + $0x108] sm:$0xff]  ;;  %v6430_v13 = vld [vmem:[%s8153_s14 + $0x110] sm:$0xff] }
 0x3ab   : >> { %6427 = vst [vmem:[%s8149_s28 + $0x100] sm:$0xff] %v6426_v12  ;;  %v6432_v57 = vld [vmem:[%s8153_s14 + $0x118] sm:$0xff]  ;;  %6429 = vst [vmem:[%s8149_s28 + $0x108] sm:$0xff] %v6428_v14  ;;  %v6434_v15 = vld [vmem:[%s8153_s14 + $0x120] sm:$0xff] }
 0x3ac   : >> { %6431 = vst [vmem:[%s8149_s28 + $0x110] sm:$0xff] %v6430_v13  ;;  %6433 = vst [vmem:[%s8149_s28 + $0x118] sm:$0xff] %v6432_v57  ;;  %v6436_v16 = vld [vmem:[%s8153_s14 + $0x128] sm:$0xff]  ;;  %v6438_v17 = vld [vmem:[%s8153_s14 + $0x130] sm:$0xff] }
 0x3ad   : >> { %6435 = vst [vmem:[%s8149_s28 + $0x120] sm:$0xff] %v6434_v15  ;;  %6437 = vst [vmem:[%s8149_s28 + $0x128] sm:$0xff] %v6436_v16  ;;  %v6440_v18 = vld [vmem:[%s8153_s14 + $0x138] sm:$0xff]  ;;  %v6442_v19 = vld [vmem:[%s8153_s14 + $0x140] sm:$0xff] }
 0x3ae   : >> { %6439 = vst [vmem:[%s8149_s28 + $0x130] sm:$0xff] %v6438_v17  ;;  %v6444_v20 = vld [vmem:[%s8153_s14 + $0x148] sm:$0xff]  ;;  %6441 = vst [vmem:[%s8149_s28 + $0x138] sm:$0xff] %v6440_v18  ;;  %v6446_v21 = vld [vmem:[%s8153_s14 + $0x150] sm:$0xff] }
 0x3af   : >> { %6443 = vst [vmem:[%s8149_s28 + $0x140] sm:$0xff] %v6442_v19  ;;  %6445 = vst [vmem:[%s8149_s28 + $0x148] sm:$0xff] %v6444_v20  ;;  %v6448_v22 = vld [vmem:[%s8153_s14 + $0x158] sm:$0xff]  ;;  %v6450_v23 = vld [vmem:[%s8153_s14 + $0x160] sm:$0xff] }
 0x3b0   : >> { %6447 = vst [vmem:[%s8149_s28 + $0x150] sm:$0xff] %v6446_v21  ;;  %6449 = vst [vmem:[%s8149_s28 + $0x158] sm:$0xff] %v6448_v22  ;;  %v6452_v24 = vld [vmem:[%s8153_s14 + $0x168] sm:$0xff]  ;;  %v6454_v25 = vld [vmem:[%s8153_s14 + $0x170] sm:$0xff] }
 0x3b1   : >> { %6451 = vst [vmem:[%s8149_s28 + $0x160] sm:$0xff] %v6450_v23  ;;  %v6456_v26 = vld [vmem:[%s8153_s14 + $0x178] sm:$0xff]  ;;  %6453 = vst [vmem:[%s8149_s28 + $0x168] sm:$0xff] %v6452_v24  ;;  %v6458_v27 = vld [vmem:[%s8153_s14 + $0x180] sm:$0xff] }
 0x3b2   : >> { %6455 = vst [vmem:[%s8149_s28 + $0x170] sm:$0xff] %v6454_v25  ;;  %6457 = vst [vmem:[%s8149_s28 + $0x178] sm:$0xff] %v6456_v26  ;;  %v6460_v7 = vld [vmem:[%s8153_s14 + $0x188] sm:$0xff]  ;;  %v6462_v28 = vld [vmem:[%s8153_s14 + $0x190] sm:$0xff] }
 0x3b3   : >> { %6459 = vst [vmem:[%s8149_s28 + $0x180] sm:$0xff] %v6458_v27  ;;  %6461 = vst [vmem:[%s8149_s28 + $0x188] sm:$0xff] %v6460_v7  ;;  %v6464_v29 = vld [vmem:[%s8153_s14 + $0x198] sm:$0xff]  ;;  %v6466_v10 = vld [vmem:[%s8153_s14 + $0x1a0] sm:$0xff] }
 0x3b4   : >> { %6463 = vst [vmem:[%s8149_s28 + $0x190] sm:$0xff] %v6462_v28  ;;  %v6468_v30 = vld [vmem:[%s8153_s14 + $0x1a8] sm:$0xff]  ;;  %6465 = vst [vmem:[%s8149_s28 + $0x198] sm:$0xff] %v6464_v29  ;;  %v6470_v31 = vld [vmem:[%s8153_s14 + $0x1b0] sm:$0xff] }
 0x3b5   : >> { %6467 = vst [vmem:[%s8149_s28 + $0x1a0] sm:$0xff] %v6466_v10  ;;  %6469 = vst [vmem:[%s8149_s28 + $0x1a8] sm:$0xff] %v6468_v30  ;;  %v6472_v32 = vld [vmem:[%s8153_s14 + $0x1b8] sm:$0xff]  ;;  %v6474_v33 = vld [vmem:[%s8153_s14 + $0x1c0] sm:$0xff] }
 0x3b6   : >> { %6471 = vst [vmem:[%s8149_s28 + $0x1b0] sm:$0xff] %v6470_v31  ;;  %6473 = vst [vmem:[%s8149_s28 + $0x1b8] sm:$0xff] %v6472_v32  ;;  %v6476_v34 = vld [vmem:[%s8153_s14 + $0x1c8] sm:$0xff]  ;;  %v6478_v35 = vld [vmem:[%s8153_s14 + $0x1d0] sm:$0xff]  ;;  %6358 = sbr.rel (!%p6355_p8) target bundleno = 922 (0x39a), region = 279 }
 0x3b7   : >> { %6475 = vst [vmem:[%s8149_s28 + $0x1c0] sm:$0xff] %v6474_v33  ;;  %v6480_v36 = vld [vmem:[%s8153_s14 + $0x1d8] sm:$0xff]  ;;  %6477 = vst [vmem:[%s8149_s28 + $0x1c8] sm:$0xff] %v6476_v34  ;;  %v6482_v37 = vld [vmem:[%s8153_s14 + $0x1e0] sm:$0xff] }
 0x3b8   : >> { %6479 = vst [vmem:[%s8149_s28 + $0x1d0] sm:$0xff] %v6478_v35  ;;  %6481 = vst [vmem:[%s8149_s28 + $0x1d8] sm:$0xff] %v6480_v36  ;;  %v6484_v38 = vld [vmem:[%s8153_s14 + $0x1e8] sm:$0xff]  ;;  %v6486_v39 = vld [vmem:[%s8153_s14 + $0x1f0] sm:$0xff] }
 0x3b9   : >> { %6483 = vst [vmem:[%s8149_s28 + $0x1e0] sm:$0xff] %v6482_v37  ;;  %6485 = vst [vmem:[%s8149_s28 + $0x1e8] sm:$0xff] %v6484_v38  ;;  %v6488_v40 = vld [vmem:[%s8153_s14 + $0x1f8] sm:$0xff]  ;;  %s10196_s14 = smov %s9837_s29 }
 0x3ba   : >> { %6487 = vst [vmem:[%s8149_s28 + $0x1f0] sm:$0xff] %v6486_v39  ;;  %6489 = vst [vmem:[%s8149_s28 + $0x1f8] sm:$0xff] %v6488_v40  ;;  %s10195_s28 = smov %s9840_s23 }
 0x3bb PF: > { %s9946_s24 = sand.u32 63, %s6349_s15   ;;  %s7634_s25 = sshll.u32 %s9770_s10, 13 }
 0x3bc   : > { %s6501_s26 = sshra.s32 %s7634_s25, 4  ;;  %p7563_p9 = scmp.le.s32.totalorder %s9946_s24, 0 }
 0x3bd   : > { %s6502_s17 = scalar_lea.vmem %s9222_s12, %s6501_s26 [#allocation3]   ;;  %s6505_s22 = scalar_lea.vmem %s9757_s18, %s6501_s26  }
 0x3be   : > { %6887 = sbr.rel (%p7563_p9) target bundleno = 971 (0x3cb), region = 284  ;;  %s8163_s27 = smov (!%p7563_p9), %s6505_s22  }
 0x3bf   : > { %s8167_s8 = smov (!%p7563_p9), %s6502_s17   ;;  %s8171_s9 = smov (!%p7563_p9), 0  }
 0x3c0   : > { %s8175_s5 = smov (!%p7563_p9), 0  }
 0x3c3 LB: >> { %v6517_v6 = vld [vmem:[%s8169_s8] sm:$0xff]  ;;  %s6519_s21 = sadd.s32 1, %s8173_s9  ;;  %s6511_s5 = sadd.s32 1, %s8177_s5   ;;  %s8177_s5 = sphi %s8175_s5, %s6511_s5   ;;  %s8173_s9 = sphi %s8171_s9, %s8172_s9   ;;  %s8169_s8 = sphi %s8167_s8, %s6524_s8   ;;  %s8165_s27 = sphi %s8163_s27, %s6525_s27  }
 0x3c4   : >> { %6518 = vst [vmem:[%s8165_s27] sm:$0xff] %v6517_v6  ;;  %p6520_p10 = scmp.ge.s32.totalorder %s6519_s21, %s9946_s24  ;;  %p6510_p11 = scmp.ge.s32.totalorder %s6511_s5, %s9946_s24 }
 0x3c6   : >> { %s10221_s21 = smov (%p6520_p10, %s6519_s21), 0  ;;  %6513 = sbr.rel (!%p6510_p11) target bundleno = 963 (0x3c3), region = 290 }
 0x3c7   : >> { %s7564_s15 = sshll.u32 %s10221_s21, 3  ;;  %s8172_s9 = smov %s10221_s21  }
 0x3c8   : >> { %s6524_s8 = scalar_lea.vmem %s6502_s17, %s7564_s15 [#allocation3]   ;;  %s6525_s27 = scalar_lea.vmem %s6505_s22, %s7564_s15  }
 0x3cb PF: > { %6528 = sbr.rel (%p6345_p5) target bundleno = 1035 (0x40b), region = 143  ;;  %s9958_s10 = ssub.s32 (!%p6345_p5), %s9759_s30, %s9763_s20 }
 0x3cc   : > { %s6534_s28 = sshrl.u32 (!%p6345_p5), %s9759_s30, 3  ;;  %s6531_s14 = scalar_lea.vmem (!%p6345_p5), %s9222_s12, %s9958_s10 [#allocation3] }
 0x3cd   : > { %s6533_s4 = scalar_lea.vmem (!%p6345_p5), %s9757_s18, %s9958_s10  ;;  %s9967_s6 = sshrl.u32 (!%p6345_p5), %s6534_s28, 6 }
 0x3ce   : > { %p7566_p12 = scmp.le.s32.totalorder (!%p6345_p5), %s9967_s6, 0 }
 0x3d0   : > { %6901 = sbr.rel (%p7566_p12) target bundleno = 1014 (0x3f6), region = 295  ;;  %s10198_s7 = smov (!%p7566_p12), %s9757_s18 }
 0x3d1   : > { %s10199_s11 = smov (!%p7566_p12), %s9222_s12  ;;  %s9976_s29 = smov (!%p7566_p12), 0  }
 0x3d2   : > { %s9978_s23 = smov (!%p7566_p12), 0  }
 0x3d5 LB: >> { %v6547_v41 = vld [vmem:[%s8185_s11] sm:$0xff]  ;;  %v6549_v42 = vld [vmem:[%s8185_s11 + $0x8] sm:$0xff]  ;;  %v6551_v43 = vld [vmem:[%s8185_s11 + $0x10] sm:$0xff]  ;;  %s6675_s24 = sadd.s32 1, %s8189_s29  ;;  %s6541_s23 = sadd.s32 1, %s8193_s23   ;;  %s8193_s23 = sphi %s9978_s23, %s6541_s23   ;;  %s8189_s29 = sphi %s9976_s29, %s10202_s29   ;;  %s8185_s11 = sphi %s10199_s11, %s10201_s11   ;;  %s8181_s7 = sphi %s10198_s7, %s10200_s7  }
 0x3d6   : >> { %6548 = vst [vmem:[%s8181_s7] sm:$0xff] %v6547_v41  ;;  %6550 = vst [vmem:[%s8181_s7 + $0x8] sm:$0xff] %v6549_v42  ;;  %v6553_v44 = vld [vmem:[%s8185_s11 + $0x18] sm:$0xff]  ;;  %v6555_v45 = vld [vmem:[%s8185_s11 + $0x20] sm:$0xff]  ;;  %p6676_p13 = scmp.ge.s32.totalorder %s6675_s24, %s9967_s6  ;;  %p6540_p0 = scmp.ge.s32.totalorder %s6541_s23, %s9967_s6 }
 0x3d7   : >> { %6552 = vst [vmem:[%s8181_s7 + $0x10] sm:$0xff] %v6551_v43  ;;  %v6557_v46 = vld [vmem:[%s8185_s11 + $0x28] sm:$0xff]  ;;  %6554 = vst [vmem:[%s8181_s7 + $0x18] sm:$0xff] %v6553_v44  ;;  %v6559_v47 = vld [vmem:[%s8185_s11 + $0x30] sm:$0xff] }
 0x3d8   : >> { %6556 = vst [vmem:[%s8181_s7 + $0x20] sm:$0xff] %v6555_v45  ;;  %6558 = vst [vmem:[%s8181_s7 + $0x28] sm:$0xff] %v6557_v46  ;;  %v6561_v48 = vld [vmem:[%s8185_s11 + $0x38] sm:$0xff]  ;;  %v6563_v49 = vld [vmem:[%s8185_s11 + $0x40] sm:$0xff]  ;;  %s10223_s24 = smov (%p6676_p13, %s6675_s24), 0 }
 0x3d9   : >> { %6560 = vst [vmem:[%s8181_s7 + $0x30] sm:$0xff] %v6559_v47  ;;  %6562 = vst [vmem:[%s8181_s7 + $0x38] sm:$0xff] %v6561_v48  ;;  %v6565_v50 = vld [vmem:[%s8185_s11 + $0x48] sm:$0xff]  ;;  %v6567_v51 = vld [vmem:[%s8185_s11 + $0x50] sm:$0xff]  ;;  %s7567_s25 = sshll.u32 %s10223_s24, 9  ;;  %s10202_s29 = smov %s10223_s24 }
 0x3da   : >> { %6564 = vst [vmem:[%s8181_s7 + $0x40] sm:$0xff] %v6563_v49  ;;  %v6569_v52 = vld [vmem:[%s8185_s11 + $0x58] sm:$0xff]  ;;  %6566 = vst [vmem:[%s8181_s7 + $0x48] sm:$0xff] %v6565_v50  ;;  %v6571_v53 = vld [vmem:[%s8185_s11 + $0x60] sm:$0xff]  ;;  %s10034_s26 = scalar_lea.vmem %s9222_s12, %s7567_s25 [#allocation3]   ;;  %s10037_s17 = scalar_lea.vmem %s9757_s18, %s7567_s25  }
 0x3db   : >> { %6568 = vst [vmem:[%s8181_s7 + $0x50] sm:$0xff] %v6567_v51  ;;  %6570 = vst [vmem:[%s8181_s7 + $0x58] sm:$0xff] %v6569_v52  ;;  %v6573_v54 = vld [vmem:[%s8185_s11 + $0x68] sm:$0xff]  ;;  %v6575_v55 = vld [vmem:[%s8185_s11 + $0x70] sm:$0xff] }
 0x3dc   : >> { %6572 = vst [vmem:[%s8181_s7 + $0x60] sm:$0xff] %v6571_v53  ;;  %6574 = vst [vmem:[%s8181_s7 + $0x68] sm:$0xff] %v6573_v54  ;;  %v6577_v56 = vld [vmem:[%s8185_s11 + $0x78] sm:$0xff]  ;;  %v6579_v58 = vld [vmem:[%s8185_s11 + $0x80] sm:$0xff] }
 0x3dd   : >> { %6576 = vst [vmem:[%s8181_s7 + $0x70] sm:$0xff] %v6575_v55  ;;  %v6581_v62 = vld [vmem:[%s8185_s11 + $0x88] sm:$0xff]  ;;  %6578 = vst [vmem:[%s8181_s7 + $0x78] sm:$0xff] %v6577_v56  ;;  %v6583_v59 = vld [vmem:[%s8185_s11 + $0x90] sm:$0xff] }
 0x3de   : >> { %6580 = vst [vmem:[%s8181_s7 + $0x80] sm:$0xff] %v6579_v58  ;;  %6582 = vst [vmem:[%s8181_s7 + $0x88] sm:$0xff] %v6581_v62  ;;  %v6585_v60 = vld [vmem:[%s8185_s11 + $0x98] sm:$0xff]  ;;  %v6587_v61 = vld [vmem:[%s8185_s11 + $0xa0] sm:$0xff] }
 0x3df   : >> { %6584 = vst [vmem:[%s8181_s7 + $0x90] sm:$0xff] %v6583_v59  ;;  %6586 = vst [vmem:[%s8181_s7 + $0x98] sm:$0xff] %v6585_v60  ;;  %v6589_v3 = vld [vmem:[%s8185_s11 + $0xa8] sm:$0xff]  ;;  %v6591_v63 = vld [vmem:[%s8185_s11 + $0xb0] sm:$0xff] }
 0x3e0   : >> { %6588 = vst [vmem:[%s8181_s7 + $0xa0] sm:$0xff] %v6587_v61  ;;  %v6593_v0 = vld [vmem:[%s8185_s11 + $0xb8] sm:$0xff]  ;;  %6590 = vst [vmem:[%s8181_s7 + $0xa8] sm:$0xff] %v6589_v3  ;;  %v6595_v1 = vld [vmem:[%s8185_s11 + $0xc0] sm:$0xff] }
 0x3e1   : >> { %6592 = vst [vmem:[%s8181_s7 + $0xb0] sm:$0xff] %v6591_v63  ;;  %6594 = vst [vmem:[%s8181_s7 + $0xb8] sm:$0xff] %v6593_v0  ;;  %v6597_v2 = vld [vmem:[%s8185_s11 + $0xc8] sm:$0xff]  ;;  %v6599_v4 = vld [vmem:[%s8185_s11 + $0xd0] sm:$0xff] }
 0x3e2   : >> { %6596 = vst [vmem:[%s8181_s7 + $0xc0] sm:$0xff] %v6595_v1  ;;  %6598 = vst [vmem:[%s8181_s7 + $0xc8] sm:$0xff] %v6597_v2  ;;  %v6601_v5 = vld [vmem:[%s8185_s11 + $0xd8] sm:$0xff]  ;;  %v6603_v8 = vld [vmem:[%s8185_s11 + $0xe0] sm:$0xff] }
 0x3e3   : >> { %6600 = vst [vmem:[%s8181_s7 + $0xd0] sm:$0xff] %v6599_v4  ;;  %v6605_v9 = vld [vmem:[%s8185_s11 + $0xe8] sm:$0xff]  ;;  %6602 = vst [vmem:[%s8181_s7 + $0xd8] sm:$0xff] %v6601_v5  ;;  %v6607_v11 = vld [vmem:[%s8185_s11 + $0xf0] sm:$0xff] }
 0x3e4   : >> { %6604 = vst [vmem:[%s8181_s7 + $0xe0] sm:$0xff] %v6603_v8  ;;  %6606 = vst [vmem:[%s8181_s7 + $0xe8] sm:$0xff] %v6605_v9  ;;  %v6609_v12 = vld [vmem:[%s8185_s11 + $0xf8] sm:$0xff]  ;;  %v6611_v14 = vld [vmem:[%s8185_s11 + $0x100] sm:$0xff] }
 0x3e5   : >> { %6608 = vst [vmem:[%s8181_s7 + $0xf0] sm:$0xff] %v6607_v11  ;;  %6610 = vst [vmem:[%s8181_s7 + $0xf8] sm:$0xff] %v6609_v12  ;;  %v6613_v13 = vld [vmem:[%s8185_s11 + $0x108] sm:$0xff]  ;;  %v6615_v57 = vld [vmem:[%s8185_s11 + $0x110] sm:$0xff] }
 0x3e6   : >> { %6612 = vst [vmem:[%s8181_s7 + $0x100] sm:$0xff] %v6611_v14  ;;  %v6617_v15 = vld [vmem:[%s8185_s11 + $0x118] sm:$0xff]  ;;  %6614 = vst [vmem:[%s8181_s7 + $0x108] sm:$0xff] %v6613_v13  ;;  %v6619_v16 = vld [vmem:[%s8185_s11 + $0x120] sm:$0xff] }
 0x3e7   : >> { %6616 = vst [vmem:[%s8181_s7 + $0x110] sm:$0xff] %v6615_v57  ;;  %6618 = vst [vmem:[%s8181_s7 + $0x118] sm:$0xff] %v6617_v15  ;;  %v6621_v17 = vld [vmem:[%s8185_s11 + $0x128] sm:$0xff]  ;;  %v6623_v18 = vld [vmem:[%s8185_s11 + $0x130] sm:$0xff] }
 0x3e8   : >> { %6620 = vst [vmem:[%s8181_s7 + $0x120] sm:$0xff] %v6619_v16  ;;  %6622 = vst [vmem:[%s8181_s7 + $0x128] sm:$0xff] %v6621_v17  ;;  %v6625_v19 = vld [vmem:[%s8185_s11 + $0x138] sm:$0xff]  ;;  %v6627_v20 = vld [vmem:[%s8185_s11 + $0x140] sm:$0xff] }
 0x3e9   : >> { %6624 = vst [vmem:[%s8181_s7 + $0x130] sm:$0xff] %v6623_v18  ;;  %v6629_v21 = vld [vmem:[%s8185_s11 + $0x148] sm:$0xff]  ;;  %6626 = vst [vmem:[%s8181_s7 + $0x138] sm:$0xff] %v6625_v19  ;;  %v6631_v22 = vld [vmem:[%s8185_s11 + $0x150] sm:$0xff] }
 0x3ea   : >> { %6628 = vst [vmem:[%s8181_s7 + $0x140] sm:$0xff] %v6627_v20  ;;  %6630 = vst [vmem:[%s8181_s7 + $0x148] sm:$0xff] %v6629_v21  ;;  %v6633_v23 = vld [vmem:[%s8185_s11 + $0x158] sm:$0xff]  ;;  %v6635_v24 = vld [vmem:[%s8185_s11 + $0x160] sm:$0xff] }
 0x3eb   : >> { %6632 = vst [vmem:[%s8181_s7 + $0x150] sm:$0xff] %v6631_v22  ;;  %6634 = vst [vmem:[%s8181_s7 + $0x158] sm:$0xff] %v6633_v23  ;;  %v6637_v25 = vld [vmem:[%s8185_s11 + $0x168] sm:$0xff]  ;;  %v6639_v26 = vld [vmem:[%s8185_s11 + $0x170] sm:$0xff] }
 0x3ec   : >> { %6636 = vst [vmem:[%s8181_s7 + $0x160] sm:$0xff] %v6635_v24  ;;  %v6641_v27 = vld [vmem:[%s8185_s11 + $0x178] sm:$0xff]  ;;  %6638 = vst [vmem:[%s8181_s7 + $0x168] sm:$0xff] %v6637_v25  ;;  %v6643_v7 = vld [vmem:[%s8185_s11 + $0x180] sm:$0xff] }
 0x3ed   : >> { %6640 = vst [vmem:[%s8181_s7 + $0x170] sm:$0xff] %v6639_v26  ;;  %6642 = vst [vmem:[%s8181_s7 + $0x178] sm:$0xff] %v6641_v27  ;;  %v6645_v28 = vld [vmem:[%s8185_s11 + $0x188] sm:$0xff]  ;;  %v6647_v29 = vld [vmem:[%s8185_s11 + $0x190] sm:$0xff] }
 0x3ee   : >> { %6644 = vst [vmem:[%s8181_s7 + $0x180] sm:$0xff] %v6643_v7  ;;  %6646 = vst [vmem:[%s8181_s7 + $0x188] sm:$0xff] %v6645_v28  ;;  %v6649_v10 = vld [vmem:[%s8185_s11 + $0x198] sm:$0xff]  ;;  %v6651_v30 = vld [vmem:[%s8185_s11 + $0x1a0] sm:$0xff] }
 0x3ef   : >> { %6648 = vst [vmem:[%s8181_s7 + $0x190] sm:$0xff] %v6647_v29  ;;  %v6653_v31 = vld [vmem:[%s8185_s11 + $0x1a8] sm:$0xff]  ;;  %6650 = vst [vmem:[%s8181_s7 + $0x198] sm:$0xff] %v6649_v10  ;;  %v6655_v32 = vld [vmem:[%s8185_s11 + $0x1b0] sm:$0xff] }
 0x3f0   : >> { %6652 = vst [vmem:[%s8181_s7 + $0x1a0] sm:$0xff] %v6651_v30  ;;  %6654 = vst [vmem:[%s8181_s7 + $0x1a8] sm:$0xff] %v6653_v31  ;;  %v6657_v33 = vld [vmem:[%s8185_s11 + $0x1b8] sm:$0xff]  ;;  %v6659_v34 = vld [vmem:[%s8185_s11 + $0x1c0] sm:$0xff] }
 0x3f1   : >> { %6656 = vst [vmem:[%s8181_s7 + $0x1b0] sm:$0xff] %v6655_v32  ;;  %6658 = vst [vmem:[%s8181_s7 + $0x1b8] sm:$0xff] %v6657_v33  ;;  %v6661_v35 = vld [vmem:[%s8185_s11 + $0x1c8] sm:$0xff]  ;;  %v6663_v36 = vld [vmem:[%s8185_s11 + $0x1d0] sm:$0xff]  ;;  %6543 = sbr.rel (!%p6540_p0) target bundleno = 981 (0x3d5), region = 301 }
 0x3f2   : >> { %6660 = vst [vmem:[%s8181_s7 + $0x1c0] sm:$0xff] %v6659_v34  ;;  %v6665_v37 = vld [vmem:[%s8185_s11 + $0x1d8] sm:$0xff]  ;;  %6662 = vst [vmem:[%s8181_s7 + $0x1c8] sm:$0xff] %v6661_v35  ;;  %v6667_v38 = vld [vmem:[%s8185_s11 + $0x1e0] sm:$0xff] }
 0x3f3   : >> { %6664 = vst [vmem:[%s8181_s7 + $0x1d0] sm:$0xff] %v6663_v36  ;;  %6666 = vst [vmem:[%s8181_s7 + $0x1d8] sm:$0xff] %v6665_v37  ;;  %v6669_v39 = vld [vmem:[%s8185_s11 + $0x1e8] sm:$0xff]  ;;  %v6671_v40 = vld [vmem:[%s8185_s11 + $0x1f0] sm:$0xff] }
 0x3f4   : >> { %6668 = vst [vmem:[%s8181_s7 + $0x1e0] sm:$0xff] %v6667_v38  ;;  %6670 = vst [vmem:[%s8181_s7 + $0x1e8] sm:$0xff] %v6669_v39  ;;  %v6673_v6 = vld [vmem:[%s8185_s11 + $0x1f8] sm:$0xff]  ;;  %s10201_s11 = smov %s10034_s26 }
 0x3f5   : >> { %6672 = vst [vmem:[%s8181_s7 + $0x1f0] sm:$0xff] %v6671_v40  ;;  %6674 = vst [vmem:[%s8181_s7 + $0x1f8] sm:$0xff] %v6673_v6  ;;  %s10200_s7 = smov %s10037_s17 }
 0x3f6 PF: > { %s10143_s22 = sand.u32 63, %s6534_s28   ;;  %s7636_s27 = sshll.u32 %s9967_s6, 13 }
 0x3f7   : > { %s6686_s8 = sshra.s32 %s7636_s27, 4  ;;  %p7572_p1 = scmp.le.s32.totalorder %s10143_s22, 0 }
 0x3f8   : > { %s6687_s9 = scalar_lea.vmem %s9222_s12, %s6686_s8 [#allocation3]   ;;  %s6690_s5 = scalar_lea.vmem %s9757_s18, %s6686_s8  }
 0x3f9   : > { %6915 = sbr.rel (%p7572_p1) target bundleno = 1030 (0x406), region = 306  ;;  %s8195_s21 = smov (!%p7572_p1), %s6690_s5  }
 0x3fa   : > { %s8199_s15 = smov (!%p7572_p1), %s6687_s9   ;;  %s8203_s24 = smov (!%p7572_p1), 0  }
 0x3fb   : > { %s8207_s23 = smov (!%p7572_p1), 0  }
 0x3fe LB: >> { %v6702_v41 = vld [vmem:[%s8201_s15] sm:$0xff]  ;;  %s6704_s28 = sadd.s32 1, %s8205_s24  ;;  %s6696_s23 = sadd.s32 1, %s8209_s23   ;;  %s8209_s23 = sphi %s8207_s23, %s6696_s23   ;;  %s8205_s24 = sphi %s8203_s24, %s8204_s24   ;;  %s8201_s15 = sphi %s8199_s15, %s6709_s15   ;;  %s8197_s21 = sphi %s8195_s21, %s6710_s21  }
 0x3ff   : >> { %6703 = vst [vmem:[%s8197_s21] sm:$0xff] %v6702_v41  ;;  %p6705_p2 = scmp.ge.s32.totalorder %s6704_s28, %s10143_s22  ;;  %p6695_p3 = scmp.ge.s32.totalorder %s6696_s23, %s10143_s22 }
 0x401   : >> { %s10225_s28 = smov (%p6705_p2, %s6704_s28), 0  ;;  %6698 = sbr.rel (!%p6695_p3) target bundleno = 1022 (0x3fe), region = 312 }
 0x402   : >> { %s7573_s6 = sshll.u32 %s10225_s28, 3  ;;  %s8204_s24 = smov %s10225_s28  }
 0x403   : >> { %s6709_s15 = scalar_lea.vmem %s6687_s9, %s7573_s6 [#allocation3]   ;;  %s6710_s21 = scalar_lea.vmem %s6690_s5, %s7573_s6  }
 0x406 PF: > { %s8215_s7 = smov 1  }
 0x407   : > { %s6711_s11 = sshll.u32 %s8215_s7, %s9763_s20 }
 0x408   : > { %s7575_s29 = sadd.s32 4294967295, %s6711_s11 }
 0x409   : > { %v6721_v42 = vld [vmem:[%s6531_s14] sm:%s7575_s29] }
 0x40a   : > { %6722 = vst [vmem:[%s6533_s4] sm:%s7575_s29] %v6721_v42 }
 0x40b PF: > { %p7576_p5 = scmp.ge.u32.totalorder %s9759_s30, 8 }
 0x40c   : > { %s8216_s25 = smov (!%p7576_p5), 1  }
 0x40d   : > { %6331 = sbr.rel (%p7576_p5) target bundleno = 1044 (0x414), region = 114  ;;  %s6332_s26 = sshll.u32 (!%p7576_p5), %s8216_s25, %s9759_s30 }
 0x40e   : > { %s7577_s17 = sadd.s32 (!%p7576_p5), 4294967295, %s6332_s26 }
 0x412   : > { %v6342_v43 = vld [vmem:[%s9222_s12] sm:%s7577_s17] }
 0x413   : > { %6343 = vst [vmem:[%s9757_s18] sm:%s7577_s17] %v6342_v43 }
 0x414 PF: > { %p10_p4 = scmp.ge.s32.totalorder %s8256_s16, 10   ;;  %s10203_s12 = smov %s8077_s13 }
 0x415   : > { %s10204_s13 = smov %s8266_s19  ;;  %s10205_s14 = smov %s8256_s16 }
 0x416   :  { %12 = sbr.rel (!%p10_p4) target bundleno = 2 (0x2), region = 323 }

// kernel: net_forward.5
= control target key start
LH: loop header
LB: loop body
LE: loop exit
PB: predicated region body
PF: predicated region fallthrough
CT: control target
= control target key end

     0   :  { %s3445_s12 = smov 0   ;;  %s3447_s13 = smov 0   ;;  %s4337_s0 = inlined_call_operand.vmem [shape: bf16[16,150], index: 0, kind: input, shape index: {}]   ;;  %s4338_s1 = inlined_call_operand.vmem [shape: f32[16,1], index: 1, kind: input, shape index: {}]   ;;  %s4339_s2 = inlined_call_operand.vmem [shape: bf16[150,22472], index: 2, kind: input, shape index: {}]   ;;  %s4340_s3 = inlined_call_operand.vmem [shape: bf16[16,22472], index: 3, kind: output, shape index: {}]  }
   0x1   :  { %s3449_s14 = smov 0  }
   0x2 LB: > { %s2748_s15 = sadd.s32 4294967295, %s3422_s14   ;;  %s3462_s16 = sadd.s32 1, %s3422_s14   ;;  %s3422_s14 = sphi %s3449_s14, %s4344_s14   ;;  %s3418_s13 = sphi %s3447_s13, %s4343_s13   ;;  %s3414_s12 = sphi %s3445_s12, %s4342_s12  }
   0x3   : > { %s59_s17 = ssub.s32 %s3422_s14, %s3462_s16  ;;  %s62_s18 = sadd.s32 1, %s3418_s13 }
   0x4   : > { %p60_p0 = scmp.eq.s32.totalorder %s59_s17, 0  ;;  %p69_p1 = scmp.ne.s32.totalorder %s3418_s13, %s3414_s12 }
   0x5   : > { %p70_p2 = scmp.eq.s32.totalorder %s3422_s14, 0  ;;  %p99_p3 = scmp.eq.s32.totalorder %s2748_s15, 7 }
   0x6   : > { %s3473_s19 = scalar_select %p60_p0, %s3418_s13, %s62_s18  }
   0x7   : > { %p71_p4 = por %p70_p2, %p69_p1  ;;  %p3475_p5 = por %p99_p3, %p69_p1 }
   0x8   : > { %p2751_p6 = scmp.ge.s32.totalorder %s3422_s14, 8 }
   0xa   : > { %127 = sbr.rel (%p2751_p6) target bundleno = 125 (0x7d), region = 24 }
   0xf   : > { %130 = sbr.rel (!%p71_p4) target bundleno = 125 (0x7d), region = 28  ;;  %s132_s21 = sand.u32 (%p71_p4), 1, %s3418_s13  }
  0x10   : > { %s3023_s22 = smul.u32 (%p71_p4), 88, %s3422_s14 }
  0x11   : > { %s3047_s23 = smul.u32 (%p71_p4), 1672, %s132_s21 }
  0x12   : > { %s3485_s26 = scalar_lea.vmem (%p71_p4), %s4339_s2, %s3023_s22 }
  0x13   : > { %v150_v0 = vld [vmem:[%s3485_s26] sm:$0xff] (%p71_p4)  ;;  %v152_v1 = vld [vmem:[%s3485_s26 + $0x8] sm:$0xff] (%p71_p4)  ;;  %v154_v2 = vld [vmem:[%s3485_s26 + $0x10] sm:$0xff] (%p71_p4)  ;;  %s3490_s27 = scalar_lea.vmem (%p71_p4), [#allocation2], %s3047_s23 }
  0x14   : > { %151 = vst [vmem:[%s3490_s27] sm:$0xff] %v150_v0  ;;  %153 = vst [vmem:[%s3490_s27 + $0x8] sm:$0xff] %v152_v1  ;;  %v156_v3 = vld [vmem:[%s3485_s26 + $0x18] sm:$0xff]  ;;  %v158_v4 = vld [vmem:[%s3485_s26 + $0x20] sm:$0xff] }
  0x15   : > { %155 = vst [vmem:[%s3490_s27 + $0x10] sm:$0xff] %v154_v2  ;;  %v160_v5 = vld [vmem:[%s3485_s26 + $0x28] sm:$0xff]  ;;  %157 = vst [vmem:[%s3490_s27 + $0x18] sm:$0xff] %v156_v3  ;;  %v162_v6 = vld [vmem:[%s3485_s26 + $0x30] sm:$0xff] }
  0x16   : > { %159 = vst [vmem:[%s3490_s27 + $0x20] sm:$0xff] %v158_v4  ;;  %161 = vst [vmem:[%s3490_s27 + $0x28] sm:$0xff] %v160_v5  ;;  %v164_v7 = vld [vmem:[%s3485_s26 + $0x38] sm:$0xff]  ;;  %v166_v8 = vld [vmem:[%s3485_s26 + $0x40] sm:$0xff] }
  0x17   : > { %163 = vst [vmem:[%s3490_s27 + $0x30] sm:$0xff] %v162_v6  ;;  %165 = vst [vmem:[%s3490_s27 + $0x38] sm:$0xff] %v164_v7  ;;  %v168_v9 = vld [vmem:[%s3485_s26 + $0x48] sm:$0xff]  ;;  %v170_v10 = vld [vmem:[%s3485_s26 + $0x50] sm:$0xff] }
  0x18   : > { %167 = vst [vmem:[%s3490_s27 + $0x40] sm:$0xff] %v166_v8  ;;  %v172_v11 = vld [vmem:[%s3485_s26 + $0x2c0] sm:$0xff]  ;;  %169 = vst [vmem:[%s3490_s27 + $0x48] sm:$0xff] %v168_v9  ;;  %v174_v12 = vld [vmem:[%s3485_s26 + $0x2c8] sm:$0xff] }
  0x19   : > { %171 = vst [vmem:[%s3490_s27 + $0x50] sm:$0xff] %v170_v10  ;;  %173 = vst [vmem:[%s3490_s27 + $0x58] sm:$0xff] %v172_v11  ;;  %v176_v13 = vld [vmem:[%s3485_s26 + $0x2d0] sm:$0xff]  ;;  %v178_v14 = vld [vmem:[%s3485_s26 + $0x2d8] sm:$0xff] }
  0x1a   : > { %175 = vst [vmem:[%s3490_s27 + $0x60] sm:$0xff] %v174_v12  ;;  %177 = vst [vmem:[%s3490_s27 + $0x68] sm:$0xff] %v176_v13  ;;  %v180_v15 = vld [vmem:[%s3485_s26 + $0x2e0] sm:$0xff]  ;;  %v182_v16 = vld [vmem:[%s3485_s26 + $0x2e8] sm:$0xff] }
  0x1b   : > { %179 = vst [vmem:[%s3490_s27 + $0x70] sm:$0xff] %v178_v14  ;;  %v184_v17 = vld [vmem:[%s3485_s26 + $0x2f0] sm:$0xff]  ;;  %181 = vst [vmem:[%s3490_s27 + $0x78] sm:$0xff] %v180_v15  ;;  %v186_v18 = vld [vmem:[%s3485_s26 + $0x2f8] sm:$0xff] }
  0x1c   : > { %183 = vst [vmem:[%s3490_s27 + $0x80] sm:$0xff] %v182_v16  ;;  %185 = vst [vmem:[%s3490_s27 + $0x88] sm:$0xff] %v184_v17  ;;  %v188_v19 = vld [vmem:[%s3485_s26 + $0x300] sm:$0xff]  ;;  %v190_v20 = vld [vmem:[%s3485_s26 + $0x308] sm:$0xff] }
  0x1d   : > { %187 = vst [vmem:[%s3490_s27 + $0x90] sm:$0xff] %v186_v18  ;;  %189 = vst [vmem:[%s3490_s27 + $0x98] sm:$0xff] %v188_v19  ;;  %v192_v21 = vld [vmem:[%s3485_s26 + $0x310] sm:$0xff]  ;;  %v194_v22 = vld [vmem:[%s3485_s26 + $0x580] sm:$0xff] }
  0x1e   : > { %191 = vst [vmem:[%s3490_s27 + $0xa0] sm:$0xff] %v190_v20  ;;  %v196_v23 = vld [vmem:[%s3485_s26 + $0x588] sm:$0xff]  ;;  %193 = vst [vmem:[%s3490_s27 + $0xa8] sm:$0xff] %v192_v21  ;;  %v198_v24 = vld [vmem:[%s3485_s26 + $0x590] sm:$0xff] }
  0x1f   : > { %195 = vst [vmem:[%s3490_s27 + $0xb0] sm:$0xff] %v194_v22  ;;  %197 = vst [vmem:[%s3490_s27 + $0xb8] sm:$0xff] %v196_v23  ;;  %v200_v25 = vld [vmem:[%s3485_s26 + $0x598] sm:$0xff]  ;;  %v202_v26 = vld [vmem:[%s3485_s26 + $0x5a0] sm:$0xff] }
  0x20   : > { %199 = vst [vmem:[%s3490_s27 + $0xc0] sm:$0xff] %v198_v24  ;;  %201 = vst [vmem:[%s3490_s27 + $0xc8] sm:$0xff] %v200_v25  ;;  %v204_v27 = vld [vmem:[%s3485_s26 + $0x5a8] sm:$0xff]  ;;  %v206_v28 = vld [vmem:[%s3485_s26 + $0x5b0] sm:$0xff] }
  0x21   : > { %203 = vst [vmem:[%s3490_s27 + $0xd0] sm:$0xff] %v202_v26  ;;  %v208_v29 = vld [vmem:[%s3485_s26 + $0x5b8] sm:$0xff]  ;;  %205 = vst [vmem:[%s3490_s27 + $0xd8] sm:$0xff] %v204_v27  ;;  %v210_v30 = vld [vmem:[%s3485_s26 + $0x5c0] sm:$0xff] }
  0x22   : > { %207 = vst [vmem:[%s3490_s27 + $0xe0] sm:$0xff] %v206_v28  ;;  %209 = vst [vmem:[%s3490_s27 + $0xe8] sm:$0xff] %v208_v29  ;;  %v212_v31 = vld [vmem:[%s3485_s26 + $0x5c8] sm:$0xff]  ;;  %v214_v32 = vld [vmem:[%s3485_s26 + $0x5d0] sm:$0xff] }
  0x23   : > { %211 = vst [vmem:[%s3490_s27 + $0xf0] sm:$0xff] %v210_v30  ;;  %213 = vst [vmem:[%s3490_s27 + $0xf8] sm:$0xff] %v212_v31  ;;  %v216_v33 = vld [vmem:[%s3485_s26 + $0x840] sm:$0xff]  ;;  %v218_v34 = vld [vmem:[%s3485_s26 + $0x848] sm:$0xff] }
  0x24   : > { %215 = vst [vmem:[%s3490_s27 + $0x100] sm:$0xff] %v214_v32  ;;  %v220_v35 = vld [vmem:[%s3485_s26 + $0x850] sm:$0xff]  ;;  %217 = vst [vmem:[%s3490_s27 + $0x108] sm:$0xff] %v216_v33  ;;  %v222_v36 = vld [vmem:[%s3485_s26 + $0x858] sm:$0xff] }
  0x25   : > { %219 = vst [vmem:[%s3490_s27 + $0x110] sm:$0xff] %v218_v34  ;;  %221 = vst [vmem:[%s3490_s27 + $0x118] sm:$0xff] %v220_v35  ;;  %v224_v37 = vld [vmem:[%s3485_s26 + $0x860] sm:$0xff]  ;;  %v226_v38 = vld [vmem:[%s3485_s26 + $0x868] sm:$0xff] }
  0x26   : > { %223 = vst [vmem:[%s3490_s27 + $0x120] sm:$0xff] %v222_v36  ;;  %225 = vst [vmem:[%s3490_s27 + $0x128] sm:$0xff] %v224_v37  ;;  %v228_v39 = vld [vmem:[%s3485_s26 + $0x870] sm:$0xff]  ;;  %v230_v40 = vld [vmem:[%s3485_s26 + $0x878] sm:$0xff] }
  0x27   : > { %227 = vst [vmem:[%s3490_s27 + $0x130] sm:$0xff] %v226_v38  ;;  %v232_v41 = vld [vmem:[%s3485_s26 + $0x880] sm:$0xff]  ;;  %229 = vst [vmem:[%s3490_s27 + $0x138] sm:$0xff] %v228_v39  ;;  %v234_v42 = vld [vmem:[%s3485_s26 + $0x888] sm:$0xff] }
  0x28   : > { %231 = vst [vmem:[%s3490_s27 + $0x140] sm:$0xff] %v230_v40  ;;  %233 = vst [vmem:[%s3490_s27 + $0x148] sm:$0xff] %v232_v41  ;;  %v236_v43 = vld [vmem:[%s3485_s26 + $0x890] sm:$0xff]  ;;  %v238_v44 = vld [vmem:[%s3485_s26 + $0xb00] sm:$0xff] }
  0x29   : > { %235 = vst [vmem:[%s3490_s27 + $0x150] sm:$0xff] %v234_v42  ;;  %237 = vst [vmem:[%s3490_s27 + $0x158] sm:$0xff] %v236_v43  ;;  %v240_v45 = vld [vmem:[%s3485_s26 + $0xb08] sm:$0xff]  ;;  %v242_v46 = vld [vmem:[%s3485_s26 + $0xb10] sm:$0xff] }
  0x2a   : > { %239 = vst [vmem:[%s3490_s27 + $0x160] sm:$0xff] %v238_v44  ;;  %v244_v47 = vld [vmem:[%s3485_s26 + $0xb18] sm:$0xff]  ;;  %241 = vst [vmem:[%s3490_s27 + $0x168] sm:$0xff] %v240_v45  ;;  %v246_v48 = vld [vmem:[%s3485_s26 + $0xb20] sm:$0xff] }
  0x2b   : > { %243 = vst [vmem:[%s3490_s27 + $0x170] sm:$0xff] %v242_v46  ;;  %245 = vst [vmem:[%s3490_s27 + $0x178] sm:$0xff] %v244_v47  ;;  %v248_v49 = vld [vmem:[%s3485_s26 + $0xb28] sm:$0xff]  ;;  %v250_v50 = vld [vmem:[%s3485_s26 + $0xb30] sm:$0xff] }
  0x2c   : > { %247 = vst [vmem:[%s3490_s27 + $0x180] sm:$0xff] %v246_v48  ;;  %249 = vst [vmem:[%s3490_s27 + $0x188] sm:$0xff] %v248_v49  ;;  %v252_v51 = vld [vmem:[%s3485_s26 + $0xb38] sm:$0xff]  ;;  %v254_v52 = vld [vmem:[%s3485_s26 + $0xb40] sm:$0xff] }
  0x2d   : > { %251 = vst [vmem:[%s3490_s27 + $0x190] sm:$0xff] %v250_v50  ;;  %v256_v53 = vld [vmem:[%s3485_s26 + $0xb48] sm:$0xff]  ;;  %253 = vst [vmem:[%s3490_s27 + $0x198] sm:$0xff] %v252_v51  ;;  %v258_v54 = vld [vmem:[%s3485_s26 + $0xb50] sm:$0xff] }
  0x2e   : > { %255 = vst [vmem:[%s3490_s27 + $0x1a0] sm:$0xff] %v254_v52  ;;  %257 = vst [vmem:[%s3490_s27 + $0x1a8] sm:$0xff] %v256_v53  ;;  %v260_v55 = vld [vmem:[%s3485_s26 + $0xdc0] sm:$0xff]  ;;  %v262_v56 = vld [vmem:[%s3485_s26 + $0xdc8] sm:$0xff] }
  0x2f   : > { %259 = vst [vmem:[%s3490_s27 + $0x1b0] sm:$0xff] %v258_v54  ;;  %261 = vst [vmem:[%s3490_s27 + $0x1b8] sm:$0xff] %v260_v55  ;;  %v264_v57 = vld [vmem:[%s3485_s26 + $0xdd0] sm:$0xff]  ;;  %v266_v58 = vld [vmem:[%s3485_s26 + $0xdd8] sm:$0xff] }
  0x30   : > { %263 = vst [vmem:[%s3490_s27 + $0x1c0] sm:$0xff] %v262_v56  ;;  %v268_v59 = vld [vmem:[%s3485_s26 + $0xde0] sm:$0xff]  ;;  %265 = vst [vmem:[%s3490_s27 + $0x1c8] sm:$0xff] %v264_v57  ;;  %v270_v60 = vld [vmem:[%s3485_s26 + $0xde8] sm:$0xff] }
  0x31   : > { %267 = vst [vmem:[%s3490_s27 + $0x1d0] sm:$0xff] %v266_v58  ;;  %269 = vst [vmem:[%s3490_s27 + $0x1d8] sm:$0xff] %v268_v59  ;;  %v272_v61 = vld [vmem:[%s3485_s26 + $0xdf0] sm:$0xff]  ;;  %v274_v62 = vld [vmem:[%s3485_s26 + $0xdf8] sm:$0xff] }
  0x32   : > { %271 = vst [vmem:[%s3490_s27 + $0x1e0] sm:$0xff] %v270_v60  ;;  %273 = vst [vmem:[%s3490_s27 + $0x1e8] sm:$0xff] %v272_v61  ;;  %v276_v63 = vld [vmem:[%s3485_s26 + $0xe00] sm:$0xff]  ;;  %v278_v0 = vld [vmem:[%s3485_s26 + $0xe08] sm:$0xff] }
  0x33   : > { %275 = vst [vmem:[%s3490_s27 + $0x1f0] sm:$0xff] %v274_v62  ;;  %v280_v1 = vld [vmem:[%s3485_s26 + $0xe10] sm:$0xff]  ;;  %277 = vst [vmem:[%s3490_s27 + $0x1f8] sm:$0xff] %v276_v63  ;;  %v282_v2 = vld [vmem:[%s3485_s26 + $0x1080] sm:$0xff] }
  0x34   : > { %279 = vst [vmem:[%s3490_s27 + $0x200] sm:$0xff] %v278_v0  ;;  %281 = vst [vmem:[%s3490_s27 + $0x208] sm:$0xff] %v280_v1  ;;  %v284_v3 = vld [vmem:[%s3485_s26 + $0x1088] sm:$0xff]  ;;  %v286_v4 = vld [vmem:[%s3485_s26 + $0x1090] sm:$0xff] }
  0x35   : > { %283 = vst [vmem:[%s3490_s27 + $0x210] sm:$0xff] %v282_v2  ;;  %285 = vst [vmem:[%s3490_s27 + $0x218] sm:$0xff] %v284_v3  ;;  %v288_v5 = vld [vmem:[%s3485_s26 + $0x1098] sm:$0xff]  ;;  %v290_v6 = vld [vmem:[%s3485_s26 + $0x10a0] sm:$0xff] }
  0x36   : > { %287 = vst [vmem:[%s3490_s27 + $0x220] sm:$0xff] %v286_v4  ;;  %v292_v7 = vld [vmem:[%s3485_s26 + $0x10a8] sm:$0xff]  ;;  %289 = vst [vmem:[%s3490_s27 + $0x228] sm:$0xff] %v288_v5  ;;  %v294_v8 = vld [vmem:[%s3485_s26 + $0x10b0] sm:$0xff] }
  0x37   : > { %291 = vst [vmem:[%s3490_s27 + $0x230] sm:$0xff] %v290_v6  ;;  %293 = vst [vmem:[%s3490_s27 + $0x238] sm:$0xff] %v292_v7  ;;  %v296_v9 = vld [vmem:[%s3485_s26 + $0x10b8] sm:$0xff]  ;;  %v298_v10 = vld [vmem:[%s3485_s26 + $0x10c0] sm:$0xff] }
  0x38   : > { %295 = vst [vmem:[%s3490_s27 + $0x240] sm:$0xff] %v294_v8  ;;  %297 = vst [vmem:[%s3490_s27 + $0x248] sm:$0xff] %v296_v9  ;;  %v300_v11 = vld [vmem:[%s3485_s26 + $0x10c8] sm:$0xff]  ;;  %v302_v12 = vld [vmem:[%s3485_s26 + $0x10d0] sm:$0xff] }
  0x39   : > { %299 = vst [vmem:[%s3490_s27 + $0x250] sm:$0xff] %v298_v10  ;;  %v304_v13 = vld [vmem:[%s3485_s26 + $0x1340] sm:$0xff]  ;;  %301 = vst [vmem:[%s3490_s27 + $0x258] sm:$0xff] %v300_v11  ;;  %v306_v14 = vld [vmem:[%s3485_s26 + $0x1348] sm:$0xff] }
  0x3a   : > { %303 = vst [vmem:[%s3490_s27 + $0x260] sm:$0xff] %v302_v12  ;;  %305 = vst [vmem:[%s3490_s27 + $0x268] sm:$0xff] %v304_v13  ;;  %v308_v15 = vld [vmem:[%s3485_s26 + $0x1350] sm:$0xff]  ;;  %v310_v16 = vld [vmem:[%s3485_s26 + $0x1358] sm:$0xff] }
  0x3b   : > { %307 = vst [vmem:[%s3490_s27 + $0x270] sm:$0xff] %v306_v14  ;;  %309 = vst [vmem:[%s3490_s27 + $0x278] sm:$0xff] %v308_v15  ;;  %v312_v17 = vld [vmem:[%s3485_s26 + $0x1360] sm:$0xff]  ;;  %v314_v18 = vld [vmem:[%s3485_s26 + $0x1368] sm:$0xff] }
  0x3c   : > { %311 = vst [vmem:[%s3490_s27 + $0x280] sm:$0xff] %v310_v16  ;;  %v316_v19 = vld [vmem:[%s3485_s26 + $0x1370] sm:$0xff]  ;;  %313 = vst [vmem:[%s3490_s27 + $0x288] sm:$0xff] %v312_v17  ;;  %v318_v20 = vld [vmem:[%s3485_s26 + $0x1378] sm:$0xff] }
  0x3d   : > { %315 = vst [vmem:[%s3490_s27 + $0x290] sm:$0xff] %v314_v18  ;;  %317 = vst [vmem:[%s3490_s27 + $0x298] sm:$0xff] %v316_v19  ;;  %v320_v21 = vld [vmem:[%s3485_s26 + $0x1380] sm:$0xff]  ;;  %v322_v22 = vld [vmem:[%s3485_s26 + $0x1388] sm:$0xff] }
  0x3e   : > { %319 = vst [vmem:[%s3490_s27 + $0x2a0] sm:$0xff] %v318_v20  ;;  %321 = vst [vmem:[%s3490_s27 + $0x2a8] sm:$0xff] %v320_v21  ;;  %v324_v23 = vld [vmem:[%s3485_s26 + $0x1390] sm:$0xff]  ;;  %v326_v24 = vld [vmem:[%s3485_s26 + $0x1600] sm:$0xff] }
  0x3f   : > { %323 = vst [vmem:[%s3490_s27 + $0x2b0] sm:$0xff] %v322_v22  ;;  %v328_v25 = vld [vmem:[%s3485_s26 + $0x1608] sm:$0xff]  ;;  %325 = vst [vmem:[%s3490_s27 + $0x2b8] sm:$0xff] %v324_v23  ;;  %v330_v26 = vld [vmem:[%s3485_s26 + $0x1610] sm:$0xff] }
  0x40   : > { %327 = vst [vmem:[%s3490_s27 + $0x2c0] sm:$0xff] %v326_v24  ;;  %329 = vst [vmem:[%s3490_s27 + $0x2c8] sm:$0xff] %v328_v25  ;;  %v332_v27 = vld [vmem:[%s3485_s26 + $0x1618] sm:$0xff]  ;;  %v334_v28 = vld [vmem:[%s3485_s26 + $0x1620] sm:$0xff] }
  0x41   : > { %331 = vst [vmem:[%s3490_s27 + $0x2d0] sm:$0xff] %v330_v26  ;;  %333 = vst [vmem:[%s3490_s27 + $0x2d8] sm:$0xff] %v332_v27  ;;  %v336_v29 = vld [vmem:[%s3485_s26 + $0x1628] sm:$0xff]  ;;  %v338_v30 = vld [vmem:[%s3485_s26 + $0x1630] sm:$0xff] }
  0x42   : > { %335 = vst [vmem:[%s3490_s27 + $0x2e0] sm:$0xff] %v334_v28  ;;  %v340_v31 = vld [vmem:[%s3485_s26 + $0x1638] sm:$0xff]  ;;  %337 = vst [vmem:[%s3490_s27 + $0x2e8] sm:$0xff] %v336_v29  ;;  %v342_v32 = vld [vmem:[%s3485_s26 + $0x1640] sm:$0xff] }
  0x43   : > { %339 = vst [vmem:[%s3490_s27 + $0x2f0] sm:$0xff] %v338_v30  ;;  %341 = vst [vmem:[%s3490_s27 + $0x2f8] sm:$0xff] %v340_v31  ;;  %v344_v33 = vld [vmem:[%s3485_s26 + $0x1648] sm:$0xff]  ;;  %v346_v34 = vld [vmem:[%s3485_s26 + $0x1650] sm:$0xff] }
  0x44   : > { %343 = vst [vmem:[%s3490_s27 + $0x300] sm:$0xff] %v342_v32  ;;  %345 = vst [vmem:[%s3490_s27 + $0x308] sm:$0xff] %v344_v33  ;;  %v348_v35 = vld [vmem:[%s3485_s26 + $0x18c0] sm:$0xff]  ;;  %v350_v36 = vld [vmem:[%s3485_s26 + $0x18c8] sm:$0xff] }
  0x45   : > { %347 = vst [vmem:[%s3490_s27 + $0x310] sm:$0xff] %v346_v34  ;;  %v352_v37 = vld [vmem:[%s3485_s26 + $0x18d0] sm:$0xff]  ;;  %349 = vst [vmem:[%s3490_s27 + $0x318] sm:$0xff] %v348_v35  ;;  %v354_v38 = vld [vmem:[%s3485_s26 + $0x18d8] sm:$0xff] }
  0x46   : > { %351 = vst [vmem:[%s3490_s27 + $0x320] sm:$0xff] %v350_v36  ;;  %353 = vst [vmem:[%s3490_s27 + $0x328] sm:$0xff] %v352_v37  ;;  %v356_v39 = vld [vmem:[%s3485_s26 + $0x18e0] sm:$0xff]  ;;  %v358_v40 = vld [vmem:[%s3485_s26 + $0x18e8] sm:$0xff] }
  0x47   : > { %355 = vst [vmem:[%s3490_s27 + $0x330] sm:$0xff] %v354_v38  ;;  %357 = vst [vmem:[%s3490_s27 + $0x338] sm:$0xff] %v356_v39  ;;  %v360_v41 = vld [vmem:[%s3485_s26 + $0x18f0] sm:$0xff]  ;;  %v362_v42 = vld [vmem:[%s3485_s26 + $0x18f8] sm:$0xff] }
  0x48   : > { %359 = vst [vmem:[%s3490_s27 + $0x340] sm:$0xff] %v358_v40  ;;  %v364_v43 = vld [vmem:[%s3485_s26 + $0x1900] sm:$0xff]  ;;  %361 = vst [vmem:[%s3490_s27 + $0x348] sm:$0xff] %v360_v41  ;;  %v366_v44 = vld [vmem:[%s3485_s26 + $0x1908] sm:$0xff] }
  0x49   : > { %363 = vst [vmem:[%s3490_s27 + $0x350] sm:$0xff] %v362_v42  ;;  %365 = vst [vmem:[%s3490_s27 + $0x358] sm:$0xff] %v364_v43  ;;  %v368_v45 = vld [vmem:[%s3485_s26 + $0x1910] sm:$0xff]  ;;  %v370_v46 = vld [vmem:[%s3485_s26 + $0x1b80] sm:$0xff] }
  0x4a   : > { %367 = vst [vmem:[%s3490_s27 + $0x360] sm:$0xff] %v366_v44  ;;  %369 = vst [vmem:[%s3490_s27 + $0x368] sm:$0xff] %v368_v45  ;;  %v372_v47 = vld [vmem:[%s3485_s26 + $0x1b88] sm:$0xff]  ;;  %v374_v48 = vld [vmem:[%s3485_s26 + $0x1b90] sm:$0xff] }
  0x4b   : > { %371 = vst [vmem:[%s3490_s27 + $0x370] sm:$0xff] %v370_v46  ;;  %v376_v49 = vld [vmem:[%s3485_s26 + $0x1b98] sm:$0xff]  ;;  %373 = vst [vmem:[%s3490_s27 + $0x378] sm:$0xff] %v372_v47  ;;  %v378_v50 = vld [vmem:[%s3485_s26 + $0x1ba0] sm:$0xff] }
  0x4c   : > { %375 = vst [vmem:[%s3490_s27 + $0x380] sm:$0xff] %v374_v48  ;;  %377 = vst [vmem:[%s3490_s27 + $0x388] sm:$0xff] %v376_v49  ;;  %v380_v51 = vld [vmem:[%s3485_s26 + $0x1ba8] sm:$0xff]  ;;  %v382_v52 = vld [vmem:[%s3485_s26 + $0x1bb0] sm:$0xff] }
  0x4d   : > { %379 = vst [vmem:[%s3490_s27 + $0x390] sm:$0xff] %v378_v50  ;;  %381 = vst [vmem:[%s3490_s27 + $0x398] sm:$0xff] %v380_v51  ;;  %v384_v53 = vld [vmem:[%s3485_s26 + $0x1bb8] sm:$0xff]  ;;  %v386_v54 = vld [vmem:[%s3485_s26 + $0x1bc0] sm:$0xff] }
  0x4e   : > { %383 = vst [vmem:[%s3490_s27 + $0x3a0] sm:$0xff] %v382_v52  ;;  %v388_v55 = vld [vmem:[%s3485_s26 + $0x1bc8] sm:$0xff]  ;;  %385 = vst [vmem:[%s3490_s27 + $0x3a8] sm:$0xff] %v384_v53  ;;  %v390_v56 = vld [vmem:[%s3485_s26 + $0x1bd0] sm:$0xff] }
  0x4f   : > { %387 = vst [vmem:[%s3490_s27 + $0x3b0] sm:$0xff] %v386_v54  ;;  %389 = vst [vmem:[%s3490_s27 + $0x3b8] sm:$0xff] %v388_v55  ;;  %v392_v57 = vld [vmem:[%s3485_s26 + $0x1e40] sm:$0xff]  ;;  %v394_v58 = vld [vmem:[%s3485_s26 + $0x1e48] sm:$0xff] }
  0x50   : > { %391 = vst [vmem:[%s3490_s27 + $0x3c0] sm:$0xff] %v390_v56  ;;  %393 = vst [vmem:[%s3490_s27 + $0x3c8] sm:$0xff] %v392_v57  ;;  %v396_v59 = vld [vmem:[%s3485_s26 + $0x1e50] sm:$0xff]  ;;  %v398_v60 = vld [vmem:[%s3485_s26 + $0x1e58] sm:$0xff] }
  0x51   : > { %395 = vst [vmem:[%s3490_s27 + $0x3d0] sm:$0xff] %v394_v58  ;;  %v400_v61 = vld [vmem:[%s3485_s26 + $0x1e60] sm:$0xff]  ;;  %397 = vst [vmem:[%s3490_s27 + $0x3d8] sm:$0xff] %v396_v59  ;;  %v402_v62 = vld [vmem:[%s3485_s26 + $0x1e68] sm:$0xff] }
  0x52   : > { %399 = vst [vmem:[%s3490_s27 + $0x3e0] sm:$0xff] %v398_v60  ;;  %401 = vst [vmem:[%s3490_s27 + $0x3e8] sm:$0xff] %v400_v61  ;;  %v404_v63 = vld [vmem:[%s3485_s26 + $0x1e70] sm:$0xff]  ;;  %v406_v0 = vld [vmem:[%s3485_s26 + $0x1e78] sm:$0xff] }
  0x53   : > { %403 = vst [vmem:[%s3490_s27 + $0x3f0] sm:$0xff] %v402_v62  ;;  %405 = vst [vmem:[%s3490_s27 + $0x3f8] sm:$0xff] %v404_v63  ;;  %v408_v1 = vld [vmem:[%s3485_s26 + $0x1e80] sm:$0xff]  ;;  %v410_v2 = vld [vmem:[%s3485_s26 + $0x1e88] sm:$0xff] }
  0x54   : > { %407 = vst [vmem:[%s3490_s27 + $0x400] sm:$0xff] %v406_v0  ;;  %v412_v3 = vld [vmem:[%s3485_s26 + $0x1e90] sm:$0xff]  ;;  %409 = vst [vmem:[%s3490_s27 + $0x408] sm:$0xff] %v408_v1  ;;  %v414_v4 = vld [vmem:[%s3485_s26 + $0x2100] sm:$0xff] }
  0x55   : > { %411 = vst [vmem:[%s3490_s27 + $0x410] sm:$0xff] %v410_v2  ;;  %413 = vst [vmem:[%s3490_s27 + $0x418] sm:$0xff] %v412_v3  ;;  %v416_v5 = vld [vmem:[%s3485_s26 + $0x2108] sm:$0xff]  ;;  %v418_v6 = vld [vmem:[%s3485_s26 + $0x2110] sm:$0xff] }
  0x56   : > { %415 = vst [vmem:[%s3490_s27 + $0x420] sm:$0xff] %v414_v4  ;;  %417 = vst [vmem:[%s3490_s27 + $0x428] sm:$0xff] %v416_v5  ;;  %v420_v7 = vld [vmem:[%s3485_s26 + $0x2118] sm:$0xff]  ;;  %v422_v8 = vld [vmem:[%s3485_s26 + $0x2120] sm:$0xff] }
  0x57   : > { %419 = vst [vmem:[%s3490_s27 + $0x430] sm:$0xff] %v418_v6  ;;  %v424_v9 = vld [vmem:[%s3485_s26 + $0x2128] sm:$0xff]  ;;  %421 = vst [vmem:[%s3490_s27 + $0x438] sm:$0xff] %v420_v7  ;;  %v426_v10 = vld [vmem:[%s3485_s26 + $0x2130] sm:$0xff] }
  0x58   : > { %423 = vst [vmem:[%s3490_s27 + $0x440] sm:$0xff] %v422_v8  ;;  %425 = vst [vmem:[%s3490_s27 + $0x448] sm:$0xff] %v424_v9  ;;  %v428_v11 = vld [vmem:[%s3485_s26 + $0x2138] sm:$0xff]  ;;  %v430_v12 = vld [vmem:[%s3485_s26 + $0x2140] sm:$0xff] }
  0x59   : > { %427 = vst [vmem:[%s3490_s27 + $0x450] sm:$0xff] %v426_v10  ;;  %429 = vst [vmem:[%s3490_s27 + $0x458] sm:$0xff] %v428_v11  ;;  %v432_v13 = vld [vmem:[%s3485_s26 + $0x2148] sm:$0xff]  ;;  %v434_v14 = vld [vmem:[%s3485_s26 + $0x2150] sm:$0xff] }
  0x5a   : > { %431 = vst [vmem:[%s3490_s27 + $0x460] sm:$0xff] %v430_v12  ;;  %v436_v15 = vld [vmem:[%s3485_s26 + $0x23c0] sm:$0xff]  ;;  %433 = vst [vmem:[%s3490_s27 + $0x468] sm:$0xff] %v432_v13  ;;  %v438_v16 = vld [vmem:[%s3485_s26 + $0x23c8] sm:$0xff] }
  0x5b   : > { %435 = vst [vmem:[%s3490_s27 + $0x470] sm:$0xff] %v434_v14  ;;  %437 = vst [vmem:[%s3490_s27 + $0x478] sm:$0xff] %v436_v15  ;;  %v440_v17 = vld [vmem:[%s3485_s26 + $0x23d0] sm:$0xff]  ;;  %v442_v18 = vld [vmem:[%s3485_s26 + $0x23d8] sm:$0xff] }
  0x5c   : > { %439 = vst [vmem:[%s3490_s27 + $0x480] sm:$0xff] %v438_v16  ;;  %441 = vst [vmem:[%s3490_s27 + $0x488] sm:$0xff] %v440_v17  ;;  %v444_v19 = vld [vmem:[%s3485_s26 + $0x23e0] sm:$0xff]  ;;  %v446_v20 = vld [vmem:[%s3485_s26 + $0x23e8] sm:$0xff] }
  0x5d   : > { %443 = vst [vmem:[%s3490_s27 + $0x490] sm:$0xff] %v442_v18  ;;  %v448_v21 = vld [vmem:[%s3485_s26 + $0x23f0] sm:$0xff]  ;;  %445 = vst [vmem:[%s3490_s27 + $0x498] sm:$0xff] %v444_v19  ;;  %v450_v22 = vld [vmem:[%s3485_s26 + $0x23f8] sm:$0xff] }
  0x5e   : > { %447 = vst [vmem:[%s3490_s27 + $0x4a0] sm:$0xff] %v446_v20  ;;  %449 = vst [vmem:[%s3490_s27 + $0x4a8] sm:$0xff] %v448_v21  ;;  %v452_v23 = vld [vmem:[%s3485_s26 + $0x2400] sm:$0xff]  ;;  %v454_v24 = vld [vmem:[%s3485_s26 + $0x2408] sm:$0xff] }
  0x5f   : > { %451 = vst [vmem:[%s3490_s27 + $0x4b0] sm:$0xff] %v450_v22  ;;  %453 = vst [vmem:[%s3490_s27 + $0x4b8] sm:$0xff] %v452_v23  ;;  %v456_v25 = vld [vmem:[%s3485_s26 + $0x2410] sm:$0xff]  ;;  %v458_v26 = vld [vmem:[%s3485_s26 + $0x2680] sm:$0xff] }
  0x60   : > { %455 = vst [vmem:[%s3490_s27 + $0x4c0] sm:$0xff] %v454_v24  ;;  %v460_v27 = vld [vmem:[%s3485_s26 + $0x2688] sm:$0xff]  ;;  %457 = vst [vmem:[%s3490_s27 + $0x4c8] sm:$0xff] %v456_v25  ;;  %v462_v28 = vld [vmem:[%s3485_s26 + $0x2690] sm:$0xff] }
  0x61   : > { %459 = vst [vmem:[%s3490_s27 + $0x4d0] sm:$0xff] %v458_v26  ;;  %461 = vst [vmem:[%s3490_s27 + $0x4d8] sm:$0xff] %v460_v27  ;;  %v464_v29 = vld [vmem:[%s3485_s26 + $0x2698] sm:$0xff]  ;;  %v466_v30 = vld [vmem:[%s3485_s26 + $0x26a0] sm:$0xff] }
  0x62   : > { %463 = vst [vmem:[%s3490_s27 + $0x4e0] sm:$0xff] %v462_v28  ;;  %465 = vst [vmem:[%s3490_s27 + $0x4e8] sm:$0xff] %v464_v29  ;;  %v468_v31 = vld [vmem:[%s3485_s26 + $0x26a8] sm:$0xff]  ;;  %v470_v32 = vld [vmem:[%s3485_s26 + $0x26b0] sm:$0xff] }
  0x63   : > { %467 = vst [vmem:[%s3490_s27 + $0x4f0] sm:$0xff] %v466_v30  ;;  %v472_v33 = vld [vmem:[%s3485_s26 + $0x26b8] sm:$0xff]  ;;  %469 = vst [vmem:[%s3490_s27 + $0x4f8] sm:$0xff] %v468_v31  ;;  %v474_v34 = vld [vmem:[%s3485_s26 + $0x26c0] sm:$0xff] }
  0x64   : > { %471 = vst [vmem:[%s3490_s27 + $0x500] sm:$0xff] %v470_v32  ;;  %473 = vst [vmem:[%s3490_s27 + $0x508] sm:$0xff] %v472_v33  ;;  %v476_v35 = vld [vmem:[%s3485_s26 + $0x26c8] sm:$0xff]  ;;  %v478_v36 = vld [vmem:[%s3485_s26 + $0x26d0] sm:$0xff] }
  0x65   : > { %475 = vst [vmem:[%s3490_s27 + $0x510] sm:$0xff] %v474_v34  ;;  %477 = vst [vmem:[%s3490_s27 + $0x518] sm:$0xff] %v476_v35  ;;  %v480_v37 = vld [vmem:[%s3485_s26 + $0x2940] sm:$0xff]  ;;  %v482_v38 = vld [vmem:[%s3485_s26 + $0x2948] sm:$0xff] }
  0x66   : > { %479 = vst [vmem:[%s3490_s27 + $0x520] sm:$0xff] %v478_v36  ;;  %v484_v39 = vld [vmem:[%s3485_s26 + $0x2950] sm:$0xff]  ;;  %481 = vst [vmem:[%s3490_s27 + $0x528] sm:$0xff] %v480_v37  ;;  %v486_v40 = vld [vmem:[%s3485_s26 + $0x2958] sm:$0xff] }
  0x67   : > { %483 = vst [vmem:[%s3490_s27 + $0x530] sm:$0xff] %v482_v38  ;;  %485 = vst [vmem:[%s3490_s27 + $0x538] sm:$0xff] %v484_v39  ;;  %v488_v41 = vld [vmem:[%s3485_s26 + $0x2960] sm:$0xff]  ;;  %v490_v42 = vld [vmem:[%s3485_s26 + $0x2968] sm:$0xff] }
  0x68   : > { %487 = vst [vmem:[%s3490_s27 + $0x540] sm:$0xff] %v486_v40  ;;  %489 = vst [vmem:[%s3490_s27 + $0x548] sm:$0xff] %v488_v41  ;;  %v492_v43 = vld [vmem:[%s3485_s26 + $0x2970] sm:$0xff]  ;;  %v494_v44 = vld [vmem:[%s3485_s26 + $0x2978] sm:$0xff] }
  0x69   : > { %491 = vst [vmem:[%s3490_s27 + $0x550] sm:$0xff] %v490_v42  ;;  %v496_v45 = vld [vmem:[%s3485_s26 + $0x2980] sm:$0xff]  ;;  %493 = vst [vmem:[%s3490_s27 + $0x558] sm:$0xff] %v492_v43  ;;  %v498_v46 = vld [vmem:[%s3485_s26 + $0x2988] sm:$0xff] }
  0x6a   : > { %495 = vst [vmem:[%s3490_s27 + $0x560] sm:$0xff] %v494_v44  ;;  %497 = vst [vmem:[%s3490_s27 + $0x568] sm:$0xff] %v496_v45  ;;  %v500_v47 = vld [vmem:[%s3485_s26 + $0x2990] sm:$0xff]  ;;  %v502_v48 = vld [vmem:[%s3485_s26 + $0x2c00] sm:$0xff] }
  0x6b   : > { %499 = vst [vmem:[%s3490_s27 + $0x570] sm:$0xff] %v498_v46  ;;  %501 = vst [vmem:[%s3490_s27 + $0x578] sm:$0xff] %v500_v47  ;;  %v504_v49 = vld [vmem:[%s3485_s26 + $0x2c08] sm:$0xff]  ;;  %v506_v50 = vld [vmem:[%s3485_s26 + $0x2c10] sm:$0xff] }
  0x6c   : > { %503 = vst [vmem:[%s3490_s27 + $0x580] sm:$0xff] %v502_v48  ;;  %v508_v51 = vld [vmem:[%s3485_s26 + $0x2c18] sm:$0xff]  ;;  %505 = vst [vmem:[%s3490_s27 + $0x588] sm:$0xff] %v504_v49  ;;  %v510_v52 = vld [vmem:[%s3485_s26 + $0x2c20] sm:$0xff] }
  0x6d   : > { %507 = vst [vmem:[%s3490_s27 + $0x590] sm:$0xff] %v506_v50  ;;  %509 = vst [vmem:[%s3490_s27 + $0x598] sm:$0xff] %v508_v51  ;;  %v512_v53 = vld [vmem:[%s3485_s26 + $0x2c28] sm:$0xff]  ;;  %v514_v54 = vld [vmem:[%s3485_s26 + $0x2c30] sm:$0xff] }
  0x6e   : > { %511 = vst [vmem:[%s3490_s27 + $0x5a0] sm:$0xff] %v510_v52  ;;  %513 = vst [vmem:[%s3490_s27 + $0x5a8] sm:$0xff] %v512_v53  ;;  %v516_v55 = vld [vmem:[%s3485_s26 + $0x2c38] sm:$0xff]  ;;  %v518_v56 = vld [vmem:[%s3485_s26 + $0x2c40] sm:$0xff] }
  0x6f   : > { %515 = vst [vmem:[%s3490_s27 + $0x5b0] sm:$0xff] %v514_v54  ;;  %v520_v57 = vld [vmem:[%s3485_s26 + $0x2c48] sm:$0xff]  ;;  %517 = vst [vmem:[%s3490_s27 + $0x5b8] sm:$0xff] %v516_v55  ;;  %v522_v58 = vld [vmem:[%s3485_s26 + $0x2c50] sm:$0xff] }
  0x70   : > { %519 = vst [vmem:[%s3490_s27 + $0x5c0] sm:$0xff] %v518_v56  ;;  %521 = vst [vmem:[%s3490_s27 + $0x5c8] sm:$0xff] %v520_v57  ;;  %v524_v59 = vld [vmem:[%s3485_s26 + $0x2ec0] sm:$0xff]  ;;  %v526_v60 = vld [vmem:[%s3485_s26 + $0x2ec8] sm:$0xff] }
  0x71   : > { %523 = vst [vmem:[%s3490_s27 + $0x5d0] sm:$0xff] %v522_v58  ;;  %525 = vst [vmem:[%s3490_s27 + $0x5d8] sm:$0xff] %v524_v59  ;;  %v528_v61 = vld [vmem:[%s3485_s26 + $0x2ed0] sm:$0xff]  ;;  %v530_v62 = vld [vmem:[%s3485_s26 + $0x2ed8] sm:$0xff] }
  0x72   : > { %527 = vst [vmem:[%s3490_s27 + $0x5e0] sm:$0xff] %v526_v60  ;;  %v532_v63 = vld [vmem:[%s3485_s26 + $0x2ee0] sm:$0xff]  ;;  %529 = vst [vmem:[%s3490_s27 + $0x5e8] sm:$0xff] %v528_v61  ;;  %v534_v0 = vld [vmem:[%s3485_s26 + $0x2ee8] sm:$0xff] }
  0x73   : > { %531 = vst [vmem:[%s3490_s27 + $0x5f0] sm:$0xff] %v530_v62  ;;  %533 = vst [vmem:[%s3490_s27 + $0x5f8] sm:$0xff] %v532_v63  ;;  %v536_v1 = vld [vmem:[%s3485_s26 + $0x2ef0] sm:$0xff]  ;;  %v538_v2 = vld [vmem:[%s3485_s26 + $0x2ef8] sm:$0xff] }
  0x74   : > { %535 = vst [vmem:[%s3490_s27 + $0x600] sm:$0xff] %v534_v0  ;;  %537 = vst [vmem:[%s3490_s27 + $0x608] sm:$0xff] %v536_v1  ;;  %v540_v3 = vld [vmem:[%s3485_s26 + $0x2f00] sm:$0xff]  ;;  %v542_v4 = vld [vmem:[%s3485_s26 + $0x2f08] sm:$0xff] }
  0x75   : > { %539 = vst [vmem:[%s3490_s27 + $0x610] sm:$0xff] %v538_v2  ;;  %v544_v5 = vld [vmem:[%s3485_s26 + $0x2f10] sm:$0xff]  ;;  %541 = vst [vmem:[%s3490_s27 + $0x618] sm:$0xff] %v540_v3  ;;  %v546_v6 = vld [vmem:[%s3485_s26 + $0x3180] sm:$0xff] }
  0x76   : > { %543 = vst [vmem:[%s3490_s27 + $0x620] sm:$0xff] %v542_v4  ;;  %545 = vst [vmem:[%s3490_s27 + $0x628] sm:$0xff] %v544_v5  ;;  %v548_v7 = vld [vmem:[%s3485_s26 + $0x3188] sm:$0xff]  ;;  %v550_v8 = vld [vmem:[%s3485_s26 + $0x3190] sm:$0xff] }
  0x77   : > { %547 = vst [vmem:[%s3490_s27 + $0x630] sm:$0xff] %v546_v6  ;;  %549 = vst [vmem:[%s3490_s27 + $0x638] sm:$0xff] %v548_v7  ;;  %v552_v9 = vld [vmem:[%s3485_s26 + $0x3198] sm:$0xff]  ;;  %v554_v10 = vld [vmem:[%s3485_s26 + $0x31a0] sm:$0xff] }
  0x78   : > { %551 = vst [vmem:[%s3490_s27 + $0x640] sm:$0xff] %v550_v8  ;;  %v556_v11 = vld [vmem:[%s3485_s26 + $0x31a8] sm:$0xff]  ;;  %553 = vst [vmem:[%s3490_s27 + $0x648] sm:$0xff] %v552_v9  ;;  %v558_v12 = vld [vmem:[%s3485_s26 + $0x31b0] sm:$0xff] }
  0x79   : > { %555 = vst [vmem:[%s3490_s27 + $0x650] sm:$0xff] %v554_v10  ;;  %557 = vst [vmem:[%s3490_s27 + $0x658] sm:$0xff] %v556_v11  ;;  %v560_v13 = vld [vmem:[%s3485_s26 + $0x31b8] sm:$0xff]  ;;  %v562_v14 = vld [vmem:[%s3485_s26 + $0x31c0] sm:$0xff] }
  0x7a   : > { %559 = vst [vmem:[%s3490_s27 + $0x660] sm:$0xff] %v558_v12  ;;  %561 = vst [vmem:[%s3490_s27 + $0x668] sm:$0xff] %v560_v13  ;;  %v564_v15 = vld [vmem:[%s3485_s26 + $0x31c8] sm:$0xff]  ;;  %v566_v16 = vld [vmem:[%s3485_s26 + $0x31d0] sm:$0xff] }
  0x7b   : > { %563 = vst [vmem:[%s3490_s27 + $0x670] sm:$0xff] %v562_v14  ;;  %565 = vst [vmem:[%s3490_s27 + $0x678] sm:$0xff] %v564_v15 }
  0x7c   : > { %567 = vst [vmem:[%s3490_s27 + $0x680] sm:$0xff] %v566_v16 }
  0x7d PF: > { %p2753_p7 = scmp.ge.s32.totalorder %s3422_s14, 1  ;;  %p572_p8 = scmp.lt.s32.totalorder %s3422_s14, 9 }
  0x7f   : > { %p573_p9 = pnand %p2753_p7, %p572_p8 }
  0x80   : > { %s579_s28 = sand.u32 (!%p573_p9), 1, %s3414_s12  }
  0x81   : > { %576 = sbr.rel (%p573_p9) target bundleno = 591 (0x24f), region = 51 }
  0x82   : > { %s3048_s4 = smul.u32 (!%p573_p9), 1672, %s579_s28 }
  0x83   : > { %s3049_s23 = smul.u32 (!%p573_p9), 176, %s579_s28 }
  0x84   : > { %s3927_s9 = scalar_lea.vmem (!%p573_p9), [#allocation2], %s3048_s4 }
  0x85   : > { %s4210_s24 = scalar_lea.vmem (!%p573_p9), [#allocation3], %s3049_s23 }
  0x86   : > { %v3913_v17 = vld [vmem:[%s4337_s0 + $0x4] ss:$8 sps:$4 sm:$0xff]   ;;  %vm1881_vm0 = vcmask 179200   ;;  %v3424_v19 = vmov 0   ;;  %v3078_v22 = vld [vmem:[%s3927_s9 + $0x4d0] ss:$88 sps:$4 sm:$0xff]  }
  0x87   : > { %v815_v18 = vld [vmem:[%s4338_s1] sm:$0xff]  ;;  %2977 = vmatprep.mubr.msk.bf16.mxu0 %vm1881_vm0, %v3913_v17  ;;  %2979 = vmatprep.mubr.msk.bf16.mxu1 %vm1881_vm0, %v3913_v17  ;;  %v816_v20 = vld [vmem:[%s4338_s1 + $0x8] sm:$0xff]  ;;  %v804_v45 = vld [vmem:[%s3927_s9 + $0x630] sm:$0x77]  ;;  %vm1885_vm1 = vcmask 1042432   ;;  %s3046_s12 = smul.u32 (%p3475_p5), 88, %s2748_s15 }
  0x88   : > { %3075 = vset.pattern.permute.xlu0 %v3424_v19  ;;  %v3076_v21 = vld [vmem:[%s3927_s9 + $0x4d4] ss:$88 sps:$4 sm:$0xff]   ;;  %v3079_v23 = vld [vmem:[%s3927_s9 + $0x424] ss:$88 sps:$4 sm:$0xff]   ;;  %v3081_v24 = vld [vmem:[%s3927_s9 + $0x420] ss:$88 sps:$4 sm:$0xff]   ;;  %v2955_v49 = vcombine.high %v804_v45, %v804_v45  ;;  %v2954_v50 = vcombine.low %v804_v45, %v804_v45 }
  0x89   : > { %819 = vperm.xlu0 %3075, %v815_v18   ;;  %1952 = vmatprep.subr.bf16.mxu0 %v3076_v21  ;;  %v3082_v25 = vld [vmem:[%s3927_s9 + $0x374] ss:$88 sps:$4 sm:$0xff]   ;;  %v3084_v26 = vld [vmem:[%s3927_s9 + $0x370] ss:$88 sps:$4 sm:$0xff]   ;;  %v3085_v27 = vld [vmem:[%s3927_s9 + $0x2c4] ss:$88 sps:$4 sm:$0xff]   ;;  %s4287_s25 = scalar_lea.vmem (%p3475_p5), %s4340_s3, %s3046_s12 }
  0x8a   : > { %1953 = vmatpush1.bf16.msra.mxu0 %v3078_v22  ;;  %v3087_v28 = vld [vmem:[%s3927_s9 + $0x2c0] ss:$88 sps:$4 sm:$0xff]   ;;  %v3088_v29 = vld [vmem:[%s3927_s9 + $0x214] ss:$88 sps:$4 sm:$0xff]   ;;  %v3090_v34 = vld [vmem:[%s3927_s9 + $0x210] ss:$88 sps:$4 sm:$0xff]  }
  0x8b   : > { %1954 = vmatprep.subr.bf16.mxu0 %v3079_v23  ;;  %v3102_v30 = vld [vmem:[%s3927_s9 + $0x4dc] ss:$88 sps:$4 sm:$0xff]   ;;  %v3104_v31 = vld [vmem:[%s3927_s9 + $0x4d8] ss:$88 sps:$4 sm:$0xff]   ;;  %v3108_v32 = vld [vmem:[%s3927_s9 + $0x42c] ss:$88 sps:$4 sm:$0xff]  }
  0x8c   : > { %1995 = vmatprep.subr.bf16.mxu1 %v3102_v30  ;;  %v3112_v33 = vld [vmem:[%s3927_s9 + $0x428] ss:$88 sps:$4 sm:$0xff]   ;;  %v3091_v35 = vld [vmem:[%s3927_s9 + $0x164] ss:$88 sps:$4 sm:$0xff]   ;;  %v3119_v38 = vld [vmem:[%s3927_s9 + $0x378] ss:$88 sps:$4 sm:$0xff]  }
  0x8d   : > { %824 = vperm.xlu0 %3075, %v816_v20   ;;  %1996 = vmatpush1.bf16.msra.mxu1 %v3104_v31  ;;  %v3117_v36 = vld [vmem:[%s3927_s9 + $0x37c] ss:$88 sps:$4 sm:$0xff]   ;;  %v3093_v37 = vld [vmem:[%s3927_s9 + $0x160] ss:$88 sps:$4 sm:$0xff]   ;;  %v3123_v39 = vld [vmem:[%s3927_s9 + $0x2cc] ss:$88 sps:$4 sm:$0xff]  }
  0x8e   : > { %1955 = vmatpush1.bf16.msra.mxu0 %v3081_v24  ;;  %1997 = vmatprep.subr.bf16.mxu1 %v3108_v32  ;;  %v3094_v40 = vld [vmem:[%s3927_s9 + $0xb4] ss:$88 sps:$4 sm:$0xff]   ;;  %v3096_v41 = vld [vmem:[%s3927_s9 + $0xb0] ss:$88 sps:$4 sm:$0xff]   ;;  %v3097_v44 = vld [vmem:[%s3927_s9 + $0x4] ss:$88 sps:$4 sm:$0xff]  }
  0x8f   : > { %1956 = vmatprep.subr.bf16.mxu0 %v3082_v25  ;;  %v3125_v42 = vld [vmem:[%s3927_s9 + $0x2c8] ss:$88 sps:$4 sm:$0xff]   ;;  %v3129_v43 = vld [vmem:[%s3927_s9 + $0x21c] ss:$88 sps:$4 sm:$0xff]   ;;  %v3131_v47 = vld [vmem:[%s3927_s9 + $0x218] ss:$88 sps:$4 sm:$0xff]  }
  0x90   : > { %v3099_v46 = vld [vmem:[%s3927_s9] ss:$88 sps:$4 sm:$0xff]   ;;  %v3135_v48 = vld [vmem:[%s3927_s9 + $0x16c] ss:$88 sps:$4 sm:$0xff]   ;;  %v3141_v52 = vld [vmem:[%s3927_s9 + $0xbc] ss:$88 sps:$4 sm:$0xff]  }
  0x91   : > { %1998 = vmatpush1.bf16.msra.mxu1 %v3112_v33  ;;  %v3137_v51 = vld [vmem:[%s3927_s9 + $0x168] ss:$88 sps:$4 sm:$0xff]   ;;  %v1887_v53 = vsel %vm1885_vm1, %v2954_v50, 0  ;;  %v3105_v54 = vld [vmem:[%s3927_s9 + $0x584] ss:$88 sps:$4 sm:$0xff]  }
  0x92   : > { %1957 = vmatpush1.bf16.msra.mxu0 %v3084_v26  ;;  %1999 = vmatprep.subr.bf16.mxu1 %v3117_v36  ;;  %v3143_v55 = vld [vmem:[%s3927_s9 + $0xb8] ss:$88 sps:$4 sm:$0xff]   ;;  %v3147_v57 = vld [vmem:[%s3927_s9 + $0xc] ss:$88 sps:$4 sm:$0xff]   ;;  %v3149_v61 = vld [vmem:[%s3927_s9 + $0x8] ss:$88 sps:$4 sm:$0xff]  }
  0x93   : > { %1958 = vmatprep.subr.bf16.mxu0 %v3085_v27  ;;  %v3107_v56 = vld [vmem:[%s3927_s9 + $0x580] ss:$88 sps:$4 sm:$0xff]   ;;  %v3116_v58 = vld [vmem:[%s3927_s9 + $0x4e4] ss:$88 sps:$4 sm:$0xff]   ;;  %v3122_v1 = vld [vmem:[%s3927_s9 + $0x434] ss:$88 sps:$4 sm:$0xff]  }
  0x94   : > { %v805_v59 = vld [vmem:[%s3927_s9 + $0x638] sm:$0x77]  ;;  %v3120_v2 = vld [vmem:[%s3927_s9 + $0x430] ss:$88 sps:$4 sm:$0xff]   ;;  %v3158_v4 = vld [vmem:[%s3927_s9 + $0x58c] ss:$88 sps:$4 sm:$0xff]  }
  0x95   : > { %2000 = vmatpush1.bf16.msra.mxu1 %v3119_v38  ;;  %v3970_v60 = vld [vmem:[%s4337_s0] ss:$8 sps:$4 sm:$0xff]   ;;  %v2957_v63 = vcombine.high %v805_v59, %v805_v59  ;;  %v2956_v0 = vcombine.low %v805_v59, %v805_v59  ;;  %v3128_v5 = vld [vmem:[%s3927_s9 + $0x384] ss:$88 sps:$4 sm:$0xff]   ;;  %v3134_v9 = vld [vmem:[%s3927_s9 + $0x2d4] ss:$88 sps:$4 sm:$0xff]  }
  0x96   : > { %1959 = vmatpush1.bf16.msra.mxu0 %v3087_v28  ;;  %2001 = vmatprep.subr.bf16.mxu1 %v3123_v39  ;;  %v3114_v62 = vld [vmem:[%s3927_s9 + $0x4e0] ss:$88 sps:$4 sm:$0xff]   ;;  %v3165_v8 = vld [vmem:[%s3927_s9 + $0x4ec] ss:$88 sps:$4 sm:$0xff]   ;;  %v3132_v11 = vld [vmem:[%s3927_s9 + $0x2d0] ss:$88 sps:$4 sm:$0xff]  }
  0x97   : > { %1960 = vmatprep.subr.bf16.mxu0 %v3088_v29  ;;  %v1893_v3 = vsel %vm1885_vm1, %v2956_v0, 0  ;;  %v3160_v6 = vld [vmem:[%s3927_s9 + $0x588] ss:$88 sps:$4 sm:$0xff]   ;;  %v3171_v12 = vld [vmem:[%s3927_s9 + $0x43c] ss:$88 sps:$4 sm:$0xff]  }
  0x98   : > { %v3126_v7 = vld [vmem:[%s3927_s9 + $0x380] ss:$88 sps:$4 sm:$0xff]   ;;  %v3140_v13 = vld [vmem:[%s3927_s9 + $0x224] ss:$88 sps:$4 sm:$0xff]   ;;  %v3146_v18 = vld [vmem:[%s3927_s9 + $0x174] ss:$88 sps:$4 sm:$0xff]  }
  0x99   : > { %2002 = vmatpush1.bf16.msra.mxu1 %v3125_v42  ;;  %v3163_v10 = vld [vmem:[%s3927_s9 + $0x4e8] ss:$88 sps:$4 sm:$0xff]   ;;  %v3169_v14 = vld [vmem:[%s3927_s9 + $0x438] ss:$88 sps:$4 sm:$0xff]   ;;  %v3177_v16 = vld [vmem:[%s3927_s9 + $0x38c] ss:$88 sps:$4 sm:$0xff]  }
  0x9a   : > { %1961 = vmatpush1.bf16.msra.mxu0 %v3090_v34  ;;  %2003 = vmatprep.subr.bf16.mxu1 %v3129_v43  ;;  %v3138_v15 = vld [vmem:[%s3927_s9 + $0x220] ss:$88 sps:$4 sm:$0xff]   ;;  %v3144_v20 = vld [vmem:[%s3927_s9 + $0x170] ss:$88 sps:$4 sm:$0xff]   ;;  %v3183_v21 = vld [vmem:[%s3927_s9 + $0x2dc] ss:$88 sps:$4 sm:$0xff]  }
  0x9b   : > { %1962 = vmatprep.subr.bf16.mxu0 %v3091_v35  ;;  %v3175_v19 = vld [vmem:[%s3927_s9 + $0x388] ss:$88 sps:$4 sm:$0xff]   ;;  %v3152_v22 = vld [vmem:[%s3927_s9 + $0xc4] ss:$88 sps:$4 sm:$0xff]   ;;  %v3181_v24 = vld [vmem:[%s3927_s9 + $0x2d8] ss:$88 sps:$4 sm:$0xff]  }
  0x9c   : > { %v3150_v23 = vld [vmem:[%s3927_s9 + $0xc0] ss:$88 sps:$4 sm:$0xff]   ;;  %v3189_v25 = vld [vmem:[%s3927_s9 + $0x22c] ss:$88 sps:$4 sm:$0xff]   ;;  %v3155_v28 = vld [vmem:[%s3927_s9 + $0x10] ss:$88 sps:$4 sm:$0xff]  }
  0x9d   : > { %2004 = vmatpush1.bf16.msra.mxu1 %v3131_v47  ;;  %v3157_v26 = vld [vmem:[%s3927_s9 + $0x14] ss:$88 sps:$4 sm:$0xff]   ;;  %v806_v27 = vld [vmem:[%s3927_s9 + $0x640] sm:$0x77]  ;;  %v3193_v33 = vld [vmem:[%s3927_s9 + $0x178] ss:$88 sps:$4 sm:$0xff]  }
  0x9e   : > { %1963 = vmatpush1.bf16.msra.mxu0 %v3093_v37  ;;  %2005 = vmatprep.subr.bf16.mxu1 %v3135_v48  ;;  %v3187_v29 = vld [vmem:[%s3927_s9 + $0x228] ss:$88 sps:$4 sm:$0xff]   ;;  %v3195_v30 = vld [vmem:[%s3927_s9 + $0x17c] ss:$88 sps:$4 sm:$0xff]   ;;  %v2959_v31 = vcombine.high %v806_v27, %v806_v27  ;;  %v2958_v32 = vcombine.low %v806_v27, %v806_v27  ;;  %v3201_v34 = vld [vmem:[%s3927_s9 + $0xcc] ss:$88 sps:$4 sm:$0xff]  }
  0x9f   : > { %1964 = vmatprep.subr.bf16.mxu0 %v3094_v40  ;;  %v3168_v36 = vld [vmem:[%s3927_s9 + $0x594] ss:$88 sps:$4 sm:$0xff]   ;;  %v3166_v37 = vld [vmem:[%s3927_s9 + $0x590] ss:$88 sps:$4 sm:$0xff]   ;;  %v3178_v47 = vld [vmem:[%s3927_s9 + $0x440] ss:$88 sps:$4 sm:$0xff]  }
  0xa0   : > { %v1899_v35 = vsel %vm1885_vm1, %v2958_v32, 0  ;;  %v3174_v38 = vld [vmem:[%s3927_s9 + $0x4f4] ss:$88 sps:$4 sm:$0xff]   ;;  %v3199_v39 = vld [vmem:[%s3927_s9 + $0xc8] ss:$88 sps:$4 sm:$0xff]  }
  0xa1   : > { %2006 = vmatpush1.bf16.msra.mxu1 %v3137_v51  ;;  %v3207_v40 = vld [vmem:[%s3927_s9 + $0x1c] ss:$88 sps:$4 sm:$0xff]   ;;  %v3205_v42 = vld [vmem:[%s3927_s9 + $0x18] ss:$88 sps:$4 sm:$0xff]   ;;  %v3227_v59 = vld [vmem:[%s3927_s9 + $0x448] ss:$88 sps:$4 sm:$0xff]  }
  0xa2   : > { %1965 = vmatpush1.bf16.msra.mxu0 %v3096_v41  ;;  %2007 = vmatprep.subr.bf16.mxu1 %v3141_v52  ;;  %v807_v41 = vld [vmem:[%s3927_s9 + $0x648] sm:$0x77]  ;;  %v3216_v51 = vld [vmem:[%s3927_s9 + $0x598] ss:$88 sps:$4 sm:$0xff]   ;;  %v3244_v32 = vld [vmem:[%s3927_s9 + $0x3a4] ss:$88 sps:$4 sm:$0xff]  }
  0xa3   : > { %1966 = vmatprep.subr.bf16.mxu0 %v3097_v44  ;;  %v3172_v43 = vld [vmem:[%s3927_s9 + $0x4f0] ss:$88 sps:$4 sm:$0xff]   ;;  %v2961_v44 = vcombine.high %v807_v41, %v807_v41  ;;  %v2960_v45 = vcombine.low %v807_v41, %v807_v41  ;;  %v3186_v50 = vld [vmem:[%s3927_s9 + $0x394] ss:$88 sps:$4 sm:$0xff]  }
  0xa4   : > { %v3184_v52 = vld [vmem:[%s3927_s9 + $0x390] ss:$88 sps:$4 sm:$0xff]  }
  0xa5   : > { %2008 = vmatpush1.bf16.msra.mxu1 %v3143_v55  ;;  %v1905_v48 = vsel %vm1885_vm1, %v2960_v45, 0  ;;  %v3221_v55 = vld [vmem:[%s3927_s9 + $0x4f8] ss:$88 sps:$4 sm:$0xff]   ;;  %v3291_v45 = vld [vmem:[%s3927_s9 + $0x3a8] ss:$88 sps:$4 sm:$0xff]  }
  0xa6   : > { %1967 = vmatpush1.bf16.msra.mxu0 %v3099_v46  ;;  %2009 = vmatprep.subr.bf16.mxu1 %v3147_v57  ;;  %v3180_v46 = vld [vmem:[%s3927_s9 + $0x444] ss:$88 sps:$4 sm:$0xff]   ;;  %v3233_v0 = vld [vmem:[%s3927_s9 + $0x398] ss:$88 sps:$4 sm:$0xff]  }
  0xa7   : > { %2976 = vmatprep.subr.msk.bf16.mxu0 %vm1885_vm1, %v2955_v49  ;;  %v3218_v49 = vld [vmem:[%s3927_s9 + $0x59c] ss:$88 sps:$4 sm:$0xff]   ;;  %v3229_v57 = vld [vmem:[%s3927_s9 + $0x44c] ss:$88 sps:$4 sm:$0xff]   ;;  %v3285_v41 = vld [vmem:[%s3927_s9 + $0x458] ss:$88 sps:$4 sm:$0xff]  }
  0xa9   : > { %2010 = vmatpush1.bf16.msra.mxu1 %v3149_v61  ;;  %v3196_v61 = vld [vmem:[%s3927_s9 + $0x230] ss:$88 sps:$4 sm:$0xff]  }
  0xaa   : > { %1981 = vmatpush2.bf16.msra.mxu0 %v1887_v53  ;;  %2978 = vmatprep.subr.msk.bf16.mxu1 %vm1885_vm1, %v2957_v63  ;;  %v3223_v53 = vld [vmem:[%s3927_s9 + $0x4fc] ss:$88 sps:$4 sm:$0xff]  }
  0xab   : > { %1982 = vmatprep.subr.bf16.mxu0 %v3105_v54  ;;  %v3192_v54 = vld [vmem:[%s3927_s9 + $0x2e4] ss:$88 sps:$4 sm:$0xff]  }
  0xac   : > { %v3204_v63 = vld [vmem:[%s3927_s9 + $0x184] ss:$88 sps:$4 sm:$0xff]  }
  0xad   : > { %2024 = vmatpush2.bf16.msra.mxu1 %v1893_v3  ;;  %v3210_v3 = vld [vmem:[%s3927_s9 + $0xd4] ss:$88 sps:$4 sm:$0xff]  }
  0xae   : > { %1983 = vmatpush2.bf16.msra.mxu0 %v3107_v56  ;;  %2025 = vmatprep.subr.bf16.mxu1 %v3158_v4  ;;  %v3190_v56 = vld [vmem:[%s3927_s9 + $0x2e0] ss:$88 sps:$4 sm:$0xff]  }
  0xaf   : > { %2038 = vmatprep.subr.bf16.mxu0 %v3116_v58  ;;  %v3198_v58 = vld [vmem:[%s3927_s9 + $0x234] ss:$88 sps:$4 sm:$0xff]   ;;  %v3239_v4 = vld [vmem:[%s3927_s9 + $0x2e8] ss:$88 sps:$4 sm:$0xff]  }
  0xb1   : > { %1985 = vmatmul.mubr.bf16.vlgmr.msra.gmra.mxu0 %v3970_v60  ;;  %2026 = vmatpush2.bf16.msra.mxu1 %v3160_v6  ;;  %v3247_v6 = vld [vmem:[%s3927_s9 + $0x23c] ss:$88 sps:$4 sm:$0xff]  }
  0xb2   : > { %2039 = vmatpush1.bf16.msra.mxu0 %v3114_v62  ;;  %2981 = vmatprep.mubr.msk.bf16.mxu0 %vm1881_vm0, %v3913_v17  ;;  %v3235_v62 = vld [vmem:[%s3927_s9 + $0x39c] ss:$88 sps:$4 sm:$0xff]  }
  0xb3   : > { %2040 = vmatprep.subr.bf16.mxu0 %v3122_v1  ;;  %2081 = vmatprep.subr.bf16.mxu1 %v3165_v8  ;;  %v3202_v1 = vld [vmem:[%s3927_s9 + $0x180] ss:$88 sps:$4 sm:$0xff]   ;;  %v808_v8 = vld [vmem:[%s3927_s9 + $0x650] sm:$0x77] }
  0xb4   : > { %2028 = vmatmul.mubr.bf16.vlgmr.msra.gmra.mxu1 %v3970_v60 }
  0xb5   : > { %2082 = vmatpush1.bf16.msra.mxu1 %v3163_v10  ;;  %2983 = vmatprep.mubr.msk.bf16.mxu1 %vm1881_vm0, %v3913_v17  ;;  %v3213_v10 = vld [vmem:[%s3927_s9 + $0x20] ss:$88 sps:$4 sm:$0xff]  }
  0xb6   : > { %2041 = vmatpush1.bf16.msra.mxu0 %v3120_v2  ;;  %2083 = vmatprep.subr.bf16.mxu1 %v3171_v12  ;;  %v3241_v2 = vld [vmem:[%s3927_s9 + $0x2ec] ss:$88 sps:$4 sm:$0xff]   ;;  %v2963_v12 = vcombine.high %v808_v8, %v808_v8 }
  0xb7   : > { %2042 = vmatprep.subr.bf16.mxu0 %v3128_v5  ;;  %v3208_v5 = vld [vmem:[%s3927_s9 + $0xd0] ss:$88 sps:$4 sm:$0xff]  }
  0xb9   : > { %2084 = vmatpush1.bf16.msra.mxu1 %v3169_v14  ;;  %v3251_v14 = vld [vmem:[%s3927_s9 + $0x188] ss:$88 sps:$4 sm:$0xff]  }
  0xba   : > { %2043 = vmatpush1.bf16.msra.mxu0 %v3126_v7  ;;  %2085 = vmatprep.subr.bf16.mxu1 %v3177_v16  ;;  %v3215_v7 = vld [vmem:[%s3927_s9 + $0x24] ss:$88 sps:$4 sm:$0xff]  }
  0xbb   : > { %2044 = vmatprep.subr.bf16.mxu0 %v3134_v9  ;;  %v3245_v9 = vld [vmem:[%s3927_s9 + $0x238] ss:$88 sps:$4 sm:$0xff]  }
  0xbd   : > { %2086 = vmatpush1.bf16.msra.mxu1 %v3175_v19  ;;  %v3224_v19 = vld [vmem:[%s3927_s9 + $0x5a0] ss:$88 sps:$4 sm:$0xff]  }
  0xbe   : > { %2045 = vmatpush1.bf16.msra.mxu0 %v3132_v11  ;;  %2087 = vmatprep.subr.bf16.mxu1 %v3183_v21  ;;  %v3253_v11 = vld [vmem:[%s3927_s9 + $0x18c] ss:$88 sps:$4 sm:$0xff]   ;;  %v3257_v21 = vld [vmem:[%s3927_s9 + $0xd8] ss:$88 sps:$4 sm:$0xff]  }
  0xbf   : > { %2046 = vmatprep.subr.bf16.mxu0 %v3140_v13  ;;  %v2962_v13 = vcombine.low %v808_v8, %v808_v8  ;;  %v3296_v8 = vld [vmem:[%s3927_s9 + $0x464] ss:$88 sps:$4 sm:$0xff]  }
  0xc1   : > { %2088 = vmatpush1.bf16.msra.mxu1 %v3181_v24  ;;  %v1911_v16 = vsel %vm1885_vm1, %v2962_v13, 0  ;;  %v3263_v24 = vld [vmem:[%s3927_s9 + $0x28] ss:$88 sps:$4 sm:$0xff]   ;;  %v4128_v13 = vld [vmem:[%s4337_s0 + $0x4] ss:$8 sps:$4 sm:$0xff]  }
  0xc2   : > { %2047 = vmatpush1.bf16.msra.mxu0 %v3138_v15  ;;  %2089 = vmatprep.subr.bf16.mxu1 %v3189_v25  ;;  %v3259_v15 = vld [vmem:[%s3927_s9 + $0xdc] ss:$88 sps:$4 sm:$0xff]   ;;  %v3230_v25 = vld [vmem:[%s3927_s9 + $0x500] ss:$88 sps:$4 sm:$0xff]  }
  0xc3   : > { %2048 = vmatprep.subr.bf16.mxu0 %v3146_v18  ;;  %v3226_v18 = vld [vmem:[%s3927_s9 + $0x5a4] ss:$88 sps:$4 sm:$0xff]  }
  0xc5   : > { %2090 = vmatpush1.bf16.msra.mxu1 %v3187_v29  ;;  %v3236_v29 = vld [vmem:[%s3927_s9 + $0x450] ss:$88 sps:$4 sm:$0xff]  }
  0xc6   : > { %2049 = vmatpush1.bf16.msra.mxu0 %v3144_v20  ;;  %2091 = vmatprep.subr.bf16.mxu1 %v3195_v30  ;;  %v3232_v20 = vld [vmem:[%s3927_s9 + $0x504] ss:$88 sps:$4 sm:$0xff]  }
  0xc7   : > { %2050 = vmatprep.subr.bf16.mxu0 %v3152_v22  ;;  %v3265_v22 = vld [vmem:[%s3927_s9 + $0x2c] ss:$88 sps:$4 sm:$0xff]  }
  0xc9   : > { %2092 = vmatpush1.bf16.msra.mxu1 %v3193_v33  ;;  %v3242_v33 = vld [vmem:[%s3927_s9 + $0x3a0] ss:$88 sps:$4 sm:$0xff]  }
  0xca   : > { %2051 = vmatpush1.bf16.msra.mxu0 %v3150_v23  ;;  %2093 = vmatprep.subr.bf16.mxu1 %v3201_v34  ;;  %v809_v23 = vld [vmem:[%s3927_s9 + $0x658] sm:$0x77]  ;;  %v3274_v34 = vld [vmem:[%s3927_s9 + $0x5a8] ss:$88 sps:$4 sm:$0xff]  }
  0xcb   : > { %2052 = vmatprep.subr.bf16.mxu0 %v3157_v26  ;;  %v2965_v26 = vcombine.high %v809_v23, %v809_v23  ;;  %v2964_v27 = vcombine.low %v809_v23, %v809_v23  ;;  %v3343_v23 = vld [vmem:[%s3927_s9 + $0x468] ss:$88 sps:$4 sm:$0xff]  }
  0xcd   : > { %2094 = vmatpush1.bf16.msra.mxu1 %v3199_v39  ;;  %v1917_v30 = vsel %vm1885_vm1, %v2964_v27, 0  ;;  %v3287_v39 = vld [vmem:[%s3927_s9 + $0x45c] ss:$88 sps:$4 sm:$0xff]   ;;  %v3349_v27 = vld [vmem:[%s3927_s9 + $0x3b8] ss:$88 sps:$4 sm:$0xff]  }
  0xce   : > { %2053 = vmatpush1.bf16.msra.mxu0 %v3155_v28  ;;  %2095 = vmatprep.subr.bf16.mxu1 %v3207_v40  ;;  %v3238_v28 = vld [vmem:[%s3927_s9 + $0x454] ss:$88 sps:$4 sm:$0xff]   ;;  %v3256_v40 = vld [vmem:[%s3927_s9 + $0x244] ss:$88 sps:$4 sm:$0xff]  }
  0xcf   : > { %2980 = vmatprep.subr.msk.bf16.mxu0 %vm1885_vm1, %v2959_v31  ;;  %v3276_v31 = vld [vmem:[%s3927_s9 + $0x5ac] ss:$88 sps:$4 sm:$0xff]  }
  0xd1   : > { %2096 = vmatpush1.bf16.msra.mxu1 %v3205_v42  ;;  %v3254_v42 = vld [vmem:[%s3927_s9 + $0x240] ss:$88 sps:$4 sm:$0xff]  }
  0xd2   : > { %2067 = vmatpush2.bf16.msra.mxu0 %v1899_v35  ;;  %2982 = vmatprep.subr.msk.bf16.mxu1 %vm1885_vm1, %v2961_v44  ;;  %v3281_v35 = vld [vmem:[%s3927_s9 + $0x50c] ss:$88 sps:$4 sm:$0xff]  }
  0xd3   : > { %2068 = vmatprep.subr.bf16.mxu0 %v3168_v36  ;;  %v3250_v36 = vld [vmem:[%s3927_s9 + $0x2f4] ss:$88 sps:$4 sm:$0xff]  }
  0xd4   : > { %v3262_v44 = vld [vmem:[%s3927_s9 + $0x194] ss:$88 sps:$4 sm:$0xff]  }
  0xd5   : > { %2110 = vmatpush2.bf16.msra.mxu1 %v1905_v48  ;;  %v3297_v48 = vld [vmem:[%s3927_s9 + $0x2f8] ss:$88 sps:$4 sm:$0xff]  }
  0xd6   : > { %2069 = vmatpush2.bf16.msra.mxu0 %v3166_v37  ;;  %2111 = vmatprep.subr.bf16.mxu1 %v3218_v49  ;;  %v3248_v37 = vld [vmem:[%s3927_s9 + $0x2f0] ss:$88 sps:$4 sm:$0xff]   ;;  %v3266_v49 = vld [vmem:[%s3927_s9 + $0xe0] ss:$88 sps:$4 sm:$0xff]  }
  0xd7   : > { %2124 = vmatprep.subr.bf16.mxu0 %v3174_v38  ;;  %v3279_v38 = vld [vmem:[%s3927_s9 + $0x508] ss:$88 sps:$4 sm:$0xff]  }
  0xd9   : > { %2071 = vmatmul.mubr.bf16.vlgmr.msra.gmra.mxu0 %v3970_v60  ;;  %2112 = vmatpush2.bf16.msra.mxu1 %v3216_v51  ;;  %v3273_v51 = vld [vmem:[%s3927_s9 + $0x34] ss:$88 sps:$4 sm:$0xff]  }
  0xda   : > { %2125 = vmatpush1.bf16.msra.mxu0 %v3172_v43  ;;  %2985 = vmatprep.mubr.msk.bf16.mxu0 %vm1881_vm0, %v3913_v17  ;;  %v3293_v43 = vld [vmem:[%s3927_s9 + $0x3ac] ss:$88 sps:$4 sm:$0xff]  }
  0xdb   : > { %2126 = vmatprep.subr.bf16.mxu0 %v3180_v46  ;;  %2167 = vmatprep.subr.bf16.mxu1 %v3223_v53  ;;  %v3260_v46 = vld [vmem:[%s3927_s9 + $0x190] ss:$88 sps:$4 sm:$0xff]  }
  0xdc   : > { %2114 = vmatmul.mubr.bf16.vlgmr.msra.gmra.mxu1 %v3970_v60  ;;  %v3303_v53 = vld [vmem:[%s3927_s9 + $0x248] ss:$88 sps:$4 sm:$0xff]  }
  0xdd   : > { %2168 = vmatpush1.bf16.msra.mxu1 %v3221_v55  ;;  %2987 = vmatprep.mubr.msk.bf16.mxu1 %vm1881_vm0, %v3913_v17  ;;  %v3311_v55 = vld [vmem:[%s3927_s9 + $0x19c] ss:$88 sps:$4 sm:$0xff]  }
  0xde   : > { %2127 = vmatpush1.bf16.msra.mxu0 %v3178_v47  ;;  %2169 = vmatprep.subr.bf16.mxu1 %v3229_v57  ;;  %v3299_v47 = vld [vmem:[%s3927_s9 + $0x2fc] ss:$88 sps:$4 sm:$0xff]  }
  0xdf   : > { %2128 = vmatprep.subr.bf16.mxu0 %v3186_v50  ;;  %v3305_v50 = vld [vmem:[%s3927_s9 + $0x24c] ss:$88 sps:$4 sm:$0xff]  }
  0xe1   : > { %2170 = vmatpush1.bf16.msra.mxu1 %v3227_v59  ;;  %v3317_v59 = vld [vmem:[%s3927_s9 + $0xec] ss:$88 sps:$4 sm:$0xff]  }
  0xe2   : > { %2129 = vmatpush1.bf16.msra.mxu0 %v3184_v52  ;;  %2171 = vmatprep.subr.bf16.mxu1 %v3235_v62  ;;  %v810_v52 = vld [vmem:[%s3927_s9 + $0x660] sm:$0x77]  ;;  %v3284_v62 = vld [vmem:[%s3927_s9 + $0x5b4] ss:$88 sps:$4 sm:$0xff]  }
  0xe3   : > { %2130 = vmatprep.subr.bf16.mxu0 %v3192_v54  ;;  %v3271_v54 = vld [vmem:[%s3927_s9 + $0x30] ss:$88 sps:$4 sm:$0xff]   ;;  %v2966_v57 = vcombine.low %v810_v52, %v810_v52 }
  0xe5   : > { %2172 = vmatpush1.bf16.msra.mxu1 %v3233_v0  ;;  %v3282_v0 = vld [vmem:[%s3927_s9 + $0x5b0] ss:$88 sps:$4 sm:$0xff]  }
  0xe6   : > { %2131 = vmatpush1.bf16.msra.mxu0 %v3190_v56  ;;  %2173 = vmatprep.subr.bf16.mxu1 %v3241_v2  ;;  %v2967_v56 = vcombine.high %v810_v52, %v810_v52  ;;  %v3290_v2 = vld [vmem:[%s3927_s9 + $0x514] ss:$88 sps:$4 sm:$0xff]  }
  0xe7   : > { %2132 = vmatprep.subr.bf16.mxu0 %v3198_v58  ;;  %v3309_v58 = vld [vmem:[%s3927_s9 + $0x198] ss:$88 sps:$4 sm:$0xff]  }
  0xe9   : > { %2174 = vmatpush1.bf16.msra.mxu1 %v3239_v4  ;;  %v3321_v4 = vld [vmem:[%s3927_s9 + $0x38] ss:$88 sps:$4 sm:$0xff]  }
  0xea   : > { %2133 = vmatpush1.bf16.msra.mxu0 %v3196_v61  ;;  %2175 = vmatprep.subr.bf16.mxu1 %v3247_v6  ;;  %v1923_v61 = vsel %vm1885_vm1, %v2966_v57, 0  ;;  %v3360_v57 = vld [vmem:[%s3927_s9 + $0x3c4] ss:$88 sps:$4 sm:$0xff]  }
  0xeb   : > { %2134 = vmatprep.subr.bf16.mxu0 %v3204_v63  ;;  %v3315_v63 = vld [vmem:[%s3927_s9 + $0xe8] ss:$88 sps:$4 sm:$0xff]  }
  0xed   : > { %2176 = vmatpush1.bf16.msra.mxu1 %v3245_v9  ;;  %v3294_v9 = vld [vmem:[%s3927_s9 + $0x460] ss:$88 sps:$4 sm:$0xff]  }
  0xee   : > { %2135 = vmatpush1.bf16.msra.mxu0 %v3202_v1  ;;  %2177 = vmatprep.subr.bf16.mxu1 %v3253_v11  ;;  %v3323_v1 = vld [vmem:[%s3927_s9 + $0x3c] ss:$88 sps:$4 sm:$0xff]  }
  0xef   : > { %2136 = vmatprep.subr.bf16.mxu0 %v3210_v3  ;;  %v811_v3 = vld [vmem:[%s3927_s9 + $0x668] sm:$0x77]  ;;  %v3334_v11 = vld [vmem:[%s3927_s9 + $0x5bc] ss:$88 sps:$4 sm:$0xff]  }
  0xf0   : > { %v2969_v6 = vcombine.high %v811_v3, %v811_v3 }
  0xf1   : > { %2178 = vmatpush1.bf16.msra.mxu1 %v3251_v14  ;;  %v3332_v14 = vld [vmem:[%s3927_s9 + $0x5b8] ss:$88 sps:$4 sm:$0xff]  }
  0xf2   : > { %2137 = vmatpush1.bf16.msra.mxu0 %v3208_v5  ;;  %2179 = vmatprep.subr.bf16.mxu1 %v3259_v15  ;;  %v3288_v5 = vld [vmem:[%s3927_s9 + $0x510] ss:$88 sps:$4 sm:$0xff]  }
  0xf3   : > { %2138 = vmatprep.subr.bf16.mxu0 %v3215_v7  ;;  %v2968_v7 = vcombine.low %v811_v3, %v811_v3  ;;  %v3300_v15 = vld [vmem:[%s3927_s9 + $0x3b0] ss:$88 sps:$4 sm:$0xff]   ;;  %v3384_v3 = vld [vmem:[%s3927_s9 + $0x104] ss:$88 sps:$4 sm:$0xff]  }
  0xf5   : > { %2180 = vmatpush1.bf16.msra.mxu1 %v3257_v21  ;;  %v3345_v21 = vld [vmem:[%s3927_s9 + $0x46c] ss:$88 sps:$4 sm:$0xff]  }
  0xf6   : > { %2139 = vmatpush1.bf16.msra.mxu0 %v3213_v10  ;;  %2181 = vmatprep.subr.bf16.mxu1 %v3265_v22  ;;  %v1929_v10 = vsel %vm1885_vm1, %v2968_v7, 0  ;;  %v3314_v22 = vld [vmem:[%s3927_s9 + $0x254] ss:$88 sps:$4 sm:$0xff]   ;;  %v3387_v7 = vld [vmem:[%s3927_s9 + $0x50] ss:$88 sps:$4 sm:$0xff]  }
  0xf7   : > { %2984 = vmatprep.subr.msk.bf16.mxu0 %vm1885_vm1, %v2963_v12  ;;  %v3302_v12 = vld [vmem:[%s3927_s9 + $0x3b4] ss:$88 sps:$4 sm:$0xff]  }
  0xf9   : > { %2182 = vmatpush1.bf16.msra.mxu1 %v3263_v24  ;;  %v3312_v24 = vld [vmem:[%s3927_s9 + $0x250] ss:$88 sps:$4 sm:$0xff]  }
  0xfa   : > { %2153 = vmatpush2.bf16.msra.mxu0 %v1911_v16  ;;  %2986 = vmatprep.subr.msk.bf16.mxu1 %vm1885_vm1, %v2965_v26  ;;  %v3339_v16 = vld [vmem:[%s3927_s9 + $0x51c] ss:$88 sps:$4 sm:$0xff]  }
  0xfb   : > { %2154 = vmatprep.subr.bf16.mxu0 %v3226_v18  ;;  %v3308_v18 = vld [vmem:[%s3927_s9 + $0x304] ss:$88 sps:$4 sm:$0xff]  }
  0xfc   : > { %v3320_v26 = vld [vmem:[%s3927_s9 + $0x1a4] ss:$88 sps:$4 sm:$0xff]  }
  0xfd   : > { %2196 = vmatpush2.bf16.msra.mxu1 %v1917_v30  ;;  %v3326_v30 = vld [vmem:[%s3927_s9 + $0xf4] ss:$88 sps:$4 sm:$0xff]  }
  0xfe   : > { %2155 = vmatpush2.bf16.msra.mxu0 %v3224_v19  ;;  %2197 = vmatprep.subr.bf16.mxu1 %v3276_v31  ;;  %v3337_v19 = vld [vmem:[%s3927_s9 + $0x518] ss:$88 sps:$4 sm:$0xff]   ;;  %v3355_v31 = vld [vmem:[%s3927_s9 + $0x308] ss:$88 sps:$4 sm:$0xff]  }
  0xff   : > { %2210 = vmatprep.subr.bf16.mxu0 %v3232_v20  ;;  %v3306_v20 = vld [vmem:[%s3927_s9 + $0x300] ss:$88 sps:$4 sm:$0xff]  }
 0x101   : > { %2157 = vmatmul.mubr.bf16.vlgmr.msra.gmra.mxu0 %v3970_v60  ;;  %2198 = vmatpush2.bf16.msra.mxu1 %v3274_v34  ;;  %v3331_v34 = vld [vmem:[%s3927_s9 + $0x44] ss:$88 sps:$4 sm:$0xff]  }
 0x102   : > { %2211 = vmatpush1.bf16.msra.mxu0 %v3230_v25  ;;  %2989 = vmatprep.mubr.msk.bf16.mxu0 %vm1881_vm0, %v3913_v17  ;;  %v3351_v25 = vld [vmem:[%s3927_s9 + $0x3bc] ss:$88 sps:$4 sm:$0xff]  }
 0x103   : > { %2212 = vmatprep.subr.bf16.mxu0 %v3238_v28  ;;  %2253 = vmatprep.subr.bf16.mxu1 %v3281_v35  ;;  %v3318_v28 = vld [vmem:[%s3927_s9 + $0x1a0] ss:$88 sps:$4 sm:$0xff]   ;;  %v812_v35 = vld [vmem:[%s3927_s9 + $0x670] sm:$0x77] }
 0x104   : > { %2200 = vmatmul.mubr.bf16.vlgmr.msra.gmra.mxu1 %v3970_v60 }
 0x105   : > { %2254 = vmatpush1.bf16.msra.mxu1 %v3279_v38  ;;  %2991 = vmatprep.mubr.msk.bf16.mxu1 %vm1881_vm0, %v3913_v17  ;;  %v3268_v17 = vld [vmem:[%s3927_s9 + $0xe4] ss:$88 sps:$4 sm:$0xff]  }
 0x106   : > { %2213 = vmatpush1.bf16.msra.mxu0 %v3236_v29  ;;  %2255 = vmatprep.subr.bf16.mxu1 %v3287_v39  ;;  %v3357_v29 = vld [vmem:[%s3927_s9 + $0x30c] ss:$88 sps:$4 sm:$0xff]   ;;  %v2971_v39 = vcombine.high %v812_v35, %v812_v35 }
 0x107   : > { %2214 = vmatprep.subr.bf16.mxu0 %v3244_v32  ;;  %v3324_v32 = vld [vmem:[%s3927_s9 + $0xf0] ss:$88 sps:$4 sm:$0xff]   ;;  %v3369_v38 = vld [vmem:[%s3927_s9 + $0x1ac] ss:$88 sps:$4 sm:$0xff]  }
 0x109   : > { %2256 = vmatpush1.bf16.msra.mxu1 %v3285_v41  ;;  %v3367_v41 = vld [vmem:[%s3927_s9 + $0x1a8] ss:$88 sps:$4 sm:$0xff]  }
 0x10a   : > { %2215 = vmatpush1.bf16.msra.mxu0 %v3242_v33  ;;  %2257 = vmatprep.subr.bf16.mxu1 %v3293_v43  ;;  %v3363_v33 = vld [vmem:[%s3927_s9 + $0x25c] ss:$88 sps:$4 sm:$0xff]  }
 0x10b   : > { %2216 = vmatprep.subr.bf16.mxu0 %v3250_v36  ;;  %v3361_v36 = vld [vmem:[%s3927_s9 + $0x258] ss:$88 sps:$4 sm:$0xff]  }
 0x10d   : > { %2258 = vmatpush1.bf16.msra.mxu1 %v3291_v45  ;;  %v3373_v45 = vld [vmem:[%s3927_s9 + $0xf8] ss:$88 sps:$4 sm:$0xff]  }
 0x10e   : > { %2217 = vmatpush1.bf16.msra.mxu0 %v3248_v37  ;;  %2259 = vmatprep.subr.bf16.mxu1 %v3299_v47  ;;  %v3329_v37 = vld [vmem:[%s3927_s9 + $0x40] ss:$88 sps:$4 sm:$0xff]   ;;  %v3381_v47 = vld [vmem:[%s3927_s9 + $0x4c] ss:$88 sps:$4 sm:$0xff]  }
 0x10f   : > { %2218 = vmatprep.subr.bf16.mxu0 %v3256_v40  ;;  %v2970_v40 = vcombine.low %v812_v35, %v812_v35 }
 0x111   : > { %2260 = vmatpush1.bf16.msra.mxu1 %v3297_v48  ;;  %v1935_v43 = vsel %vm1885_vm1, %v2970_v40, 0  ;;  %v813_v48 = vld [vmem:[%s3927_s9 + $0x678] sm:$0x77] }
 0x112   : > { %2219 = vmatpush1.bf16.msra.mxu0 %v3254_v42  ;;  %2261 = vmatprep.subr.bf16.mxu1 %v3305_v50  ;;  %v3375_v42 = vld [vmem:[%s3927_s9 + $0xfc] ss:$88 sps:$4 sm:$0xff]   ;;  %v3346_v50 = vld [vmem:[%s3927_s9 + $0x520] ss:$88 sps:$4 sm:$0xff]   ;;  %v2972_v52 = vcombine.low %v813_v48, %v813_v48 }
 0x113   : > { %2220 = vmatprep.subr.bf16.mxu0 %v3262_v44  ;;  %v3342_v44 = vld [vmem:[%s3927_s9 + $0x5c4] ss:$88 sps:$4 sm:$0xff]  }
 0x115   : > { %2262 = vmatpush1.bf16.msra.mxu1 %v3303_v53  ;;  %v3354_v53 = vld [vmem:[%s3927_s9 + $0x474] ss:$88 sps:$4 sm:$0xff]  }
 0x116   : > { %2221 = vmatpush1.bf16.msra.mxu0 %v3260_v46  ;;  %2263 = vmatprep.subr.bf16.mxu1 %v3311_v55  ;;  %v3340_v46 = vld [vmem:[%s3927_s9 + $0x5c0] ss:$88 sps:$4 sm:$0xff]   ;;  %v1941_v55 = vsel %vm1885_vm1, %v2972_v52, 0 }
 0x117   : > { %2222 = vmatprep.subr.bf16.mxu0 %v3268_v17  ;;  %v3348_v17 = vld [vmem:[%s3927_s9 + $0x524] ss:$88 sps:$4 sm:$0xff]  }
 0x119   : > { %2264 = vmatpush1.bf16.msra.mxu1 %v3309_v58  ;;  %v3390_v58 = vld [vmem:[%s3927_s9 + $0x5c8] ss:$88 sps:$4 sm:$0xff]  }
 0x11a   : > { %2223 = vmatpush1.bf16.msra.mxu0 %v3266_v49  ;;  %2265 = vmatprep.subr.bf16.mxu1 %v3317_v59  ;;  %v3379_v49 = vld [vmem:[%s3927_s9 + $0x48] ss:$88 sps:$4 sm:$0xff]   ;;  %v3366_v59 = vld [vmem:[%s3927_s9 + $0x314] ss:$88 sps:$4 sm:$0xff]  }
 0x11b   : > { %2224 = vmatprep.subr.bf16.mxu0 %v3273_v51  ;;  %v2973_v51 = vcombine.high %v813_v48, %v813_v48 }
 0x11d   : > { %2266 = vmatpush1.bf16.msra.mxu1 %v3315_v63  ;;  %v3399_v63 = vld [vmem:[%s4337_s0] ss:$8 sps:$4 sm:$0xff]  }
 0x11e   : > { %2225 = vmatpush1.bf16.msra.mxu0 %v3271_v54  ;;  %2267 = vmatprep.subr.bf16.mxu1 %v3323_v1  ;;  %v3352_v54 = vld [vmem:[%s3927_s9 + $0x470] ss:$88 sps:$4 sm:$0xff]   ;;  %v3378_v1 = vld [vmem:[%s3927_s9 + $0x1b4] ss:$88 sps:$4 sm:$0xff]  }
 0x11f   : > { %2988 = vmatprep.subr.msk.bf16.mxu0 %vm1885_vm1, %v2967_v56  ;;  %v3392_v56 = vld [vmem:[%s3927_s9 + $0x5cc] ss:$88 sps:$4 sm:$0xff]  }
 0x121   : > { %2268 = vmatpush1.bf16.msra.mxu1 %v3321_v4  ;;  %v3382_v4 = vld [vmem:[%s3927_s9 + $0x100] ss:$88 sps:$4 sm:$0xff]  }
 0x122   : > { %2239 = vmatpush2.bf16.msra.mxu0 %v1923_v61  ;;  %2990 = vmatprep.subr.msk.bf16.mxu1 %vm1885_vm1, %v2969_v6  ;;  %v3364_v61 = vld [vmem:[%s3927_s9 + $0x310] ss:$88 sps:$4 sm:$0xff]   ;;  %v814_v6 = vld [vmem:[%s3927_s9 + $0x680] sm:$0x77] }
 0x123   : > { %2240 = vmatprep.subr.bf16.mxu0 %v3284_v62  ;;  %v3372_v62 = vld [vmem:[%s3927_s9 + $0x264] ss:$88 sps:$4 sm:$0xff]  }
 0x125   : > { %2282 = vmatpush2.bf16.msra.mxu1 %v1929_v10  ;;  %v4196_v10 = vpop.permute.xlu0 %819 }
 0x126   : > { %2241 = vmatpush2.bf16.msra.mxu0 %v3282_v0  ;;  %2283 = vmatprep.subr.bf16.mxu1 %v3334_v11  ;;  %v3370_v0 = vld [vmem:[%s3927_s9 + $0x260] ss:$88 sps:$4 sm:$0xff]  }
 0x127   : > { %2296 = vmatprep.subr.bf16.mxu0 %v3290_v2  ;;  %v3376_v2 = vld [vmem:[%s3927_s9 + $0x1b0] ss:$88 sps:$4 sm:$0xff]  }
 0x129   : > { %2243 = vmatmul.mubr.bf16.vlgmr.msra.gmra.mxu0 %v3970_v60  ;;  %2284 = vmatpush2.bf16.msra.mxu1 %v3332_v14 }
 0x12a   : > { %2297 = vmatpush1.bf16.msra.mxu0 %v3288_v5  ;;  %2993 = vmatprep.mubr.msk.bf16.mxu0 %vm1881_vm0, %v4128_v13  ;;  %v3389_v5 = vld [vmem:[%s3927_s9 + $0x54] ss:$88 sps:$4 sm:$0xff]  }
 0x12b   : > { %2298 = vmatprep.subr.bf16.mxu0 %v3296_v8  ;;  %2339 = vmatprep.subr.bf16.mxu1 %v3339_v16  ;;  %v2975_v8 = vcombine.high %v814_v6, %v814_v6 }
 0x12c   : > { %2286 = vmatmul.mubr.bf16.vlgmr.msra.gmra.mxu1 %v3970_v60 }
 0x12d   : > { %2340 = vmatpush1.bf16.msra.mxu1 %v3337_v19  ;;  %2995 = vmatprep.mubr.msk.bf16.mxu1 %vm1881_vm0, %v4128_v13 }
 0x12e   : > { %2299 = vmatpush1.bf16.msra.mxu0 %v3294_v9  ;;  %2341 = vmatprep.subr.bf16.mxu1 %v3345_v21  ;;  %v2974_v9 = vcombine.low %v814_v6, %v814_v6 }
 0x12f   : > { %2300 = vmatprep.subr.bf16.mxu0 %v3302_v12  ;;  %v3397_v12 = vld [vmem:[%s3927_s9 + $0x5d4] ss:$88 sps:$4 sm:$0xff]  }
 0x130   : > { %v1947_v11 = vsel %vm1885_vm1, %v2974_v9, 0 }
 0x131   : > { %2342 = vmatpush1.bf16.msra.mxu1 %v3343_v23 }
 0x132   : > { %2301 = vmatpush1.bf16.msra.mxu0 %v3300_v15  ;;  %2343 = vmatprep.subr.bf16.mxu1 %v3351_v25  ;;  %v3395_v15 = vld [vmem:[%s3927_s9 + $0x5d0] ss:$88 sps:$4 sm:$0xff]  }
 0x133   : > { %2302 = vmatprep.subr.bf16.mxu0 %v3308_v18  ;;  %v4205_v18 = vpop.permute.xlu0 %824 }
 0x135   : > { %2344 = vmatpush1.bf16.msra.mxu1 %v3349_v27 }
 0x136   : > { %2303 = vmatpush1.bf16.msra.mxu0 %v3306_v20  ;;  %2345 = vmatprep.subr.bf16.mxu1 %v3357_v29 }
 0x137   : > { %2304 = vmatprep.subr.bf16.mxu0 %v3314_v22 }
 0x139   : > { %2346 = vmatpush1.bf16.msra.mxu1 %v3355_v31 }
 0x13a   : > { %2305 = vmatpush1.bf16.msra.mxu0 %v3312_v24  ;;  %2347 = vmatprep.subr.bf16.mxu1 %v3363_v33 }
 0x13b   : > { %2306 = vmatprep.subr.bf16.mxu0 %v3320_v26 }
 0x13d   : > { %2348 = vmatpush1.bf16.msra.mxu1 %v3361_v36 }
 0x13e   : > { %2307 = vmatpush1.bf16.msra.mxu0 %v3318_v28  ;;  %2349 = vmatprep.subr.bf16.mxu1 %v3369_v38 }
 0x13f   : > { %2308 = vmatprep.subr.bf16.mxu0 %v3326_v30 }
 0x141   : > { %2350 = vmatpush1.bf16.msra.mxu1 %v3367_v41 }
 0x142   : > { %2309 = vmatpush1.bf16.msra.mxu0 %v3324_v32  ;;  %2351 = vmatprep.subr.bf16.mxu1 %v3375_v42 }
 0x143   : > { %2310 = vmatprep.subr.bf16.mxu0 %v3331_v34 }
 0x145   : > { %2352 = vmatpush1.bf16.msra.mxu1 %v3373_v45 }
 0x146   : > { %2311 = vmatpush1.bf16.msra.mxu0 %v3329_v37  ;;  %2353 = vmatprep.subr.bf16.mxu1 %v3381_v47 }
 0x147   : > { %2992 = vmatprep.subr.msk.bf16.mxu0 %vm1885_vm1, %v2971_v39 }
 0x149   : > { %2354 = vmatpush1.bf16.msra.mxu1 %v3379_v49 }
 0x14a   : > { %2325 = vmatpush2.bf16.msra.mxu0 %v1935_v43  ;;  %2994 = vmatprep.subr.msk.bf16.mxu1 %vm1885_vm1, %v2973_v51 }
 0x14b   : > { %2326 = vmatprep.subr.bf16.mxu0 %v3342_v44 }
 0x14d   : > { %2368 = vmatpush2.bf16.msra.mxu1 %v1941_v55 }
 0x14e   : > { %2327 = vmatpush2.bf16.msra.mxu0 %v3340_v46  ;;  %2369 = vmatprep.subr.bf16.mxu1 %v3392_v56 }
 0x14f   : > { %2382 = vmatprep.subr.bf16.mxu0 %v3348_v17 }
 0x151   : > { %2329 = vmatmul.mubr.bf16.vlgmr.msra.gmra.mxu0 %v3970_v60  ;;  %v3358_v60 = vld [vmem:[%s3927_s9 + $0x3c0] ss:$88 sps:$4 sm:$0xff]   ;;  %2370 = vmatpush2.bf16.msra.mxu1 %v3390_v58 }
 0x152   : > { %2383 = vmatpush1.bf16.msra.mxu0 %v3346_v50  ;;  %2997 = vmatprep.mubr.msk.bf16.mxu0 %vm1881_vm0, %v4128_v13 }
 0x153   : > { %2384 = vmatprep.subr.bf16.mxu0 %v3354_v53 }
 0x154   : > { %2372 = vmatmul.mubr.bf16.vlgmr.msra.gmra.mxu1 %v3399_v63 }
 0x156   : > { %2385 = vmatpush1.bf16.msra.mxu0 %v3352_v54 }
 0x157   : > { %2386 = vmatprep.subr.bf16.mxu0 %v3360_v57 }
 0x15a   : > { %2387 = vmatpush1.bf16.msra.mxu0 %v3358_v60 }
 0x15b   : > { %2388 = vmatprep.subr.bf16.mxu0 %v3366_v59 }
 0x15e   : > { %2389 = vmatpush1.bf16.msra.mxu0 %v3364_v61 }
 0x15f   : > { %2390 = vmatprep.subr.bf16.mxu0 %v3372_v62 }
 0x162   : > { %2391 = vmatpush1.bf16.msra.mxu0 %v3370_v0 }
 0x163   : > { %2392 = vmatprep.subr.bf16.mxu0 %v3378_v1 }
 0x166   : > { %2393 = vmatpush1.bf16.msra.mxu0 %v3376_v2 }
 0x167   : > { %2394 = vmatprep.subr.bf16.mxu0 %v3384_v3 }
 0x16a   : > { %2395 = vmatpush1.bf16.msra.mxu0 %v3382_v4 }
 0x16b   : > { %2396 = vmatprep.subr.bf16.mxu0 %v3389_v5 }
 0x16e   : > { %2397 = vmatpush1.bf16.msra.mxu0 %v3387_v7 }
 0x16f   : > { %2996 = vmatprep.subr.msk.bf16.mxu0 %vm1885_vm1, %v2975_v8 }
 0x171   : > { %v1986_v13 = vpop.f32.mrf.mxu0 }
 0x172   : > { %v1987_v14 = vadd.f32 %v1986_v13, %v4196_v10  ;;  %2411 = vmatpush2.bf16.msra.mxu0 %v1947_v11 }
 0x173   : > { %v1988_v16 = vpop.f32.mrf.mxu0  ;;  %2412 = vmatprep.subr.bf16.mxu0 %v3397_v12 }
 0x174   : > { %v2425_v19 = vmax.f32 %v1987_v14, 0.0  ;;  %v1989_v20 = vadd.f32 %v1988_v16, %v4196_v10  ;;  %v2029_v30 = vpop.f32.mrf.mxu1 }
 0x175   : > { %v1990_v21 = vpop.f32.mrf.mxu0  ;;  %v2030_v31 = vadd.f32 %v2029_v30, %v4196_v10 }
 0x176   : > { %v2426_v22 = vmax.f32 %v1989_v20, 0.0  ;;  %v1991_v23 = vadd.f32 %v1990_v21, %v4205_v18  ;;  %2413 = vmatpush2.bf16.msra.mxu0 %v3395_v15  ;;  %v2031_v32 = vpop.f32.mrf.mxu1 }
 0x177   : > { %v1992_v24 = vpop.f32.mrf.mxu0  ;;  %v2427_v33 = vmax.f32 %v2030_v31, 0.0  ;;  %v2032_v34 = vadd.f32 %v2031_v32, %v4196_v10 }
 0x178   : > { %v3024_v25 = vpack.c.bf16 %v2426_v22, %v2425_v19  ;;  %v1993_v26 = vadd.f32 %v1992_v24, %v4205_v18  ;;  %v2447_v27 = vmax.f32 %v1991_v23, 0.0  ;;  %v2033_v35 = vpop.f32.mrf.mxu1 }
 0x179   : > { %2415 = vmatmul.mubr.bf16.vlgmr.msra.gmra.mxu0 %v3399_v63  ;;  %v2428_v36 = vmax.f32 %v2032_v34, 0.0  ;;  %v2034_v37 = vadd.f32 %v2033_v35, %v4205_v18 }
 0x17a   : > { %2601 = vst [vmem:[%s4210_s24] sm:$0xff] %v3024_v25  ;;  %v2448_v28 = vmax.f32 %v1993_v26, 0.0  ;;  %v2035_v38 = vpop.f32.mrf.mxu1 }
 0x17b   : > { %v3025_v39 = vpack.c.bf16 %v2428_v36, %v2427_v33  ;;  %v2449_v40 = vmax.f32 %v2034_v37, 0.0  ;;  %v2036_v41 = vadd.f32 %v2035_v38, %v4205_v18 }
 0x17c   : > { %v3035_v29 = vpack.c.bf16 %v2448_v28, %v2447_v27 }
 0x17d   : > { %2602 = vst [vmem:[%s4210_s24 + $0x8] sm:$0xff] %v3025_v39  ;;  %v2450_v42 = vmax.f32 %v2036_v41, 0.0 }
 0x17e   : > { %2612 = vst [vmem:[%s4210_s24 + $0x58] sm:$0xff] %v3035_v29 }
 0x17f   : > { %v3036_v43 = vpack.c.bf16 %v2450_v42, %v2449_v40 }
 0x181   : > { %2613 = vst [vmem:[%s4210_s24 + $0x60] sm:$0xff] %v3036_v43 }
 0x199   : > { %v2072_v44 = vpop.f32.mrf.mxu0 }
 0x19a   : > { %v2073_v45 = vadd.f32 %v2072_v44, %v4196_v10 }
 0x19b   : > { %v2074_v46 = vpop.f32.mrf.mxu0 }
 0x19c   : > { %v2429_v47 = vmax.f32 %v2073_v45, 0.0  ;;  %v2075_v17 = vadd.f32 %v2074_v46, %v4196_v10  ;;  %v2115_v57 = vpop.f32.mrf.mxu1 }
 0x19d   : > { %v2076_v48 = vpop.f32.mrf.mxu0  ;;  %v2116_v58 = vadd.f32 %v2115_v57, %v4196_v10 }
 0x19e   : > { %v2430_v49 = vmax.f32 %v2075_v17, 0.0  ;;  %v2077_v50 = vadd.f32 %v2076_v48, %v4205_v18  ;;  %v2117_v60 = vpop.f32.mrf.mxu1 }
 0x19f   : > { %v2078_v51 = vpop.f32.mrf.mxu0  ;;  %v2431_v59 = vmax.f32 %v2116_v58, 0.0  ;;  %v2118_v61 = vadd.f32 %v2117_v60, %v4196_v10 }
 0x1a0   : > { %v3026_v52 = vpack.c.bf16 %v2430_v49, %v2429_v47  ;;  %v2079_v53 = vadd.f32 %v2078_v51, %v4205_v18  ;;  %v2451_v54 = vmax.f32 %v2077_v50, 0.0  ;;  %v2119_v62 = vpop.f32.mrf.mxu1 }
 0x1a1   : > { %v2432_v63 = vmax.f32 %v2118_v61, 0.0  ;;  %v2120_v0 = vadd.f32 %v2119_v62, %v4205_v18 }
 0x1a2   : > { %2603 = vst [vmem:[%s4210_s24 + $0x10] sm:$0xff] %v3026_v52  ;;  %v2452_v55 = vmax.f32 %v2079_v53, 0.0  ;;  %v2121_v1 = vpop.f32.mrf.mxu1 }
 0x1a3   : > { %v3027_v2 = vpack.c.bf16 %v2432_v63, %v2431_v59  ;;  %v2453_v3 = vmax.f32 %v2120_v0, 0.0  ;;  %v2122_v4 = vadd.f32 %v2121_v1, %v4205_v18 }
 0x1a4   : > { %v3037_v56 = vpack.c.bf16 %v2452_v55, %v2451_v54 }
 0x1a5   : > { %2604 = vst [vmem:[%s4210_s24 + $0x18] sm:$0xff] %v3027_v2  ;;  %v2454_v5 = vmax.f32 %v2122_v4, 0.0 }
 0x1a6   : > { %2614 = vst [vmem:[%s4210_s24 + $0x68] sm:$0xff] %v3037_v56 }
 0x1a7   : > { %v3038_v6 = vpack.c.bf16 %v2454_v5, %v2453_v3 }
 0x1a9   : > { %2615 = vst [vmem:[%s4210_s24 + $0x70] sm:$0xff] %v3038_v6 }
 0x1c1   : > { %v2158_v7 = vpop.f32.mrf.mxu0 }
 0x1c2   : > { %v2159_v8 = vadd.f32 %v2158_v7, %v4196_v10 }
 0x1c3   : > { %v2160_v9 = vpop.f32.mrf.mxu0 }
 0x1c4   : > { %v2433_v11 = vmax.f32 %v2159_v8, 0.0  ;;  %v2161_v12 = vadd.f32 %v2160_v9, %v4196_v10  ;;  %v2201_v24 = vpop.f32.mrf.mxu1 }
 0x1c5   : > { %v2162_v13 = vpop.f32.mrf.mxu0  ;;  %v2202_v25 = vadd.f32 %v2201_v24, %v4196_v10 }
 0x1c6   : > { %v2434_v14 = vmax.f32 %v2161_v12, 0.0  ;;  %v2163_v15 = vadd.f32 %v2162_v13, %v4205_v18  ;;  %v2203_v26 = vpop.f32.mrf.mxu1 }
 0x1c7   : > { %v2164_v16 = vpop.f32.mrf.mxu0  ;;  %v2435_v27 = vmax.f32 %v2202_v25, 0.0  ;;  %v2204_v28 = vadd.f32 %v2203_v26, %v4196_v10 }
 0x1c8   : > { %v3028_v19 = vpack.c.bf16 %v2434_v14, %v2433_v11  ;;  %v2165_v20 = vadd.f32 %v2164_v16, %v4205_v18  ;;  %v2455_v21 = vmax.f32 %v2163_v15, 0.0  ;;  %v2205_v29 = vpop.f32.mrf.mxu1 }
 0x1c9   : > { %v2436_v30 = vmax.f32 %v2204_v28, 0.0  ;;  %v2206_v31 = vadd.f32 %v2205_v29, %v4205_v18 }
 0x1ca   : > { %2605 = vst [vmem:[%s4210_s24 + $0x20] sm:$0xff] %v3028_v19  ;;  %v2456_v22 = vmax.f32 %v2165_v20, 0.0  ;;  %v2207_v32 = vpop.f32.mrf.mxu1 }
 0x1cb   : > { %v3029_v33 = vpack.c.bf16 %v2436_v30, %v2435_v27  ;;  %v2457_v34 = vmax.f32 %v2206_v31, 0.0  ;;  %v2208_v35 = vadd.f32 %v2207_v32, %v4205_v18 }
 0x1cc   : > { %v3039_v23 = vpack.c.bf16 %v2456_v22, %v2455_v21 }
 0x1cd   : > { %2606 = vst [vmem:[%s4210_s24 + $0x28] sm:$0xff] %v3029_v33  ;;  %v2458_v36 = vmax.f32 %v2208_v35, 0.0 }
 0x1ce   : > { %2616 = vst [vmem:[%s4210_s24 + $0x78] sm:$0xff] %v3039_v23 }
 0x1cf   : > { %v3040_v37 = vpack.c.bf16 %v2458_v36, %v2457_v34 }
 0x1d1   : > { %2617 = vst [vmem:[%s4210_s24 + $0x80] sm:$0xff] %v3040_v37 }
 0x1e9   : > { %v2244_v38 = vpop.f32.mrf.mxu0 }
 0x1ea   : > { %v2245_v39 = vadd.f32 %v2244_v38, %v4196_v10 }
 0x1eb   : > { %v2246_v40 = vpop.f32.mrf.mxu0 }
 0x1ec   : > { %v2437_v41 = vmax.f32 %v2245_v39, 0.0  ;;  %v2247_v42 = vadd.f32 %v2246_v40, %v4196_v10  ;;  %v2287_v51 = vpop.f32.mrf.mxu1 }
 0x1ed   : > { %v2248_v43 = vpop.f32.mrf.mxu0  ;;  %v2288_v52 = vadd.f32 %v2287_v51, %v4196_v10 }
 0x1ee   : > { %v2438_v44 = vmax.f32 %v2247_v42, 0.0  ;;  %v2249_v45 = vadd.f32 %v2248_v43, %v4205_v18  ;;  %v2289_v53 = vpop.f32.mrf.mxu1 }
 0x1ef   : > { %v2250_v46 = vpop.f32.mrf.mxu0  ;;  %v2439_v54 = vmax.f32 %v2288_v52, 0.0  ;;  %v2290_v55 = vadd.f32 %v2289_v53, %v4196_v10 }
 0x1f0   : > { %v3030_v47 = vpack.c.bf16 %v2438_v44, %v2437_v41  ;;  %v2251_v17 = vadd.f32 %v2250_v46, %v4205_v18  ;;  %v2459_v48 = vmax.f32 %v2249_v45, 0.0  ;;  %v2291_v56 = vpop.f32.mrf.mxu1  ;;  %v2649_v46 = vld [vmem:[%s4210_s24 + $0x10] sm:$0xff] (%p3475_p5) }
 0x1f1   : > { %v2440_v57 = vmax.f32 %v2290_v55, 0.0  ;;  %v2292_v58 = vadd.f32 %v2291_v56, %v4205_v18  ;;  %2650 = vst [vmem:[%s4287_s25 + $0x10] sm:$0xff] (%p3475_p5), %v2649_v46  ;;  %v2669_v55 = vld [vmem:[%s4210_s24 + $0x60] sm:$0xff] (%p3475_p5)  ;;  %v2671_v56 = vld [vmem:[%s4210_s24 + $0x68] sm:$0xff] (%p3475_p5) }
 0x1f2   : > { %2607 = vst [vmem:[%s4210_s24 + $0x30] sm:$0xff] %v3030_v47  ;;  %v2460_v49 = vmax.f32 %v2251_v17, 0.0  ;;  %v2293_v60 = vpop.f32.mrf.mxu1  ;;  %v2651_v47 = vld [vmem:[%s4210_s24 + $0x18] sm:$0xff] (%p3475_p5)  ;;  %v2653_v17 = vld [vmem:[%s4210_s24 + $0x20] sm:$0xff] (%p3475_p5)  ;;  %2670 = vst [vmem:[%s4287_s25 + $0x2c8] sm:$0xff] (%p3475_p5), %v2669_v55 }
 0x1f3   : > { %v3031_v59 = vpack.c.bf16 %v2440_v57, %v2439_v54  ;;  %v2461_v61 = vmax.f32 %v2292_v58, 0.0  ;;  %v2294_v62 = vadd.f32 %v2293_v60, %v4205_v18  ;;  %2652 = vst [vmem:[%s4287_s25 + $0x18] sm:$0xff] (%p3475_p5), %v2651_v47  ;;  %2654 = vst [vmem:[%s4287_s25 + $0x20] sm:$0xff] (%p3475_p5), %v2653_v17  ;;  %v2667_v54 = vld [vmem:[%s4210_s24 + $0x58] sm:$0xff] (%p3475_p5)  ;;  %v2673_v57 = vld [vmem:[%s4210_s24 + $0x70] sm:$0xff] (%p3475_p5) }
 0x1f4   : > { %v3041_v50 = vpack.c.bf16 %v2460_v49, %v2459_v48  ;;  %v2655_v48 = vld [vmem:[%s4210_s24 + $0x28] sm:$0xff] (%p3475_p5)  ;;  %2668 = vst [vmem:[%s4287_s25 + $0x2c0] sm:$0xff] (%p3475_p5), %v2667_v54  ;;  %2672 = vst [vmem:[%s4287_s25 + $0x2d0] sm:$0xff] (%p3475_p5), %v2671_v56  ;;  %v2675_v58 = vld [vmem:[%s4210_s24 + $0x78] sm:$0xff] (%p3475_p5) }
 0x1f5   : > { %2608 = vst [vmem:[%s4210_s24 + $0x38] sm:$0xff] %v3031_v59  ;;  %v2462_v63 = vmax.f32 %v2294_v62, 0.0  ;;  %2656 = vst [vmem:[%s4287_s25 + $0x28] sm:$0xff] (%p3475_p5), %v2655_v48  ;;  %v2677_v60 = vld [vmem:[%s4210_s24 + $0x80] sm:$0xff] (%p3475_p5) }
 0x1f6   : > { %2618 = vst [vmem:[%s4210_s24 + $0x88] sm:$0xff] %v3041_v50  ;;  %2674 = vst [vmem:[%s4287_s25 + $0x2d8] sm:$0xff] (%p3475_p5), %v2673_v57 }
 0x1f7   : > { %v3042_v0 = vpack.c.bf16 %v2462_v63, %v2461_v61  ;;  %2676 = vst [vmem:[%s4287_s25 + $0x2e0] sm:$0xff] (%p3475_p5), %v2675_v58  ;;  %2678 = vst [vmem:[%s4287_s25 + $0x2e8] sm:$0xff] (%p3475_p5), %v2677_v60 }
 0x1f9   : > { %2619 = vst [vmem:[%s4210_s24 + $0x90] sm:$0xff] %v3042_v0  ;;  %v2657_v49 = vld [vmem:[%s4210_s24 + $0x30] sm:$0xff] (%p3475_p5) }
 0x1fa   : > { %2658 = vst [vmem:[%s4287_s25 + $0x30] sm:$0xff] (%p3475_p5), %v2657_v49 }
 0x1fc   : > { %v2659_v50 = vld [vmem:[%s4210_s24 + $0x38] sm:$0xff] (%p3475_p5) }
 0x1fd   : > { %2660 = vst [vmem:[%s4287_s25 + $0x38] sm:$0xff] (%p3475_p5), %v2659_v50  ;;  %v2679_v59 = vld [vmem:[%s4210_s24 + $0x88] sm:$0xff] (%p3475_p5) }
 0x1fe   : > { %2680 = vst [vmem:[%s4287_s25 + $0x2f0] sm:$0xff] (%p3475_p5), %v2679_v59 }
 0x200   : > { %v2681_v61 = vld [vmem:[%s4210_s24 + $0x90] sm:$0xff] (%p3475_p5) }
 0x201   : > { %2682 = vst [vmem:[%s4287_s25 + $0x2f8] sm:$0xff] (%p3475_p5), %v2681_v61 }
 0x211   : > { %v2330_v1 = vpop.f32.mrf.mxu0 }
 0x212   : > { %v2331_v2 = vadd.f32 %v2330_v1, %v4196_v10 }
 0x213   : > { %v2332_v3 = vpop.f32.mrf.mxu0 }
 0x214   : > { %v2441_v4 = vmax.f32 %v2331_v2, 0.0  ;;  %v2333_v5 = vadd.f32 %v2332_v3, %v4196_v10  ;;  %v2373_v16 = vpop.f32.mrf.mxu1 }
 0x215   : > { %v2334_v6 = vpop.f32.mrf.mxu0  ;;  %v2374_v19 = vadd.f32 %v2373_v16, %v4196_v10 }
 0x216   : > { %v2442_v7 = vmax.f32 %v2333_v5, 0.0  ;;  %v2335_v8 = vadd.f32 %v2334_v6, %v4205_v18  ;;  %v2375_v20 = vpop.f32.mrf.mxu1 }
 0x217   : > { %v2336_v9 = vpop.f32.mrf.mxu0  ;;  %v2443_v21 = vmax.f32 %v2374_v19, 0.0  ;;  %v2376_v22 = vadd.f32 %v2375_v20, %v4196_v10 }
 0x218   : > { %v3032_v11 = vpack.c.bf16 %v2442_v7, %v2441_v4  ;;  %v2337_v12 = vadd.f32 %v2336_v9, %v4205_v18  ;;  %v2463_v13 = vmax.f32 %v2335_v8, 0.0  ;;  %v2377_v23 = vpop.f32.mrf.mxu1 }
 0x219   : > { %v2444_v24 = vmax.f32 %v2376_v22, 0.0  ;;  %v2378_v25 = vadd.f32 %v2377_v23, %v4205_v18 }
 0x21a   : > { %2609 = vst [vmem:[%s4210_s24 + $0x40] sm:$0xff] %v3032_v11  ;;  %v2464_v14 = vmax.f32 %v2337_v12, 0.0  ;;  %v2379_v26 = vpop.f32.mrf.mxu1 }
 0x21b   : > { %v3033_v27 = vpack.c.bf16 %v2444_v24, %v2443_v21  ;;  %v2465_v28 = vmax.f32 %v2378_v25, 0.0  ;;  %v2380_v29 = vadd.f32 %v2379_v26, %v4205_v18 }
 0x21c   : > { %v3043_v15 = vpack.c.bf16 %v2464_v14, %v2463_v13 }
 0x21d   : > { %2610 = vst [vmem:[%s4210_s24 + $0x48] sm:$0xff] %v3033_v27  ;;  %v2466_v30 = vmax.f32 %v2380_v29, 0.0 }
 0x21e   : > { %2620 = vst [vmem:[%s4210_s24 + $0x98] sm:$0xff] %v3043_v15 }
 0x21f   : > { %v3044_v31 = vpack.c.bf16 %v2466_v30, %v2465_v28 }
 0x221   : > { %2621 = vst [vmem:[%s4210_s24 + $0xa0] sm:$0xff] %v3044_v31  ;;  %v2661_v51 = vld [vmem:[%s4210_s24 + $0x40] sm:$0xff] (%p3475_p5) }
 0x222   : > { %2662 = vst [vmem:[%s4287_s25 + $0x40] sm:$0xff] (%p3475_p5), %v2661_v51 }
 0x224   : > { %v2663_v52 = vld [vmem:[%s4210_s24 + $0x48] sm:$0xff] (%p3475_p5) }
 0x225   : > { %2664 = vst [vmem:[%s4287_s25 + $0x48] sm:$0xff] (%p3475_p5), %v2663_v52  ;;  %v2683_v62 = vld [vmem:[%s4210_s24 + $0x98] sm:$0xff] (%p3475_p5) }
 0x226   : > { %2684 = vst [vmem:[%s4287_s25 + $0x300] sm:$0xff] (%p3475_p5), %v2683_v62 }
 0x228   : > { %v2685_v63 = vld [vmem:[%s4210_s24 + $0xa0] sm:$0xff] (%p3475_p5) }
 0x229   : > { %2686 = vst [vmem:[%s4287_s25 + $0x308] sm:$0xff] (%p3475_p5), %v2685_v63 }
 0x239   : > { %v2416_v32 = vpop.f32.mrf.mxu0 }
 0x23a   : > { %v2417_v33 = vadd.f32 %v2416_v32, %v4196_v10 }
 0x23b   : > { %v2418_v34 = vpop.f32.mrf.mxu0 }
 0x23c   : > { %v2419_v35 = vadd.f32 %v2418_v34, %v4196_v10  ;;  %v2445_v37 = vmax.f32 %v2417_v33, 0.0  ;;  %v2645_v10 = vld [vmem:[%s4210_s24] sm:$0xff] (%p3475_p5) }
 0x23d   : > { %v2420_v36 = vpop.f32.mrf.mxu0  ;;  %2646 = vst [vmem:[%s4287_s25] sm:$0xff] (%p3475_p5), %v2645_v10 }
 0x23e   : > { %v2446_v38 = vmax.f32 %v2419_v35, 0.0  ;;  %v2421_v39 = vadd.f32 %v2420_v36, %v4205_v18 }
 0x23f   : > { %v2422_v40 = vpop.f32.mrf.mxu0 }
 0x240   : > { %v3034_v41 = vpack.c.bf16 %v2446_v38, %v2445_v37  ;;  %v2423_v42 = vadd.f32 %v2422_v40, %v4205_v18  ;;  %v2467_v43 = vmax.f32 %v2421_v39, 0.0  ;;  %v2647_v18 = vld [vmem:[%s4210_s24 + $0x8] sm:$0xff] (%p3475_p5) }
 0x241   : > { %2648 = vst [vmem:[%s4287_s25 + $0x8] sm:$0xff] (%p3475_p5), %v2647_v18 }
 0x242   : > { %2611 = vst [vmem:[%s4210_s24 + $0x50] sm:$0xff] %v3034_v41  ;;  %v2468_v44 = vmax.f32 %v2423_v42, 0.0  ;;  %2629 = sbr.rel (!%p3475_p5) target bundleno = 591 (0x24f), region = 59 }
 0x244   : > { %v3045_v45 = vpack.c.bf16 %v2468_v44, %v2467_v43 }
 0x246   : > { %2622 = vst [vmem:[%s4210_s24 + $0xa8] sm:$0xff] %v3045_v45 }
 0x249   : > { %v2665_v53 = vld [vmem:[%s4210_s24 + $0x50] sm:$0xff] }
 0x24a   : > { %2666 = vst [vmem:[%s4287_s25 + $0x50] sm:$0xff] %v2665_v53 }
 0x24d   : > { %v2687_v0 = vld [vmem:[%s4210_s24 + $0xa8] sm:$0xff] }
 0x24e   : > { %2688 = vst [vmem:[%s4287_s25 + $0x310] sm:$0xff] %v2687_v0 }
 0x24f PF: > { %p10_p10 = scmp.ge.s32.totalorder %s3462_s16, 10   ;;  %s4342_s12 = smov %s3418_s13 }
 0x250   : > { %s4343_s13 = smov %s3473_s19  ;;  %s4344_s14 = smov %s3462_s16 }
 0x251   :  { %12 = sbr.rel (!%p10_p10) target bundleno = 2 (0x2), region = 113 }

// kernel: net_forward.6
= control target key start
LH: loop header
LB: loop body
LE: loop exit
PB: predicated region body
PF: predicated region fallthrough
CT: control target
= control target key end

     0   :  { %s5617_s9 = smov 0   ;;  %s5619_s10 = smov 0   ;;  %s6110_s0 = inlined_call_operand.vmem [shape: bf16[2,45056], index: 0, kind: input, shape index: {}]   ;;  %s6111_s1 = inlined_call_operand.vmem [shape: bf16[45056,120], index: 1, kind: input, shape index: {}]   ;;  %s6112_s2 = inlined_call_operand.vmem [shape: f32[2,2,120], index: 2, kind: output, shape index: {}]  }
   0x1   :  { %s5621_s11 = smov 0   ;;  %s5623_s12 = smov 0  }
   0x2   :  { %s5625_s13 = smov 0  }
   0x3 LB: > { %s21_s14 = sadd.s32 1, %s5590_s11  ;;  %s24_s15 = sadd.s32 1, %s5594_s12  ;;  %s5598_s13 = sphi %s5625_s13, %s12_s13   ;;  %s5594_s12 = sphi %s5623_s12, %s6116_s12   ;;  %s5590_s11 = sphi %s5621_s11, %s6115_s11   ;;  %s5586_s10 = sphi %s5619_s10, %s6114_s10   ;;  %s5582_s9 = sphi %s5617_s9, %s6113_s9  }
   0x4   : > { %p22_p0 = scmp.ge.s32.totalorder %s21_s14, 4  ;;  %p4316_p1 = scmp.ge.s32.totalorder %s5598_s13, 1 }
   0x5   : > { %p151_p2 = scmp.lt.s32.totalorder %s5598_s13, 9 }
   0x6   : > { %s6118_s14 = smov (%p22_p0, %s21_s14), 0  ;;  %s6120_s15 = smov (!%p22_p0, %s24_s15), %s5594_s12 }
   0x7   : > { %p152_p3 = pnand %p4316_p1, %p151_p2  ;;  %p26_p4 = scmp.ge.s32.totalorder %s6120_s15, 2 }
   0x8   : > { %s4317_s16 = sshll.u32 (!%p152_p3), %s5586_s10, 2  ;;  %p199_p7 = scmp.lt.s32.totalorder (!%p152_p3), %s5586_s10, 1 }
   0x9   : > { %s6122_s15 = smov (%p26_p4, %s6120_s15), 0  ;;  %155 = sbr.rel (%p152_p3) target bundleno = 583 (0x247), region = 28 }
   0xa   : > { %s181_s17 = sadd.s32 (!%p152_p3), %s5582_s9, %s4317_s16  ;;  %p4321_p8 = scmp.ne.s32.totalorder (!%p152_p3), %s5582_s9, 0 }
   0xb   : > { %s182_s18 = smul.u32 (!%p152_p3), 44, %s181_s17 }
   0xc   : > { %s191_s19 = smul.u32 (!%p152_p3), 704, %s181_s17 }
   0xd   : > { %p183_p5 = scmp.lt.s32.totalorder (!%p152_p3), %s182_s18, 351 }
   0xe   : > { %p192_p6 = scmp.lt.s32.totalorder %s191_s19, 5631  ;;  %s6128_s10 = smov (!%p199_p7, %s5586_s10), 1 }
   0xf   : > { %s6124_s18 = smov (!%p183_p5, %s182_s18), 351  ;;  %s4320_s27 = sshll.u32 %s6128_s10, 1 }
  0x10   : > { %s6126_s19 = smov (!%p192_p6, %s191_s19), 5631  ;;  %s5653_s22 = scalar_lea.vmem %s6110_s0, %s6124_s18 }
  0x11   : > { %s4319_s23 = sshll.u32 %s6126_s19, 2  ;;  %s5663_s30 = scalar_lea.vmem %s6112_s2, %s4320_s27 }
  0x12   : > { %s5658_s26 = scalar_lea.vmem %s6111_s1, %s4319_s23  ;;  %207 = sbr.rel (%p4321_p8) target bundleno = 25 (0x19), region = 32 }
  0x17   : > { %vm208_vm0 = vcmask 975872   ;;  %v5600_v0 = vmov 0.0  }
  0x18   : > { %209 = vst.msk [vmem:[%s5663_s30] sm:$0x3] %vm208_vm0, %v5600_v0 }
  0x19 PF: > { %v5203_v1 = vld [vmem:[%s5658_s26 + $0x78] sm:$0xff]   ;;  %v5207_v5 = vld [vmem:[%s5658_s26 + $0x70] sm:$0xff]   ;;  %v5211_v9 = vld [vmem:[%s5658_s26 + $0x68] sm:$0xff]   ;;  %v931_v29 = vlaneseq  ;;  %v5601_v37 = vmov 1966171168   ;;  %vm4233_vm1 = vcmask 975872  }
  0x1a   : > { %v5204_v2 = vld [vmem:[%s5658_s26 + $0xf8] sm:$0xff]   ;;  %4677 = vmatprep.subr.bf16.mxu0 %v5203_v1  ;;  %v5208_v6 = vld [vmem:[%s5658_s26 + $0xf0] sm:$0xff]   ;;  %v5212_v10 = vld [vmem:[%s5658_s26 + $0xe8] sm:$0xff]   ;;  %v929_v38 = vunpack.c.l.s4 %v5601_v37 }
  0x1b   : > { %v5205_v3 = vld [vmem:[%s5658_s26 + $0x38] sm:$0xff]   ;;  %4699 = vmatprep.subr.bf16.mxu1 %v5204_v2  ;;  %v5209_v7 = vld [vmem:[%s5658_s26 + $0x30] sm:$0xff]   ;;  %v5213_v11 = vld [vmem:[%s5658_s26 + $0x28] sm:$0xff]   ;;  %v932_v34 = vshrl.u32 %v931_v29, 7 }
  0x1c   : > { %v5206_v4 = vld [vmem:[%s5658_s26 + $0xb8] sm:$0xff]   ;;  %4678 = vmatpush3.bf16.msra.mxu0 %v5205_v3  ;;  %v5210_v8 = vld [vmem:[%s5658_s26 + $0xb0] sm:$0xff]   ;;  %v5214_v12 = vld [vmem:[%s5658_s26 + $0xa8] sm:$0xff]   ;;  %v930_v41 = vunpack.c.0.s8 %v929_v38 }
  0x1d   : > { %4700 = vmatpush3.bf16.msra.mxu1 %v5206_v4  ;;  %4679 = vmatprep.subr.bf16.mxu0 %v5207_v5  ;;  %v5215_v13 = vld [vmem:[%s5658_s26 + $0x60] sm:$0xff]   ;;  %v5219_v17 = vld [vmem:[%s5658_s26 + $0x58] sm:$0xff]   ;;  %v5223_v21 = vld [vmem:[%s5658_s26 + $0x50] sm:$0xff]  }
  0x1e   : > { %4701 = vmatprep.subr.bf16.mxu1 %v5208_v6  ;;  %v5216_v14 = vld [vmem:[%s5658_s26 + $0xe0] sm:$0xff]   ;;  %v5220_v18 = vld [vmem:[%s5658_s26 + $0xd8] sm:$0xff]   ;;  %v5224_v22 = vld [vmem:[%s5658_s26 + $0xd0] sm:$0xff]   ;;  %v5702_v42 = vsub.s32 %v930_v41, %v932_v34 }
  0x1f   : > { %v5217_v15 = vld [vmem:[%s5658_s26 + $0x20] sm:$0xff]   ;;  %v5221_v19 = vld [vmem:[%s5658_s26 + $0x18] sm:$0xff]   ;;  %v5225_v23 = vld [vmem:[%s5658_s26 + $0x10] sm:$0xff]  }
  0x20   : > { %4680 = vmatpush3.bf16.msra.mxu0 %v5209_v7  ;;  %v5218_v16 = vld [vmem:[%s5658_s26 + $0xa0] sm:$0xff]   ;;  %v5222_v20 = vld [vmem:[%s5658_s26 + $0x98] sm:$0xff]   ;;  %v5226_v24 = vld [vmem:[%s5658_s26 + $0x90] sm:$0xff]  }
  0x21   : > { %4702 = vmatpush3.bf16.msra.mxu1 %v5210_v8  ;;  %4681 = vmatprep.subr.bf16.mxu0 %v5211_v9  ;;  %v5227_v25 = vld [vmem:[%s5658_s26 + $0x48] sm:$0xff]   ;;  %v5231_v30 = vld [vmem:[%s5658_s26 + $0x40] sm:$0xff]   ;;  %v5236_v36 = vld [vmem:[%s5658_s26 + $0x178] sm:$0xff]  }
  0x22   : > { %4703 = vmatprep.subr.bf16.mxu1 %v5212_v10  ;;  %v5228_v26 = vld [vmem:[%s5658_s26 + $0xc8] sm:$0xff]   ;;  %v5232_v31 = vld [vmem:[%s5658_s26 + $0xc0] sm:$0xff]   ;;  %v5237_v39 = vld [vmem:[%s5658_s26 + $0x1f8] sm:$0xff]  }
  0x23   : > { %v5229_v27 = vld [vmem:[%s5658_s26 + $0x8] sm:$0xff]   ;;  %v5233_v32 = vld [vmem:[%s5658_s26] sm:$0xff]   ;;  %v5238_v48 = vld [vmem:[%s5658_s26 + $0x138] sm:$0xff]  }
  0x24   : > { %4682 = vmatpush3.bf16.msra.mxu0 %v5213_v11  ;;  %v5230_v28 = vld [vmem:[%s5658_s26 + $0x88] sm:$0xff]   ;;  %v5234_v33 = vld [vmem:[%s5658_s26 + $0x80] sm:$0xff]   ;;  %v5239_v50 = vld [vmem:[%s5658_s26 + $0x1b8] sm:$0xff]  }
  0x25   : > { %4704 = vmatpush3.bf16.msra.mxu1 %v5214_v12  ;;  %4683 = vmatprep.subr.bf16.mxu0 %v5215_v13  ;;  %v211_v35 = vld [vmem:[%s5653_s22] sm:$0xff]  ;;  %v5240_v53 = vld [vmem:[%s5658_s26 + $0x170] sm:$0xff]   ;;  %v5244_v59 = vld [vmem:[%s5658_s26 + $0x168] sm:$0xff]  }
  0x26   : > { %4705 = vmatprep.subr.bf16.mxu1 %v5216_v14  ;;  %v927_v40 = vcombine.high %v211_v35, %v211_v35  ;;  %v934_v43 = vrot.slane %v211_v35, %v5702_v42  ;;  %v5241_v55 = vld [vmem:[%s5658_s26 + $0x1f0] sm:$0xff]   ;;  %v5245_v60 = vld [vmem:[%s5658_s26 + $0x1e8] sm:$0xff]   ;;  %v5248_v63 = vld [vmem:[%s5658_s26 + $0x160] sm:$0xff]  }
  0x27   : > { %v5242_v56 = vld [vmem:[%s5658_s26 + $0x130] sm:$0xff]   ;;  %v5246_v61 = vld [vmem:[%s5658_s26 + $0x128] sm:$0xff]   ;;  %v5249_v0 = vld [vmem:[%s5658_s26 + $0x1e0] sm:$0xff]  }
  0x28   : > { %4684 = vmatpush3.bf16.msra.mxu0 %v5217_v15  ;;  %v5706_v44 = vrot.slane %v927_v40, %v5702_v42  ;;  %v942_v45 = vcombine.high %v934_v43, %v934_v43  ;;  %v950_v46 = vrot.slane %v934_v43, %v5702_v42  ;;  %v5243_v58 = vld [vmem:[%s5658_s26 + $0x1b0] sm:$0xff]   ;;  %v5247_v62 = vld [vmem:[%s5658_s26 + $0x1a8] sm:$0xff]   ;;  %v5250_v1 = vld [vmem:[%s5658_s26 + $0x120] sm:$0xff]  }
  0x29   : > { %4706 = vmatpush3.bf16.msra.mxu1 %v5218_v16  ;;  %4685 = vmatprep.subr.bf16.mxu0 %v5219_v17  ;;  %v5251_v2 = vld [vmem:[%s5658_s26 + $0x1a0] sm:$0xff]   ;;  %v5252_v3 = vld [vmem:[%s5658_s26 + $0x158] sm:$0xff]   ;;  %v5256_v7 = vld [vmem:[%s5658_s26 + $0x150] sm:$0xff]  }
  0x2a   : > { %4707 = vmatprep.subr.bf16.mxu1 %v5220_v18  ;;  %v943_v47 = vcombine.high %v5706_v44, %v5706_v44  ;;  %v964_v49 = vrot.slane %v942_v45, %v5702_v42  ;;  %v972_v52 = vcombine.high %v950_v46, %v950_v46  ;;  %v5253_v4 = vld [vmem:[%s5658_s26 + $0x1d8] sm:$0xff]   ;;  %v5257_v8 = vld [vmem:[%s5658_s26 + $0x1d0] sm:$0xff]   ;;  %v5260_v11 = vld [vmem:[%s5658_s26 + $0x148] sm:$0xff]  }
  0x2b   : > { %v5254_v5 = vld [vmem:[%s5658_s26 + $0x118] sm:$0xff]   ;;  %v5258_v9 = vld [vmem:[%s5658_s26 + $0x110] sm:$0xff]   ;;  %v5261_v12 = vld [vmem:[%s5658_s26 + $0x1c8] sm:$0xff]  }
  0x2c   : > { %4686 = vmatpush3.bf16.msra.mxu0 %v5221_v19  ;;  %v971_v51 = vrot.slane %v943_v47, %v5702_v42  ;;  %3384 = vmatprep.mubr.bf16.mxu0 %v964_v49  ;;  %v974_v54 = vcombine.high %v964_v49, %v964_v49  ;;  %v5255_v6 = vld [vmem:[%s5658_s26 + $0x198] sm:$0xff]   ;;  %v5259_v10 = vld [vmem:[%s5658_s26 + $0x190] sm:$0xff]   ;;  %v5262_v13 = vld [vmem:[%s5658_s26 + $0x108] sm:$0xff]   ;;  %v957_v19 = vrot.slane %v5706_v44, %v5702_v42 }
  0x2d   : > { %4708 = vmatpush3.bf16.msra.mxu1 %v5222_v20  ;;  %4687 = vmatprep.subr.bf16.mxu0 %v5223_v21  ;;  %v5263_v14 = vld [vmem:[%s5658_s26 + $0x188] sm:$0xff]   ;;  %v5264_v15 = vld [vmem:[%s5658_s26 + $0x140] sm:$0xff]   ;;  %v5268_v20 = vld [vmem:[%s5658_s26 + $0x278] sm:$0xff]  }
  0x2e   : > { %4709 = vmatprep.subr.bf16.mxu1 %v5224_v22  ;;  %v975_v57 = vcombine.high %v971_v51, %v971_v51  ;;  %3424 = vmatprep.mubr.bf16.mxu1 %v974_v54  ;;  %v5265_v16 = vld [vmem:[%s5658_s26 + $0x1c0] sm:$0xff]   ;;  %v5269_v21 = vld [vmem:[%s5658_s26 + $0x2f8] sm:$0xff]   ;;  %v5276_v29 = vld [vmem:[%s5658_s26 + $0x268] sm:$0xff]  }
  0x2f   : > { %v5266_v17 = vld [vmem:[%s5658_s26 + $0x100] sm:$0xff]   ;;  %v5270_v22 = vld [vmem:[%s5658_s26 + $0x238] sm:$0xff]   ;;  %v5288_v41 = vld [vmem:[%s5658_s26 + $0x250] sm:$0xff]  }
  0x30   : > { %4688 = vmatpush3.bf16.msra.mxu0 %v5225_v23  ;;  %v5267_v18 = vld [vmem:[%s5658_s26 + $0x180] sm:$0xff]   ;;  %v5271_v23 = vld [vmem:[%s5658_s26 + $0x2b8] sm:$0xff]   ;;  %v5289_v43 = vld [vmem:[%s5658_s26 + $0x2d0] sm:$0xff]  }
  0x31   : > { %4710 = vmatpush3.bf16.msra.mxu1 %v5226_v24  ;;  %4689 = vmatprep.subr.bf16.mxu0 %v5227_v25  ;;  %v973_v24 = vcombine.high %v957_v19, %v957_v19  ;;  %v5272_v25 = vld [vmem:[%s5658_s26 + $0x270] sm:$0xff]   ;;  %v5281_v34 = vld [vmem:[%s5658_s26 + $0x2e0] sm:$0xff]   ;;  %v5284_v37 = vld [vmem:[%s5658_s26 + $0x258] sm:$0xff]  }
  0x32   : > { %4711 = vmatprep.subr.bf16.mxu1 %v5228_v26  ;;  %v5273_v26 = vld [vmem:[%s5658_s26 + $0x2f0] sm:$0xff]   ;;  %v5282_v35 = vld [vmem:[%s5658_s26 + $0x220] sm:$0xff]   ;;  %v5285_v38 = vld [vmem:[%s5658_s26 + $0x2d8] sm:$0xff]  }
  0x33   : > { %v5287_v40 = vld [vmem:[%s5658_s26 + $0x298] sm:$0xff]   ;;  %v5290_v44 = vld [vmem:[%s5658_s26 + $0x210] sm:$0xff]   ;;  %v212_v47 = vld [vmem:[%s5653_s22 + $0x8] sm:$0xff] }
  0x34   : > { %4690 = vmatpush3.bf16.msra.mxu0 %v5229_v27  ;;  %v5274_v27 = vld [vmem:[%s5658_s26 + $0x230] sm:$0xff]   ;;  %v983_v49 = vrot.slane %v212_v47, %v5702_v42 }
  0x35   : > { %4712 = vmatpush3.bf16.msra.mxu1 %v5230_v28  ;;  %4691 = vmatprep.subr.bf16.mxu0 %v5231_v30  ;;  %v5275_v28 = vld [vmem:[%s5658_s26 + $0x2b0] sm:$0xff]   ;;  %v5277_v30 = vld [vmem:[%s5658_s26 + $0x2e8] sm:$0xff]  }
  0x36   : > { %4713 = vmatprep.subr.bf16.mxu1 %v5232_v31  ;;  %v5278_v31 = vld [vmem:[%s5658_s26 + $0x228] sm:$0xff]   ;;  %v5291_v45 = vld [vmem:[%s5658_s26 + $0x290] sm:$0xff]  }
  0x38   : > { %4692 = vmatpush3.bf16.msra.mxu0 %v5233_v32  ;;  %v5279_v32 = vld [vmem:[%s5658_s26 + $0x2a8] sm:$0xff]  }
  0x39   : > { %4714 = vmatpush3.bf16.msra.mxu1 %v5234_v33  ;;  %4721 = vmatprep.subr.bf16.mxu0 %v5236_v36  ;;  %v5280_v33 = vld [vmem:[%s5658_s26 + $0x260] sm:$0xff]  }
  0x3a   : > { %4743 = vmatprep.subr.bf16.mxu1 %v5237_v39  ;;  %v5283_v36 = vld [vmem:[%s5658_s26 + $0x2a0] sm:$0xff]   ;;  %v5286_v39 = vld [vmem:[%s5658_s26 + $0x218] sm:$0xff]  }
  0x3b   : > { %3385 = vmatmul.mubr.bf16.vlgmr.msra.gmra.mxu0 %v950_v46  ;;  %v5292_v46 = vld [vmem:[%s5658_s26 + $0x248] sm:$0xff]  }
  0x3c   : > { %4722 = vmatpush3.bf16.msra.mxu0 %v5238_v48  ;;  %3425 = vmatmul.mubr.bf16.vlgmr.msra.gmra.mxu1 %v972_v52  ;;  %v5293_v48 = vld [vmem:[%s5658_s26 + $0x2c8] sm:$0xff]  }
  0x3d   : > { %4723 = vmatprep.subr.bf16.mxu0 %v5240_v53  ;;  %4744 = vmatpush3.bf16.msra.mxu1 %v5239_v50  ;;  %v976_v50 = vcombine.high %v212_v47, %v212_v47  ;;  %v5295_v52 = vld [vmem:[%s5658_s26 + $0x288] sm:$0xff]   ;;  %v991_v53 = vcombine.high %v983_v49, %v983_v49 }
  0x3e   : > { %3464 = vmatprep.mubr.bf16.mxu0 %v971_v51  ;;  %4745 = vmatprep.subr.bf16.mxu1 %v5241_v55  ;;  %v5294_v51 = vld [vmem:[%s5658_s26 + $0x208] sm:$0xff]   ;;  %v5296_v55 = vld [vmem:[%s5658_s26 + $0x240] sm:$0xff]  }
  0x3f   : > { %3504 = vmatprep.mubr.bf16.mxu1 %v975_v57  ;;  %v5776_v54 = vrot.slane %v976_v50, %v5702_v42  ;;  %v1013_v57 = vrot.slane %v991_v53, %v5702_v42  ;;  %v5343_v47 = vld [vmem:[%s5658_s26 + $0x428] sm:$0xff]   ;;  %v5346_v50 = vld [vmem:[%s5658_s26 + $0x4e0] sm:$0xff]   ;;  %v5349_v53 = vld [vmem:[%s5658_s26 + $0x458] sm:$0xff]  }
  0x40   : > { %4724 = vmatpush3.bf16.msra.mxu0 %v5242_v56  ;;  %v5297_v56 = vld [vmem:[%s5658_s26 + $0x2c0] sm:$0xff]  }
  0x41   : > { %4725 = vmatprep.subr.bf16.mxu0 %v5244_v59  ;;  %4746 = vmatpush3.bf16.msra.mxu1 %v5243_v58  ;;  %v992_v58 = vcombine.high %v5776_v54, %v5776_v54  ;;  %v5298_v59 = vld [vmem:[%s5658_s26 + $0x200] sm:$0xff]  }
  0x42   : > { %4747 = vmatprep.subr.bf16.mxu1 %v5245_v60  ;;  %v5299_v60 = vld [vmem:[%s5658_s26 + $0x280] sm:$0xff]  }
  0x44   : > { %4726 = vmatpush3.bf16.msra.mxu0 %v5246_v61  ;;  %v1023_v61 = vcombine.high %v1013_v57, %v1013_v57 }
  0x45   : > { %4727 = vmatprep.subr.bf16.mxu0 %v5248_v63  ;;  %4748 = vmatpush3.bf16.msra.mxu1 %v5247_v62  ;;  %v999_v62 = vrot.slane %v983_v49, %v5702_v42  ;;  %v5300_v63 = vld [vmem:[%s5658_s26 + $0x378] sm:$0xff]   ;;  %v5345_v49 = vld [vmem:[%s5658_s26 + $0x460] sm:$0xff]  }
  0x46   : > { %4749 = vmatprep.subr.bf16.mxu1 %v5249_v0  ;;  %v5301_v0 = vld [vmem:[%s5658_s26 + $0x3f8] sm:$0xff]  }
  0x48   : > { %4728 = vmatpush3.bf16.msra.mxu0 %v5250_v1  ;;  %v1020_v1 = vrot.slane %v992_v58, %v5702_v42  ;;  %v5354_v58 = vld [vmem:[%s5658_s26 + $0x4d0] sm:$0xff]  }
  0x49   : > { %4729 = vmatprep.subr.bf16.mxu0 %v5252_v3  ;;  %4750 = vmatpush3.bf16.msra.mxu1 %v5251_v2  ;;  %v5302_v2 = vld [vmem:[%s5658_s26 + $0x338] sm:$0xff]  }
  0x4a   : > { %4751 = vmatprep.subr.bf16.mxu1 %v5253_v4  ;;  %v5303_v3 = vld [vmem:[%s5658_s26 + $0x3b8] sm:$0xff]   ;;  %v1021_v4 = vcombine.high %v999_v62, %v999_v62 }
  0x4c   : > { %4730 = vmatpush3.bf16.msra.mxu0 %v5254_v5  ;;  %v5304_v5 = vld [vmem:[%s5658_s26 + $0x370] sm:$0xff]  }
  0x4d   : > { %4731 = vmatprep.subr.bf16.mxu0 %v5256_v7  ;;  %4752 = vmatpush3.bf16.msra.mxu1 %v5255_v6  ;;  %v5305_v6 = vld [vmem:[%s5658_s26 + $0x3f0] sm:$0xff]   ;;  %v1024_v7 = vcombine.high %v1020_v1, %v1020_v1 }
  0x4e   : > { %4753 = vmatprep.subr.bf16.mxu1 %v5257_v8  ;;  %v5306_v8 = vld [vmem:[%s5658_s26 + $0x330] sm:$0xff]  }
  0x50   : > { %4732 = vmatpush3.bf16.msra.mxu0 %v5258_v9  ;;  %v5307_v9 = vld [vmem:[%s5658_s26 + $0x3b0] sm:$0xff]  }
  0x51   : > { %4733 = vmatprep.subr.bf16.mxu0 %v5260_v11  ;;  %4754 = vmatpush3.bf16.msra.mxu1 %v5259_v10  ;;  %v5308_v10 = vld [vmem:[%s5658_s26 + $0x368] sm:$0xff]  }
  0x52   : > { %4755 = vmatprep.subr.bf16.mxu1 %v5261_v12  ;;  %v5309_v11 = vld [vmem:[%s5658_s26 + $0x3e8] sm:$0xff]  }
  0x53   : > { %v5310_v12 = vld [vmem:[%s5658_s26 + $0x328] sm:$0xff]  }
  0x54   : > { %4734 = vmatpush3.bf16.msra.mxu0 %v5262_v13  ;;  %v5311_v13 = vld [vmem:[%s5658_s26 + $0x3a8] sm:$0xff]  }
  0x55   : > { %4735 = vmatprep.subr.bf16.mxu0 %v5264_v15  ;;  %4756 = vmatpush3.bf16.msra.mxu1 %v5263_v14  ;;  %v5312_v14 = vld [vmem:[%s5658_s26 + $0x360] sm:$0xff]  }
  0x56   : > { %4757 = vmatprep.subr.bf16.mxu1 %v5265_v16  ;;  %v5313_v15 = vld [vmem:[%s5658_s26 + $0x3e0] sm:$0xff]  }
  0x57   : > { %v5314_v16 = vld [vmem:[%s5658_s26 + $0x320] sm:$0xff]  }
  0x58   : > { %4736 = vmatpush3.bf16.msra.mxu0 %v5266_v17  ;;  %v5315_v17 = vld [vmem:[%s5658_s26 + $0x3a0] sm:$0xff]  }
  0x59   : > { %4765 = vmatprep.subr.bf16.mxu0 %v5268_v20  ;;  %4758 = vmatpush3.bf16.msra.mxu1 %v5267_v18  ;;  %v5316_v18 = vld [vmem:[%s5658_s26 + $0x358] sm:$0xff]  }
  0x5a   : > { %4787 = vmatprep.subr.bf16.mxu1 %v5269_v21  ;;  %v5318_v20 = vld [vmem:[%s5658_s26 + $0x318] sm:$0xff]  }
  0x5b   : > { %3465 = vmatmul.mubr.bf16.vlgmr.msra.gmra.mxu0 %v957_v19  ;;  %v5317_v19 = vld [vmem:[%s5658_s26 + $0x3d8] sm:$0xff]  }
  0x5c   : > { %4766 = vmatpush3.bf16.msra.mxu0 %v5270_v22  ;;  %3505 = vmatmul.mubr.bf16.vlgmr.msra.gmra.mxu1 %v973_v24  ;;  %v5319_v21 = vld [vmem:[%s5658_s26 + $0x398] sm:$0xff]   ;;  %v5320_v22 = vld [vmem:[%s5658_s26 + $0x350] sm:$0xff]  }
  0x5d   : > { %4767 = vmatprep.subr.bf16.mxu0 %v5272_v25  ;;  %4788 = vmatpush3.bf16.msra.mxu1 %v5271_v23  ;;  %v5321_v23 = vld [vmem:[%s5658_s26 + $0x3d0] sm:$0xff]  }
  0x5e   : > { %4789 = vmatprep.subr.bf16.mxu1 %v5273_v26  ;;  %3544 = vmatprep.mubr.bf16.mxu0 %v1013_v57  ;;  %v5322_v24 = vld [vmem:[%s5658_s26 + $0x310] sm:$0xff]   ;;  %v5324_v26 = vld [vmem:[%s5658_s26 + $0x348] sm:$0xff]  }
  0x5f   : > { %3584 = vmatprep.mubr.bf16.mxu1 %v1023_v61  ;;  %v5323_v25 = vld [vmem:[%s5658_s26 + $0x390] sm:$0xff]   ;;  %v5357_v61 = vld [vmem:[%s5658_s26 + $0x448] sm:$0xff]  }
  0x60   : > { %4768 = vmatpush3.bf16.msra.mxu0 %v5274_v27  ;;  %v5325_v27 = vld [vmem:[%s5658_s26 + $0x3c8] sm:$0xff]   ;;  %v5353_v57 = vld [vmem:[%s5658_s26 + $0x450] sm:$0xff]  }
  0x61   : > { %4769 = vmatprep.subr.bf16.mxu0 %v5276_v29  ;;  %4790 = vmatpush3.bf16.msra.mxu1 %v5275_v28  ;;  %v5326_v28 = vld [vmem:[%s5658_s26 + $0x308] sm:$0xff]  }
  0x62   : > { %4791 = vmatprep.subr.bf16.mxu1 %v5277_v30  ;;  %v5327_v29 = vld [vmem:[%s5658_s26 + $0x388] sm:$0xff]   ;;  %v5328_v30 = vld [vmem:[%s5658_s26 + $0x340] sm:$0xff]  }
  0x64   : > { %4770 = vmatpush3.bf16.msra.mxu0 %v5278_v31  ;;  %v5329_v31 = vld [vmem:[%s5658_s26 + $0x3c0] sm:$0xff]  }
  0x65   : > { %4771 = vmatprep.subr.bf16.mxu0 %v5280_v33  ;;  %4792 = vmatpush3.bf16.msra.mxu1 %v5279_v32  ;;  %v5330_v32 = vld [vmem:[%s5658_s26 + $0x300] sm:$0xff]  }
  0x66   : > { %4793 = vmatprep.subr.bf16.mxu1 %v5281_v34  ;;  %v5331_v33 = vld [vmem:[%s5658_s26 + $0x380] sm:$0xff]   ;;  %v1006_v34 = vrot.slane %v5776_v54, %v5702_v42  ;;  %v5350_v54 = vld [vmem:[%s5658_s26 + $0x4d8] sm:$0xff]  }
  0x68   : > { %4772 = vmatpush3.bf16.msra.mxu0 %v5282_v35  ;;  %v5333_v35 = vld [vmem:[%s5658_s26 + $0x478] sm:$0xff]  }
  0x69   : > { %4773 = vmatprep.subr.bf16.mxu0 %v5284_v37  ;;  %4794 = vmatpush3.bf16.msra.mxu1 %v5283_v36  ;;  %v5334_v36 = vld [vmem:[%s5658_s26 + $0x4f8] sm:$0xff]  }
  0x6a   : > { %4795 = vmatprep.subr.bf16.mxu1 %v5285_v38  ;;  %v5335_v37 = vld [vmem:[%s5658_s26 + $0x438] sm:$0xff]  }
  0x6b   : > { %v5336_v38 = vld [vmem:[%s5658_s26 + $0x4b8] sm:$0xff]  }
  0x6c   : > { %4774 = vmatpush3.bf16.msra.mxu0 %v5286_v39  ;;  %v1022_v39 = vcombine.high %v1006_v34, %v1006_v34 }
  0x6d   : > { %4775 = vmatprep.subr.bf16.mxu0 %v5288_v41  ;;  %4796 = vmatpush3.bf16.msra.mxu1 %v5287_v40  ;;  %v5337_v40 = vld [vmem:[%s5658_s26 + $0x470] sm:$0xff]  }
  0x6e   : > { %4797 = vmatprep.subr.bf16.mxu1 %v5289_v43  ;;  %v5338_v41 = vld [vmem:[%s5658_s26 + $0x4f0] sm:$0xff]  }
  0x6f   : > { %v5339_v43 = vld [vmem:[%s5658_s26 + $0x430] sm:$0xff]  }
  0x70   : > { %4776 = vmatpush3.bf16.msra.mxu0 %v5290_v44  ;;  %v5340_v44 = vld [vmem:[%s5658_s26 + $0x4b0] sm:$0xff]  }
  0x71   : > { %4777 = vmatprep.subr.bf16.mxu0 %v5292_v46  ;;  %4798 = vmatpush3.bf16.msra.mxu1 %v5291_v45  ;;  %v5341_v45 = vld [vmem:[%s5658_s26 + $0x468] sm:$0xff]  }
  0x72   : > { %4799 = vmatprep.subr.bf16.mxu1 %v5293_v48  ;;  %v5342_v46 = vld [vmem:[%s5658_s26 + $0x4e8] sm:$0xff]  }
  0x73   : > { %v5344_v48 = vld [vmem:[%s5658_s26 + $0x4a8] sm:$0xff]  }
  0x74   : > { %4778 = vmatpush3.bf16.msra.mxu0 %v5294_v51  ;;  %v5347_v51 = vld [vmem:[%s5658_s26 + $0x420] sm:$0xff]  }
  0x75   : > { %4779 = vmatprep.subr.bf16.mxu0 %v5296_v55  ;;  %4800 = vmatpush3.bf16.msra.mxu1 %v5295_v52  ;;  %v5348_v52 = vld [vmem:[%s5658_s26 + $0x4a0] sm:$0xff]   ;;  %v5351_v55 = vld [vmem:[%s5658_s26 + $0x418] sm:$0xff]  }
  0x76   : > { %4801 = vmatprep.subr.bf16.mxu1 %v5297_v56  ;;  %v5352_v56 = vld [vmem:[%s5658_s26 + $0x498] sm:$0xff]  }
  0x78   : > { %4780 = vmatpush3.bf16.msra.mxu0 %v5298_v59  ;;  %v5355_v59 = vld [vmem:[%s5658_s26 + $0x410] sm:$0xff]  }
  0x79   : > { %4809 = vmatprep.subr.bf16.mxu0 %v5300_v63  ;;  %4802 = vmatpush3.bf16.msra.mxu1 %v5299_v60  ;;  %v5356_v60 = vld [vmem:[%s5658_s26 + $0x490] sm:$0xff]   ;;  %v5358_v63 = vld [vmem:[%s5658_s26 + $0x4c8] sm:$0xff]  }
  0x7a   : > { %4831 = vmatprep.subr.bf16.mxu1 %v5301_v0 }
  0x7b   : > { %3545 = vmatmul.mubr.bf16.vlgmr.msra.gmra.mxu0 %v999_v62  ;;  %v213_v62 = vld [vmem:[%s5653_s22 + $0x10] sm:$0xff] }
  0x7c   : > { %4810 = vmatpush3.bf16.msra.mxu0 %v5302_v2  ;;  %3624 = vmatprep.mubr.bf16.mxu0 %v1020_v1  ;;  %v1032_v0 = vrot.slane %v213_v62, %v5702_v42  ;;  %v1025_v1 = vcombine.high %v213_v62, %v213_v62  ;;  %v5359_v2 = vld [vmem:[%s5658_s26 + $0x408] sm:$0xff]  }
  0x7d   : > { %3585 = vmatmul.mubr.bf16.vlgmr.msra.gmra.mxu1 %v1021_v4  ;;  %4811 = vmatprep.subr.bf16.mxu0 %v5304_v5  ;;  %v5408_v62 = vld [vmem:[%s5658_s26 + $0x628] sm:$0xff]  }
  0x7e   : > { %4832 = vmatpush3.bf16.msra.mxu1 %v5303_v3  ;;  %3664 = vmatprep.mubr.bf16.mxu1 %v1024_v7  ;;  %v5360_v3 = vld [vmem:[%s5658_s26 + $0x488] sm:$0xff]   ;;  %v1040_v4 = vcombine.high %v1032_v0, %v1032_v0  ;;  %v5852_v5 = vrot.slane %v1025_v1, %v5702_v42  ;;  %v5362_v7 = vld [vmem:[%s5658_s26 + $0x4c0] sm:$0xff]  }
  0x7f   : > { %4833 = vmatprep.subr.bf16.mxu1 %v5305_v6  ;;  %v5361_v6 = vld [vmem:[%s5658_s26 + $0x440] sm:$0xff]  }
  0x80   : > { %4812 = vmatpush3.bf16.msra.mxu0 %v5306_v8  ;;  %v1062_v8 = vrot.slane %v1040_v4, %v5702_v42  ;;  %v5411_v1 = vld [vmem:[%s5658_s26 + $0x6e0] sm:$0xff]   ;;  %v5414_v4 = vld [vmem:[%s5658_s26 + $0x658] sm:$0xff]  }
  0x81   : > { %4813 = vmatprep.subr.bf16.mxu0 %v5308_v10  ;;  %v5363_v10 = vld [vmem:[%s5658_s26 + $0x400] sm:$0xff]  }
  0x82   : > { %4834 = vmatpush3.bf16.msra.mxu1 %v5307_v9  ;;  %v1041_v9 = vcombine.high %v5852_v5, %v5852_v5 }
  0x83   : > { %4835 = vmatprep.subr.bf16.mxu1 %v5309_v11  ;;  %v5364_v11 = vld [vmem:[%s5658_s26 + $0x480] sm:$0xff]  }
  0x84   : > { %4814 = vmatpush3.bf16.msra.mxu0 %v5310_v12  ;;  %v1072_v12 = vcombine.high %v1062_v8, %v1062_v8 }
  0x85   : > { %4815 = vmatprep.subr.bf16.mxu0 %v5312_v14  ;;  %v5365_v14 = vld [vmem:[%s5658_s26 + $0x578] sm:$0xff]  }
  0x86   : > { %4836 = vmatpush3.bf16.msra.mxu1 %v5311_v13  ;;  %v1048_v13 = vrot.slane %v1032_v0, %v5702_v42  ;;  %v5410_v0 = vld [vmem:[%s5658_s26 + $0x660] sm:$0xff]  }
  0x87   : > { %4837 = vmatprep.subr.bf16.mxu1 %v5313_v15  ;;  %v5366_v15 = vld [vmem:[%s5658_s26 + $0x5f8] sm:$0xff]  }
  0x88   : > { %4816 = vmatpush3.bf16.msra.mxu0 %v5314_v16  ;;  %v1069_v16 = vrot.slane %v1041_v9, %v5702_v42  ;;  %v5419_v9 = vld [vmem:[%s5658_s26 + $0x6d0] sm:$0xff]  }
  0x89   : > { %4817 = vmatprep.subr.bf16.mxu0 %v5316_v18  ;;  %v5368_v18 = vld [vmem:[%s5658_s26 + $0x5b8] sm:$0xff]  }
  0x8a   : > { %4838 = vmatpush3.bf16.msra.mxu1 %v5315_v17  ;;  %v5367_v17 = vld [vmem:[%s5658_s26 + $0x538] sm:$0xff]  }
  0x8b   : > { %4839 = vmatprep.subr.bf16.mxu1 %v5317_v19  ;;  %v1070_v19 = vcombine.high %v1048_v13, %v1048_v13 }
  0x8c   : > { %4818 = vmatpush3.bf16.msra.mxu0 %v5318_v20  ;;  %v5369_v20 = vld [vmem:[%s5658_s26 + $0x570] sm:$0xff]  }
  0x8d   : > { %4819 = vmatprep.subr.bf16.mxu0 %v5320_v22  ;;  %v1073_v22 = vcombine.high %v1069_v16, %v1069_v16 }
  0x8e   : > { %4840 = vmatpush3.bf16.msra.mxu1 %v5319_v21  ;;  %v5370_v21 = vld [vmem:[%s5658_s26 + $0x5f0] sm:$0xff]  }
  0x8f   : > { %4841 = vmatprep.subr.bf16.mxu1 %v5321_v23  ;;  %v5371_v23 = vld [vmem:[%s5658_s26 + $0x530] sm:$0xff]  }
  0x90   : > { %4820 = vmatpush3.bf16.msra.mxu0 %v5322_v24  ;;  %v5372_v24 = vld [vmem:[%s5658_s26 + $0x5b0] sm:$0xff]  }
  0x91   : > { %4821 = vmatprep.subr.bf16.mxu0 %v5324_v26  ;;  %v5374_v26 = vld [vmem:[%s5658_s26 + $0x5e8] sm:$0xff]  }
  0x92   : > { %4842 = vmatpush3.bf16.msra.mxu1 %v5323_v25  ;;  %v5373_v25 = vld [vmem:[%s5658_s26 + $0x568] sm:$0xff]  }
  0x93   : > { %4843 = vmatprep.subr.bf16.mxu1 %v5325_v27  ;;  %v5375_v27 = vld [vmem:[%s5658_s26 + $0x528] sm:$0xff]  }
  0x94   : > { %4822 = vmatpush3.bf16.msra.mxu0 %v5326_v28  ;;  %v5376_v28 = vld [vmem:[%s5658_s26 + $0x5a8] sm:$0xff]  }
  0x95   : > { %4823 = vmatprep.subr.bf16.mxu0 %v5328_v30  ;;  %v5378_v30 = vld [vmem:[%s5658_s26 + $0x5e0] sm:$0xff]  }
  0x96   : > { %4844 = vmatpush3.bf16.msra.mxu1 %v5327_v29  ;;  %v5377_v29 = vld [vmem:[%s5658_s26 + $0x560] sm:$0xff]  }
  0x97   : > { %4845 = vmatprep.subr.bf16.mxu1 %v5329_v31  ;;  %v5379_v31 = vld [vmem:[%s5658_s26 + $0x520] sm:$0xff]  }
  0x98   : > { %4824 = vmatpush3.bf16.msra.mxu0 %v5330_v32  ;;  %v5380_v32 = vld [vmem:[%s5658_s26 + $0x5a0] sm:$0xff]  }
  0x99   : > { %4853 = vmatprep.subr.bf16.mxu0 %v5333_v35  ;;  %v5383_v35 = vld [vmem:[%s5658_s26 + $0x518] sm:$0xff]  }
  0x9a   : > { %4846 = vmatpush3.bf16.msra.mxu1 %v5331_v33  ;;  %v5381_v33 = vld [vmem:[%s5658_s26 + $0x558] sm:$0xff]  }
  0x9b   : > { %3625 = vmatmul.mubr.bf16.vlgmr.msra.gmra.mxu0 %v1006_v34  ;;  %4875 = vmatprep.subr.bf16.mxu1 %v5334_v36  ;;  %v5382_v34 = vld [vmem:[%s5658_s26 + $0x5d8] sm:$0xff]  }
  0x9c   : > { %4854 = vmatpush3.bf16.msra.mxu0 %v5335_v37  ;;  %3704 = vmatprep.mubr.bf16.mxu0 %v1062_v8  ;;  %v5384_v36 = vld [vmem:[%s5658_s26 + $0x598] sm:$0xff]   ;;  %v5385_v37 = vld [vmem:[%s5658_s26 + $0x550] sm:$0xff]  }
  0x9d   : > { %3665 = vmatmul.mubr.bf16.vlgmr.msra.gmra.mxu1 %v1022_v39  ;;  %4855 = vmatprep.subr.bf16.mxu0 %v5337_v40  ;;  %v5387_v39 = vld [vmem:[%s5658_s26 + $0x510] sm:$0xff]  }
  0x9e   : > { %4876 = vmatpush3.bf16.msra.mxu1 %v5336_v38  ;;  %3744 = vmatprep.mubr.bf16.mxu1 %v1072_v12  ;;  %v5386_v38 = vld [vmem:[%s5658_s26 + $0x5d0] sm:$0xff]   ;;  %v5422_v12 = vld [vmem:[%s5658_s26 + $0x648] sm:$0xff]  }
  0x9f   : > { %4877 = vmatprep.subr.bf16.mxu1 %v5338_v41  ;;  %v5388_v40 = vld [vmem:[%s5658_s26 + $0x590] sm:$0xff]   ;;  %v5389_v41 = vld [vmem:[%s5658_s26 + $0x548] sm:$0xff]  }
  0xa0   : > { %4856 = vmatpush3.bf16.msra.mxu0 %v5339_v43  ;;  %v5390_v43 = vld [vmem:[%s5658_s26 + $0x5c8] sm:$0xff]   ;;  %v5418_v8 = vld [vmem:[%s5658_s26 + $0x650] sm:$0xff]  }
  0xa1   : > { %4857 = vmatprep.subr.bf16.mxu0 %v5341_v45  ;;  %v5392_v45 = vld [vmem:[%s5658_s26 + $0x588] sm:$0xff]  }
  0xa2   : > { %4878 = vmatpush3.bf16.msra.mxu1 %v5340_v44  ;;  %v5391_v44 = vld [vmem:[%s5658_s26 + $0x508] sm:$0xff]  }
  0xa3   : > { %4879 = vmatprep.subr.bf16.mxu1 %v5342_v46  ;;  %v5393_v46 = vld [vmem:[%s5658_s26 + $0x540] sm:$0xff]  }
  0xa4   : > { %4858 = vmatpush3.bf16.msra.mxu0 %v5343_v47  ;;  %v5394_v47 = vld [vmem:[%s5658_s26 + $0x5c0] sm:$0xff]  }
  0xa5   : > { %4859 = vmatprep.subr.bf16.mxu0 %v5345_v49  ;;  %v5396_v49 = vld [vmem:[%s5658_s26 + $0x580] sm:$0xff]  }
  0xa6   : > { %4880 = vmatpush3.bf16.msra.mxu1 %v5344_v48  ;;  %v5395_v48 = vld [vmem:[%s5658_s26 + $0x500] sm:$0xff]  }
  0xa7   : > { %4881 = vmatprep.subr.bf16.mxu1 %v5346_v50  ;;  %v1055_v50 = vrot.slane %v5852_v5, %v5702_v42  ;;  %v5415_v5 = vld [vmem:[%s5658_s26 + $0x6d8] sm:$0xff]  }
  0xa8   : > { %4860 = vmatpush3.bf16.msra.mxu0 %v5347_v51  ;;  %v5398_v51 = vld [vmem:[%s5658_s26 + $0x678] sm:$0xff]  }
  0xa9   : > { %4861 = vmatprep.subr.bf16.mxu0 %v5349_v53  ;;  %v5400_v53 = vld [vmem:[%s5658_s26 + $0x638] sm:$0xff]  }
  0xaa   : > { %4882 = vmatpush3.bf16.msra.mxu1 %v5348_v52  ;;  %v5399_v52 = vld [vmem:[%s5658_s26 + $0x6f8] sm:$0xff]  }
  0xab   : > { %4883 = vmatprep.subr.bf16.mxu1 %v5350_v54  ;;  %v5401_v54 = vld [vmem:[%s5658_s26 + $0x6b8] sm:$0xff]  }
  0xac   : > { %4862 = vmatpush3.bf16.msra.mxu0 %v5351_v55  ;;  %v1071_v55 = vcombine.high %v1055_v50, %v1055_v50 }
  0xad   : > { %4863 = vmatprep.subr.bf16.mxu0 %v5353_v57  ;;  %v5403_v57 = vld [vmem:[%s5658_s26 + $0x6f0] sm:$0xff]  }
  0xae   : > { %4884 = vmatpush3.bf16.msra.mxu1 %v5352_v56  ;;  %v5402_v56 = vld [vmem:[%s5658_s26 + $0x670] sm:$0xff]  }
  0xaf   : > { %4885 = vmatprep.subr.bf16.mxu1 %v5354_v58  ;;  %v5404_v58 = vld [vmem:[%s5658_s26 + $0x630] sm:$0xff]  }
  0xb0   : > { %4864 = vmatpush3.bf16.msra.mxu0 %v5355_v59  ;;  %v5405_v59 = vld [vmem:[%s5658_s26 + $0x6b0] sm:$0xff]  }
  0xb1   : > { %4865 = vmatprep.subr.bf16.mxu0 %v5357_v61  ;;  %v5407_v61 = vld [vmem:[%s5658_s26 + $0x6e8] sm:$0xff]  }
  0xb2   : > { %4886 = vmatpush3.bf16.msra.mxu1 %v5356_v60  ;;  %v5406_v60 = vld [vmem:[%s5658_s26 + $0x668] sm:$0xff]  }
  0xb3   : > { %4887 = vmatprep.subr.bf16.mxu1 %v5358_v63  ;;  %v5409_v63 = vld [vmem:[%s5658_s26 + $0x6a8] sm:$0xff]  }
  0xb4   : > { %4866 = vmatpush3.bf16.msra.mxu0 %v5359_v2  ;;  %v5412_v2 = vld [vmem:[%s5658_s26 + $0x620] sm:$0xff]  }
  0xb5   : > { %4867 = vmatprep.subr.bf16.mxu0 %v5361_v6  ;;  %v5416_v6 = vld [vmem:[%s5658_s26 + $0x618] sm:$0xff]  }
  0xb6   : > { %4888 = vmatpush3.bf16.msra.mxu1 %v5360_v3  ;;  %v5413_v3 = vld [vmem:[%s5658_s26 + $0x6a0] sm:$0xff]  }
  0xb7   : > { %4889 = vmatprep.subr.bf16.mxu1 %v5362_v7  ;;  %v5417_v7 = vld [vmem:[%s5658_s26 + $0x698] sm:$0xff]  }
  0xb8   : > { %4868 = vmatpush3.bf16.msra.mxu0 %v5363_v10  ;;  %v5420_v10 = vld [vmem:[%s5658_s26 + $0x610] sm:$0xff]  }
  0xb9   : > { %4897 = vmatprep.subr.bf16.mxu0 %v5365_v14  ;;  %v5423_v14 = vld [vmem:[%s5658_s26 + $0x6c8] sm:$0xff]  }
  0xba   : > { %4890 = vmatpush3.bf16.msra.mxu1 %v5364_v11  ;;  %v5421_v11 = vld [vmem:[%s5658_s26 + $0x690] sm:$0xff]  }
  0xbb   : > { %3705 = vmatmul.mubr.bf16.vlgmr.msra.gmra.mxu0 %v1048_v13  ;;  %4919 = vmatprep.subr.bf16.mxu1 %v5366_v15  ;;  %v214_v13 = vld [vmem:[%s5653_s22 + $0x18] sm:$0xff] }
  0xbc   : > { %4898 = vmatpush3.bf16.msra.mxu0 %v5367_v17  ;;  %3784 = vmatprep.mubr.bf16.mxu0 %v1069_v16  ;;  %v1081_v15 = vrot.slane %v214_v13, %v5702_v42  ;;  %v1074_v16 = vcombine.high %v214_v13, %v214_v13  ;;  %v5424_v17 = vld [vmem:[%s5658_s26 + $0x608] sm:$0xff]   ;;  %v5461_v13 = vld [vmem:[%s5658_s26 + $0x780] sm:$0xff]  }
  0xbd   : > { %3745 = vmatmul.mubr.bf16.vlgmr.msra.gmra.mxu1 %v1070_v19  ;;  %4899 = vmatprep.subr.bf16.mxu0 %v5369_v20 }
  0xbe   : > { %4920 = vmatpush3.bf16.msra.mxu1 %v5368_v18  ;;  %3824 = vmatprep.mubr.bf16.mxu1 %v1073_v22  ;;  %v5426_v18 = vld [vmem:[%s5658_s26 + $0x640] sm:$0xff]   ;;  %v1089_v19 = vcombine.high %v1081_v15, %v1081_v15  ;;  %v5928_v20 = vrot.slane %v1074_v16, %v5702_v42 }
  0xbf   : > { %4921 = vmatprep.subr.bf16.mxu1 %v5370_v21  ;;  %v5425_v21 = vld [vmem:[%s5658_s26 + $0x688] sm:$0xff]   ;;  %v5427_v22 = vld [vmem:[%s5658_s26 + $0x6c0] sm:$0xff]  }
  0xc0   : > { %4900 = vmatpush3.bf16.msra.mxu0 %v5371_v23  ;;  %v1111_v23 = vrot.slane %v1089_v19, %v5702_v42 }
  0xc1   : > { %4901 = vmatprep.subr.bf16.mxu0 %v5373_v25  ;;  %v5428_v25 = vld [vmem:[%s5658_s26 + $0x600] sm:$0xff]  }
  0xc2   : > { %4922 = vmatpush3.bf16.msra.mxu1 %v5372_v24  ;;  %v1090_v24 = vcombine.high %v5928_v20, %v5928_v20 }
  0xc3   : > { %4923 = vmatprep.subr.bf16.mxu1 %v5374_v26  ;;  %v1121_v26 = vcombine.high %v1111_v23, %v1111_v23 }
  0xc4   : > { %4902 = vmatpush3.bf16.msra.mxu0 %v5375_v27  ;;  %v1097_v27 = vrot.slane %v1081_v15, %v5702_v42  ;;  %v5465_v15 = vld [vmem:[%s5658_s26 + $0x838] sm:$0xff]  }
  0xc5   : > { %4903 = vmatprep.subr.bf16.mxu0 %v5377_v29  ;;  %v5429_v29 = vld [vmem:[%s5658_s26 + $0x680] sm:$0xff]  }
  0xc6   : > { %4924 = vmatpush3.bf16.msra.mxu1 %v5376_v28  ;;  %v5430_v28 = vld [vmem:[%s5658_s26 + $0x778] sm:$0xff]  }
  0xc7   : > { %4925 = vmatprep.subr.bf16.mxu1 %v5378_v30  ;;  %v1118_v30 = vrot.slane %v1090_v24, %v5702_v42  ;;  %v5471_v24 = vld [vmem:[%s5658_s26 + $0x868] sm:$0xff]  }
  0xc8   : > { %4904 = vmatpush3.bf16.msra.mxu0 %v5379_v31  ;;  %v5431_v31 = vld [vmem:[%s5658_s26 + $0x7f8] sm:$0xff]  }
  0xc9   : > { %4905 = vmatprep.subr.bf16.mxu0 %v5381_v33  ;;  %v1119_v33 = vcombine.high %v1097_v27, %v1097_v27 }
  0xca   : > { %4926 = vmatpush3.bf16.msra.mxu1 %v5380_v32  ;;  %v5432_v32 = vld [vmem:[%s5658_s26 + $0x738] sm:$0xff]  }
  0xcb   : > { %4927 = vmatprep.subr.bf16.mxu1 %v5382_v34  ;;  %v5434_v34 = vld [vmem:[%s5658_s26 + $0x770] sm:$0xff]  }
  0xcc   : > { %4906 = vmatpush3.bf16.msra.mxu0 %v5383_v35  ;;  %v5433_v35 = vld [vmem:[%s5658_s26 + $0x7b8] sm:$0xff]  }
  0xcd   : > { %4907 = vmatprep.subr.bf16.mxu0 %v5385_v37 }
  0xce   : > { %4928 = vmatpush3.bf16.msra.mxu1 %v5384_v36  ;;  %v1122_v36 = vcombine.high %v1118_v30, %v1118_v30 }
  0xcf   : > { %4929 = vmatprep.subr.bf16.mxu1 %v5386_v38  ;;  %v5435_v38 = vld [vmem:[%s5658_s26 + $0x7f0] sm:$0xff]  }
  0xd0   : > { %4908 = vmatpush3.bf16.msra.mxu0 %v5387_v39  ;;  %v5436_v39 = vld [vmem:[%s5658_s26 + $0x730] sm:$0xff]  }
  0xd1   : > { %4909 = vmatprep.subr.bf16.mxu0 %v5389_v41 }
  0xd2   : > { %4930 = vmatpush3.bf16.msra.mxu1 %v5388_v40 }
  0xd3   : > { %4931 = vmatprep.subr.bf16.mxu1 %v5390_v43  ;;  %v5438_v43 = vld [vmem:[%s5658_s26 + $0x768] sm:$0xff]  }
  0xd4   : > { %4910 = vmatpush3.bf16.msra.mxu0 %v5391_v44 }
  0xd5   : > { %4911 = vmatprep.subr.bf16.mxu0 %v5393_v46 }
  0xd6   : > { %4932 = vmatpush3.bf16.msra.mxu1 %v5392_v45  ;;  %v5437_v45 = vld [vmem:[%s5658_s26 + $0x7b0] sm:$0xff]  }
  0xd7   : > { %4933 = vmatprep.subr.bf16.mxu1 %v5394_v47 }
  0xd8   : > { %4912 = vmatpush3.bf16.msra.mxu0 %v5395_v48  ;;  %v5439_v48 = vld [vmem:[%s5658_s26 + $0x7e8] sm:$0xff]  }
  0xd9   : > { %4941 = vmatprep.subr.bf16.mxu0 %v5398_v51 }
  0xda   : > { %4934 = vmatpush3.bf16.msra.mxu1 %v5396_v49 }
  0xdb   : > { %3785 = vmatmul.mubr.bf16.vlgmr.msra.gmra.mxu0 %v1055_v50  ;;  %4963 = vmatprep.subr.bf16.mxu1 %v5399_v52  ;;  %v5440_v50 = vld [vmem:[%s5658_s26 + $0x728] sm:$0xff]  }
  0xdc   : > { %4942 = vmatpush3.bf16.msra.mxu0 %v5400_v53  ;;  %3864 = vmatprep.mubr.bf16.mxu0 %v1111_v23  ;;  %v5442_v53 = vld [vmem:[%s5658_s26 + $0x760] sm:$0xff]  }
  0xdd   : > { %3825 = vmatmul.mubr.bf16.vlgmr.msra.gmra.mxu1 %v1071_v55  ;;  %4943 = vmatprep.subr.bf16.mxu0 %v5402_v56  ;;  %v5441_v55 = vld [vmem:[%s5658_s26 + $0x7a8] sm:$0xff]  }
  0xde   : > { %4964 = vmatpush3.bf16.msra.mxu1 %v5401_v54  ;;  %3904 = vmatprep.mubr.bf16.mxu1 %v1121_v26  ;;  %v5470_v26 = vld [vmem:[%s5658_s26 + $0x8b0] sm:$0xff]  }
  0xdf   : > { %4965 = vmatprep.subr.bf16.mxu1 %v5403_v57  ;;  %v5443_v57 = vld [vmem:[%s5658_s26 + $0x7e0] sm:$0xff]  }
  0xe0   : > { %4944 = vmatpush3.bf16.msra.mxu0 %v5404_v58  ;;  %v5444_v58 = vld [vmem:[%s5658_s26 + $0x720] sm:$0xff]  }
  0xe1   : > { %4945 = vmatprep.subr.bf16.mxu0 %v5406_v60  ;;  %v5445_v60 = vld [vmem:[%s5658_s26 + $0x7a0] sm:$0xff]  }
  0xe2   : > { %4966 = vmatpush3.bf16.msra.mxu1 %v5405_v59  ;;  %v5446_v59 = vld [vmem:[%s5658_s26 + $0x758] sm:$0xff]  }
  0xe3   : > { %4967 = vmatprep.subr.bf16.mxu1 %v5407_v61  ;;  %v5447_v61 = vld [vmem:[%s5658_s26 + $0x7d8] sm:$0xff]  }
  0xe4   : > { %4946 = vmatpush3.bf16.msra.mxu0 %v5408_v62  ;;  %v5448_v62 = vld [vmem:[%s5658_s26 + $0x718] sm:$0xff]  }
  0xe5   : > { %4947 = vmatprep.subr.bf16.mxu0 %v5410_v0  ;;  %v5449_v0 = vld [vmem:[%s5658_s26 + $0x798] sm:$0xff]  }
  0xe6   : > { %4968 = vmatpush3.bf16.msra.mxu1 %v5409_v63  ;;  %v5450_v63 = vld [vmem:[%s5658_s26 + $0x750] sm:$0xff]  }
  0xe7   : > { %4969 = vmatprep.subr.bf16.mxu1 %v5411_v1  ;;  %v5451_v1 = vld [vmem:[%s5658_s26 + $0x7d0] sm:$0xff]  }
  0xe8   : > { %4948 = vmatpush3.bf16.msra.mxu0 %v5412_v2  ;;  %v5452_v2 = vld [vmem:[%s5658_s26 + $0x710] sm:$0xff]  }
  0xe9   : > { %4949 = vmatprep.subr.bf16.mxu0 %v5414_v4  ;;  %v5453_v4 = vld [vmem:[%s5658_s26 + $0x790] sm:$0xff]  }
  0xea   : > { %4970 = vmatpush3.bf16.msra.mxu1 %v5413_v3  ;;  %v5454_v3 = vld [vmem:[%s5658_s26 + $0x748] sm:$0xff]  }
  0xeb   : > { %4971 = vmatprep.subr.bf16.mxu1 %v5415_v5  ;;  %v5455_v5 = vld [vmem:[%s5658_s26 + $0x7c8] sm:$0xff]  }
  0xec   : > { %4950 = vmatpush3.bf16.msra.mxu0 %v5416_v6  ;;  %v5456_v6 = vld [vmem:[%s5658_s26 + $0x708] sm:$0xff]  }
  0xed   : > { %4951 = vmatprep.subr.bf16.mxu0 %v5418_v8  ;;  %v5457_v8 = vld [vmem:[%s5658_s26 + $0x788] sm:$0xff]  }
  0xee   : > { %4972 = vmatpush3.bf16.msra.mxu1 %v5417_v7  ;;  %v5458_v7 = vld [vmem:[%s5658_s26 + $0x740] sm:$0xff]  }
  0xef   : > { %4973 = vmatprep.subr.bf16.mxu1 %v5419_v9  ;;  %v5459_v9 = vld [vmem:[%s5658_s26 + $0x7c0] sm:$0xff]  }
  0xf0   : > { %4952 = vmatpush3.bf16.msra.mxu0 %v5420_v10  ;;  %v5460_v10 = vld [vmem:[%s5658_s26 + $0x700] sm:$0xff]  }
  0xf1   : > { %4953 = vmatprep.subr.bf16.mxu0 %v5422_v12  ;;  %v5463_v12 = vld [vmem:[%s5658_s26 + $0x878] sm:$0xff]  }
  0xf2   : > { %4974 = vmatpush3.bf16.msra.mxu1 %v5421_v11  ;;  %v1104_v11 = vrot.slane %v5928_v20, %v5702_v42  ;;  %v5468_v20 = vld [vmem:[%s5658_s26 + $0x8f0] sm:$0xff]  }
  0xf3   : > { %4975 = vmatprep.subr.bf16.mxu1 %v5423_v14  ;;  %v5464_v14 = vld [vmem:[%s5658_s26 + $0x8f8] sm:$0xff]  }
  0xf4   : > { %4954 = vmatpush3.bf16.msra.mxu0 %v5424_v17  ;;  %v1120_v16 = vcombine.high %v1104_v11, %v1104_v11  ;;  %v5467_v17 = vld [vmem:[%s5658_s26 + $0x870] sm:$0xff]  }
  0xf5   : > { %4955 = vmatprep.subr.bf16.mxu0 %v5426_v18  ;;  %v5466_v18 = vld [vmem:[%s5658_s26 + $0x8b8] sm:$0xff]  }
  0xf6   : > { %4976 = vmatpush3.bf16.msra.mxu1 %v5425_v21  ;;  %v5469_v21 = vld [vmem:[%s5658_s26 + $0x830] sm:$0xff]  }
  0xf7   : > { %4977 = vmatprep.subr.bf16.mxu1 %v5427_v22 }
  0xf8   : > { %4956 = vmatpush3.bf16.msra.mxu0 %v5428_v25 }
  0xf9   : > { %4985 = vmatprep.subr.bf16.mxu0 %v5430_v28 }
  0xfa   : > { %4978 = vmatpush3.bf16.msra.mxu1 %v5429_v29  ;;  %v5472_v29 = vld [vmem:[%s5658_s26 + $0x8e8] sm:$0xff]  }
  0xfb   : > { %v4693_v37 = vpop.f32.mrf.mxu0  ;;  %3865 = vmatmul.mubr.bf16.vlgmr.msra.gmra.mxu0 %v1097_v27  ;;  %5007 = vmatprep.subr.bf16.mxu1 %v5431_v31 }
  0xfc   : > { %4986 = vmatpush3.bf16.msra.mxu0 %v5432_v32  ;;  %3944 = vmatprep.mubr.bf16.mxu0 %v1118_v30  ;;  %v4715_v40 = vpop.f32.mrf.mxu1  ;;  %v5473_v32 = vld [vmem:[%s5658_s26 + $0x828] sm:$0xff]  }
  0xfd   : > { %3905 = vmatmul.mubr.bf16.vlgmr.msra.gmra.mxu1 %v1119_v33  ;;  %v4694_v41 = vpop.f32.mrf.mxu0  ;;  %4987 = vmatprep.subr.bf16.mxu0 %v5434_v34 }
  0xfe   : > { %5008 = vmatpush3.bf16.msra.mxu1 %v5433_v35  ;;  %v4695_v44 = vadd.f32 %v4694_v41, %v4693_v37  ;;  %3984 = vmatprep.mubr.bf16.mxu1 %v1122_v36  ;;  %v4716_v46 = vpop.f32.mrf.mxu1  ;;  %v5475_v35 = vld [vmem:[%s5658_s26 + $0x860] sm:$0xff]   ;;  %v5474_v37 = vld [vmem:[%s5658_s26 + $0x8a8] sm:$0xff]   ;;  %v5479_v41 = vld [vmem:[%s5658_s26 + $0x858] sm:$0xff]  }
  0xff   : > { %v4696_v47 = vpop.f32.mrf.mxu0  ;;  %5009 = vmatprep.subr.bf16.mxu1 %v5435_v38  ;;  %v4717_v49 = vadd.f32 %v4716_v46, %v4715_v40  ;;  %v5477_v40 = vld [vmem:[%s5658_s26 + $0x820] sm:$0xff]   ;;  %v5483_v46 = vld [vmem:[%s5658_s26 + $0x850] sm:$0xff]  }
 0x100   : > { %4988 = vmatpush3.bf16.msra.mxu0 %v5436_v39  ;;  %v4718_v51 = vpop.f32.mrf.mxu1  ;;  %v5476_v39 = vld [vmem:[%s5658_s26 + $0x8e0] sm:$0xff]   ;;  %v5482_v47 = vld [vmem:[%s5658_s26 + $0x898] sm:$0xff]  }
 0x101   : > { %v4697_v52 = vpop.f32.mrf.mxu0  ;;  %4989 = vmatprep.subr.bf16.mxu0 %v5438_v43  ;;  %v5951_v54 = vadd.f32 %v4717_v49, %v4695_v44  ;;  %v5478_v43 = vld [vmem:[%s5658_s26 + $0x8a0] sm:$0xff]   ;;  %v5480_v44 = vld [vmem:[%s5658_s26 + $0x8d8] sm:$0xff]   ;;  %v5485_v49 = vld [vmem:[%s5658_s26 + $0x810] sm:$0xff]  }
 0x102   : > { %5010 = vmatpush3.bf16.msra.mxu1 %v5437_v45  ;;  %v4719_v56 = vpop.f32.mrf.mxu1  ;;  %v5481_v45 = vld [vmem:[%s5658_s26 + $0x818] sm:$0xff]   ;;  %v5486_v51 = vld [vmem:[%s5658_s26 + $0x890] sm:$0xff]   ;;  %v215_v52 = vld [vmem:[%s5653_s22 + $0x20] sm:$0xff] }
 0x103   : > { %5011 = vmatprep.subr.bf16.mxu1 %v5439_v48  ;;  %v5484_v48 = vld [vmem:[%s5658_s26 + $0x8d0] sm:$0xff]   ;;  %v5489_v56 = vld [vmem:[%s5658_s26 + $0x808] sm:$0xff]  }
 0x104   : > { %4990 = vmatpush3.bf16.msra.mxu0 %v5440_v50  ;;  %v5487_v50 = vld [vmem:[%s5658_s26 + $0x848] sm:$0xff]  }
 0x105   : > { %4991 = vmatprep.subr.bf16.mxu0 %v5442_v53  ;;  %v5488_v53 = vld [vmem:[%s5658_s26 + $0x8c8] sm:$0xff]  }
 0x106   : > { %5012 = vmatpush3.bf16.msra.mxu1 %v5441_v55  ;;  %v1123_v55 = vcombine.high %v215_v52, %v215_v52 }
 0x107   : > { %5013 = vmatprep.subr.bf16.mxu1 %v5443_v57  ;;  %v5491_v57 = vld [vmem:[%s5658_s26 + $0x840] sm:$0xff]  }
 0x108   : > { %4992 = vmatpush3.bf16.msra.mxu0 %v5444_v58 }
 0x109   : > { %4993 = vmatprep.subr.bf16.mxu0 %v5446_v59  ;;  %v6009_v59 = vrot.slane %v1123_v55, %v5702_v42  ;;  %v5530_v55 = vld [vmem:[%s5658_s26 + $0xa38] sm:$0xff]  }
 0x10a   : > { %5014 = vmatpush3.bf16.msra.mxu1 %v5445_v60  ;;  %v5490_v60 = vld [vmem:[%s5658_s26 + $0x888] sm:$0xff]  }
 0x10b   : > { %5015 = vmatprep.subr.bf16.mxu1 %v5447_v61  ;;  %v5492_v61 = vld [vmem:[%s5658_s26 + $0x8c0] sm:$0xff]  }
 0x10c   : > { %4994 = vmatpush3.bf16.msra.mxu0 %v5448_v62 }
 0x10d   : > { %4995 = vmatprep.subr.bf16.mxu0 %v5450_v63  ;;  %v1139_v63 = vcombine.high %v6009_v59, %v6009_v59 }
 0x10e   : > { %5016 = vmatpush3.bf16.msra.mxu1 %v5449_v0  ;;  %v5493_v0 = vld [vmem:[%s5658_s26 + $0x800] sm:$0xff]  }
 0x10f   : > { %5017 = vmatprep.subr.bf16.mxu1 %v5451_v1 }
 0x110   : > { %4996 = vmatpush3.bf16.msra.mxu0 %v5452_v2 }
 0x111   : > { %4997 = vmatprep.subr.bf16.mxu0 %v5454_v3  ;;  %v5495_v3 = vld [vmem:[%s5658_s26 + $0x978] sm:$0xff]  }
 0x112   : > { %5018 = vmatpush3.bf16.msra.mxu1 %v5453_v4  ;;  %v5494_v4 = vld [vmem:[%s5658_s26 + $0x880] sm:$0xff]  }
 0x113   : > { %5019 = vmatprep.subr.bf16.mxu1 %v5455_v5  ;;  %v1167_v5 = vrot.slane %v1139_v63, %v5702_v42 }
 0x114   : > { %4998 = vmatpush3.bf16.msra.mxu0 %v5456_v6  ;;  %v5496_v6 = vld [vmem:[%s5658_s26 + $0x9f8] sm:$0xff]  }
 0x115   : > { %4999 = vmatprep.subr.bf16.mxu0 %v5458_v7  ;;  %v5497_v7 = vld [vmem:[%s5658_s26 + $0x938] sm:$0xff]  }
 0x116   : > { %5020 = vmatpush3.bf16.msra.mxu1 %v5457_v8 }
 0x117   : > { %5021 = vmatprep.subr.bf16.mxu1 %v5459_v9  ;;  %v5499_v9 = vld [vmem:[%s5658_s26 + $0x970] sm:$0xff]  }
 0x118   : > { %5000 = vmatpush3.bf16.msra.mxu0 %v5460_v10  ;;  %v5498_v10 = vld [vmem:[%s5658_s26 + $0x9b8] sm:$0xff]  }
 0x119   : > { %5029 = vmatprep.subr.bf16.mxu0 %v5463_v12 }
 0x11a   : > { %5022 = vmatpush3.bf16.msra.mxu1 %v5461_v13  ;;  %v5500_v13 = vld [vmem:[%s5658_s26 + $0x9f0] sm:$0xff]  }
 0x11b   : > { %v4737_v19 = vpop.f32.mrf.mxu0  ;;  %3945 = vmatmul.mubr.bf16.vlgmr.msra.gmra.mxu0 %v1104_v11  ;;  %5051 = vmatprep.subr.bf16.mxu1 %v5464_v14  ;;  %v1171_v11 = vcombine.high %v1167_v5, %v1167_v5  ;;  %v5501_v14 = vld [vmem:[%s5658_s26 + $0x930] sm:$0xff]  }
 0x11c   : > { %5030 = vmatpush3.bf16.msra.mxu0 %v5465_v15  ;;  %v4759_v22 = vpop.f32.mrf.mxu1 }
 0x11d   : > { %3985 = vmatmul.mubr.bf16.vlgmr.msra.gmra.mxu1 %v1120_v16  ;;  %v4738_v23 = vpop.f32.mrf.mxu0  ;;  %5031 = vmatprep.subr.bf16.mxu0 %v5467_v17  ;;  %v5503_v17 = vld [vmem:[%s5658_s26 + $0x968] sm:$0xff]  }
 0x11e   : > { %5052 = vmatpush3.bf16.msra.mxu1 %v5466_v18  ;;  %v4739_v25 = vadd.f32 %v4738_v23, %v4737_v19  ;;  %v4760_v27 = vpop.f32.mrf.mxu1  ;;  %v5502_v19 = vld [vmem:[%s5658_s26 + $0x9b0] sm:$0xff]  }
 0x11f   : > { %v4740_v28 = vpop.f32.mrf.mxu0  ;;  %5053 = vmatprep.subr.bf16.mxu1 %v5468_v20  ;;  %v4761_v31 = vadd.f32 %v4760_v27, %v4759_v22  ;;  %v5504_v22 = vld [vmem:[%s5658_s26 + $0x9e8] sm:$0xff]  }
 0x120   : > { %v3467_v30 = vadd.f32 %v4739_v25, %v5951_v54  ;;  %5032 = vmatpush3.bf16.msra.mxu0 %v5469_v21  ;;  %v4762_v33 = vpop.f32.mrf.mxu1  ;;  %v1130_v54 = vrot.slane %v215_v52, %v5702_v42  ;;  %v5505_v25 = vld [vmem:[%s5658_s26 + $0x928] sm:$0xff]   ;;  %v5507_v28 = vld [vmem:[%s5658_s26 + $0x960] sm:$0xff]   ;;  %v5528_v52 = vld [vmem:[%s5658_s26 + $0xa78] sm:$0xff]  }
 0x121   : > { %v4741_v34 = vpop.f32.mrf.mxu0  ;;  %5033 = vmatprep.subr.bf16.mxu0 %v5471_v24  ;;  %v5509_v33 = vld [vmem:[%s5658_s26 + $0x920] sm:$0xff]  }
 0x122   : > { %v5988_v36 = vadd.f32 %v4761_v31, %v3467_v30  ;;  %5054 = vmatpush3.bf16.msra.mxu1 %v5470_v26  ;;  %v4763_v38 = vpop.f32.mrf.mxu1  ;;  %v1138_v58 = vcombine.high %v1130_v54, %v1130_v54  ;;  %v1146_v2 = vrot.slane %v1130_v54, %v5702_v42  ;;  %v5506_v30 = vld [vmem:[%s5658_s26 + $0x9a8] sm:$0xff]   ;;  %v5511_v34 = vld [vmem:[%s5658_s26 + $0x958] sm:$0xff]  }
 0x123   : > { %5055 = vmatprep.subr.bf16.mxu1 %v5472_v29  ;;  %v5515_v38 = vld [vmem:[%s5658_s26 + $0x950] sm:$0xff]   ;;  %v5529_v54 = vld [vmem:[%s5658_s26 + $0xaf8] sm:$0xff]  }
 0x124   : > { %5034 = vmatpush3.bf16.msra.mxu0 %v5473_v32  ;;  %v1160_v62 = vrot.slane %v1138_v58, %v5702_v42  ;;  %v1168_v8 = vcombine.high %v1146_v2, %v1146_v2  ;;  %v5508_v32 = vld [vmem:[%s5658_s26 + $0x9e0] sm:$0xff]   ;;  %v5531_v58 = vld [vmem:[%s5658_s26 + $0xab8] sm:$0xff]  }
 0x125   : > { %5035 = vmatprep.subr.bf16.mxu0 %v5475_v35  ;;  %v5510_v35 = vld [vmem:[%s5658_s26 + $0x9a0] sm:$0xff]  }
 0x126   : > { %5056 = vmatpush3.bf16.msra.mxu1 %v5474_v37  ;;  %4024 = vmatprep.mubr.bf16.mxu0 %v1160_v62  ;;  %v1170_v1 = vcombine.high %v1160_v62, %v1160_v62  ;;  %v5513_v37 = vld [vmem:[%s5658_s26 + $0x918] sm:$0xff]  }
 0x127   : > { %5057 = vmatprep.subr.bf16.mxu1 %v5476_v39  ;;  %v5514_v39 = vld [vmem:[%s5658_s26 + $0x998] sm:$0xff]  }
 0x128   : > { %5036 = vmatpush3.bf16.msra.mxu0 %v5477_v40  ;;  %4064 = vmatprep.mubr.bf16.mxu1 %v1170_v1  ;;  %v5516_v40 = vld [vmem:[%s5658_s26 + $0x9d0] sm:$0xff]  }
 0x129   : > { %5037 = vmatprep.subr.bf16.mxu0 %v5479_v41  ;;  %v5517_v41 = vld [vmem:[%s5658_s26 + $0x910] sm:$0xff]  }
 0x12a   : > { %5058 = vmatpush3.bf16.msra.mxu1 %v5478_v43  ;;  %v5519_v43 = vld [vmem:[%s5658_s26 + $0x948] sm:$0xff]  }
 0x12b   : > { %5059 = vmatprep.subr.bf16.mxu1 %v5480_v44  ;;  %v5518_v44 = vld [vmem:[%s5658_s26 + $0x990] sm:$0xff]  }
 0x12c   : > { %5038 = vmatpush3.bf16.msra.mxu0 %v5481_v45  ;;  %v5520_v45 = vld [vmem:[%s5658_s26 + $0x9c8] sm:$0xff]  }
 0x12d   : > { %5039 = vmatprep.subr.bf16.mxu0 %v5483_v46  ;;  %v5521_v46 = vld [vmem:[%s5658_s26 + $0x908] sm:$0xff]  }
 0x12e   : > { %5060 = vmatpush3.bf16.msra.mxu1 %v5482_v47  ;;  %v5523_v47 = vld [vmem:[%s5658_s26 + $0x940] sm:$0xff]  }
 0x12f   : > { %5061 = vmatprep.subr.bf16.mxu1 %v5484_v48  ;;  %v5522_v48 = vld [vmem:[%s5658_s26 + $0x988] sm:$0xff]  }
 0x130   : > { %5040 = vmatpush3.bf16.msra.mxu0 %v5485_v49  ;;  %v5524_v49 = vld [vmem:[%s5658_s26 + $0x9c0] sm:$0xff]  }
 0x131   : > { %5041 = vmatprep.subr.bf16.mxu0 %v5487_v50  ;;  %v5525_v50 = vld [vmem:[%s5658_s26 + $0x900] sm:$0xff]  }
 0x132   : > { %5062 = vmatpush3.bf16.msra.mxu1 %v5486_v51  ;;  %v1153_v51 = vrot.slane %v6009_v59, %v5702_v42  ;;  %v5533_v59 = vld [vmem:[%s5658_s26 + $0xaf0] sm:$0xff]  }
 0x133   : > { %5063 = vmatprep.subr.bf16.mxu1 %v5488_v53  ;;  %v5526_v53 = vld [vmem:[%s5658_s26 + $0x980] sm:$0xff]  }
 0x134   : > { %5042 = vmatpush3.bf16.msra.mxu0 %v5489_v56  ;;  %v1169_v56 = vcombine.high %v1153_v51, %v1153_v51 }
 0x135   : > { %5043 = vmatprep.subr.bf16.mxu0 %v5491_v57  ;;  %v5532_v57 = vld [vmem:[%s5658_s26 + $0xa70] sm:$0xff]  }
 0x136   : > { %5064 = vmatpush3.bf16.msra.mxu1 %v5490_v60 }
 0x137   : > { %5065 = vmatprep.subr.bf16.mxu1 %v5492_v61  ;;  %v5534_v61 = vld [vmem:[%s5658_s26 + $0xa30] sm:$0xff]  }
 0x138   : > { %5044 = vmatpush3.bf16.msra.mxu0 %v5493_v0  ;;  %v5536_v0 = vld [vmem:[%s5658_s26 + $0xa68] sm:$0xff]  }
 0x139   : > { %5073 = vmatprep.subr.bf16.mxu0 %v5495_v3 }
 0x13a   : > { %5066 = vmatpush3.bf16.msra.mxu1 %v5494_v4 }
 0x13b   : > { %v4781_v12 = vpop.f32.mrf.mxu0  ;;  %4025 = vmatmul.mubr.bf16.vlgmr.msra.gmra.mxu0 %v1146_v2  ;;  %5095 = vmatprep.subr.bf16.mxu1 %v5496_v6  ;;  %v5535_v2 = vld [vmem:[%s5658_s26 + $0xab0] sm:$0xff]  }
 0x13c   : > { %5074 = vmatpush3.bf16.msra.mxu0 %v5497_v7  ;;  %4104 = vmatprep.mubr.bf16.mxu0 %v1167_v5  ;;  %v5537_v5 = vld [vmem:[%s5658_s26 + $0xae8] sm:$0xff]  }
 0x13d   : > { %v4803_v15 = vpop.f32.mrf.mxu1  ;;  %4065 = vmatmul.mubr.bf16.vlgmr.msra.gmra.mxu1 %v1168_v8  ;;  %v4782_v16 = vpop.f32.mrf.mxu0  ;;  %5075 = vmatprep.subr.bf16.mxu0 %v5499_v9  ;;  %v5538_v8 = vld [vmem:[%s5658_s26 + $0xa28] sm:$0xff]  }
 0x13e   : > { %5096 = vmatpush3.bf16.msra.mxu1 %v5498_v10  ;;  %v4783_v18 = vadd.f32 %v4782_v16, %v4781_v12  ;;  %4144 = vmatprep.mubr.bf16.mxu1 %v1171_v11  ;;  %v5540_v11 = vld [vmem:[%s5658_s26 + $0xa60] sm:$0xff]  }
 0x13f   : > { %v4804_v20 = vpop.f32.mrf.mxu1  ;;  %v4784_v21 = vpop.f32.mrf.mxu0  ;;  %5097 = vmatprep.subr.bf16.mxu1 %v5500_v13  ;;  %v5539_v13 = vld [vmem:[%s5658_s26 + $0xaa8] sm:$0xff]   ;;  %v5542_v16 = vld [vmem:[%s5658_s26 + $0xa20] sm:$0xff]  }
 0x140   : > { %v3547_v23 = vadd.f32 %v4783_v18, %v5988_v36  ;;  %v4805_v24 = vadd.f32 %v4804_v20, %v4803_v15  ;;  %5076 = vmatpush3.bf16.msra.mxu0 %v5501_v14  ;;  %v5512_v36 = vld [vmem:[%s5658_s26 + $0x9d8] sm:$0xff]   ;;  %v5541_v15 = vld [vmem:[%s5658_s26 + $0xae0] sm:$0xff]   ;;  %v5548_v21 = vld [vmem:[%s5658_s26 + $0xa50] sm:$0xff]  }
 0x141   : > { %v4806_v26 = vpop.f32.mrf.mxu1  ;;  %v4785_v27 = vpop.f32.mrf.mxu0  ;;  %5077 = vmatprep.subr.bf16.mxu0 %v5503_v17  ;;  %v5544_v17 = vld [vmem:[%s5658_s26 + $0xa58] sm:$0xff]   ;;  %v5543_v18 = vld [vmem:[%s5658_s26 + $0xaa0] sm:$0xff]  }
 0x142   : > { %v6033_v29 = vadd.f32 %v4805_v24, %v3547_v23  ;;  %5098 = vmatpush3.bf16.msra.mxu1 %v5502_v19  ;;  %v5545_v19 = vld [vmem:[%s5658_s26 + $0xad8] sm:$0xff]   ;;  %v5549_v23 = vld [vmem:[%s5658_s26 + $0xad0] sm:$0xff]   ;;  %v5553_v27 = vld [vmem:[%s5658_s26 + $0xac8] sm:$0xff]  }
 0x143   : > { %v4807_v31 = vpop.f32.mrf.mxu1  ;;  %5099 = vmatprep.subr.bf16.mxu1 %v5504_v22  ;;  %v5546_v20 = vld [vmem:[%s5658_s26 + $0xa18] sm:$0xff]   ;;  %v5550_v24 = vld [vmem:[%s5658_s26 + $0xa10] sm:$0xff]  }
 0x144   : > { %5078 = vmatpush3.bf16.msra.mxu0 %v5505_v25  ;;  %v5547_v22 = vld [vmem:[%s5658_s26 + $0xa98] sm:$0xff]   ;;  %v5552_v25 = vld [vmem:[%s5658_s26 + $0xa48] sm:$0xff]   ;;  %v5551_v26 = vld [vmem:[%s5658_s26 + $0xa90] sm:$0xff]  }
 0x145   : > { %5079 = vmatprep.subr.bf16.mxu0 %v5507_v28  ;;  %v4322_v28 = vld.sshfl [vmem:[%s5653_s22 + $0x28] sm:$0x33 pattern:$0x75316420]  ;;  %v5556_v31 = vld [vmem:[%s5658_s26 + $0xa40] sm:$0xff]  }
 0x146   : > { %5100 = vmatpush3.bf16.msra.mxu1 %v5506_v30  ;;  %v1179_v30 = vcombine.high %v4322_v28, %v4322_v28 }
 0x147   : > { %5101 = vmatprep.subr.bf16.mxu1 %v5508_v32  ;;  %v5555_v32 = vld [vmem:[%s5658_s26 + $0xa88] sm:$0xff]  }
 0x148   : > { %5080 = vmatpush3.bf16.msra.mxu0 %v5509_v33  ;;  %v1193_v33 = vrot.slane %v1179_v30, %v5702_v42 }
 0x149   : > { %5081 = vmatprep.subr.bf16.mxu0 %v5511_v34  ;;  %v5557_v34 = vld [vmem:[%s5658_s26 + $0xac0] sm:$0xff]  }
 0x14a   : > { %5102 = vmatpush3.bf16.msra.mxu1 %v5510_v35  ;;  %v5558_v35 = vld [vmem:[%s5658_s26 + $0xa00] sm:$0xff]  }
 0x14b   : > { %5103 = vmatprep.subr.bf16.mxu1 %v5512_v36  ;;  %v1195_v36 = vcombine.high %v1193_v33, %v1193_v33 }
 0x14c   : > { %5082 = vmatpush3.bf16.msra.mxu0 %v5513_v37  ;;  %v1186_v37 = vrot.slane %v4322_v28, %v5702_v42 }
 0x14d   : > { %5083 = vmatprep.subr.bf16.mxu0 %v5515_v38  ;;  %v5559_v38 = vld [vmem:[%s5658_s26 + $0xa80] sm:$0xff]  }
 0x14e   : > { %5104 = vmatpush3.bf16.msra.mxu1 %v5514_v39  ;;  %v1194_v39 = vcombine.high %v1186_v37, %v1186_v37 }
 0x14f   : > { %5105 = vmatprep.subr.bf16.mxu1 %v5516_v40 }
 0x150   : > { %5084 = vmatpush3.bf16.msra.mxu0 %v5517_v41 }
 0x151   : > { %5085 = vmatprep.subr.bf16.mxu0 %v5519_v43 }
 0x152   : > { %5106 = vmatpush3.bf16.msra.mxu1 %v5518_v44 }
 0x153   : > { %5107 = vmatprep.subr.bf16.mxu1 %v5520_v45 }
 0x154   : > { %5086 = vmatpush3.bf16.msra.mxu0 %v5521_v46 }
 0x155   : > { %5087 = vmatprep.subr.bf16.mxu0 %v5523_v47 }
 0x156   : > { %5108 = vmatpush3.bf16.msra.mxu1 %v5522_v48 }
 0x157   : > { %5109 = vmatprep.subr.bf16.mxu1 %v5524_v49 }
 0x158   : > { %5088 = vmatpush3.bf16.msra.mxu0 %v5525_v50 }
 0x159   : > { %5117 = vmatprep.subr.bf16.mxu0 %v5528_v52 }
 0x15a   : > { %5110 = vmatpush3.bf16.msra.mxu1 %v5526_v53 }
 0x15b   : > { %v4825_v60 = vpop.f32.mrf.mxu0  ;;  %4105 = vmatmul.mubr.bf16.vlgmr.msra.gmra.mxu0 %v1153_v51  ;;  %5139 = vmatprep.subr.bf16.mxu1 %v5529_v54 }
 0x15c   : > { %5118 = vmatpush3.bf16.msra.mxu0 %v5530_v55  ;;  %4184 = vmatprep.mubr.bf16.mxu0 %v1193_v33 }
 0x15d   : > { %v4847_v62 = vpop.f32.mrf.mxu1  ;;  %4145 = vmatmul.mubr.bf16.vlgmr.msra.gmra.mxu1 %v1169_v56  ;;  %v4826_v63 = vpop.f32.mrf.mxu0  ;;  %5119 = vmatprep.subr.bf16.mxu0 %v5532_v57 }
 0x15e   : > { %5140 = vmatpush3.bf16.msra.mxu1 %v5531_v58  ;;  %v4827_v1 = vadd.f32 %v4826_v63, %v4825_v60  ;;  %4224 = vmatprep.mubr.bf16.mxu1 %v1195_v36 }
 0x15f   : > { %v4848_v3 = vpop.f32.mrf.mxu1  ;;  %v4828_v4 = vpop.f32.mrf.mxu0  ;;  %5141 = vmatprep.subr.bf16.mxu1 %v5533_v59 }
 0x160   : > { %v3627_v6 = vadd.f32 %v4827_v1, %v6033_v29  ;;  %v4849_v7 = vadd.f32 %v4848_v3, %v4847_v62  ;;  %5120 = vmatpush3.bf16.msra.mxu0 %v5534_v61  ;;  %v5554_v29 = vld [vmem:[%s5658_s26 + $0xa08] sm:$0xff]  }
 0x161   : > { %v4850_v9 = vpop.f32.mrf.mxu1  ;;  %v4829_v10 = vpop.f32.mrf.mxu0  ;;  %5121 = vmatprep.subr.bf16.mxu0 %v5536_v0 }
 0x162   : > { %v3667_v12 = vadd.f32 %v4849_v7, %v3627_v6  ;;  %5142 = vmatpush3.bf16.msra.mxu1 %v5535_v2 }
 0x163   : > { %v4851_v14 = vpop.f32.mrf.mxu1  ;;  %5143 = vmatprep.subr.bf16.mxu1 %v5537_v5 }
 0x164   : > { %5122 = vmatpush3.bf16.msra.mxu0 %v5538_v8 }
 0x165   : > { %5123 = vmatprep.subr.bf16.mxu0 %v5540_v11 }
 0x166   : > { %5144 = vmatpush3.bf16.msra.mxu1 %v5539_v13 }
 0x167   : > { %5145 = vmatprep.subr.bf16.mxu1 %v5541_v15 }
 0x168   : > { %5124 = vmatpush3.bf16.msra.mxu0 %v5542_v16 }
 0x169   : > { %5125 = vmatprep.subr.bf16.mxu0 %v5544_v17 }
 0x16a   : > { %5146 = vmatpush3.bf16.msra.mxu1 %v5543_v18 }
 0x16b   : > { %5147 = vmatprep.subr.bf16.mxu1 %v5545_v19 }
 0x16c   : > { %5126 = vmatpush3.bf16.msra.mxu0 %v5546_v20 }
 0x16d   : > { %5127 = vmatprep.subr.bf16.mxu0 %v5548_v21 }
 0x16e   : > { %5148 = vmatpush3.bf16.msra.mxu1 %v5547_v22 }
 0x16f   : > { %5149 = vmatprep.subr.bf16.mxu1 %v5549_v23 }
 0x170   : > { %5128 = vmatpush3.bf16.msra.mxu0 %v5550_v24 }
 0x171   : > { %5129 = vmatprep.subr.bf16.mxu0 %v5552_v25 }
 0x172   : > { %5150 = vmatpush3.bf16.msra.mxu1 %v5551_v26 }
 0x173   : > { %5151 = vmatprep.subr.bf16.mxu1 %v5553_v27 }
 0x174   : > { %5130 = vmatpush3.bf16.msra.mxu0 %v5554_v29 }
 0x175   : > { %5131 = vmatprep.subr.bf16.mxu0 %v5556_v31 }
 0x176   : > { %5152 = vmatpush3.bf16.msra.mxu1 %v5555_v32 }
 0x177   : > { %5153 = vmatprep.subr.bf16.mxu1 %v5557_v34 }
 0x178   : > { %5132 = vmatpush3.bf16.msra.mxu0 %v5558_v35 }
 0x17a   : > { %5154 = vmatpush3.bf16.msra.mxu1 %v5559_v38 }
 0x17b   : > { %v4869_v40 = vpop.f32.mrf.mxu0  ;;  %4185 = vmatmul.mubr.bf16.vlgmr.msra.gmra.mxu0 %v1186_v37 }
 0x17d   : > { %v4891_v41 = vpop.f32.mrf.mxu1  ;;  %4225 = vmatmul.mubr.bf16.vlgmr.msra.gmra.mxu1 %v1194_v39  ;;  %v4870_v43 = vpop.f32.mrf.mxu0 }
 0x17e   : > { %v4871_v44 = vadd.f32 %v4870_v43, %v4869_v40 }
 0x17f   : > { %v4892_v45 = vpop.f32.mrf.mxu1  ;;  %v4872_v46 = vpop.f32.mrf.mxu0 }
 0x180   : > { %v3707_v47 = vadd.f32 %v4871_v44, %v3667_v12  ;;  %v4893_v48 = vadd.f32 %v4892_v45, %v4891_v41 }
 0x181   : > { %v4894_v49 = vpop.f32.mrf.mxu1  ;;  %v4873_v50 = vpop.f32.mrf.mxu0 }
 0x182   : > { %v3747_v42 = vadd.f32 %v4893_v48, %v3707_v47 }
 0x183   : > { %v4895_v51 = vpop.f32.mrf.mxu1 }
 0x19b   : > { %v4913_v52 = vpop.f32.mrf.mxu0 }
 0x19d   : > { %v4935_v53 = vpop.f32.mrf.mxu1  ;;  %v4914_v54 = vpop.f32.mrf.mxu0 }
 0x19e   : > { %v4915_v55 = vadd.f32 %v4914_v54, %v4913_v52 }
 0x19f   : > { %v4936_v56 = vpop.f32.mrf.mxu1  ;;  %v4916_v57 = vpop.f32.mrf.mxu0 }
 0x1a0   : > { %v3787_v58 = vadd.f32 %v4915_v55, %v3747_v42  ;;  %v4937_v60 = vadd.f32 %v4936_v56, %v4935_v53  ;;  %v210_v56 = vld [vmem:[%s5663_s30] sm:$0x3] }
 0x1a1   : > { %v4938_v59 = vpop.f32.mrf.mxu1  ;;  %v4917_v61 = vpop.f32.mrf.mxu0 }
 0x1a2   : > { %v3827_v62 = vadd.f32 %v4937_v60, %v3787_v58 }
 0x1a3   : > { %v4939_v63 = vpop.f32.mrf.mxu1 }
 0x1bb   : > { %v4957_v0 = vpop.f32.mrf.mxu0 }
 0x1bd   : > { %v4979_v1 = vpop.f32.mrf.mxu1  ;;  %v4958_v2 = vpop.f32.mrf.mxu0 }
 0x1be   : > { %v4959_v3 = vadd.f32 %v4958_v2, %v4957_v0 }
 0x1bf   : > { %v4980_v4 = vpop.f32.mrf.mxu1  ;;  %v4960_v5 = vpop.f32.mrf.mxu0 }
 0x1c0   : > { %v3867_v6 = vadd.f32 %v4959_v3, %v3827_v62  ;;  %v4981_v7 = vadd.f32 %v4980_v4, %v4979_v1 }
 0x1c1   : > { %v4982_v8 = vpop.f32.mrf.mxu1  ;;  %v4961_v9 = vpop.f32.mrf.mxu0 }
 0x1c2   : > { %v3907_v10 = vadd.f32 %v4981_v7, %v3867_v6 }
 0x1c3   : > { %v4983_v11 = vpop.f32.mrf.mxu1 }
 0x1db   : > { %v5001_v12 = vpop.f32.mrf.mxu0 }
 0x1dd   : > { %v5023_v13 = vpop.f32.mrf.mxu1  ;;  %v5002_v14 = vpop.f32.mrf.mxu0 }
 0x1de   : > { %v5003_v15 = vadd.f32 %v5002_v14, %v5001_v12 }
 0x1df   : > { %v5024_v16 = vpop.f32.mrf.mxu1  ;;  %v5004_v17 = vpop.f32.mrf.mxu0 }
 0x1e0   : > { %v3947_v18 = vadd.f32 %v5003_v15, %v3907_v10  ;;  %v5025_v19 = vadd.f32 %v5024_v16, %v5023_v13 }
 0x1e1   : > { %v5026_v20 = vpop.f32.mrf.mxu1  ;;  %v5005_v21 = vpop.f32.mrf.mxu0 }
 0x1e2   : > { %v3987_v22 = vadd.f32 %v5025_v19, %v3947_v18 }
 0x1e3   : > { %v5027_v23 = vpop.f32.mrf.mxu1 }
 0x1fb   : > { %v5045_v24 = vpop.f32.mrf.mxu0 }
 0x1fd   : > { %v5067_v25 = vpop.f32.mrf.mxu1  ;;  %v5046_v26 = vpop.f32.mrf.mxu0 }
 0x1fe   : > { %v5047_v40 = vadd.f32 %v5046_v26, %v5045_v24 }
 0x1ff   : > { %v5068_v27 = vpop.f32.mrf.mxu1  ;;  %v5048_v28 = vpop.f32.mrf.mxu0 }
 0x200   : > { %v4027_v41 = vadd.f32 %v5047_v40, %v3987_v22  ;;  %v5069_v43 = vadd.f32 %v5068_v27, %v5067_v25 }
 0x201   : > { %v5070_v29 = vpop.f32.mrf.mxu1  ;;  %v5049_v30 = vpop.f32.mrf.mxu0 }
 0x202   : > { %v4067_v45 = vadd.f32 %v5069_v43, %v4027_v41 }
 0x203   : > { %v5071_v31 = vpop.f32.mrf.mxu1 }
 0x21b   : > { %v5089_v32 = vpop.f32.mrf.mxu0 }
 0x21d   : > { %v5111_v33 = vpop.f32.mrf.mxu1  ;;  %v5090_v34 = vpop.f32.mrf.mxu0 }
 0x21e   : > { %v5091_v44 = vadd.f32 %v5090_v34, %v5089_v32 }
 0x21f   : > { %v5112_v35 = vpop.f32.mrf.mxu1  ;;  %v5092_v36 = vpop.f32.mrf.mxu0 }
 0x220   : > { %v4107_v46 = vadd.f32 %v5091_v44, %v4067_v45  ;;  %v5113_v47 = vadd.f32 %v5112_v35, %v5111_v33 }
 0x221   : > { %v5114_v37 = vpop.f32.mrf.mxu1  ;;  %v5093_v38 = vpop.f32.mrf.mxu0 }
 0x222   : > { %v4147_v42 = vadd.f32 %v5113_v47, %v4107_v46 }
 0x223   : > { %v5115_v39 = vpop.f32.mrf.mxu1 }
 0x23b   : > { %v5133_v48 = vpop.f32.mrf.mxu0 }
 0x23d   : > { %v5155_v49 = vpop.f32.mrf.mxu1  ;;  %v5134_v50 = vpop.f32.mrf.mxu0 }
 0x23e   : > { %v5135_v51 = vadd.f32 %v5134_v50, %v5133_v48 }
 0x23f   : > { %v5156_v52 = vpop.f32.mrf.mxu1  ;;  %v5136_v53 = vpop.f32.mrf.mxu0 }
 0x240   : > { %v4187_v54 = vadd.f32 %v5135_v51, %v4147_v42  ;;  %v5157_v55 = vadd.f32 %v5156_v52, %v5155_v49 }
 0x241   : > { %v5158_v57 = vpop.f32.mrf.mxu1  ;;  %v5137_v58 = vpop.f32.mrf.mxu0 }
 0x242   : > { %v4227_v60 = vadd.f32 %v5157_v55, %v4187_v54 }
 0x243   : > { %v5159_v59 = vpop.f32.mrf.mxu1 }
 0x244   : > { %v4232_v61 = vadd.f32 %v4227_v60, %v210_v56 }
 0x246   : > { %4234 = vst.msk [vmem:[%s5663_s30] sm:$0x3] %vm4233_vm1, %v4232_v61 }
 0x247 PF: > { %s12_s13 = sadd.s32 1, %s5598_s13   ;;  %s6113_s9 = smov %s5590_s11 }
 0x248   : > { %p9_p9 = scmp.ge.s32.totalorder %s12_s13, 10   ;;  %s6114_s10 = smov %s5594_s12 }
 0x249   : > { %s6115_s11 = smov %s6118_s14  ;;  %s6116_s12 = smov %s6122_s15 }
 0x24a   :  { %11 = sbr.rel (!%p9_p9) target bundleno = 3 (0x3), region = 65 }

// kernel: net_forward.7
= control target key start
LH: loop header
LB: loop body
LE: loop exit
PB: predicated region body
PF: predicated region fallthrough
CT: control target
= control target key end

     0   :  { %vm110_vm0 = vcmask 1043456   ;;  %v382_v1 = vmov 0.0   ;;  %vm383_vm1 = vmmov 0   ;;  %vm211_vm2 = vcmask 1041408   ;;  %s480_s0 = inlined_call_operand.vmem [shape: f32[2,2,120], index: 0, kind: input, shape index: {}]   ;;  %s481_s1 = inlined_call_operand.vmem [shape: f32[1,120], index: 1, kind: input, shape index: {}]   ;;  %s482_s2 = inlined_call_operand.vmem [shape: bf16[120,84], index: 2, kind: input, shape index: {}]   ;;  %s483_s3 = inlined_call_operand.vmem [shape: f32[1,84], index: 3, kind: input, shape index: {}]   ;;  %s484_s4 = inlined_call_operand.vmem [shape: bf16[84,10], index: 4, kind: input, shape index: {}]   ;;  %s485_s5 = inlined_call_operand.vmem [shape: f32[1,10], index: 5, kind: input, shape index: {}]   ;;  %s486_s6 = inlined_call_operand.hbm [shape: f32[2,10], index: 6, kind: output, shape index: {}]  }
   0x1   :  { %v346_v0 = vld [vmem:[%s482_s2 + $0x38] ss:$0 sps:$4 sm:$0xff]   ;;  %307 = vmatprep.subr.bf16.mxu0 %v382_v1  ;;  %327 = vmatprep.subr.bf16.mxu1 %v382_v1  ;;  %v347_v3 = vld [vmem:[%s482_s2 + $0x30] sm:$0xff]   ;;  %v348_v4 = vld [vmem:[%s482_s2 + $0x28] sm:$0xff]  }
   0x2   :  { %v112_v2 = vsel %vm110_vm0, %v346_v0, 0  ;;  %323 = vmatprep.mubr.msk.bf16.mxu0 %vm383_vm1, %v382_v1  ;;  %339 = vmatprep.mubr.msk.bf16.mxu1 %vm383_vm1, %v382_v1  ;;  %v354_v5 = vld [vmem:[%s484_s4 + $0x28] ss:$0 sps:$4 sm:$0x33]   ;;  %v349_v6 = vld [vmem:[%s482_s2 + $0x20] sm:$0xff]  }
   0x3   :  { %308 = vmatpush3.bf16.msra.mxu0 %v112_v2  ;;  %v213_v7 = vsel %vm211_vm2, %v354_v5, 0  ;;  %v355_v8 = vld [vmem:[%s484_s4 + $0x20] sm:$0xff]  }
   0x4   :  { %309 = vmatprep.subr.bf16.mxu0 %v382_v1  ;;  %328 = vmatpush3.bf16.msra.mxu1 %v213_v7 }
   0x5   :  { %329 = vmatprep.subr.bf16.mxu1 %v382_v1 }
   0x7   :  { %310 = vmatpush3.bf16.msra.mxu0 %v347_v3 }
   0x8   :  { %311 = vmatprep.subr.bf16.mxu0 %v382_v1 }
   0xb   :  { %312 = vmatpush3.bf16.msra.mxu0 %v348_v4 }
   0xc   :  { %313 = vmatprep.subr.bf16.mxu0 %v382_v1 }
   0xd   :  { %11 = vsyncpa [#allocation3], 0  ;;  %v350_v9 = vld [vmem:[%s482_s2 + $0x18] sm:$0xff]   ;;  %v25_v10 = vld [vmem:[%s480_s0] sm:$0x3]  ;;  %330 = vmatpush3.bf16.msra.mxu1 %v355_v8  ;;  %vm106_vm3 = vcmask 982016  }
   0xe   :  { %v271_v11 = vld [vmem:[%s480_s0 + $0x2] sm:$0x3]  ;;  %v356_v12 = vld [vmem:[%s484_s4 + $0x18] sm:$0xff]   ;;  %331 = vmatprep.subr.bf16.mxu1 %v382_v1  ;;  %v351_v14 = vld [vmem:[%s482_s2 + $0x10] sm:$0xff]   ;;  %vm207_vm4 = vcmask 687104   ;;  %s384_s8 = smov [#allocation2]  }
   0xf   :  { %314 = vmatpush3.bf16.msra.mxu0 %v349_v6  ;;  %v28_v13 = vadd.f32 %v271_v11, %v25_v10  ;;  %v272_v15 = vld [vmem:[%s481_s1] ss:$0 sm:$0xff]  ;;  %v357_v16 = vld [vmem:[%s484_s4 + $0x10] sm:$0xff]   ;;  %v352_v18 = vld [vmem:[%s482_s2 + $0x8] sm:$0xff]   ;;  %vm255_vm5 = vcmask 74752  }
  0x10   :  { %315 = vmatprep.subr.bf16.mxu0 %v382_v1  ;;  %v353_v20 = vld [vmem:[%s482_s2] sm:$0xff]   ;;  %v358_v22 = vld [vmem:[%s484_s4 + $0x8] sm:$0xff]  }
  0x11   :  { %332 = vmatpush3.bf16.msra.mxu1 %v356_v12  ;;  %v36_v17 = vadd.f32 %v272_v15, %v28_v13  ;;  %v359_v23 = vld [vmem:[%s484_s4] sm:$0xff]   ;;  %s263_s4 = sshll.u32 %s384_s8, 4  ;;  %s264_s4 = int_to_ptr.vmem [resolvable:$true] %s263_s4 }
  0x12   :  { %333 = vmatprep.subr.bf16.mxu1 %v382_v1  ;;  %v273_v24 = vld [vmem:[%s483_s3] ss:$0 sm:$0xff]  ;;  %s360_s3 = scalar_lea.vmem %s264_s4, 32  ;;  %p365_p1 = scmp.lt.s32.totalorder %s264_s4, %s264_s4 }
  0x13   :  { %316 = vmatpush3.bf16.msra.mxu0 %v350_v9  ;;  %v37_v19 = vmax.f32 %v36_v17, 0.0  ;;  %v283_v32 = vld [vmem:[%s485_s5] ss:$0 sm:$0xff]  ;;  %p361_p0 = scmp.ne.s32.totalorder %s264_s4, %s360_s3  ;;  %p366_p2 = scmp.lt.s32.totalorder %s360_s3, %s360_s3 }
  0x14   :  { %317 = vmatprep.subr.bf16.mxu0 %v382_v1 }
  0x15   :  { %334 = vmatpush3.bf16.msra.mxu1 %v357_v16  ;;  %v38_v21 = vpack.c.bf16 %v37_v19, %v37_v19  ;;  %p367_p3 = por %p366_p2, %p365_p1 }
  0x16   :  { %335 = vmatprep.subr.bf16.mxu1 %v382_v1 }
  0x17   :  { %318 = vmatpush3.bf16.msra.mxu0 %v351_v14  ;;  %p368_p4 = pnand %p367_p3, %p361_p0 }
  0x18   :  { %319 = vmatprep.subr.bf16.mxu0 %v382_v1 }
  0x19   :  { %336 = vmatpush3.bf16.msra.mxu1 %v358_v22 }
  0x1a   :  { %337 = vmatprep.subr.bf16.mxu1 %v382_v1 }
  0x1b   :  { %320 = vmatpush3.bf16.msra.mxu0 %v352_v18 }
  0x1c   :  { %321 = vmatprep.subr.bf16.mxu0 %v382_v1 }
  0x1d   :  { %338 = vmatpush3.bf16.msra.mxu1 %v359_v23 }
  0x1f   :  { %322 = vmatpush3.bf16.msra.mxu0 %v353_v20 }
  0x22   :  { %324 = vmatmul.mubr.msk.bf16.vlgmr.msra.gmra.mxu0 %vm106_vm3, %v38_v21 }
  0xe2   :  { %v148_v25 = vpop.f32.mrf.mxu0 }
  0xe3   :  { %v149_v26 = vadd.f32 %v273_v24, %v148_v25 }
  0xe4   :  { %v325_v27 = vpop.f32.mrf.mxu0 }
  0xe5   :  { %v154_v28 = vmax.f32 %v149_v26, 0.0 }
  0xe6   :  { %v151_v29 = vpop.f32.mrf.mxu0 }
  0xe7   :  { %v155_v30 = vpack.c.bf16 %v154_v28, %v154_v28 }
  0xe8   :  { %v326_v31 = vpop.f32.mrf.mxu0 }
  0xe9   :  { %340 = vmatmul.mubr.msk.bf16.vlgmr.msra.gmra.mxu1 %vm207_vm4, %v155_v30 }
 0x1a9   :  { %v249_v33 = vpop.f32.mrf.mxu1 }
 0x1aa   :  { %v250_v34 = vadd.f32 %v283_v32, %v249_v33 }
 0x1ab   :  { %v341_v35 = vpop.f32.mrf.mxu1 }
 0x1ac   :  { %256 = vst.msk [vmem:[#allocation2] sm:$0x3] %vm255_vm5, %v250_v34 }
 0x1ad   :  { %v252_v36 = vpop.f32.mrf.mxu1 }
 0x1ae   :  { %371 = shalt.err (!%p368_p4)
}
 0x1af   :  { %266 = dma.vmem_to_hbm [thread:$0]  %s264_s4, 32, %s486_s6, [#allocation3]   ;;  %v342_v37 = vpop.f32.mrf.mxu1 }
 0x1b0   :  { %380 = dma.done.wait [#allocation3], 32  }
 0x1b1   :  { %381 = vsyncadd [#allocation3], 4294967264 }
 0x1b2   :  { %270 = vsyncpa [#allocation3], 1 }

</bundles_post_ra>
